<compile_context>
chip_gen: v7x
topology: tpu7x:2x2x1
jax: 0.10.0
libtpu: 0.0.40
codegen_flags: <defaults>
</compile_context>

<pallas_src>
import functools
import math

import jax
import jax.numpy as jnp
from jax.experimental import pallas as pl
from jax.experimental.pallas import tpu as pltpu


# ---------------------------------------------------------------------------
# Helpers
# ---------------------------------------------------------------------------
def _round_up(x, m):
    return (x + m - 1) // m * m


def _ln(x, w, b, eps=1e-5):
    """LayerNorm over the last axis (matches torch.nn.LayerNorm defaults)."""
    mu = jnp.mean(x, axis=-1, keepdims=True)
    var = jnp.mean((x - mu) ** 2, axis=-1, keepdims=True)
    return (x - mu) * jax.lax.rsqrt(var + eps) * w + b


def _pick_bt(batch, block_b):
    """Largest divisor of `batch` <= block_b, preferring >= 2 grid steps."""
    divisors = [d for d in range(1, min(batch, block_b) + 1) if batch % d == 0]
    bt = max(divisors)
    if batch // bt < 2:
        two_plus = [d for d in divisors if batch // d >= 2]
        if two_plus:
            bt = max(two_plus)
    return bt


def _vmem_limit_bytes():
    """Generation-aware VMEM limit: raise over the scoped default but leave
    ~16 MiB headroom below physical capacity (v7x has only 64 MiB per TC)."""
    cap = None
    try:
        cap = getattr(pltpu.get_tpu_info(), "vmem_capacity_bytes", None)
    except Exception:
        cap = None
    if not cap:
        cap = 64 * 1024 * 1024            # conservative: v7x per-TC capacity
    return max(32 * 1024 * 1024,
               min(cap - 16 * 1024 * 1024, 64 * 1024 * 1024))


# ---------------------------------------------------------------------------
# Fused transformer-stack kernel: grid = (batch_tiles, num_layers)
# ---------------------------------------------------------------------------
def _encoder_kernel(x_ref,
                    ln1_w, ln1_b,
                    w_qkv, b_qkv, w_o, b_o,
                    ln2_w, ln2_b,
                    w_fc, b_fc, w_pr, b_pr,
                    o_ref,
                    x_acc, *, num_heads):
    l = pl.program_id(1)
    bt, S, D = x_acc.shape
    dh = D // num_heads

    # Load the bf16 residual stream from HBM once per batch tile.
    @pl.when(l == 0)
    def _():
        x_acc[...] = x_ref[...].astype(jnp.float32)

    x = x_acc[...]                                     # (bt, S, D) f32

    # Causal mask built in-kernel (matches torch build_attention_mask; also
    # masks the padded key columns introduced by the host-side S padding).
    rows = jax.lax.broadcasted_iota(jnp.int32, (S, S), 0)
    cols = jax.lax.broadcasted_iota(jnp.int32, (S, S), 1)
    mask = jnp.where(cols > rows, jnp.float32(-10000.0), jnp.float32(0.0))

    # ---- multi-head self-attention (pre-LN) ----
    h = _ln(x, ln1_w[...], ln1_b[...])
    h2d = h.reshape(bt * S, D).astype(jnp.bfloat16)

    # Fused QKV projection (1/sqrt(dh) pre-folded into the Q columns of w_qkv).
    qkv = jnp.dot(h2d, w_qkv[...], preferred_element_type=jnp.float32) + b_qkv[...]
    qkv = qkv.astype(jnp.bfloat16)

    def split_heads(t2d):
        # (bt*S, D) -> (H*bt, S, dh): static lane slices, leading-axis stack.
        parts = [t2d[:, hd * dh:(hd + 1) * dh].reshape(bt, S, dh)
                 for hd in range(num_heads)]
        return jnp.stack(parts, axis=0).reshape(num_heads * bt, S, dh)

    q = split_heads(qkv[:, :D])
    k = split_heads(qkv[:, D:2 * D])
    v = split_heads(qkv[:, 2 * D:])

    # One batched QK^T, one softmax, one batched PV (heads folded into batch).
    s = jnp.einsum('bqd,bkd->bqk', q, k,
                   preferred_element_type=jnp.float32) + mask
    s = s - jnp.max(s, axis=-1, keepdims=True)
    p = jnp.exp(s)
    p = p * pl.reciprocal(jnp.sum(p, axis=-1, keepdims=True), approx=True)
    ctx = jnp.einsum('bqk,bkd->bqd', p.astype(jnp.bfloat16), v,
                     preferred_element_type=jnp.float32)       # (H*bt, S, dh)

    ctx = ctx.reshape(num_heads, bt, S, dh)
    ctx = jnp.concatenate([ctx[hd] for hd in range(num_heads)], axis=-1)  # (bt,S,D)

    attn = jnp.dot(ctx.reshape(bt * S, D).astype(jnp.bfloat16), w_o[...],
                   preferred_element_type=jnp.float32) + b_o[...]
    x = x + attn.reshape(bt, S, D)

    # ---- MLP (pre-LN) ----
    h2 = _ln(x, ln2_w[...], ln2_b[...]).reshape(bt * S, D)
    fc = jnp.dot(h2.astype(jnp.bfloat16), w_fc[...],
                 preferred_element_type=jnp.float32) + b_fc[...]
    # TODO(synk): gemm_base may use exact GELU; CLIP-style QuickGELU used here.
    fc = fc * jax.nn.sigmoid(1.702 * fc)
    mlp = jnp.dot(fc.astype(jnp.bfloat16), w_pr[...],
                  preferred_element_type=jnp.float32) + b_pr[...]
    x = x + mlp.reshape(bt, S, D)

    x_acc[...] = x

    # Write the residual stream back to HBM (bf16) only after the last layer.
    @pl.when(l == pl.num_programs(1) - 1)
    def _():
        o_ref[...] = x.astype(o_ref.dtype)


_STACK_KEYS = ("ln1_w", "ln1_b",
               "w_qkv", "b_qkv", "w_o", "b_o",
               "ln2_w", "ln2_b",
               "w_fc", "b_fc", "w_pr", "b_pr")


def encoder_stack(x, stack, num_heads, block_b=4):
    """All L residual blocks in one pallas_call.  x: (B, S_pad, D) bf16."""
    B, S, D = x.shape
    L = stack["w_qkv"].shape[0]
    bt = _pick_bt(B, block_b)
    wts = [stack[k] for k in _STACK_KEYS]

    def w_spec(w):
        # Leading L axis squeezed; per-layer weights stream as l advances
        # (default double-buffering prefetches layer l+1 under layer l compute).
        return pl.BlockSpec((None,) + w.shape[1:], lambda b, l: (l, 0, 0))

    in_specs = [pl.BlockSpec((bt, S, D), lambda b, l: (b, 0, 0))]
    in_specs += [w_spec(w) for w in wts]

    return pl.pallas_call(
        functools.partial(_encoder_kernel, num_heads=num_heads),
        out_shape=jax.ShapeDtypeStruct((B, S, D), jnp.bfloat16),
        grid=(B // bt, L),
        in_specs=in_specs,
        out_specs=pl.BlockSpec((bt, S, D), lambda b, l: (b, 0, 0)),
        scratch_shapes=[pltpu.VMEM((bt, S, D), jnp.float32)],
        compiler_params=pltpu.CompilerParams(
            dimension_semantics=("parallel", "arbitrary"),
            vmem_limit_bytes=_vmem_limit_bytes()),
    )(x, *wts)


# ---------------------------------------------------------------------------
# Final LayerNorm + text_projection kernel (on gathered EOS tokens).
# Per-token LayerNorm commutes with the row gather, so applying ln_final only
# to the gathered rows is identical to LN(full seq) then gather.
# ---------------------------------------------------------------------------
def _final_kernel(x_ref, lnw_ref, lnb_ref, proj_ref, o_ref):
    h = _ln(x_ref[...].astype(jnp.float32), lnw_ref[...], lnb_ref[...])
    o_ref[...] = jnp.dot(h.astype(jnp.bfloat16), proj_ref[...],
                         preferred_element_type=jnp.float32)


def final_projection(x_eos, ln_w, ln_b, proj):
    B = x_eos.shape[0]
    E = proj.shape[1]
    E_pad = _round_up(E, 128)                 # lane-dense output store
    if E_pad != E:
        proj = jnp.pad(proj, ((0, 0), (0, E_pad - E)))
    out = pl.pallas_call(
        _final_kernel,
        out_shape=jax.ShapeDtypeStruct((B, E_pad), jnp.float32),
        in_specs=[pl.BlockSpec(memory_space=pltpu.MemorySpace.VMEM)] * 4,
        out_specs=pl.BlockSpec(memory_space=pltpu.MemorySpace.VMEM),
    )(x_eos, ln_w, ln_b, proj.astype(jnp.bfloat16))
    return out[:, :E]


# ---------------------------------------------------------------------------
# Parameter init (deterministic, synthetic).  Matmul weights stored bf16,
# stacked along a leading L axis so the fused kernel can stream them per layer.
# ---------------------------------------------------------------------------
def init_params(key, *, vocab_size, context_length, width, heads, layers, embed_dim):
    D = width
    q_scale = 1.0 / math.sqrt(D // heads)
    keys = jax.random.split(key, 7)

    def nrm(k, shape, scale=0.02):
        return scale * jax.random.normal(k, shape, dtype=jnp.float32)

    w_qkv = nrm(keys[3], (layers, D, 3 * D))
    # Fold the attention scale into the Q columns (and, in general, Q bias).
    w_qkv = w_qkv.at[..., :D].multiply(q_scale)
    b_qkv = jnp.zeros((layers, 1, 3 * D), jnp.float32)   # zero bias: scale is a no-op

    stack = {
        "ln1_w": jnp.ones((layers, 1, D), jnp.float32),
        "ln1_b": jnp.zeros((layers, 1, D), jnp.float32),
        "w_qkv": w_qkv.astype(jnp.bfloat16),
        "b_qkv": b_qkv,
        "w_o": nrm(keys[4], (layers, D, D)).astype(jnp.bfloat16),
        "b_o": jnp.zeros((layers, 1, D), jnp.float32),
        "ln2_w": jnp.ones((layers, 1, D), jnp.float32),
        "ln2_b": jnp.zeros((layers, 1, D), jnp.float32),
        "w_fc": nrm(keys[5], (layers, D, 4 * D)).astype(jnp.bfloat16),
        "b_fc": jnp.zeros((layers, 1, 4 * D), jnp.float32),
        "w_pr": nrm(keys[6], (layers, 4 * D, D)).astype(jnp.bfloat16),
        "b_pr": jnp.zeros((layers, 1, D), jnp.float32),
    }

    return {
        "token_embedding": nrm(keys[0], (vocab_size, D)),
        "positional_embedding": nrm(keys[1], (context_length, D), 0.01),
        "ln_final_w": jnp.ones((1, D), jnp.float32),
        "ln_final_b": jnp.zeros((1, D), jnp.float32),
        "text_projection": nrm(keys[2], (D, embed_dim)),
        "stack": stack,
    }


# ---------------------------------------------------------------------------
# Full TextEncoder forward
# ---------------------------------------------------------------------------
def text_encoder_forward(text, params, num_heads, block_b=4):
    B, S = text.shape
    # token embedding + positional embedding (plain-JAX glue)
    x = jnp.take(params["token_embedding"], text, axis=0)
    x = x + params["positional_embedding"][:S]

    # Pad S up to a multiple of 128: reshapes become free, QK^T/PV lane-dense.
    # The causal mask already masks padded key columns; padded query rows are
    # garbage but never gathered below.
    S_pad = _round_up(S, 128)
    if S_pad != S:
        x = jnp.pad(x, ((0, 0), (0, S_pad - S), (0, 0)))

    # bf16 residual stream at the HBM boundary; f32 inside the kernel.
    x = encoder_stack(x.astype(jnp.bfloat16), params["stack"], num_heads, block_b)

    # x[arange(B), text.argmax(-1)] @ text_projection
    eos_idx = jnp.argmax(text, axis=-1)      # CLIP convention: EOT has max token id
    x_eos = x[jnp.arange(B), eos_idx]        # (B, D)
    return final_projection(x_eos, params["ln_final_w"], params["ln_final_b"],
                            params["text_projection"])


# ---------------------------------------------------------------------------
if __name__ == "__main__":
    # small config: configs = (..., context_length, vocab_size, width, heads, layers)
    # NOTE: toy dims are below (8,128) tiling; benchmark at real CLIP dims
    # (S=77->128, D=512/768) before drawing perf conclusions.
    embed_dim = 16       # configs[0]
    context_length = 8
    vocab_size = 50
    model_width = 32
    model_heads = 4
    model_layers = 2
    batch = 4

    key = jax.random.PRNGKey(0)
    k_param, k_text = jax.random.split(key)

    params = init_params(k_param,
                         vocab_size=vocab_size,
                         context_length=context_length,
                         width=model_width,
                         heads=model_heads,
                         layers=model_layers,
                         embed_dim=embed_dim)

    text = jax.random.randint(k_text, (batch, context_length), 0, vocab_size,
                              dtype=jnp.int32)

    embedding = text_encoder_forward(text, params, model_heads)
    embedding = jax.block_until_ready(embedding)

    assert embedding.shape == (batch, embed_dim)
    assert embedding.dtype == jnp.float32
    print("KERNEL_OK")
</pallas_src>

<mosaic_0001>
module attributes {stable_mosaic.version = 11 : i64} {
  func.func @_encoder_kernel(%arg0: i32, %arg1: i32, %arg2: memref<2x128x32xbf16, #tpu.memory_space<vmem>>, %arg3: memref<1x1x32xf32, #tpu.memory_space<vmem>>, %arg4: memref<1x1x32xf32, #tpu.memory_space<vmem>>, %arg5: memref<1x32x96xbf16, #tpu.memory_space<vmem>>, %arg6: memref<1x1x96xf32, #tpu.memory_space<vmem>>, %arg7: memref<1x32x32xbf16, #tpu.memory_space<vmem>>, %arg8: memref<1x1x32xf32, #tpu.memory_space<vmem>>, %arg9: memref<1x1x32xf32, #tpu.memory_space<vmem>>, %arg10: memref<1x1x32xf32, #tpu.memory_space<vmem>>, %arg11: memref<1x32x128xbf16, #tpu.memory_space<vmem>>, %arg12: memref<1x1x128xf32, #tpu.memory_space<vmem>>, %arg13: memref<1x128x32xbf16, #tpu.memory_space<vmem>>, %arg14: memref<1x1x32xf32, #tpu.memory_space<vmem>>, %arg15: memref<2x128x32xbf16, #tpu.memory_space<vmem>>, %arg16: memref<2x128x32xf32, #tpu.memory_space<vmem>>) attributes {dimension_semantics = [#tpu.dimension_semantics<parallel>, #tpu.dimension_semantics<arbitrary>], iteration_bounds = array<i64: 2, 2>, scalar_prefetch = 0 : i64, scratch_operands = 1 : i64, tpu.core_type = #tpu.core_type<tc>, window_params = [{transform_indices = @transform_0, window_bounds = array<i64: 2, 128, 32>}, {transform_indices = @transform_1, window_bounds = array<i64: 1, 1, 32>}, {transform_indices = @transform_2, window_bounds = array<i64: 1, 1, 32>}, {transform_indices = @transform_3, window_bounds = array<i64: 1, 32, 96>}, {transform_indices = @transform_4, window_bounds = array<i64: 1, 1, 96>}, {transform_indices = @transform_5, window_bounds = array<i64: 1, 32, 32>}, {transform_indices = @transform_6, window_bounds = array<i64: 1, 1, 32>}, {transform_indices = @transform_7, window_bounds = array<i64: 1, 1, 32>}, {transform_indices = @transform_8, window_bounds = array<i64: 1, 1, 32>}, {transform_indices = @transform_9, window_bounds = array<i64: 1, 32, 128>}, {transform_indices = @transform_10, window_bounds = array<i64: 1, 1, 128>}, {transform_indices = @transform_11, window_bounds = array<i64: 1, 128, 32>}, {transform_indices = @transform_12, window_bounds = array<i64: 1, 1, 32>}, {transform_indices = @transform_13, window_bounds = array<i64: 2, 128, 32>}]} {
    %c0_i32 = arith.constant 0 : i32
    %0 = arith.cmpi eq, %arg1, %c0_i32 : i32
    %1 = arith.extui %0 : i1 to i32
    %c0_i32_0 = arith.constant 0 : i32
    %2 = arith.cmpi ne, %1, %c0_i32_0 : i32
    scf.if %2 {
      %c0_64 = arith.constant 0 : index
      %c0_65 = arith.constant 0 : index
      %c0_66 = arith.constant 0 : index
      %189 = vector.load %arg2[%c0_64, %c0_65, %c0_66] : memref<2x128x32xbf16, #tpu.memory_space<vmem>>, vector<2x128x32xbf16>
      %190 = arith.extf %189 : vector<2x128x32xbf16> to vector<2x128x32xf32>
      %c0_67 = arith.constant 0 : index
      %c0_68 = arith.constant 0 : index
      %c0_69 = arith.constant 0 : index
      %191 = vector.load %arg16[%c0_67, %c0_68, %c0_69] : memref<2x128x32xf32, #tpu.memory_space<vmem>>, vector<2x128x32xf32>
      tpu.vector_store %arg16[%c0_67, %c0_68, %c0_69], %190 {strides = array<i32>} : memref<2x128x32xf32, #tpu.memory_space<vmem>>, vector<2x128x32xf32>,
    } else {
    }
    %c0 = arith.constant 0 : index
    %c0_1 = arith.constant 0 : index
    %c0_2 = arith.constant 0 : index
    %3 = vector.load %arg16[%c0, %c0_1, %c0_2] : memref<2x128x32xf32, #tpu.memory_space<vmem>>, vector<2x128x32xf32>
    %4 = tpu.iota {dimensions = array<i32: 0>} : vector<128x128xi32>
    %5 = tpu.iota {dimensions = array<i32: 1>} : vector<128x128xi32>
    %6 = arith.cmpi sgt, %5, %4 : vector<128x128xi32>
    %cst = arith.constant -1.000000e+04 : f32
    %cst_3 = arith.constant 0.000000e+00 : f32
    %7 = vector.broadcast %cst : f32 to vector<128x128xf32>
    %8 = vector.broadcast %cst_3 : f32 to vector<128x128xf32>
    %9 = arith.select %6, %7, %8 : vector<128x128xi1>, vector<128x128xf32>
    %c0_4 = arith.constant 0 : index
    %c0_5 = arith.constant 0 : index
    %c0_6 = arith.constant 0 : index
    %10 = vector.load %arg3[%c0_4, %c0_5, %c0_6] : memref<1x1x32xf32, #tpu.memory_space<vmem>>, vector<1x1x32xf32>
    %11 = vector.shape_cast %10 : vector<1x1x32xf32> to vector<1x32xf32>
    %c0_7 = arith.constant 0 : index
    %c0_8 = arith.constant 0 : index
    %c0_9 = arith.constant 0 : index
    %12 = vector.load %arg4[%c0_7, %c0_8, %c0_9] : memref<1x1x32xf32, #tpu.memory_space<vmem>>, vector<1x1x32xf32>
    %13 = vector.shape_cast %12 : vector<1x1x32xf32> to vector<1x32xf32>
    %cst_10 = arith.constant dense<0.000000e+00> : vector<2x128xf32>
    %14 = vector.multi_reduction <add>, %3, %cst_10 [2] : vector<2x128x32xf32> to vector<2x128xf32>
    %15 = vector.shape_cast %14 : vector<2x128xf32> to vector<2x128x1xf32>
    %cst_11 = arith.constant 3.200000e+01 : f32
    %16 = vector.broadcast %cst_11 : f32 to vector<2x128x1xf32>
    %17 = arith.divf %15, %16 : vector<2x128x1xf32>
    %18 = vector.broadcast %17 : vector<2x128x1xf32> to vector<2x128x32xf32>
    %19 = arith.subf %3, %18 : vector<2x128x32xf32>
    %20 = arith.mulf %19, %19 : vector<2x128x32xf32>
    %cst_12 = arith.constant dense<0.000000e+00> : vector<2x128xf32>
    %21 = vector.multi_reduction <add>, %20, %cst_12 [2] : vector<2x128x32xf32> to vector<2x128xf32>
    %22 = vector.shape_cast %21 : vector<2x128xf32> to vector<2x128x1xf32>
    %cst_13 = arith.constant 3.200000e+01 : f32
    %23 = vector.broadcast %cst_13 : f32 to vector<2x128x1xf32>
    %24 = arith.divf %22, %23 : vector<2x128x1xf32>
    %25 = vector.broadcast %17 : vector<2x128x1xf32> to vector<2x128x32xf32>
    %26 = arith.subf %3, %25 : vector<2x128x32xf32>
    %cst_14 = arith.constant 9.99999974E-6 : f32
    %27 = vector.broadcast %cst_14 : f32 to vector<2x128x1xf32>
    %28 = arith.addf %24, %27 : vector<2x128x1xf32>
    %29 = math.rsqrt %28 : vector<2x128x1xf32>
    %30 = vector.broadcast %29 : vector<2x128x1xf32> to vector<2x128x32xf32>
    %31 = arith.mulf %26, %30 : vector<2x128x32xf32>
    %32 = vector.shape_cast %11 : vector<1x32xf32> to vector<1x1x32xf32>
    %33 = vector.broadcast %32 : vector<1x1x32xf32> to vector<2x128x32xf32>
    %34 = arith.mulf %31, %33 : vector<2x128x32xf32>
    %35 = vector.shape_cast %13 : vector<1x32xf32> to vector<1x1x32xf32>
    %36 = vector.broadcast %35 : vector<1x1x32xf32> to vector<2x128x32xf32>
    %37 = arith.addf %34, %36 : vector<2x128x32xf32>
    %38 = vector.shape_cast %37 : vector<2x128x32xf32> to vector<256x32xf32>
    %39 = arith.truncf %38 : vector<256x32xf32> to vector<256x32xbf16>
    %c0_15 = arith.constant 0 : index
    %c0_16 = arith.constant 0 : index
    %c0_17 = arith.constant 0 : index
    %40 = vector.load %arg5[%c0_15, %c0_16, %c0_17] : memref<1x32x96xbf16, #tpu.memory_space<vmem>>, vector<1x32x96xbf16>
    %41 = vector.shape_cast %40 : vector<1x32x96xbf16> to vector<32x96xbf16>
    %cst_18 = arith.constant dense<0.000000e+00> : vector<256x96xf32>
    %42 = tpu.matmul %39, %41, %cst_18 {dimension_numbers = #tpu.dot_dimension_numbers<[1], [0], [0], [1], [0, 0, 1, 1], [], []>} : vector<256x32xbf16>, vector<32x96xbf16>, vector<256x96xf32> -> vector<256x96xf32>
    %c0_19 = arith.constant 0 : index
    %c0_20 = arith.constant 0 : index
    %c0_21 = arith.constant 0 : index
    %43 = vector.load %arg6[%c0_19, %c0_20, %c0_21] : memref<1x1x96xf32, #tpu.memory_space<vmem>>, vector<1x1x96xf32>
    %44 = vector.shape_cast %43 : vector<1x1x96xf32> to vector<1x96xf32>
    %45 = vector.broadcast %44 : vector<1x96xf32> to vector<256x96xf32>
    %46 = arith.addf %42, %45 : vector<256x96xf32>
    %47 = arith.truncf %46 : vector<256x96xf32> to vector<256x96xbf16>
    %48 = vector.extract_strided_slice %47 {offsets = [0, 0], sizes = [256, 32], strides = [1, 1]} : vector<256x96xbf16> to vector<256x32xbf16>
    %49 = vector.extract_strided_slice %48 {offsets = [0, 0], sizes = [256, 8], strides = [1, 1]} : vector<256x32xbf16> to vector<256x8xbf16>
    %50 = vector.shape_cast %49 : vector<256x8xbf16> to vector<2x128x8xbf16>
    %51 = vector.extract_strided_slice %48 {offsets = [0, 8], sizes = [256, 8], strides = [1, 1]} : vector<256x32xbf16> to vector<256x8xbf16>
    %52 = vector.shape_cast %51 : vector<256x8xbf16> to vector<2x128x8xbf16>
    %53 = vector.extract_strided_slice %48 {offsets = [0, 16], sizes = [256, 8], strides = [1, 1]} : vector<256x32xbf16> to vector<256x8xbf16>
    %54 = vector.shape_cast %53 : vector<256x8xbf16> to vector<2x128x8xbf16>
    %55 = vector.extract_strided_slice %48 {offsets = [0, 24], sizes = [256, 8], strides = [1, 1]} : vector<256x32xbf16> to vector<256x8xbf16>
    %56 = vector.shape_cast %55 : vector<256x8xbf16> to vector<2x128x8xbf16>
    %57 = vector.shape_cast %50 : vector<2x128x8xbf16> to vector<1x2x128x8xbf16>
    %58 = vector.shape_cast %52 : vector<2x128x8xbf16> to vector<1x2x128x8xbf16>
    %59 = vector.shape_cast %54 : vector<2x128x8xbf16> to vector<1x2x128x8xbf16>
    %60 = vector.shape_cast %56 : vector<2x128x8xbf16> to vector<1x2x128x8xbf16>
    %61 = tpu.concatenate %57, %58, %59, %60 in 0 : vector<1x2x128x8xbf16>, vector<1x2x128x8xbf16>, vector<1x2x128x8xbf16>, vector<1x2x128x8xbf16> -> vector<4x2x128x8xbf16>
    %62 = vector.shape_cast %61 : vector<4x2x128x8xbf16> to vector<8x128x8xbf16>
    %63 = vector.extract_strided_slice %47 {offsets = [0, 32], sizes = [256, 32], strides = [1, 1]} : vector<256x96xbf16> to vector<256x32xbf16>
    %64 = vector.extract_strided_slice %63 {offsets = [0, 0], sizes = [256, 8], strides = [1, 1]} : vector<256x32xbf16> to vector<256x8xbf16>
    %65 = vector.shape_cast %64 : vector<256x8xbf16> to vector<2x128x8xbf16>
    %66 = vector.extract_strided_slice %63 {offsets = [0, 8], sizes = [256, 8], strides = [1, 1]} : vector<256x32xbf16> to vector<256x8xbf16>
    %67 = vector.shape_cast %66 : vector<256x8xbf16> to vector<2x128x8xbf16>
    %68 = vector.extract_strided_slice %63 {offsets = [0, 16], sizes = [256, 8], strides = [1, 1]} : vector<256x32xbf16> to vector<256x8xbf16>
    %69 = vector.shape_cast %68 : vector<256x8xbf16> to vector<2x128x8xbf16>
    %70 = vector.extract_strided_slice %63 {offsets = [0, 24], sizes = [256, 8], strides = [1, 1]} : vector<256x32xbf16> to vector<256x8xbf16>
    %71 = vector.shape_cast %70 : vector<256x8xbf16> to vector<2x128x8xbf16>
    %72 = vector.shape_cast %65 : vector<2x128x8xbf16> to vector<1x2x128x8xbf16>
    %73 = vector.shape_cast %67 : vector<2x128x8xbf16> to vector<1x2x128x8xbf16>
    %74 = vector.shape_cast %69 : vector<2x128x8xbf16> to vector<1x2x128x8xbf16>
    %75 = vector.shape_cast %71 : vector<2x128x8xbf16> to vector<1x2x128x8xbf16>
    %76 = tpu.concatenate %72, %73, %74, %75 in 0 : vector<1x2x128x8xbf16>, vector<1x2x128x8xbf16>, vector<1x2x128x8xbf16>, vector<1x2x128x8xbf16> -> vector<4x2x128x8xbf16>
    %77 = vector.shape_cast %76 : vector<4x2x128x8xbf16> to vector<8x128x8xbf16>
    %78 = vector.extract_strided_slice %47 {offsets = [0, 64], sizes = [256, 32], strides = [1, 1]} : vector<256x96xbf16> to vector<256x32xbf16>
    %79 = vector.extract_strided_slice %78 {offsets = [0, 0], sizes = [256, 8], strides = [1, 1]} : vector<256x32xbf16> to vector<256x8xbf16>
    %80 = vector.shape_cast %79 : vector<256x8xbf16> to vector<2x128x8xbf16>
    %81 = vector.extract_strided_slice %78 {offsets = [0, 8], sizes = [256, 8], strides = [1, 1]} : vector<256x32xbf16> to vector<256x8xbf16>
    %82 = vector.shape_cast %81 : vector<256x8xbf16> to vector<2x128x8xbf16>
    %83 = vector.extract_strided_slice %78 {offsets = [0, 16], sizes = [256, 8], strides = [1, 1]} : vector<256x32xbf16> to vector<256x8xbf16>
    %84 = vector.shape_cast %83 : vector<256x8xbf16> to vector<2x128x8xbf16>
    %85 = vector.extract_strided_slice %78 {offsets = [0, 24], sizes = [256, 8], strides = [1, 1]} : vector<256x32xbf16> to vector<256x8xbf16>
    %86 = vector.shape_cast %85 : vector<256x8xbf16> to vector<2x128x8xbf16>
    %87 = vector.shape_cast %80 : vector<2x128x8xbf16> to vector<1x2x128x8xbf16>
    %88 = vector.shape_cast %82 : vector<2x128x8xbf16> to vector<1x2x128x8xbf16>
    %89 = vector.shape_cast %84 : vector<2x128x8xbf16> to vector<1x2x128x8xbf16>
    %90 = vector.shape_cast %86 : vector<2x128x8xbf16> to vector<1x2x128x8xbf16>
    %91 = tpu.concatenate %87, %88, %89, %90 in 0 : vector<1x2x128x8xbf16>, vector<1x2x128x8xbf16>, vector<1x2x128x8xbf16>, vector<1x2x128x8xbf16> -> vector<4x2x128x8xbf16>
    %92 = vector.shape_cast %91 : vector<4x2x128x8xbf16> to vector<8x128x8xbf16>
    "tpu.trace_start"() <{level = 10 : i32, message = "bqd,bkd->bqk"}> : () -> ()
    %cst_22 = arith.constant dense<0.000000e+00> : vector<8x128x128xf32>
    %93 = tpu.matmul %62, %77, %cst_22 {dimension_numbers = #tpu.dot_dimension_numbers<[2], [2], [1], [1], [0, 0, 0, 1, 1, 1], [0], [0]>} : vector<8x128x8xbf16>, vector<8x128x8xbf16>, vector<8x128x128xf32> -> vector<8x128x128xf32>
    "tpu.trace_stop"() : () -> ()
    %94 = vector.shape_cast %9 : vector<128x128xf32> to vector<1x128x128xf32>
    %95 = vector.broadcast %94 : vector<1x128x128xf32> to vector<8x128x128xf32>
    %96 = arith.addf %93, %95 : vector<8x128x128xf32>
    %cst_23 = arith.constant dense<0xFF800000> : vector<8x128xf32>
    %97 = vector.multi_reduction <maximumf>, %96, %cst_23 [2] : vector<8x128x128xf32> to vector<8x128xf32>
    %98 = vector.shape_cast %97 : vector<8x128xf32> to vector<8x128x1xf32>
    %99 = vector.broadcast %98 : vector<8x128x1xf32> to vector<8x128x128xf32>
    %100 = arith.subf %96, %99 : vector<8x128x128xf32>
    %101 = math.exp %100 : vector<8x128x128xf32>
    %cst_24 = arith.constant dense<0.000000e+00> : vector<8x128xf32>
    %102 = vector.multi_reduction <add>, %101, %cst_24 [2] : vector<8x128x128xf32> to vector<8x128xf32>
    %103 = vector.shape_cast %102 : vector<8x128xf32> to vector<8x128x1xf32>
    %104 = tpu.reciprocal %103 {approx = true} : vector<8x128x1xf32> -> vector<8x128x1xf32>
    %105 = vector.broadcast %104 : vector<8x128x1xf32> to vector<8x128x128xf32>
    %106 = arith.mulf %101, %105 : vector<8x128x128xf32>
    %107 = arith.truncf %106 : vector<8x128x128xf32> to vector<8x128x128xbf16>
    "tpu.trace_start"() <{level = 10 : i32, message = "bqk,bkd->bqd"}> : () -> ()
    %cst_25 = arith.constant dense<0.000000e+00> : vector<8x128x8xf32>
    %108 = tpu.matmul %107, %92, %cst_25 {dimension_numbers = #tpu.dot_dimension_numbers<[2], [1], [1], [2], [0, 0, 0, 1, 1, 2], [0], [0]>} : vector<8x128x128xbf16>, vector<8x128x8xbf16>, vector<8x128x8xf32> -> vector<8x128x8xf32>
    "tpu.trace_stop"() : () -> ()
    %109 = vector.shape_cast %108 : vector<8x128x8xf32> to vector<4x2x128x8xf32>
    %110 = vector.extract_strided_slice %109 {offsets = [0, 0, 0, 0], sizes = [1, 2, 128, 8], strides = [1, 1, 1, 1]} : vector<4x2x128x8xf32> to vector<1x2x128x8xf32>
    %111 = vector.shape_cast %110 : vector<1x2x128x8xf32> to vector<2x128x8xf32>
    %112 = vector.extract_strided_slice %109 {offsets = [1, 0, 0, 0], sizes = [1, 2, 128, 8], strides = [1, 1, 1, 1]} : vector<4x2x128x8xf32> to vector<1x2x128x8xf32>
    %113 = vector.shape_cast %112 : vector<1x2x128x8xf32> to vector<2x128x8xf32>
    %114 = vector.extract_strided_slice %109 {offsets = [2, 0, 0, 0], sizes = [1, 2, 128, 8], strides = [1, 1, 1, 1]} : vector<4x2x128x8xf32> to vector<1x2x128x8xf32>
    %115 = vector.shape_cast %114 : vector<1x2x128x8xf32> to vector<2x128x8xf32>
    %116 = vector.extract_strided_slice %109 {offsets = [3, 0, 0, 0], sizes = [1, 2, 128, 8], strides = [1, 1, 1, 1]} : vector<4x2x128x8xf32> to vector<1x2x128x8xf32>
    %117 = vector.shape_cast %116 : vector<1x2x128x8xf32> to vector<2x128x8xf32>
    %118 = tpu.concatenate %111, %113, %115, %117 in 2 : vector<2x128x8xf32>, vector<2x128x8xf32>, vector<2x128x8xf32>, vector<2x128x8xf32> -> vector<2x128x32xf32>
    %119 = vector.shape_cast %118 : vector<2x128x32xf32> to vector<256x32xf32>
    %120 = arith.truncf %119 : vector<256x32xf32> to vector<256x32xbf16>
    %c0_26 = arith.constant 0 : index
    %c0_27 = arith.constant 0 : index
    %c0_28 = arith.constant 0 : index
    %121 = vector.load %arg7[%c0_26, %c0_27, %c0_28] : memref<1x32x32xbf16, #tpu.memory_space<vmem>>, vector<1x32x32xbf16>
    %122 = vector.shape_cast %121 : vector<1x32x32xbf16> to vector<32x32xbf16>
    %cst_29 = arith.constant dense<0.000000e+00> : vector<256x32xf32>
    %123 = tpu.matmul %120, %122, %cst_29 {dimension_numbers = #tpu.dot_dimension_numbers<[1], [0], [0], [1], [0, 0, 1, 1], [], []>} : vector<256x32xbf16>, vector<32x32xbf16>, vector<256x32xf32> -> vector<256x32xf32>
    %c0_30 = arith.constant 0 : index
    %c0_31 = arith.constant 0 : index
    %c0_32 = arith.constant 0 : index
    %124 = vector.load %arg8[%c0_30, %c0_31, %c0_32] : memref<1x1x32xf32, #tpu.memory_space<vmem>>, vector<1x1x32xf32>
    %125 = vector.shape_cast %124 : vector<1x1x32xf32> to vector<1x32xf32>
    %126 = vector.broadcast %125 : vector<1x32xf32> to vector<256x32xf32>
    %127 = arith.addf %123, %126 : vector<256x32xf32>
    %128 = vector.shape_cast %127 : vector<256x32xf32> to vector<2x128x32xf32>
    %129 = arith.addf %3, %128 : vector<2x128x32xf32>
    %c0_33 = arith.constant 0 : index
    %c0_34 = arith.constant 0 : index
    %c0_35 = arith.constant 0 : index
    %130 = vector.load %arg9[%c0_33, %c0_34, %c0_35] : memref<1x1x32xf32, #tpu.memory_space<vmem>>, vector<1x1x32xf32>
    %131 = vector.shape_cast %130 : vector<1x1x32xf32> to vector<1x32xf32>
    %c0_36 = arith.constant 0 : index
    %c0_37 = arith.constant 0 : index
    %c0_38 = arith.constant 0 : index
    %132 = vector.load %arg10[%c0_36, %c0_37, %c0_38] : memref<1x1x32xf32, #tpu.memory_space<vmem>>, vector<1x1x32xf32>
    %133 = vector.shape_cast %132 : vector<1x1x32xf32> to vector<1x32xf32>
    %cst_39 = arith.constant dense<0.000000e+00> : vector<2x128xf32>
    %134 = vector.multi_reduction <add>, %129, %cst_39 [2] : vector<2x128x32xf32> to vector<2x128xf32>
    %135 = vector.shape_cast %134 : vector<2x128xf32> to vector<2x128x1xf32>
    %cst_40 = arith.constant 3.200000e+01 : f32
    %136 = vector.broadcast %cst_40 : f32 to vector<2x128x1xf32>
    %137 = arith.divf %135, %136 : vector<2x128x1xf32>
    %138 = vector.broadcast %137 : vector<2x128x1xf32> to vector<2x128x32xf32>
    %139 = arith.subf %129, %138 : vector<2x128x32xf32>
    %140 = arith.mulf %139, %139 : vector<2x128x32xf32>
    %cst_41 = arith.constant dense<0.000000e+00> : vector<2x128xf32>
    %141 = vector.multi_reduction <add>, %140, %cst_41 [2] : vector<2x128x32xf32> to vector<2x128xf32>
    %142 = vector.shape_cast %141 : vector<2x128xf32> to vector<2x128x1xf32>
    %cst_42 = arith.constant 3.200000e+01 : f32
    %143 = vector.broadcast %cst_42 : f32 to vector<2x128x1xf32>
    %144 = arith.divf %142, %143 : vector<2x128x1xf32>
    %145 = vector.broadcast %137 : vector<2x128x1xf32> to vector<2x128x32xf32>
    %146 = arith.subf %129, %145 : vector<2x128x32xf32>
    %cst_43 = arith.constant 9.99999974E-6 : f32
    %147 = vector.broadcast %cst_43 : f32 to vector<2x128x1xf32>
    %148 = arith.addf %144, %147 : vector<2x128x1xf32>
    %149 = math.rsqrt %148 : vector<2x128x1xf32>
    %150 = vector.broadcast %149 : vector<2x128x1xf32> to vector<2x128x32xf32>
    %151 = arith.mulf %146, %150 : vector<2x128x32xf32>
    %152 = vector.shape_cast %131 : vector<1x32xf32> to vector<1x1x32xf32>
    %153 = vector.broadcast %152 : vector<1x1x32xf32> to vector<2x128x32xf32>
    %154 = arith.mulf %151, %153 : vector<2x128x32xf32>
    %155 = vector.shape_cast %133 : vector<1x32xf32> to vector<1x1x32xf32>
    %156 = vector.broadcast %155 : vector<1x1x32xf32> to vector<2x128x32xf32>
    %157 = arith.addf %154, %156 : vector<2x128x32xf32>
    %158 = vector.shape_cast %157 : vector<2x128x32xf32> to vector<256x32xf32>
    %159 = arith.truncf %158 : vector<256x32xf32> to vector<256x32xbf16>
    %c0_44 = arith.constant 0 : index
    %c0_45 = arith.constant 0 : index
    %c0_46 = arith.constant 0 : index
    %160 = vector.load %arg11[%c0_44, %c0_45, %c0_46] : memref<1x32x128xbf16, #tpu.memory_space<vmem>>, vector<1x32x128xbf16>
    %161 = vector.shape_cast %160 : vector<1x32x128xbf16> to vector<32x128xbf16>
    %cst_47 = arith.constant dense<0.000000e+00> : vector<256x128xf32>
    %162 = tpu.matmul %159, %161, %cst_47 {dimension_numbers = #tpu.dot_dimension_numbers<[1], [0], [0], [1], [0, 0, 1, 1], [], []>} : vector<256x32xbf16>, vector<32x128xbf16>, vector<256x128xf32> -> vector<256x128xf32>
    %c0_48 = arith.constant 0 : index
    %c0_49 = arith.constant 0 : index
    %c0_50 = arith.constant 0 : index
    %163 = vector.load %arg12[%c0_48, %c0_49, %c0_50] : memref<1x1x128xf32, #tpu.memory_space<vmem>>, vector<1x1x128xf32>
    %164 = vector.shape_cast %163 : vector<1x1x128xf32> to vector<1x128xf32>
    %165 = vector.broadcast %164 : vector<1x128xf32> to vector<256x128xf32>
    %166 = arith.addf %162, %165 : vector<256x128xf32>
    %cst_51 = arith.constant 1.702000e+00 : f32
    %167 = vector.broadcast %cst_51 : f32 to vector<256x128xf32>
    %168 = arith.mulf %167, %166 : vector<256x128xf32>
    %169 = arith.negf %168 : vector<256x128xf32>
    %170 = math.exp %169 : vector<256x128xf32>
    %cst_52 = arith.constant 1.000000e+00 : f32
    %171 = vector.broadcast %cst_52 : f32 to vector<256x128xf32>
    %172 = arith.addf %171, %170 : vector<256x128xf32>
    %173 = arith.divf %171, %172 : vector<256x128xf32>
    %174 = arith.mulf %166, %173 : vector<256x128xf32>
    %175 = arith.truncf %174 : vector<256x128xf32> to vector<256x128xbf16>
    %c0_53 = arith.constant 0 : index
    %c0_54 = arith.constant 0 : index
    %c0_55 = arith.constant 0 : index
    %176 = vector.load %arg13[%c0_53, %c0_54, %c0_55] : memref<1x128x32xbf16, #tpu.memory_space<vmem>>, vector<1x128x32xbf16>
    %177 = vector.shape_cast %176 : vector<1x128x32xbf16> to vector<128x32xbf16>
    %cst_56 = arith.constant dense<0.000000e+00> : vector<256x32xf32>
    %178 = tpu.matmul %175, %177, %cst_56 {dimension_numbers = #tpu.dot_dimension_numbers<[1], [0], [0], [1], [0, 0, 1, 1], [], []>} : vector<256x128xbf16>, vector<128x32xbf16>, vector<256x32xf32> -> vector<256x32xf32>
    %c0_57 = arith.constant 0 : index
    %c0_58 = arith.constant 0 : index
    %c0_59 = arith.constant 0 : index
    %179 = vector.load %arg14[%c0_57, %c0_58, %c0_59] : memref<1x1x32xf32, #tpu.memory_space<vmem>>, vector<1x1x32xf32>
    %180 = vector.shape_cast %179 : vector<1x1x32xf32> to vector<1x32xf32>
    %181 = vector.broadcast %180 : vector<1x32xf32> to vector<256x32xf32>
    %182 = arith.addf %178, %181 : vector<256x32xf32>
    %183 = vector.shape_cast %182 : vector<256x32xf32> to vector<2x128x32xf32>
    %184 = arith.addf %129, %183 : vector<2x128x32xf32>
    %c0_60 = arith.constant 0 : index
    %c0_61 = arith.constant 0 : index
    %c0_62 = arith.constant 0 : index
    %185 = vector.load %arg16[%c0_60, %c0_61, %c0_62] : memref<2x128x32xf32, #tpu.memory_space<vmem>>, vector<2x128x32xf32>
    tpu.vector_store %arg16[%c0_60, %c0_61, %c0_62], %184 {strides = array<i32>} : memref<2x128x32xf32, #tpu.memory_space<vmem>>, vector<2x128x32xf32>,
    %c1_i32 = arith.constant 1 : i32
    %186 = arith.cmpi eq, %arg1, %c1_i32 : i32
    %187 = arith.extui %186 : i1 to i32
    %c0_i32_63 = arith.constant 0 : i32
    %188 = arith.cmpi ne, %187, %c0_i32_63 : i32
    scf.if %188 {
      %189 = arith.truncf %184 : vector<2x128x32xf32> to vector<2x128x32xbf16>
      %c0_64 = arith.constant 0 : index
      %c0_65 = arith.constant 0 : index
      %c0_66 = arith.constant 0 : index
      %190 = vector.load %arg15[%c0_64, %c0_65, %c0_66] : memref<2x128x32xbf16, #tpu.memory_space<vmem>>, vector<2x128x32xbf16>
      tpu.vector_store %arg15[%c0_64, %c0_65, %c0_66], %189 {strides = array<i32>} : memref<2x128x32xbf16, #tpu.memory_space<vmem>>, vector<2x128x32xbf16>,
    } else {
    }
    return
  }
  func.func @transform_0(%arg0: i32, %arg1: i32) -> (i32, i32, i32) {
    %c0_i32 = arith.constant 0 : i32
    %c0_i32_0 = arith.constant 0 : i32
    %c0_i32_1 = arith.constant 0 : i32
    return %arg0, %c0_i32, %c0_i32_0 : i32, i32, i32
  }
  func.func @transform_1(%arg0: i32, %arg1: i32) -> (i32, i32, i32) {
    %c0_i32 = arith.constant 0 : i32
    %c0_i32_0 = arith.constant 0 : i32
    %c0_i32_1 = arith.constant 0 : i32
    return %arg1, %c0_i32, %c0_i32_0 : i32, i32, i32
  }
  func.func @transform_2(%arg0: i32, %arg1: i32) -> (i32, i32, i32) {
    %c0_i32 = arith.constant 0 : i32
    %c0_i32_0 = arith.constant 0 : i32
    %c0_i32_1 = arith.constant 0 : i32
    return %arg1, %c0_i32, %c0_i32_0 : i32, i32, i32
  }
  func.func @transform_3(%arg0: i32, %arg1: i32) -> (i32, i32, i32) {
    %c0_i32 = arith.constant 0 : i32
    %c0_i32_0 = arith.constant 0 : i32
    %c0_i32_1 = arith.constant 0 : i32
    return %arg1, %c0_i32, %c0_i32_0 : i32, i32, i32
  }
  func.func @transform_4(%arg0: i32, %arg1: i32) -> (i32, i32, i32) {
    %c0_i32 = arith.constant 0 : i32
    %c0_i32_0 = arith.constant 0 : i32
    %c0_i32_1 = arith.constant 0 : i32
    return %arg1, %c0_i32, %c0_i32_0 : i32, i32, i32
  }
  func.func @transform_5(%arg0: i32, %arg1: i32) -> (i32, i32, i32) {
    %c0_i32 = arith.constant 0 : i32
    %c0_i32_0 = arith.constant 0 : i32
    %c0_i32_1 = arith.constant 0 : i32
    return %arg1, %c0_i32, %c0_i32_0 : i32, i32, i32
  }
  func.func @transform_6(%arg0: i32, %arg1: i32) -> (i32, i32, i32) {
    %c0_i32 = arith.constant 0 : i32
    %c0_i32_0 = arith.constant 0 : i32
    %c0_i32_1 = arith.constant 0 : i32
    return %arg1, %c0_i32, %c0_i32_0 : i32, i32, i32
  }
  func.func @transform_7(%arg0: i32, %arg1: i32) -> (i32, i32, i32) {
    %c0_i32 = arith.constant 0 : i32
    %c0_i32_0 = arith.constant 0 : i32
    %c0_i32_1 = arith.constant 0 : i32
    return %arg1, %c0_i32, %c0_i32_0 : i32, i32, i32
  }
  func.func @transform_8(%arg0: i32, %arg1: i32) -> (i32, i32, i32) {
    %c0_i32 = arith.constant 0 : i32
    %c0_i32_0 = arith.constant 0 : i32
    %c0_i32_1 = arith.constant 0 : i32
    return %arg1, %c0_i32, %c0_i32_0 : i32, i32, i32
  }
  func.func @transform_9(%arg0: i32, %arg1: i32) -> (i32, i32, i32) {
    %c0_i32 = arith.constant 0 : i32
    %c0_i32_0 = arith.constant 0 : i32
    %c0_i32_1 = arith.constant 0 : i32
    return %arg1, %c0_i32, %c0_i32_0 : i32, i32, i32
  }
  func.func @transform_10(%arg0: i32, %arg1: i32) -> (i32, i32, i32) {
    %c0_i32 = arith.constant 0 : i32
    %c0_i32_0 = arith.constant 0 : i32
    %c0_i32_1 = arith.constant 0 : i32
    return %arg1, %c0_i32, %c0_i32_0 : i32, i32, i32
  }
  func.func @transform_11(%arg0: i32, %arg1: i32) -> (i32, i32, i32) {
    %c0_i32 = arith.constant 0 : i32
    %c0_i32_0 = arith.constant 0 : i32
    %c0_i32_1 = arith.constant 0 : i32
    return %arg1, %c0_i32, %c0_i32_0 : i32, i32, i32
  }
  func.func @transform_12(%arg0: i32, %arg1: i32) -> (i32, i32, i32) {
    %c0_i32 = arith.constant 0 : i32
    %c0_i32_0 = arith.constant 0 : i32
    %c0_i32_1 = arith.constant 0 : i32
    return %arg1, %c0_i32, %c0_i32_0 : i32, i32, i32
  }
  func.func @transform_13(%arg0: i32, %arg1: i32) -> (i32, i32, i32) {
    %c0_i32 = arith.constant 0 : i32
    %c0_i32_0 = arith.constant 0 : i32
    %c0_i32_1 = arith.constant 0 : i32
    return %arg0, %c0_i32, %c0_i32_0 : i32, i32, i32
  }
}

</mosaic_0001>

<bundles_post_ra>
// kernel: tpu_custom_call.1
= control target key start
LH: loop header
LB: loop body
LE: loop exit
PB: predicated region body
PF: predicated region fallthrough
CT: control target
= control target key end

     0   :  { %s10236_s25 = smov 0   ;;  %s10238_s26 = smov 0   ;;  %s15334_s0 = inlined_call_operand.vmem [shape: bf16[4,128,32], index: 0, kind: input, shape index: {}]   ;;  %s15335_s1 = inlined_call_operand.vmem [shape: f32[2,1,32], index: 1, kind: input, shape index: {}]   ;;  %s15336_s2 = inlined_call_operand.vmem [shape: f32[2,1,32], index: 2, kind: input, shape index: {}]   ;;  %s15337_s3 = inlined_call_operand.vmem [shape: bf16[2,32,96], index: 3, kind: input, shape index: {}]   ;;  %s15338_s4 = inlined_call_operand.vmem [shape: f32[2,1,96], index: 4, kind: input, shape index: {}]   ;;  %s15339_s5 = inlined_call_operand.vmem [shape: bf16[2,32,32], index: 5, kind: input, shape index: {}]   ;;  %s15340_s6 = inlined_call_operand.vmem [shape: f32[2,1,32], index: 6, kind: input, shape index: {}]   ;;  %s15341_s7 = inlined_call_operand.vmem [shape: f32[2,1,32], index: 7, kind: input, shape index: {}]   ;;  %s15342_s8 = inlined_call_operand.vmem [shape: f32[2,1,32], index: 8, kind: input, shape index: {}]   ;;  %s15343_s9 = inlined_call_operand.vmem [shape: bf16[2,32,128], index: 9, kind: input, shape index: {}]   ;;  %s15344_s10 = inlined_call_operand.vmem [shape: f32[2,1,128], index: 10, kind: input, shape index: {}]   ;;  %s15345_s11 = inlined_call_operand.vmem [shape: bf16[2,128,32], index: 11, kind: input, shape index: {}]   ;;  %s15346_s12 = inlined_call_operand.vmem [shape: f32[2,1,32], index: 12, kind: input, shape index: {}]   ;;  %s15347_s13 = inlined_call_operand.vmem [shape: bf16[4,128,32], index: 13, kind: output, shape index: {}]  }
   0x1   :  { %15641 = sst [smem:[#allocation180_spill]] %s15334_s0  ;;  %s10240_s27 = smov 0  }
   0x2   :  { %15642 = sst [smem:[#allocation181_spill]] %s15335_s1  ;;  %s10242_s28 = smov 0  }
   0x3   :  { %15643 = sst [smem:[#allocation182_spill]] %s15336_s2  ;;  %s10244_s29 = smov 0  }
   0x4   :  { %15644 = sst [smem:[#allocation183_spill]] %s15337_s3 }
   0x5   :  { %15645 = sst [smem:[#allocation184_spill]] %s15339_s5 }
   0x6 LB: > { %15646 = sst [smem:[#allocation3_spill]] %s10139_s25  ;;  %s32_s30 = sadd.s32 1, %s10147_s27  ;;  %s10155_s29 = sphi %s10244_s29, %s23_s29   ;;  %s10151_s28 = sphi %s10242_s28, %s16440_s28   ;;  %s10147_s27 = sphi %s10240_s27, %s16439_s27   ;;  %s10143_s26 = sphi %s10238_s26, %s16438_s26   ;;  %s10139_s25 = sphi %s10236_s25, %s16437_s25  }
   0x7   : > { %15647 = sst [smem:[#allocation4_spill]] %s10147_s27  ;;  %s35_s14 = sadd.s32 1, %s10151_s28 }
   0x8   : > { %15648 = sst [smem:[#allocation5_spill]] %s10151_s28  ;;  %p33_p0 = scmp.ge.s32.totalorder %s32_s30, 2 }
   0x9   : > { %15649 = sst [smem:[#allocation6_spill]] %s10155_s29  ;;  %p7614_p1 = scmp.ge.s32.totalorder %s10155_s29, 1 }
   0xa   : > { %p505_p2 = scmp.lt.s32.totalorder %s10155_s29, 5  ;;  %s16442_s30 = smov (%p33_p0, %s32_s30), 0 }
   0xb   : > { %15650 = sst [smem:[#allocation7_spill]] %s16442_s30  ;;  %s16444_s14 = smov (!%p33_p0, %s35_s14), %s10151_s28 }
   0xc   : > { %p506_p3 = pnand %p7614_p1, %p505_p2  ;;  %p37_p4 = scmp.ge.s32.totalorder %s16444_s14, 2 }
   0xe   : > { %s16446_s14 = smov (%p37_p4, %s16444_s14), 0  ;;  %509 = sbr.rel (%p506_p3) target bundleno = 3730 (0xe92), region = 72 }
   0xf   : > { %15651 = sst [smem:[#allocation8_spill]] %s16446_s14 }
  0x15   : > { %s7615_s15 = sshll.u32 %s10143_s26, 1  ;;  %p602_p5 = scmp.lt.s32.totalorder %s10139_s25, 1 }
  0x16   : > { %p596_p6 = scmp.lt.s32.totalorder %s7615_s15, 3  ;;  %s15654_s0 = sld [smem:[#allocation180_spill]] }
  0x17   : > { %s10270_s16 = scalar_select %p602_p5, %s10139_s25, 1 }
  0x18   : > { %s16448_s15 = smov (!%p596_p6, %s7615_s15), 3  ;;  %s15655_s3 = sld [smem:[#allocation183_spill]] }
  0x19   : > { %s7831_s23 = sshll.u32 %s16448_s15, 6  ;;  %s7832_s24 = sshll.u32 %s10270_s16, 4 }
  0x1a   : > { %s15656_s5 = sld [smem:[#allocation184_spill]]  ;;  %s10315_s17 = scalar_lea.vmem %s15343_s9, %s7832_s24 }
  0x1b   : > { %s637_s18 = scalar_lea.vmem %s15344_s10, %s10270_s16  ;;  %s645_s27 = scalar_lea.vmem %s15346_s12, %s10270_s16 }
  0x1c   : > { %s10284_s30 = scalar_lea.vmem %s15654_s0, %s7831_s23  ;;  %s626_s0 = scalar_lea.vmem %s15341_s7, %s10270_s16 }
  0x1d   : > { %s10334_s2 = scalar_lea.vmem %s15347_s13, %s7831_s23 }
  0x1e   : > { %s10289_s29 = scalar_lea.vmem %s15655_s3, %s7832_s24 }
  0x20   : > { %s10298_s20 = scalar_lea.vmem %s15656_s5, %s7832_s24  ;;  %s7835_s5 = sshll.u32 %s10270_s16, 6 }
  0x21   : > { %s10325_s14 = scalar_lea.vmem %s15345_s11, %s7835_s5  ;;  %s15657_s24 = sld [smem:[#allocation3_spill]] }
  0x27   : > { %p7629_p7 = scmp.ne.s32.totalorder %s15657_s24, 0 }
  0x28   : > { %v7870_v0 = vld [vmem:[%s10284_s30] sm:$0xff] (!%p7629_p7)   ;;  %vm722_vm0 = vcmask (!%p7629_p7), 261120   ;;  %v7933_v1 = vld [vmem:[%s10284_s30 + $0x8] sm:$0xff] (!%p7629_p7)   ;;  %v7934_v2 = vld [vmem:[%s10284_s30 + $0x10] sm:$0xff] (!%p7629_p7)  }
  0x29   : > { %657 = sbr.rel (%p7629_p7) target bundleno = 59 (0x3b), region = 76  ;;  %v7871_v3 = vunpack.c.l.bf16 (!%p7629_p7), %v7870_v0  ;;  %v7872_v4 = vunpack.c.h.bf16 (!%p7629_p7), %v7870_v0  ;;  %v7875_v5 = vunpack.c.l.bf16 (!%p7629_p7), %v7933_v1  ;;  %v7876_v6 = vunpack.c.h.bf16 (!%p7629_p7), %v7933_v1  ;;  %v7935_v7 = vld [vmem:[%s10284_s30 + $0x18] sm:$0xff] (!%p7629_p7)   ;;  %v7936_v8 = vld [vmem:[%s10284_s30 + $0x20] sm:$0xff] (!%p7629_p7)   ;;  %v7937_v9 = vld [vmem:[%s10284_s30 + $0x28] sm:$0xff] (!%p7629_p7)  }
  0x2a   : > { %v7879_v10 = vunpack.c.l.bf16 (!%p7629_p7), %v7934_v2  ;;  %v7880_v11 = vunpack.c.h.bf16 (!%p7629_p7), %v7934_v2  ;;  %v7883_v12 = vunpack.c.l.bf16 (!%p7629_p7), %v7935_v7  ;;  %v7884_v13 = vunpack.c.h.bf16 (!%p7629_p7), %v7935_v7  ;;  %v7938_v14 = vld [vmem:[%s10284_s30 + $0x30] sm:$0xff] (!%p7629_p7)   ;;  %v7939_v15 = vld [vmem:[%s10284_s30 + $0x38] sm:$0xff] (!%p7629_p7)   ;;  %v7940_v16 = vld [vmem:[%s10284_s30 + $0x40] sm:$0xff] (!%p7629_p7)  }
  0x2b   : > { %723 = vst.msk [vmem:[#allocation2] sm:$0xff] (!%p7629_p7), %vm722_vm0, %v7871_v3  ;;  %724 = vst.msk [vmem:[#allocation2 + $0x8] sm:$0xff] (!%p7629_p7), %vm722_vm0, %v7872_v4  ;;  %v7887_v17 = vunpack.c.l.bf16 (!%p7629_p7), %v7936_v8  ;;  %v7888_v18 = vunpack.c.h.bf16 (!%p7629_p7), %v7936_v8  ;;  %v7891_v19 = vunpack.c.l.bf16 (!%p7629_p7), %v7937_v9  ;;  %v7892_v20 = vunpack.c.h.bf16 (!%p7629_p7), %v7937_v9  ;;  %v7941_v21 = vld [vmem:[%s10284_s30 + $0x48] sm:$0xff] (!%p7629_p7)   ;;  %v7942_v22 = vld [vmem:[%s10284_s30 + $0x50] sm:$0xff] (!%p7629_p7)  }
  0x2c   : > { %725 = vst.msk [vmem:[#allocation2 + $0x10] sm:$0xff] (!%p7629_p7), %vm722_vm0, %v7875_v5  ;;  %726 = vst.msk [vmem:[#allocation2 + $0x18] sm:$0xff] (!%p7629_p7), %vm722_vm0, %v7876_v6  ;;  %v7943_v23 = vld [vmem:[%s10284_s30 + $0x58] sm:$0xff] (!%p7629_p7)   ;;  %v7895_v24 = vunpack.c.l.bf16 (!%p7629_p7), %v7938_v14  ;;  %v7896_v25 = vunpack.c.h.bf16 (!%p7629_p7), %v7938_v14  ;;  %v7899_v26 = vunpack.c.l.bf16 (!%p7629_p7), %v7939_v15  ;;  %v7900_v27 = vunpack.c.h.bf16 (!%p7629_p7), %v7939_v15  ;;  %v7944_v28 = vld [vmem:[%s10284_s30 + $0x60] sm:$0xff] (!%p7629_p7)  }
  0x2d   : > { %727 = vst.msk [vmem:[#allocation2 + $0x20] sm:$0xff] (!%p7629_p7), %vm722_vm0, %v7879_v10  ;;  %728 = vst.msk [vmem:[#allocation2 + $0x28] sm:$0xff] (!%p7629_p7), %vm722_vm0, %v7880_v11  ;;  %v7945_v29 = vld [vmem:[%s10284_s30 + $0x68] sm:$0xff] (!%p7629_p7)   ;;  %v7903_v30 = vunpack.c.l.bf16 (!%p7629_p7), %v7940_v16  ;;  %v7904_v31 = vunpack.c.h.bf16 (!%p7629_p7), %v7940_v16  ;;  %v7907_v32 = vunpack.c.l.bf16 (!%p7629_p7), %v7941_v21  ;;  %v7908_v33 = vunpack.c.h.bf16 (!%p7629_p7), %v7941_v21  ;;  %v7946_v34 = vld [vmem:[%s10284_s30 + $0x70] sm:$0xff] (!%p7629_p7)  }
  0x2e   : > { %729 = vst.msk [vmem:[#allocation2 + $0x30] sm:$0xff] (!%p7629_p7), %vm722_vm0, %v7883_v12  ;;  %730 = vst.msk [vmem:[#allocation2 + $0x38] sm:$0xff] (!%p7629_p7), %vm722_vm0, %v7884_v13  ;;  %v7947_v35 = vld [vmem:[%s10284_s30 + $0x78] sm:$0xff] (!%p7629_p7)   ;;  %v7911_v36 = vunpack.c.l.bf16 (!%p7629_p7), %v7942_v22  ;;  %v7912_v37 = vunpack.c.h.bf16 (!%p7629_p7), %v7942_v22  ;;  %v7915_v38 = vunpack.c.l.bf16 (!%p7629_p7), %v7943_v23  ;;  %v7916_v39 = vunpack.c.h.bf16 (!%p7629_p7), %v7943_v23 }
  0x2f   : > { %731 = vst.msk [vmem:[#allocation2 + $0x40] sm:$0xff] (!%p7629_p7), %vm722_vm0, %v7887_v17  ;;  %732 = vst.msk [vmem:[#allocation2 + $0x48] sm:$0xff] (!%p7629_p7), %vm722_vm0, %v7888_v18  ;;  %v7919_v40 = vunpack.c.l.bf16 (!%p7629_p7), %v7944_v28  ;;  %v7920_v41 = vunpack.c.h.bf16 (!%p7629_p7), %v7944_v28  ;;  %v7923_v42 = vunpack.c.l.bf16 (!%p7629_p7), %v7945_v29  ;;  %v7924_v43 = vunpack.c.h.bf16 (!%p7629_p7), %v7945_v29 }
  0x30   : > { %733 = vst.msk [vmem:[#allocation2 + $0x50] sm:$0xff] %vm722_vm0, %v7891_v19  ;;  %734 = vst.msk [vmem:[#allocation2 + $0x58] sm:$0xff] %vm722_vm0, %v7892_v20  ;;  %v7927_v44 = vunpack.c.l.bf16 %v7946_v34  ;;  %v7928_v45 = vunpack.c.h.bf16 %v7946_v34  ;;  %v7931_v46 = vunpack.c.l.bf16 %v7947_v35  ;;  %v7932_v47 = vunpack.c.h.bf16 %v7947_v35 }
  0x31   : > { %735 = vst.msk [vmem:[#allocation2 + $0x60] sm:$0xff] %vm722_vm0, %v7895_v24  ;;  %736 = vst.msk [vmem:[#allocation2 + $0x68] sm:$0xff] %vm722_vm0, %v7896_v25 }
  0x32   : > { %737 = vst.msk [vmem:[#allocation2 + $0x70] sm:$0xff] %vm722_vm0, %v7899_v26  ;;  %738 = vst.msk [vmem:[#allocation2 + $0x78] sm:$0xff] %vm722_vm0, %v7900_v27 }
  0x33   : > { %739 = vst.msk [vmem:[#allocation2 + $0x80] sm:$0xff] %vm722_vm0, %v7903_v30  ;;  %740 = vst.msk [vmem:[#allocation2 + $0x88] sm:$0xff] %vm722_vm0, %v7904_v31 }
  0x34   : > { %741 = vst.msk [vmem:[#allocation2 + $0x90] sm:$0xff] %vm722_vm0, %v7907_v32  ;;  %742 = vst.msk [vmem:[#allocation2 + $0x98] sm:$0xff] %vm722_vm0, %v7908_v33 }
  0x35   : > { %743 = vst.msk [vmem:[#allocation2 + $0xa0] sm:$0xff] %vm722_vm0, %v7911_v36  ;;  %744 = vst.msk [vmem:[#allocation2 + $0xa8] sm:$0xff] %vm722_vm0, %v7912_v37 }
  0x36   : > { %745 = vst.msk [vmem:[#allocation2 + $0xb0] sm:$0xff] %vm722_vm0, %v7915_v38  ;;  %746 = vst.msk [vmem:[#allocation2 + $0xb8] sm:$0xff] %vm722_vm0, %v7916_v39 }
  0x37   : > { %747 = vst.msk [vmem:[#allocation2 + $0xc0] sm:$0xff] %vm722_vm0, %v7919_v40  ;;  %748 = vst.msk [vmem:[#allocation2 + $0xc8] sm:$0xff] %vm722_vm0, %v7920_v41 }
  0x38   : > { %749 = vst.msk [vmem:[#allocation2 + $0xd0] sm:$0xff] %vm722_vm0, %v7923_v42  ;;  %750 = vst.msk [vmem:[#allocation2 + $0xd8] sm:$0xff] %vm722_vm0, %v7924_v43 }
  0x39   : > { %751 = vst.msk [vmem:[#allocation2 + $0xe0] sm:$0xff] %vm722_vm0, %v7927_v44  ;;  %752 = vst.msk [vmem:[#allocation2 + $0xe8] sm:$0xff] %vm722_vm0, %v7928_v45 }
  0x3a   : > { %753 = vst.msk [vmem:[#allocation2 + $0xf0] sm:$0xff] %vm722_vm0, %v7931_v46  ;;  %754 = vst.msk [vmem:[#allocation2 + $0xf8] sm:$0xff] %vm722_vm0, %v7932_v47 }
  0x3b PF: > { %vm840_vm1 = vcmask 261120   ;;  %v10433_v8 = vld [vmem:[#allocation2 + $0x60] sm:$0xff]  ;;  %v10435_v9 = vld [vmem:[#allocation2 + $0x68] sm:$0xff]  ;;  %v10441_v12 = vld [vmem:[#allocation2 + $0x70] sm:$0xff]  ;;  %s15660_s1 = sld [smem:[#allocation182_spill]]  ;;  %s15662_s22 = scalar_lea.vmem %s15338_s4, %s10270_s16  ;;  %vm1726_vm2 = vcmask 64512  }
  0x3c   : > { %v877_v10 = vsel %vm840_vm1, %v10433_v8, 0.0  ;;  %v880_v11 = vsel %vm840_vm1, %v10435_v9, 0.0  ;;  %v10443_v13 = vld [vmem:[#allocation2 + $0x78] sm:$0xff]  ;;  %v883_v14 = vsel %vm840_vm1, %v10441_v12, 0.0  ;;  %v10449_v16 = vld [vmem:[#allocation2 + $0x80] sm:$0xff]  ;;  %v10451_v17 = vld [vmem:[#allocation2 + $0x88] sm:$0xff] }
  0x3d   : > { %v10385_v48 = vld [vmem:[#allocation2] sm:$0xff]  ;;  %v10389_v50 = vld [vmem:[#allocation2 + $0x8] sm:$0xff]  ;;  %v886_v15 = vsel %vm840_vm1, %v10443_v13, 0.0  ;;  %v889_v18 = vsel %vm840_vm1, %v10449_v16, 0.0  ;;  %v892_v19 = vsel %vm840_vm1, %v10451_v17, 0.0  ;;  %v10457_v20 = vld [vmem:[#allocation2 + $0x90] sm:$0xff] }
  0x3e   : > { %v10387_v49 = vld [vmem:[#allocation2 + $0x10] sm:$0xff]  ;;  %v841_v51 = vsel %vm840_vm1, %v10385_v48, 0.0  ;;  %v10395_v53 = vld [vmem:[#allocation2 + $0x18] sm:$0xff]  ;;  %v844_v54 = vsel %vm840_vm1, %v10389_v50, 0.0  ;;  %v895_v22 = vsel %vm840_vm1, %v10457_v20, 0.0  ;;  %v10465_v24 = vld [vmem:[#allocation2 + $0xa0] sm:$0xff] }
  0x3f   : > { %v847_v52 = vsel %vm840_vm1, %v10387_v49, 0.0  ;;  %842 = vadd.xlane.f32.xlu0 %v841_v51  ;;  %v850_v55 = vsel %vm840_vm1, %v10395_v53, 0.0  ;;  %v10401_v56 = vld [vmem:[#allocation2 + $0x20] sm:$0xff]  ;;  %v10403_v57 = vld [vmem:[#allocation2 + $0x28] sm:$0xff]  ;;  %v10459_v21 = vld [vmem:[#allocation2 + $0x98] sm:$0xff]  ;;  %v901_v26 = vsel %vm840_vm1, %v10465_v24, 0.0 }
  0x40   : > { %848 = vadd.xlane.f32.xlu1 %v847_v52  ;;  %v10405_v58 = vld [vmem:[#allocation2 + $0x30] sm:$0xff]  ;;  %v853_v59 = vsel %vm840_vm1, %v10401_v56, 0.0  ;;  %v856_v60 = vsel %vm840_vm1, %v10403_v57, 0.0  ;;  %v10411_v61 = vld [vmem:[#allocation2 + $0x38] sm:$0xff]  ;;  %v898_v23 = vsel %vm840_vm1, %v10459_v21, 0.0  ;;  %v10467_v25 = vld [vmem:[#allocation2 + $0xa8] sm:$0xff] }
  0x41   : > { %v10413_v62 = vld [vmem:[#allocation2 + $0x40] sm:$0xff]  ;;  %v10415_v63 = vld [vmem:[#allocation2 + $0x48] sm:$0xff]  ;;  %v859_v2 = vsel %vm840_vm1, %v10405_v58, 0.0  ;;  %v862_v3 = vsel %vm840_vm1, %v10411_v61, 0.0  ;;  %v904_v27 = vsel %vm840_vm1, %v10467_v25, 0.0  ;;  %v10473_v28 = vld [vmem:[#allocation2 + $0xb0] sm:$0xff]  ;;  %s15661_s19 = scalar_lea.vmem %s15660_s1, %s10270_s16  ;;  %s16379_s1 = scalar_lea.vmem %s15340_s6, %s10270_s16 }
  0x42   : > { %v10417_v0 = vld [vmem:[#allocation2 + $0x50] sm:$0xff]  ;;  %v10419_v1 = vld [vmem:[#allocation2 + $0x58] sm:$0xff]  ;;  %v865_v4 = vsel %vm840_vm1, %v10413_v62, 0.0  ;;  %v868_v5 = vsel %vm840_vm1, %v10415_v63, 0.0  ;;  %v907_v30 = vsel %vm840_vm1, %v10473_v28, 0.0  ;;  %v10481_v32 = vld [vmem:[#allocation2 + $0xc0] sm:$0xff] }
  0x43   : > { %845 = vadd.xlane.f32.xlu0 %v844_v54  ;;  %v871_v6 = vsel %vm840_vm1, %v10417_v0, 0.0  ;;  %v874_v7 = vsel %vm840_vm1, %v10419_v1, 0.0  ;;  %v10475_v29 = vld [vmem:[#allocation2 + $0xb8] sm:$0xff]  ;;  %v10483_v33 = vld [vmem:[#allocation2 + $0xc8] sm:$0xff]  ;;  %v913_v34 = vsel %vm840_vm1, %v10481_v32, 0.0  ;;  %v10489_v36 = vld [vmem:[#allocation2 + $0xd0] sm:$0xff] }
  0x44   : > { %851 = vadd.xlane.f32.xlu1 %v850_v55  ;;  %v910_v31 = vsel %vm840_vm1, %v10475_v29, 0.0  ;;  %v916_v35 = vsel %vm840_vm1, %v10483_v33, 0.0  ;;  %v10491_v37 = vld [vmem:[#allocation2 + $0xd8] sm:$0xff]  ;;  %v919_v38 = vsel %vm840_vm1, %v10489_v36, 0.0  ;;  %v10497_v40 = vld [vmem:[#allocation2 + $0xe0] sm:$0xff]  ;;  %v10499_v41 = vld [vmem:[#allocation2 + $0xe8] sm:$0xff] }
  0x45   : > { %v922_v39 = vsel %vm840_vm1, %v10491_v37, 0.0  ;;  %v925_v42 = vsel %vm840_vm1, %v10497_v40, 0.0  ;;  %v928_v43 = vsel %vm840_vm1, %v10499_v41, 0.0  ;;  %v10505_v44 = vld [vmem:[#allocation2 + $0xf0] sm:$0xff]  ;;  %v10507_v45 = vld [vmem:[#allocation2 + $0xf8] sm:$0xff]  ;;  %s10157_s26 = smov 96  }
  0x46   : > { %v931_v46 = vsel %vm840_vm1, %v10505_v44, 0.0  ;;  %v934_v47 = vsel %vm840_vm1, %v10507_v45, 0.0  ;;  %s10158_s28 = smov 120   ;;  %s10159_s24 = smov 64  }
  0x47   : > { %854 = vadd.xlane.f32.xlu0 %v853_v59  ;;  %s10160_s3 = smov 112   ;;  %s10161_s5 = smov 104  }
  0x48   : > { %857 = vadd.xlane.f32.xlu1 %v856_v60 }
  0x4b   : > { %860 = vadd.xlane.f32.xlu0 %v859_v2 }
  0x4c   : > { %863 = vadd.xlane.f32.xlu1 %v862_v3 }
  0x4f   : > { %866 = vadd.xlane.f32.xlu0 %v865_v4 }
  0x50   : > { %869 = vadd.xlane.f32.xlu1 %v868_v5 }
  0x53   : > { %872 = vadd.xlane.f32.xlu0 %v871_v6 }
  0x54   : > { %875 = vadd.xlane.f32.xlu1 %v874_v7 }
  0x57   : > { %878 = vadd.xlane.f32.xlu0 %v877_v10 }
  0x58   : > { %881 = vadd.xlane.f32.xlu1 %v880_v11 }
  0x5b   : > { %884 = vadd.xlane.f32.xlu0 %v883_v14 }
  0x5c   : > { %887 = vadd.xlane.f32.xlu1 %v886_v15 }
  0x5f   : > { %890 = vadd.xlane.f32.xlu0 %v889_v18 }
  0x60   : > { %893 = vadd.xlane.f32.xlu1 %v892_v19 }
  0x63   : > { %896 = vadd.xlane.f32.xlu0 %v895_v22 }
  0x64   : > { %899 = vadd.xlane.f32.xlu1 %v898_v23 }
  0x67   : > { %902 = vadd.xlane.f32.xlu0 %v901_v26 }
  0x68   : > { %905 = vadd.xlane.f32.xlu1 %v904_v27 }
  0x6b   : > { %908 = vadd.xlane.f32.xlu0 %v907_v30 }
  0x6c   : > { %911 = vadd.xlane.f32.xlu1 %v910_v31 }
  0x6f   : > { %914 = vadd.xlane.f32.xlu0 %v913_v34 }
  0x70   : > { %917 = vadd.xlane.f32.xlu1 %v916_v35 }
  0x73   : > { %920 = vadd.xlane.f32.xlu0 %v919_v38 }
  0x74   : > { %923 = vadd.xlane.f32.xlu1 %v922_v39 }
  0x77   : > { %926 = vadd.xlane.f32.xlu0 %v925_v42 }
  0x78   : > { %929 = vadd.xlane.f32.xlu1 %v928_v43 }
  0x7b   : > { %932 = vadd.xlane.f32.xlu0 %v931_v46 }
  0x7c   : > { %935 = vadd.xlane.f32.xlu1 %v934_v47 }
  0xcc   : > { %v843_v51 = vpop.xlane.xlu0 %842 }
  0xcd   : > { %v849_v52 = vpop.xlane.xlu1 %848  ;;  %v938_v54 = vmul.f32 0.03125, %v843_v51 }
  0xce   : > { %v940_v55 = vmul.f32 0.03125, %v849_v52 }
  0xcf   : > { %v10514_v59 = vsub.f32 %v10385_v48, %v938_v54 }
  0xd0   : > { %v10517_v60 = vsub.f32 %v10387_v49, %v940_v55  ;;  %v846_v2 = vpop.xlane.xlu0 %845 }
  0xd1   : > { %v852_v3 = vpop.xlane.xlu1 %851  ;;  %v939_v4 = vmul.f32 0.03125, %v846_v2  ;;  %v1002_v6 = vmul.f32 %v10514_v59, %v10514_v59 }
  0xd2   : > { %v941_v5 = vmul.f32 0.03125, %v852_v3  ;;  %v1004_v7 = vmul.f32 %v10517_v60, %v10517_v60 }
  0xd3   : > { %v10524_v10 = vsub.f32 %v10389_v50, %v939_v4  ;;  %v1034_v48 = vsel %vm840_vm1, %v1002_v6, 0.0 }
  0xd4   : > { %v10527_v11 = vsub.f32 %v10395_v53, %v941_v5  ;;  %1035 = vadd.xlane.f32.xlu0 %v1034_v48  ;;  %v855_v49 = vpop.xlane.xlu0 %854  ;;  %v1040_v15 = vsel %vm840_vm1, %v1004_v7, 0.0 }
  0xd5   : > { %v858_v14 = vpop.xlane.xlu1 %857  ;;  %v942_v18 = vmul.f32 0.03125, %v855_v49  ;;  %v1003_v22 = vmul.f32 %v10524_v10, %v10524_v10 }
  0xd6   : > { %v943_v19 = vmul.f32 0.03125, %v858_v14  ;;  %v1005_v23 = vmul.f32 %v10527_v11, %v10527_v11 }
  0xd7   : > { %v10536_v50 = vsub.f32 %v10401_v56, %v942_v18  ;;  %v1037_v26 = vsel %vm840_vm1, %v1003_v22, 0.0 }
  0xd8   : > { %v10539_v53 = vsub.f32 %v10403_v57, %v943_v19  ;;  %1041 = vadd.xlane.f32.xlu0 %v1040_v15  ;;  %1038 = vadd.xlane.f32.xlu1 %v1037_v26  ;;  %v861_v27 = vpop.xlane.xlu0 %860  ;;  %v1043_v31 = vsel %vm840_vm1, %v1005_v23, 0.0 }
  0xd9   : > { %v864_v30 = vpop.xlane.xlu1 %863  ;;  %v944_v34 = vmul.f32 0.03125, %v861_v27  ;;  %v1006_v38 = vmul.f32 %v10536_v50, %v10536_v50 }
  0xda   : > { %v945_v35 = vmul.f32 0.03125, %v864_v30  ;;  %v1007_v56 = vmul.f32 %v10539_v53, %v10539_v53 }
  0xdb   : > { %v10548_v39 = vsub.f32 %v10405_v58, %v944_v34  ;;  %v1046_v42 = vsel %vm840_vm1, %v1006_v38, 0.0 }
  0xdc   : > { %v10551_v57 = vsub.f32 %v10411_v61, %v945_v35  ;;  %1044 = vadd.xlane.f32.xlu1 %v1043_v31  ;;  %1047 = vadd.xlane.f32.xlu0 %v1046_v42  ;;  %v867_v43 = vpop.xlane.xlu0 %866  ;;  %v1049_v47 = vsel %vm840_vm1, %v1007_v56, 0.0 }
  0xdd   : > { %v870_v46 = vpop.xlane.xlu1 %869  ;;  %v946_v51 = vmul.f32 0.03125, %v867_v43  ;;  %v1008_v54 = vmul.f32 %v10548_v39, %v10548_v39 }
  0xde   : > { %v947_v52 = vmul.f32 0.03125, %v870_v46  ;;  %v1009_v58 = vmul.f32 %v10551_v57, %v10551_v57 }
  0xdf   : > { %v10560_v55 = vsub.f32 %v10413_v62, %v946_v51  ;;  %v1052_v2 = vsel %vm840_vm1, %v1008_v54, 0.0 }
  0xe0   : > { %v10563_v61 = vsub.f32 %v10415_v63, %v947_v52  ;;  %1050 = vadd.xlane.f32.xlu1 %v1049_v47  ;;  %1053 = vadd.xlane.f32.xlu0 %v1052_v2  ;;  %v873_v3 = vpop.xlane.xlu0 %872  ;;  %v1055_v5 = vsel %vm840_vm1, %v1009_v58, 0.0 }
  0xe1   : > { %v876_v4 = vpop.xlane.xlu1 %875  ;;  %v948_v6 = vmul.f32 0.03125, %v873_v3  ;;  %v1010_v48 = vmul.f32 %v10560_v55, %v10560_v55 }
  0xe2   : > { %v949_v7 = vmul.f32 0.03125, %v876_v4  ;;  %v1011_v62 = vmul.f32 %v10563_v61, %v10563_v61 }
  0xe3   : > { %v10572_v49 = vsub.f32 %v10417_v0, %v948_v6  ;;  %v1058_v14 = vsel %vm840_vm1, %v1010_v48, 0.0 }
  0xe4   : > { %v10575_v63 = vsub.f32 %v10419_v1, %v949_v7  ;;  %1056 = vadd.xlane.f32.xlu1 %v1055_v5  ;;  %1059 = vadd.xlane.f32.xlu0 %v1058_v14  ;;  %v879_v15 = vpop.xlane.xlu0 %878  ;;  %v1061_v19 = vsel %vm840_vm1, %v1011_v62, 0.0 }
  0xe5   : > { %v882_v18 = vpop.xlane.xlu1 %881  ;;  %v950_v22 = vmul.f32 0.03125, %v879_v15  ;;  %v1012_v26 = vmul.f32 %v10572_v49, %v10572_v49 }
  0xe6   : > { %v951_v23 = vmul.f32 0.03125, %v882_v18  ;;  %v1013_v0 = vmul.f32 %v10575_v63, %v10575_v63 }
  0xe7   : > { %v10584_v27 = vsub.f32 %v10433_v8, %v950_v22  ;;  %v1064_v30 = vsel %vm840_vm1, %v1012_v26, 0.0 }
  0xe8   : > { %v10587_v1 = vsub.f32 %v10435_v9, %v951_v23  ;;  %1062 = vadd.xlane.f32.xlu1 %v1061_v19  ;;  %1065 = vadd.xlane.f32.xlu0 %v1064_v30  ;;  %v885_v31 = vpop.xlane.xlu0 %884  ;;  %v1067_v35 = vsel %vm840_vm1, %v1013_v0, 0.0 }
  0xe9   : > { %v888_v34 = vpop.xlane.xlu1 %887  ;;  %v952_v38 = vmul.f32 0.03125, %v885_v31  ;;  %v1014_v42 = vmul.f32 %v10584_v27, %v10584_v27 }
  0xea   : > { %v953_v56 = vmul.f32 0.03125, %v888_v34  ;;  %v1015_v8 = vmul.f32 %v10587_v1, %v10587_v1 }
  0xeb   : > { %v10596_v43 = vsub.f32 %v10441_v12, %v952_v38  ;;  %v1070_v46 = vsel %vm840_vm1, %v1014_v42, 0.0  ;;  %v9303_v42 = vld [vmem:[%s10289_s29] sm:$0xff]  }
  0xec   : > { %v10599_v9 = vsub.f32 %v10443_v13, %v953_v56  ;;  %1068 = vadd.xlane.f32.xlu1 %v1067_v35  ;;  %1071 = vadd.xlane.f32.xlu0 %v1070_v46  ;;  %v891_v47 = vpop.xlane.xlu0 %890  ;;  %v1073_v52 = vsel %vm840_vm1, %v1015_v8, 0.0 }
  0xed   : > { %v894_v51 = vpop.xlane.xlu1 %893  ;;  %v954_v54 = vmul.f32 0.03125, %v891_v47  ;;  %v1016_v2 = vmul.f32 %v10596_v43, %v10596_v43  ;;  %8282 = vmatprep.subr.bf16.mxu0 %v9303_v42 }
  0xee   : > { %v955_v58 = vmul.f32 0.03125, %v894_v51  ;;  %v1017_v12 = vmul.f32 %v10599_v9, %v10599_v9  ;;  %8283 = vmatpush3.bf16.msra.mxu0 %v9303_v42 }
  0xef   : > { %v10608_v3 = vsub.f32 %v10449_v16, %v954_v54  ;;  %v1076_v4 = vsel %vm840_vm1, %v1016_v2, 0.0 }
  0xf0   : > { %v10611_v13 = vsub.f32 %v10451_v17, %v955_v58  ;;  %1074 = vadd.xlane.f32.xlu1 %v1073_v52  ;;  %1077 = vadd.xlane.f32.xlu0 %v1076_v4  ;;  %v897_v5 = vpop.xlane.xlu0 %896  ;;  %v1079_v7 = vsel %vm840_vm1, %v1017_v12, 0.0  ;;  %v9304_v12 = vld [vmem:[%s10289_s29 + $0x8] sm:$0xff]   ;;  %s15658_s29 = sld [smem:[#allocation181_spill]] }
  0xf1   : > { %v900_v6 = vpop.xlane.xlu1 %899  ;;  %v956_v48 = vmul.f32 0.03125, %v897_v5  ;;  %v1018_v14 = vmul.f32 %v10608_v3, %v10608_v3  ;;  %8284 = vmatprep.subr.bf16.mxu0 %v9304_v12 }
  0xf2   : > { %v957_v62 = vmul.f32 0.03125, %v900_v6  ;;  %v1019_v16 = vmul.f32 %v10611_v13, %v10611_v13  ;;  %8285 = vmatpush3.bf16.msra.mxu0 %v9304_v12 }
  0xf3   : > { %v10620_v15 = vsub.f32 %v10457_v20, %v956_v48  ;;  %v1082_v18 = vsel %vm840_vm1, %v1018_v14, 0.0 }
  0xf4   : > { %v10623_v17 = vsub.f32 %v10459_v21, %v957_v62  ;;  %1080 = vadd.xlane.f32.xlu1 %v1079_v7  ;;  %1083 = vadd.xlane.f32.xlu0 %v1082_v18  ;;  %v903_v19 = vpop.xlane.xlu0 %902  ;;  %v1085_v23 = vsel %vm840_vm1, %v1019_v16, 0.0 }
  0xf5   : > { %v906_v22 = vpop.xlane.xlu1 %905  ;;  %v958_v26 = vmul.f32 0.03125, %v903_v19  ;;  %v1020_v30 = vmul.f32 %v10620_v15, %v10620_v15 }
  0xf6   : > { %v959_v0 = vmul.f32 0.03125, %v906_v22  ;;  %v1021_v20 = vmul.f32 %v10623_v17, %v10623_v17  ;;  %s15659_s30 = scalar_lea.vmem %s15658_s29, %s10270_s16  ;;  %s10163_s29 = smov 8  }
  0xf7   : > { %v10632_v21 = vsub.f32 %v10465_v24, %v958_v26  ;;  %v1088_v34 = vsel %vm840_vm1, %v1020_v30, 0.0 }
  0xf8   : > { %v10635_v31 = vsub.f32 %v10467_v25, %v959_v0  ;;  %1086 = vadd.xlane.f32.xlu1 %v1085_v23  ;;  %1089 = vadd.xlane.f32.xlu0 %v1088_v34  ;;  %v909_v35 = vpop.xlane.xlu0 %908  ;;  %v1091_v56 = vsel %vm840_vm1, %v1021_v20, 0.0 }
  0xf9   : > { %v912_v38 = vpop.xlane.xlu1 %911  ;;  %v960_v8 = vmul.f32 0.03125, %v909_v35  ;;  %v1022_v47 = vmul.f32 %v10632_v21, %v10632_v21 }
  0xfa   : > { %v961_v46 = vmul.f32 0.03125, %v912_v38  ;;  %v1023_v24 = vmul.f32 %v10635_v31, %v10635_v31 }
  0xfb   : > { %v10645_v25 = vsub.f32 %v10473_v28, %v960_v8  ;;  %v1094_v52 = vsel %vm840_vm1, %v1022_v47, 0.0 }
  0xfc   : > { %v10648_v51 = vsub.f32 %v10475_v29, %v961_v46  ;;  %1092 = vadd.xlane.f32.xlu1 %v1091_v56  ;;  %1095 = vadd.xlane.f32.xlu0 %v1094_v52  ;;  %v915_v54 = vpop.xlane.xlu0 %914  ;;  %v1097_v2 = vsel %vm840_vm1, %v1023_v24, 0.0 }
  0xfd   : > { %v918_v58 = vpop.xlane.xlu1 %917  ;;  %v962_v4 = vmul.f32 0.03125, %v915_v54  ;;  %v1024_v6 = vmul.f32 %v10645_v25, %v10645_v25 }
  0xfe   : > { %v963_v5 = vmul.f32 0.03125, %v918_v58  ;;  %v1025_v28 = vmul.f32 %v10648_v51, %v10648_v51 }
  0xff   : > { %v10658_v29 = vsub.f32 %v10481_v32, %v962_v4  ;;  %v1100_v48 = vsel %vm840_vm1, %v1024_v6, 0.0 }
 0x100   : > { %v10661_v7 = vsub.f32 %v10483_v33, %v963_v5  ;;  %1098 = vadd.xlane.f32.xlu1 %v1097_v2  ;;  %1101 = vadd.xlane.f32.xlu0 %v1100_v48  ;;  %v921_v62 = vpop.xlane.xlu0 %920  ;;  %v1103_v16 = vsel %vm840_vm1, %v1025_v28, 0.0 }
 0x101   : > { %v924_v14 = vpop.xlane.xlu1 %923  ;;  %v964_v18 = vmul.f32 0.03125, %v921_v62  ;;  %v1026_v22 = vmul.f32 %v10658_v29, %v10658_v29 }
 0x102   : > { %v965_v19 = vmul.f32 0.03125, %v924_v14  ;;  %v1027_v32 = vmul.f32 %v10661_v7, %v10661_v7 }
 0x103   : > { %v10670_v33 = vsub.f32 %v10489_v36, %v964_v18  ;;  %v1106_v26 = vsel %vm840_vm1, %v1026_v22, 0.0 }
 0x104   : > { %v10673_v23 = vsub.f32 %v10491_v37, %v965_v19  ;;  %1104 = vadd.xlane.f32.xlu1 %v1103_v16  ;;  %1107 = vadd.xlane.f32.xlu0 %v1106_v26  ;;  %v927_v0 = vpop.xlane.xlu0 %926  ;;  %v1109_v20 = vsel %vm840_vm1, %v1027_v32, 0.0 }
 0x105   : > { %v930_v30 = vpop.xlane.xlu1 %929  ;;  %v966_v34 = vmul.f32 0.03125, %v927_v0  ;;  %v1028_v38 = vmul.f32 %v10670_v33, %v10670_v33 }
 0x106   : > { %v967_v35 = vmul.f32 0.03125, %v930_v30  ;;  %v1029_v36 = vmul.f32 %v10673_v23, %v10673_v23 }
 0x107   : > { %v10682_v56 = vsub.f32 %v10497_v40, %v966_v34  ;;  %v1112_v42 = vsel %vm840_vm1, %v1028_v38, 0.0 }
 0x108   : > { %v10685_v37 = vsub.f32 %v10499_v41, %v967_v35  ;;  %1110 = vadd.xlane.f32.xlu1 %v1109_v20  ;;  %1113 = vadd.xlane.f32.xlu0 %v1112_v42  ;;  %v933_v8 = vpop.xlane.xlu0 %932  ;;  %v1115_v47 = vsel %vm840_vm1, %v1029_v36, 0.0 }
 0x109   : > { %v936_v46 = vpop.xlane.xlu1 %935  ;;  %v968_v24 = vmul.f32 0.03125, %v933_v8  ;;  %v1030_v54 = vmul.f32 %v10682_v56, %v10682_v56 }
 0x10a   : > { %v969_v52 = vmul.f32 0.03125, %v936_v46  ;;  %v1031_v40 = vmul.f32 %v10685_v37, %v10685_v37 }
 0x10b   : > { %v10694_v58 = vsub.f32 %v10505_v44, %v968_v24  ;;  %v1118_v2 = vsel %vm840_vm1, %v1030_v54, 0.0 }
 0x10c   : > { %v10697_v41 = vsub.f32 %v10507_v45, %v969_v52  ;;  %1116 = vadd.xlane.f32.xlu1 %v1115_v47  ;;  %1119 = vadd.xlane.f32.xlu0 %v1118_v2  ;;  %v1121_v12 = vsel %vm840_vm1, %v1031_v40, 0.0 }
 0x10d   : > { %v1032_v4 = vmul.f32 %v10694_v58, %v10694_v58 }
 0x10e   : > { %v1033_v5 = vmul.f32 %v10697_v41, %v10697_v41 }
 0x10f   : > { %v1124_v6 = vsel %vm840_vm1, %v1032_v4, 0.0 }
 0x110   : > { %1122 = vadd.xlane.f32.xlu1 %v1121_v12  ;;  %1125 = vadd.xlane.f32.xlu0 %v1124_v6  ;;  %v1127_v44 = vsel %vm840_vm1, %v1033_v5, 0.0  ;;  %v10713_v12 = vld [vmem:[%s15659_s30] ss:$0 sm:$0xff]  ;;  %s10164_s30 = smov 16  }
 0x114   : > { %1128 = vadd.xlane.f32.xlu1 %v1127_v44 }
 0x161   : > { %v1036_v45 = vpop.xlane.xlu0 %1035 }
 0x162   : > { %v1130_v28 = vmul.f32 0.03125, %v1036_v45 }
 0x164   : > { %v1162_v48 = vadd.f32 1e-05, %v1130_v28 }
 0x165   : > { %v1039_v62 = vpop.xlane.xlu1 %1038  ;;  %v1042_v14 = vpop.xlane.xlu0 %1041 }
 0x166   : > { %9317 = vrsqrt.f32 %v1162_v48  ;;  %v1131_v16 = vmul.f32 0.03125, %v1039_v62  ;;  %v1132_v18 = vmul.f32 0.03125, %v1042_v14 }
 0x168   : > { %v1163_v19 = vadd.f32 1e-05, %v1131_v16  ;;  %v1164_v22 = vadd.f32 1e-05, %v1132_v18  ;;  %v10722_v16 = vld [vmem:[%s15661_s19] ss:$0 sm:$0xff] }
 0x169   : > { %v1045_v32 = vpop.xlane.xlu1 %1044  ;;  %v1048_v26 = vpop.xlane.xlu0 %1047 }
 0x16a   : > { %9319 = vrsqrt.f32 %v1163_v19  ;;  %v1133_v0 = vmul.f32 0.03125, %v1045_v32  ;;  %v1134_v30 = vmul.f32 0.03125, %v1048_v26 }
 0x16b   : > { %9321 = vrsqrt.f32 %v1164_v22 }
 0x16c   : > { %v1165_v20 = vadd.f32 1e-05, %v1133_v0  ;;  %v1166_v34 = vadd.f32 1e-05, %v1134_v30 }
 0x16d   : > { %v1051_v35 = vpop.xlane.xlu1 %1050  ;;  %v1054_v38 = vpop.xlane.xlu0 %1053 }
 0x16e   : > { %9323 = vrsqrt.f32 %v1165_v20  ;;  %v1135_v36 = vmul.f32 0.03125, %v1051_v35  ;;  %v1136_v42 = vmul.f32 0.03125, %v1054_v38 }
 0x16f   : > { %9325 = vrsqrt.f32 %v1166_v34 }
 0x170   : > { %v9318_v8 = vpop.eup %9317  ;;  %v1167_v46 = vadd.f32 1e-05, %v1135_v36  ;;  %v1168_v47 = vadd.f32 1e-05, %v1136_v42 }
 0x171   : > { %v1057_v24 = vpop.xlane.xlu1 %1056  ;;  %v1060_v52 = vpop.xlane.xlu0 %1059  ;;  %v1226_v54 = vmul.f32 %v9318_v8, %v10514_v59 }
 0x172   : > { %9327 = vrsqrt.f32 %v1167_v46  ;;  %v1137_v40 = vmul.f32 0.03125, %v1057_v24  ;;  %v1138_v2 = vmul.f32 0.03125, %v1060_v52 }
 0x173   : > { %9329 = vrsqrt.f32 %v1168_v47  ;;  %v1264_v59 = vmul.f32 %v10713_v12, %v1226_v54 }
 0x174   : > { %v9320_v4 = vpop.eup %9319  ;;  %v1169_v5 = vadd.f32 1e-05, %v1137_v40  ;;  %v1170_v6 = vadd.f32 1e-05, %v1138_v2 }
 0x175   : > { %v9322_v44 = vpop.eup %9321  ;;  %v1063_v45 = vpop.xlane.xlu1 %1062  ;;  %v1227_v48 = vmul.f32 %v9320_v4, %v10524_v10  ;;  %v1302_v20 = vadd.f32 %v10722_v16, %v1264_v59 }
 0x176   : > { %v1066_v28 = vpop.xlane.xlu0 %1065  ;;  %9331 = vrsqrt.f32 %v1169_v5  ;;  %v1139_v62 = vmul.f32 0.03125, %v1063_v45  ;;  %v1228_v18 = vmul.f32 %v9322_v44, %v10517_v60 }
 0x177   : > { %v1140_v14 = vmul.f32 0.03125, %v1066_v28  ;;  %9333 = vrsqrt.f32 %v1170_v6  ;;  %v1265_v19 = vmul.f32 %v10713_v12, %v1227_v48 }
 0x178   : > { %v9324_v22 = vpop.eup %9323  ;;  %v1171_v32 = vadd.f32 1e-05, %v1139_v62  ;;  %v1266_v38 = vmul.f32 %v10713_v12, %v1228_v18 }
 0x179   : > { %v1172_v26 = vadd.f32 1e-05, %v1140_v14  ;;  %v9326_v10 = vpop.eup %9325  ;;  %v1069_v0 = vpop.xlane.xlu1 %1068  ;;  %v1303_v34 = vadd.f32 %v10722_v16, %v1265_v19  ;;  %v1229_v35 = vmul.f32 %v9324_v22, %v10527_v11 }
 0x17a   : > { %v1072_v30 = vpop.xlane.xlu0 %1071  ;;  %9335 = vrsqrt.f32 %v1171_v32  ;;  %v1141_v36 = vmul.f32 0.03125, %v1069_v0  ;;  %v1230_v46 = vmul.f32 %v9326_v10, %v10536_v50  ;;  %v1304_v11 = vadd.f32 %v10722_v16, %v1266_v38 }
 0x17b   : > { %v1142_v60 = vmul.f32 0.03125, %v1072_v30  ;;  %9337 = vrsqrt.f32 %v1172_v26  ;;  %v1334_v42 = vpack.c.bf16 %v1303_v34, %v1302_v20  ;;  %v1267_v8 = vmul.f32 %v10713_v12, %v1229_v35 }
 0x17c   : > { %v9328_v47 = vpop.eup %9327  ;;  %v1173_v24 = vadd.f32 1e-05, %v1141_v36  ;;  %v1268_v6 = vmul.f32 %v10713_v12, %v1230_v46 }
 0x17d   : > { %v1174_v52 = vadd.f32 1e-05, %v1142_v60  ;;  %v9330_v54 = vpop.eup %9329  ;;  %v1075_v40 = vpop.xlane.xlu1 %1074  ;;  %8286 = vmatprep.mubr.msk.bf16.mxu0 %vm840_vm1, %v1334_v42  ;;  %v1305_v4 = vadd.f32 %v10722_v16, %v1267_v8  ;;  %v1231_v5 = vmul.f32 %v9328_v47, %v10539_v53 }
 0x17e   : > { %v1078_v2 = vpop.xlane.xlu0 %1077  ;;  %9339 = vrsqrt.f32 %v1173_v24  ;;  %v1143_v44 = vmul.f32 0.03125, %v1075_v40  ;;  %v1232_v50 = vmul.f32 %v9330_v54, %v10548_v39  ;;  %v1306_v53 = vadd.f32 %v10722_v16, %v1268_v6 }
 0x17f   : > { %v1144_v45 = vmul.f32 0.03125, %v1078_v2  ;;  %9341 = vrsqrt.f32 %v1174_v52  ;;  %v1335_v28 = vpack.c.bf16 %v1305_v4, %v1304_v11  ;;  %v1269_v48 = vmul.f32 %v10713_v12, %v1231_v5 }
 0x180   : > { %v9332_v59 = vpop.eup %9331  ;;  %v1175_v62 = vadd.f32 1e-05, %v1143_v44  ;;  %v1270_v39 = vmul.f32 %v10713_v12, %v1232_v50 }
 0x181   : > { %v1176_v14 = vadd.f32 1e-05, %v1144_v45  ;;  %v9334_v18 = vpop.eup %9333  ;;  %v1081_v19 = vpop.xlane.xlu1 %1080  ;;  %8287 = vmatmul.mubr.msk.bf16.vlgmr.msra.gmra.mrb[0].mxu0 %vm840_vm1, %v1335_v28  ;;  %v1307_v32 = vadd.f32 %v10722_v16, %v1269_v48  ;;  %v1233_v26 = vmul.f32 %v9332_v59, %v10551_v57 }
 0x182   : > { %v1084_v22 = vpop.xlane.xlu0 %1083  ;;  %9343 = vrsqrt.f32 %v1175_v62  ;;  %v1145_v10 = vmul.f32 0.03125, %v1081_v19  ;;  %v1234_v34 = vmul.f32 %v9334_v18, %v10560_v55  ;;  %v1308_v57 = vadd.f32 %v10722_v16, %v1270_v39 }
 0x183   : > { %v1146_v0 = vmul.f32 0.03125, %v1084_v22  ;;  %9345 = vrsqrt.f32 %v1176_v14  ;;  %v1336_v30 = vpack.c.bf16 %v1307_v32, %v1306_v53  ;;  %v1271_v20 = vmul.f32 %v10713_v12, %v1233_v26 }
 0x184   : > { %v9336_v35 = vpop.eup %9335  ;;  %v1177_v38 = vadd.f32 1e-05, %v1145_v10  ;;  %v1272_v24 = vmul.f32 %v10713_v12, %v1234_v34 }
 0x185   : > { %v1178_v36 = vadd.f32 1e-05, %v1146_v0  ;;  %v9338_v60 = vpop.eup %9337  ;;  %v1087_v42 = vpop.xlane.xlu1 %1086  ;;  %8290 = vmatprep.mubr.msk.bf16.mxu0 %vm840_vm1, %v1336_v30  ;;  %v1309_v46 = vadd.f32 %v10722_v16, %v1271_v20  ;;  %v1235_v47 = vmul.f32 %v9336_v35, %v10563_v61 }
 0x186   : > { %v1090_v8 = vpop.xlane.xlu0 %1089  ;;  %9347 = vrsqrt.f32 %v1177_v38  ;;  %v1147_v52 = vmul.f32 0.03125, %v1087_v42  ;;  %v1236_v55 = vmul.f32 %v9338_v60, %v10572_v49  ;;  %v1310_v61 = vadd.f32 %v10722_v16, %v1272_v24 }
 0x187   : > { %v1148_v54 = vmul.f32 0.03125, %v1090_v8  ;;  %9349 = vrsqrt.f32 %v1178_v36  ;;  %v1337_v40 = vpack.c.bf16 %v1309_v46, %v1308_v57  ;;  %v1273_v2 = vmul.f32 %v10713_v12, %v1235_v47 }
 0x188   : > { %v9340_v11 = vpop.eup %9339  ;;  %v1179_v4 = vadd.f32 1e-05, %v1147_v52  ;;  %v1274_v49 = vmul.f32 %v10713_v12, %v1236_v55 }
 0x189   : > { %v1180_v5 = vadd.f32 1e-05, %v1148_v54  ;;  %v9342_v6 = vpop.eup %9341  ;;  %v1093_v44 = vpop.xlane.xlu1 %1092  ;;  %8291 = vmatmul.mubr.msk.bf16.gmra.mrb[4].mxu0 %vm840_vm1, %v1337_v40  ;;  %v1311_v50 = vadd.f32 %v10722_v16, %v1273_v2  ;;  %v1237_v28 = vmul.f32 %v9340_v11, %v10575_v63 }
 0x18a   : > { %v1096_v45 = vpop.xlane.xlu0 %1095  ;;  %9351 = vrsqrt.f32 %v1179_v4  ;;  %v1149_v48 = vmul.f32 0.03125, %v1093_v44  ;;  %v1238_v18 = vmul.f32 %v9342_v6, %v10584_v27  ;;  %v1312_v63 = vadd.f32 %v10722_v16, %v1274_v49 }
 0x18b   : > { %v1150_v59 = vmul.f32 0.03125, %v1096_v45  ;;  %9353 = vrsqrt.f32 %v1180_v5  ;;  %v1338_v62 = vpack.c.bf16 %v1311_v50, %v1310_v61  ;;  %v1275_v14 = vmul.f32 %v10713_v12, %v1237_v28 }
 0x18c   : > { %v9344_v19 = vpop.eup %9343  ;;  %v1181_v22 = vadd.f32 1e-05, %v1149_v48  ;;  %v1276_v30 = vmul.f32 %v10713_v12, %v1238_v18 }
 0x18d   : > { %v1182_v53 = vadd.f32 1e-05, %v1150_v59  ;;  %v9346_v32 = vpop.eup %9345  ;;  %v1099_v26 = vpop.xlane.xlu1 %1098  ;;  %8294 = vmatprep.mubr.msk.bf16.mxu0 %vm840_vm1, %v1338_v62  ;;  %v1313_v10 = vadd.f32 %v10722_v16, %v1275_v14  ;;  %v1239_v0 = vmul.f32 %v9344_v19, %v10587_v1 }
 0x18e   : > { %v1102_v39 = vpop.xlane.xlu0 %1101  ;;  %9355 = vrsqrt.f32 %v1181_v22  ;;  %v1151_v20 = vmul.f32 0.03125, %v1099_v26  ;;  %v1240_v27 = vmul.f32 %v9346_v32, %v10596_v43  ;;  %v1314_v1 = vadd.f32 %v10722_v16, %v1276_v30 }
 0x18f   : > { %v1152_v34 = vmul.f32 0.03125, %v1102_v39  ;;  %9357 = vrsqrt.f32 %v1182_v53  ;;  %v1339_v35 = vpack.c.bf16 %v1313_v10, %v1312_v63  ;;  %v1277_v38 = vmul.f32 %v10713_v12, %v1239_v0 }
 0x190   : > { %v9348_v36 = vpop.eup %9347  ;;  %v1183_v60 = vadd.f32 1e-05, %v1151_v20  ;;  %v1278_v43 = vmul.f32 %v10713_v12, %v1240_v27 }
 0x191   : > { %v1184_v42 = vadd.f32 1e-05, %v1152_v34  ;;  %v9350_v8 = vpop.eup %9349  ;;  %v1105_v57 = vpop.xlane.xlu1 %1104  ;;  %8295 = vmatmul.mubr.msk.bf16.gmra.mrb[8].mxu0 %vm840_vm1, %v1339_v35  ;;  %v1315_v47 = vadd.f32 %v10722_v16, %v1277_v38  ;;  %v1241_v24 = vmul.f32 %v9348_v36, %v10599_v9 }
 0x192   : > { %v1108_v46 = vpop.xlane.xlu0 %1107  ;;  %9359 = vrsqrt.f32 %v1183_v60  ;;  %v1153_v52 = vmul.f32 0.03125, %v1105_v57  ;;  %v1242_v2 = vmul.f32 %v9350_v8, %v10608_v3  ;;  %v1316_v9 = vadd.f32 %v10722_v16, %v1278_v43 }
 0x193   : > { %v1154_v54 = vmul.f32 0.03125, %v1108_v46  ;;  %9361 = vrsqrt.f32 %v1184_v42  ;;  %v1340_v55 = vpack.c.bf16 %v1315_v47, %v1314_v1  ;;  %v1279_v40 = vmul.f32 %v10713_v12, %v1241_v24 }
 0x194   : > { %v9352_v11 = vpop.eup %9351  ;;  %v1185_v4 = vadd.f32 1e-05, %v1153_v52  ;;  %v1280_v28 = vmul.f32 %v10713_v12, %v1242_v2 }
 0x195   : > { %v1186_v5 = vadd.f32 1e-05, %v1154_v54  ;;  %v9354_v6 = vpop.eup %9353  ;;  %v1111_v44 = vpop.xlane.xlu1 %1110  ;;  %8298 = vmatprep.mubr.msk.bf16.mxu0 %vm840_vm1, %v1340_v55  ;;  %v1317_v61 = vadd.f32 %v10722_v16, %v1279_v40  ;;  %v1243_v50 = vmul.f32 %v9352_v11, %v10611_v13 }
 0x196   : > { %v1114_v45 = vpop.xlane.xlu0 %1113  ;;  %9363 = vrsqrt.f32 %v1185_v4  ;;  %v1155_v49 = vmul.f32 0.03125, %v1111_v44  ;;  %v1244_v3 = vmul.f32 %v9354_v6, %v10620_v15  ;;  %v1318_v13 = vadd.f32 %v10722_v16, %v1280_v28 }
 0x197   : > { %v1156_v48 = vmul.f32 0.03125, %v1114_v45  ;;  %9365 = vrsqrt.f32 %v1186_v5  ;;  %v1341_v59 = vpack.c.bf16 %v1317_v61, %v1316_v9  ;;  %v1281_v62 = vmul.f32 %v10713_v12, %v1243_v50 }
 0x198   : > { %v9356_v14 = vpop.eup %9355  ;;  %v1187_v18 = vadd.f32 1e-05, %v1155_v49  ;;  %v1282_v15 = vmul.f32 %v10713_v12, %v1244_v3 }
 0x199   : > { %v1188_v19 = vadd.f32 1e-05, %v1156_v48  ;;  %v9358_v22 = vpop.eup %9357  ;;  %v1117_v53 = vpop.xlane.xlu1 %1116  ;;  %8299 = vmatmul.mubr.msk.bf16.gmra.mrb[12].mxu0 %vm840_vm1, %v1341_v59  ;;  %v1319_v26 = vadd.f32 %v10722_v16, %v1281_v62  ;;  %v1245_v39 = vmul.f32 %v9356_v14, %v10623_v17 }
 0x19a   : > { %v1120_v32 = vpop.xlane.xlu0 %1119  ;;  %9367 = vrsqrt.f32 %v1187_v18  ;;  %v1157_v63 = vmul.f32 0.03125, %v1117_v53  ;;  %v1246_v20 = vmul.f32 %v9358_v22, %v10632_v21  ;;  %v1320_v17 = vadd.f32 %v10722_v16, %v1282_v15 }
 0x19b   : > { %v1158_v10 = vmul.f32 0.03125, %v1120_v32  ;;  %9369 = vrsqrt.f32 %v1188_v19  ;;  %v1342_v0 = vpack.c.bf16 %v1319_v26, %v1318_v13  ;;  %v1283_v30 = vmul.f32 %v10713_v12, %v1245_v39 }
 0x19c   : > { %v9360_v34 = vpop.eup %9359  ;;  %v1189_v27 = vadd.f32 1e-05, %v1157_v63  ;;  %v1284_v57 = vmul.f32 %v10713_v12, %v1246_v20 }
 0x19d   : > { %v1190_v35 = vadd.f32 1e-05, %v1158_v10  ;;  %v9362_v38 = vpop.eup %9361  ;;  %v1123_v36 = vpop.xlane.xlu1 %1122  ;;  %8302 = vmatprep.mubr.msk.bf16.mxu0 %vm840_vm1, %v1342_v0  ;;  %v1321_v42 = vadd.f32 %v10722_v16, %v1283_v30  ;;  %v1247_v8 = vmul.f32 %v9360_v34, %v10635_v31 }
 0x19e   : > { %v1126_v60 = vpop.xlane.xlu0 %1125  ;;  %9371 = vrsqrt.f32 %v1189_v27  ;;  %v1159_v46 = vmul.f32 0.03125, %v1123_v36  ;;  %v1248_v21 = vmul.f32 %v9362_v38, %v10645_v25  ;;  %v1322_v31 = vadd.f32 %v10722_v16, %v1284_v57 }
 0x19f   : > { %v1160_v1 = vmul.f32 0.03125, %v1126_v60  ;;  %9373 = vrsqrt.f32 %v1190_v35  ;;  %v1343_v47 = vpack.c.bf16 %v1321_v42, %v1320_v17  ;;  %v1285_v24 = vmul.f32 %v10713_v12, %v1247_v8 }
 0x1a0   : > { %v9364_v43 = vpop.eup %9363  ;;  %v1191_v52 = vadd.f32 1e-05, %v1159_v46  ;;  %v1286_v4 = vmul.f32 %v10713_v12, %v1248_v21 }
 0x1a1   : > { %v1192_v54 = vadd.f32 1e-05, %v1160_v1  ;;  %v9366_v55 = vpop.eup %9365  ;;  %v1129_v40 = vpop.xlane.xlu1 %1128  ;;  %8303 = vmatmul.mubr.msk.bf16.gmra.mrb[16].mxu0 %vm840_vm1, %v1343_v47  ;;  %v1323_v2 = vadd.f32 %v10722_v16, %v1285_v24  ;;  %v1249_v11 = vmul.f32 %v9364_v43, %v10648_v51 }
 0x1a2   : > { %9375 = vrsqrt.f32 %v1191_v52  ;;  %v1161_v25 = vmul.f32 0.03125, %v1129_v40  ;;  %v1250_v5 = vmul.f32 %v9366_v55, %v10658_v29  ;;  %v1324_v50 = vadd.f32 %v10722_v16, %v1286_v4 }
 0x1a3   : > { %9377 = vrsqrt.f32 %v1192_v54  ;;  %v1344_v6 = vpack.c.bf16 %v1323_v2, %v1322_v31  ;;  %v1287_v44 = vmul.f32 %v10713_v12, %v1249_v11 }
 0x1a4   : > { %v9368_v45 = vpop.eup %9367  ;;  %v1193_v9 = vadd.f32 1e-05, %v1161_v25  ;;  %v1288_v49 = vmul.f32 %v10713_v12, %v1250_v5 }
 0x1a5   : > { %v9370_v61 = vpop.eup %9369  ;;  %8306 = vmatprep.mubr.msk.bf16.mxu0 %vm840_vm1, %v1344_v6  ;;  %v1325_v28 = vadd.f32 %v10722_v16, %v1287_v44  ;;  %v1251_v51 = vmul.f32 %v9368_v45, %v10661_v7 }
 0x1a6   : > { %9379 = vrsqrt.f32 %v1193_v9  ;;  %v1252_v29 = vmul.f32 %v9370_v61, %v10670_v33  ;;  %v1326_v14 = vadd.f32 %v10722_v16, %v1288_v49 }
 0x1a7   : > { %v1345_v48 = vpack.c.bf16 %v1325_v28, %v1324_v50  ;;  %v1289_v3 = vmul.f32 %v10713_v12, %v1251_v51 }
 0x1a8   : > { %v9372_v59 = vpop.eup %9371  ;;  %v1290_v7 = vmul.f32 %v10713_v12, %v1252_v29 }
 0x1a9   : > { %v9374_v62 = vpop.eup %9373  ;;  %8307 = vmatmul.mubr.msk.bf16.gmra.mrb[20].mxu0 %vm840_vm1, %v1345_v48  ;;  %v1327_v18 = vadd.f32 %v10722_v16, %v1289_v3  ;;  %v1253_v19 = vmul.f32 %v9372_v59, %v10673_v23 }
 0x1aa   : > { %v1254_v22 = vmul.f32 %v9374_v62, %v10682_v56  ;;  %v1328_v26 = vadd.f32 %v10722_v16, %v1290_v7 }
 0x1ab   : > { %v1346_v53 = vpack.c.bf16 %v1327_v18, %v1326_v14  ;;  %v1291_v33 = vmul.f32 %v10713_v12, %v1253_v19 }
 0x1ac   : > { %v9376_v32 = vpop.eup %9375  ;;  %v1292_v63 = vmul.f32 %v10713_v12, %v1254_v22 }
 0x1ad   : > { %v9378_v13 = vpop.eup %9377  ;;  %8310 = vmatprep.mubr.msk.bf16.mxu0 %vm840_vm1, %v1346_v53  ;;  %v1329_v39 = vadd.f32 %v10722_v16, %v1291_v33  ;;  %v1255_v15 = vmul.f32 %v9376_v32, %v10685_v37 }
 0x1ae   : > { %v1256_v23 = vmul.f32 %v9378_v13, %v10694_v58  ;;  %v1330_v30 = vadd.f32 %v10722_v16, %v1292_v63 }
 0x1af   : > { %v1347_v10 = vpack.c.bf16 %v1329_v39, %v1328_v26  ;;  %v1293_v56 = vmul.f32 %v10713_v12, %v1255_v15 }
 0x1b0   : > { %v9380_v0 = vpop.eup %9379  ;;  %v1294_v27 = vmul.f32 %v10713_v12, %v1256_v23 }
 0x1b1   : > { %8311 = vmatmul.mubr.msk.bf16.gmra.mrb[24].mxu0 %vm840_vm1, %v1347_v10  ;;  %v1331_v20 = vadd.f32 %v10722_v16, %v1293_v56  ;;  %v1257_v34 = vmul.f32 %v9380_v0, %v10697_v41  ;;  %v10838_v41 = vld [vmem:[%s15662_s22] ss:$0 sm:$0xff] }
 0x1b2   : > { %v1332_v58 = vadd.f32 %v10722_v16, %v1294_v27 }
 0x1b3   : > { %v1348_v37 = vpack.c.bf16 %v1331_v20, %v1330_v30  ;;  %v1295_v35 = vmul.f32 %v10713_v12, %v1257_v34 }
 0x1b5   : > { %8314 = vmatprep.mubr.msk.bf16.mxu0 %vm840_vm1, %v1348_v37  ;;  %v1333_v38 = vadd.f32 %v10722_v16, %v1295_v35 }
 0x1b7   : > { %v1349_v36 = vpack.c.bf16 %v1333_v38, %v1332_v58 }
 0x1b9   : > { %8315 = vmatmul.mubr.msk.bf16.gmra.mrb[28].mxu0 %vm840_vm1, %v1349_v36 }
 0x254   : > { %v8288_v60 = vpop.f32.mrb[0].mxu0 }
 0x255   : > { %v1455_v17 = vpop.f32.mrb[1].mxu0  ;;  %v1464_v12 = vadd.f32 %v8288_v60, %v10838_v41 }
 0x256   : > { %v8289_v42 = vpop.f32.mrb[2].mxu0  ;;  %v1456_v46 = vadd.f32 %v10838_v41, %v1455_v17 }
 0x257   : > { %v1467_v8 = vadd.f32 %v8289_v42, %v10838_v41  ;;  %v1458_v57 = vpop.f32.mrb[3].mxu0 }
 0x258   : > { %v1459_v16 = vadd.f32 %v10838_v41, %v1458_v57 }
 0x259   : > { %v10844_v1 = vpack.c.bf16 %v1467_v8, %v1464_v12 }
 0x25a   : > { %v1582_v21 = vpack.c.bf16 %v1459_v16, %v1456_v46 }
 0x25b   : > { %1712 = vrot.lane.b32.xlu1 %v10844_v1, %s10157_s26 }
 0x25c   : > { %1710 = vrot.lane.b32.xlu0 %v1582_v21, %s10157_s26  ;;  %v8292_v47 = vpop.f32.mrb[4].mxu0  ;;  %8334 = vmatprep.mubr.msk.bf16.mxu1 %vm1726_vm2, %v1582_v21 }
 0x25d   : > { %v1471_v24 = vpop.f32.mrb[5].mxu0  ;;  %v1480_v52 = vadd.f32 %v8292_v47, %v10838_v41 }
 0x25e   : > { %v8293_v43 = vpop.f32.mrb[6].mxu0  ;;  %v1472_v40 = vadd.f32 %v10838_v41, %v1471_v24 }
 0x25f   : > { %v1483_v54 = vadd.f32 %v8293_v43, %v10838_v41  ;;  %1616 = vrot.lane.b32.xlu1 %v10844_v1, %s10158_s28  ;;  %v1474_v55 = vpop.f32.mrb[7].mxu0 }
 0x260   : > { %v1475_v31 = vadd.f32 %v10838_v41, %v1474_v55  ;;  %4215 = vrot.lane.b32.xlu0 %v1582_v21, %s10159_s24 }
 0x261   : > { %v10857_v2 = vpack.c.bf16 %v1483_v54, %v1480_v52 }
 0x262   : > { %v10859_v11 = vpack.c.bf16 %v1475_v31, %v1472_v40 }
 0x263   : > { %1648 = vrot.lane.b32.xlu1 %v10844_v1, %s10160_s3 }
 0x264   : > { %1716 = vrot.lane.b32.xlu0 %v10857_v2, %s10157_s26  ;;  %v8296_v4 = vpop.f32.mrb[8].mxu0 }
 0x265   : > { %v1487_v25 = vpop.f32.mrb[9].mxu0  ;;  %v1496_v6 = vadd.f32 %v8296_v4, %v10838_v41 }
 0x266   : > { %v8297_v5 = vpop.f32.mrb[10].mxu0  ;;  %v1488_v9 = vadd.f32 %v10838_v41, %v1487_v25 }
 0x267   : > { %v1499_v44 = vadd.f32 %v8297_v5, %v10838_v41  ;;  %1680 = vrot.lane.b32.xlu1 %v10844_v1, %s10161_s5  ;;  %v1490_v45 = vpop.f32.mrb[11].mxu0 }
 0x268   : > { %v1491_v61 = vadd.f32 %v10838_v41, %v1490_v45  ;;  %1714 = vrot.lane.b32.xlu0 %v10859_v11, %s10157_s26 }
 0x269   : > { %v10873_v50 = vpack.c.bf16 %v1499_v44, %v1496_v6 }
 0x26a   : > { %v10875_v28 = vpack.c.bf16 %v1491_v61, %v1488_v9 }
 0x26b   : > { %4217 = vrot.lane.b32.xlu1 %v10844_v1, %s10159_s24 }
 0x26c   : > { %4219 = vrot.lane.b32.xlu0 %v10859_v11, %s10159_s24  ;;  %v8300_v51 = vpop.f32.mrb[12].mxu0 }
 0x26d   : > { %v1503_v49 = vpop.f32.mrb[13].mxu0  ;;  %v1512_v3 = vadd.f32 %v8300_v51, %v10838_v41 }
 0x26e   : > { %v1504_v29 = vadd.f32 %v10838_v41, %v1503_v49  ;;  %v8301_v48 = vpop.f32.mrb[14].mxu0 }
 0x26f   : > { %v1515_v59 = vadd.f32 %v8301_v48, %v10838_v41  ;;  %1614 = vrot.lane.b32.xlu1 %v1582_v21, %s10158_s28  ;;  %v1506_v62 = vpop.f32.mrb[15].mxu0 }
 0x270   : > { %v1507_v14 = vadd.f32 %v10838_v41, %v1506_v62  ;;  %1720 = vrot.lane.b32.xlu0 %v10873_v50, %s10157_s26 }
 0x271   : > { %v10888_v18 = vpack.c.bf16 %v1515_v59, %v1512_v3 }
 0x272   : > { %v10890_v19 = vpack.c.bf16 %v1507_v14, %v1504_v29 }
 0x273   : > { %1646 = vrot.lane.b32.xlu1 %v1582_v21, %s10160_s3 }
 0x274   : > { %1624 = vrot.lane.b32.xlu0 %v10873_v50, %s10158_s28  ;;  %v8304_v7 = vpop.f32.mrb[16].mxu0 }
 0x275   : > { %v1528_v22 = vadd.f32 %v8304_v7, %v10838_v41  ;;  %v1519_v53 = vpop.f32.mrb[17].mxu0 }
 0x276   : > { %v8305_v33 = vpop.f32.mrb[18].mxu0  ;;  %v1520_v26 = vadd.f32 %v10838_v41, %v1519_v53 }
 0x277   : > { %v1531_v32 = vadd.f32 %v8305_v33, %v10838_v41  ;;  %1678 = vrot.lane.b32.xlu1 %v1582_v21, %s10161_s5  ;;  %v1522_v13 = vpop.f32.mrb[19].mxu0 }
 0x278   : > { %v1523_v39 = vadd.f32 %v10838_v41, %v1522_v13  ;;  %1656 = vrot.lane.b32.xlu0 %v10873_v50, %s10160_s3 }
 0x279   : > { %v10902_v15 = vpack.c.bf16 %v1531_v32, %v1528_v22 }
 0x27a   : > { %v10904_v63 = vpack.c.bf16 %v1523_v39, %v1520_v26 }
 0x27b   : > { %1620 = vrot.lane.b32.xlu1 %v10857_v2, %s10158_s28 }
 0x27c   : > { %1688 = vrot.lane.b32.xlu0 %v10873_v50, %s10161_s5  ;;  %v8308_v23 = vpop.f32.mrb[20].mxu0  ;;  %8366 = vmatprep.mubr.msk.bf16.mxu0 %vm1726_vm2, %v10904_v63 }
 0x27d   : > { %v1544_v10 = vadd.f32 %v8308_v23, %v10838_v41  ;;  %v1535_v56 = vpop.f32.mrb[21].mxu0 }
 0x27e   : > { %v1536_v0 = vadd.f32 %v10838_v41, %v1535_v56  ;;  %v8309_v30 = vpop.f32.mrb[22].mxu0 }
 0x27f   : > { %v1547_v20 = vadd.f32 %v8309_v30, %v10838_v41  ;;  %1652 = vrot.lane.b32.xlu1 %v10857_v2, %s10160_s3  ;;  %v1538_v34 = vpop.f32.mrb[23].mxu0 }
 0x280   : > { %v1539_v27 = vadd.f32 %v10838_v41, %v1538_v34  ;;  %1718 = vrot.lane.b32.xlu0 %v10875_v28, %s10157_s26 }
 0x281   : > { %v10920_v37 = vpack.c.bf16 %v1547_v20, %v1544_v10 }
 0x282   : > { %v10922_v35 = vpack.c.bf16 %v1539_v27, %v1536_v0 }
 0x283   : > { %1684 = vrot.lane.b32.xlu1 %v10857_v2, %s10161_s5 }
 0x284   : > { %1622 = vrot.lane.b32.xlu0 %v10875_v28, %s10158_s28  ;;  %v8312_v58 = vpop.f32.mrb[24].mxu0 }
 0x285   : > { %v1560_v38 = vadd.f32 %v8312_v58, %v10838_v41  ;;  %v1551_v36 = vpop.f32.mrb[25].mxu0 }
 0x286   : > { %v1552_v60 = vadd.f32 %v10838_v41, %v1551_v36  ;;  %v8313_v17 = vpop.f32.mrb[26].mxu0 }
 0x287   : > { %v1563_v42 = vadd.f32 %v8313_v17, %v10838_v41  ;;  %4221 = vrot.lane.b32.xlu1 %v10857_v2, %s10159_s24  ;;  %v1554_v12 = vpop.f32.mrb[27].mxu0 }
 0x288   : > { %v1555_v8 = vadd.f32 %v10838_v41, %v1554_v12  ;;  %1654 = vrot.lane.b32.xlu0 %v10875_v28, %s10160_s3 }
 0x289   : > { %v10936_v57 = vpack.c.bf16 %v1563_v42, %v1560_v38 }
 0x28a   : > { %v10938_v46 = vpack.c.bf16 %v1555_v8, %v1552_v60 }
 0x28b   : > { %1618 = vrot.lane.b32.xlu1 %v10859_v11, %s10158_s28 }
 0x28c   : > { %1686 = vrot.lane.b32.xlu0 %v10875_v28, %s10161_s5  ;;  %v8316_v16 = vpop.f32.mrb[28].mxu0 }
 0x28d   : > { %v1576_v21 = vadd.f32 %v8316_v16, %v10838_v41  ;;  %v1567_v47 = vpop.f32.mrb[29].mxu0 }
 0x28e   : > { %v1568_v24 = vadd.f32 %v10838_v41, %v1567_v47  ;;  %v8317_v43 = vpop.f32.mrb[30].mxu0 }
 0x28f   : > { %v1579_v52 = vadd.f32 %v8317_v43, %v10838_v41  ;;  %1650 = vrot.lane.b32.xlu1 %v10859_v11, %s10160_s3  ;;  %v1570_v54 = vpop.f32.mrb[31].mxu0 }
 0x290   : > { %v1571_v55 = vadd.f32 %v10838_v41, %v1570_v54  ;;  %4223 = vrot.lane.b32.xlu0 %v10875_v28, %s10159_s24 }
 0x291   : > { %v10952_v40 = vpack.c.bf16 %v1579_v52, %v1576_v21 }
 0x292   : > { %v10954_v31 = vpack.c.bf16 %v1571_v55, %v1568_v24 }
 0x293   : > { %1682 = vrot.lane.b32.xlu1 %v10859_v11, %s10161_s5 }
 0x294   : > { %1724 = vrot.lane.b32.xlu0 %v10888_v18, %s10157_s26 }
 0x297   : > { %4225 = vrot.lane.b32.xlu1 %v10873_v50, %s10159_s24 }
 0x298   : > { %1628 = vrot.lane.b32.xlu0 %v10888_v18, %s10158_s28 }
 0x29b   : > { %4229 = vrot.lane.b32.xlu1 %v10888_v18, %s10159_s24 }
 0x29c   : > { %1660 = vrot.lane.b32.xlu0 %v10888_v18, %s10160_s3 }
 0x29f   : > { %1874 = vrot.lane.b32.xlu1 %v10902_v15, %s10157_s26 }
 0x2a0   : > { %1692 = vrot.lane.b32.xlu0 %v10888_v18, %s10161_s5 }
 0x2a3   : > { %1632 = vrot.lane.b32.xlu1 %v10902_v15, %s10158_s28 }
 0x2a4   : > { %1722 = vrot.lane.b32.xlu0 %v10890_v19, %s10157_s26 }
 0x2a7   : > { %1664 = vrot.lane.b32.xlu1 %v10902_v15, %s10160_s3 }
 0x2a8   : > { %1626 = vrot.lane.b32.xlu0 %v10890_v19, %s10158_s28 }
 0x2ab   : > { %1696 = vrot.lane.b32.xlu1 %v10902_v15, %s10161_s5 }
 0x2ac   : > { %1658 = vrot.lane.b32.xlu0 %v10890_v19, %s10160_s3 }
 0x2af   : > { %1872 = vrot.lane.b32.xlu1 %v10904_v63, %s10157_s26 }
 0x2b0   : > { %1690 = vrot.lane.b32.xlu0 %v10890_v19, %s10161_s5 }
 0x2b3   : > { %1630 = vrot.lane.b32.xlu1 %v10904_v63, %s10158_s28 }
 0x2b4   : > { %4227 = vrot.lane.b32.xlu0 %v10890_v19, %s10159_s24 }
 0x2b7   : > { %1662 = vrot.lane.b32.xlu1 %v10904_v63, %s10160_s3 }
 0x2b8   : > { %4338 = vrot.lane.b32.xlu0 %v10902_v15, %s10159_s24 }
 0x2bb   : > { %1694 = vrot.lane.b32.xlu1 %v10904_v63, %s10161_s5 }
 0x2bc   : > { %4336 = vrot.lane.b32.xlu0 %v10904_v63, %s10159_s24 }
 0x2bf   : > { %1878 = vrot.lane.b32.xlu1 %v10920_v37, %s10157_s26 }
 0x2c0   : > { %4342 = vrot.lane.b32.xlu0 %v10920_v37, %s10159_s24 }
 0x2c3   : > { %1636 = vrot.lane.b32.xlu1 %v10920_v37, %s10158_s28 }
 0x2c4   : > { %1882 = vrot.lane.b32.xlu0 %v10936_v57, %s10157_s26 }
 0x2c7   : > { %1668 = vrot.lane.b32.xlu1 %v10920_v37, %s10160_s3 }
 0x2c8   : > { %1640 = vrot.lane.b32.xlu0 %v10936_v57, %s10158_s28 }
 0x2cb   : > { %1700 = vrot.lane.b32.xlu1 %v10920_v37, %s10161_s5 }
 0x2cc   : > { %1672 = vrot.lane.b32.xlu0 %v10936_v57, %s10160_s3 }
 0x2cd   : > { %v1713_v41 = vpop.permute.xlu1 %1712 }
 0x2ce   : > { %v1711_v4 = vpop.permute.xlu0 %1710  ;;  %v1755_v9 = vsel %vm1726_vm2, %v1713_v41, 0 }
 0x2cf   : > { %1876 = vrot.lane.b32.xlu1 %v10922_v35, %s10157_s26  ;;  %8950 = vmatprep.subr.msk.bf16.mxu1 %vm1726_vm2, %v1711_v4  ;;  %v1752_v25 = vsel %vm1726_vm2, %v1711_v4, 0 }
 0x2d0   : > { %4346 = vrot.lane.b32.xlu0 %v10936_v57, %s10159_s24  ;;  %8319 = vmatpush3.bf16.xpose.msra.mxu1 %v1752_v25 }
 0x2d1   : > { %v11022_v5 = vpop.permute.xlu1 %1616  ;;  %8951 = vmatprep.subr.msk.bf16.mxu1 %vm1726_vm2, %v1713_v41 }
 0x2d2   : > { %v11025_v6 = vpop.permute.xlu0 %4215 }
 0x2d3   : > { %15663 = vst [vmem:[#allocation9_spill] sm:$0xff] %v11025_v6  ;;  %1634 = vrot.lane.b32.xlu1 %v10922_v35, %s10158_s28 }
 0x2d4   : > { %1880 = vrot.lane.b32.xlu0 %v10938_v46, %s10157_s26 }
 0x2d5   : > { %v11031_v44 = vpop.permute.xlu1 %1648 }
 0x2d6   : > { %v1717_v45 = vpop.permute.xlu0 %1716 }
 0x2d7   : > { %1666 = vrot.lane.b32.xlu1 %v10922_v35, %s10160_s3  ;;  %v1761_v7 = vsel %vm1726_vm2, %v1717_v45, 0 }
 0x2d8   : > { %1638 = vrot.lane.b32.xlu0 %v10938_v46, %s10158_s28  ;;  %8321 = vmatpush3.bf16.xpose.msra.mxu1 %v1755_v9 }
 0x2d9   : > { %v11038_v61 = vpop.permute.xlu1 %1680 }
 0x2da   : > { %15664 = vst [vmem:[#allocation10_spill] sm:$0xff] %v11038_v61  ;;  %v1715_v51 = vpop.permute.xlu0 %1714 }
 0x2db   : > { %1698 = vrot.lane.b32.xlu1 %v10922_v35, %s10161_s5  ;;  %8952 = vmatprep.subr.msk.bf16.mxu1 %vm1726_vm2, %v1715_v51  ;;  %v1758_v48 = vsel %vm1726_vm2, %v1715_v51, 0 }
 0x2dc   : > { %1670 = vrot.lane.b32.xlu0 %v10938_v46, %s10160_s3 }
 0x2dd   : > { %v11045_v49 = vpop.permute.xlu1 %4217 }
 0x2de   : > { %15665 = vst [vmem:[#allocation11_spill] sm:$0xff] %v11045_v49  ;;  %v11047_v29 = vpop.permute.xlu0 %4219 }
 0x2df   : > { %15666 = vst [vmem:[#allocation12_spill] sm:$0xff] %v11047_v29  ;;  %4340 = vrot.lane.b32.xlu1 %v10922_v35, %s10159_s24 }
 0x2e0   : > { %1702 = vrot.lane.b32.xlu0 %v10938_v46, %s10161_s5  ;;  %8323 = vmatpush3.bf16.xpose.msra.mxu1 %v1758_v48 }
 0x2e1   : > { %v11054_v3 = vpop.permute.xlu1 %1614  ;;  %8953 = vmatprep.subr.msk.bf16.mxu1 %vm1726_vm2, %v1717_v45 }
 0x2e2   : > { %v1721_v59 = vpop.permute.xlu0 %1720 }
 0x2e3   : > { %1704 = vrot.lane.b32.xlu1 %v10936_v57, %s10161_s5  ;;  %v1767_v0 = vsel %vm1726_vm2, %v1721_v59, 0 }
 0x2e4   : > { %1886 = vrot.lane.b32.xlu0 %v10952_v40, %s10157_s26 }
 0x2e5   : > { %v11061_v62 = vpop.permute.xlu1 %1646 }
 0x2e6   : > { %v11063_v14 = vpop.permute.xlu0 %1624 }
 0x2e7   : > { %4344 = vrot.lane.b32.xlu1 %v10938_v46, %s10159_s24 }
 0x2e8   : > { %1644 = vrot.lane.b32.xlu0 %v10952_v40, %s10158_s28  ;;  %8325 = vmatpush3.bf16.xpose.msra.mxu1 %v1761_v7 }
 0x2e9   : > { %v11070_v22 = vpop.permute.xlu1 %1678 }
 0x2ea   : > { %15667 = vst [vmem:[#allocation13_spill] sm:$0xff] %v11070_v22  ;;  %v11072_v53 = vpop.permute.xlu0 %1656 }
 0x2eb   : > { %15668 = vst [vmem:[#allocation14_spill] sm:$0xff] %v11072_v53  ;;  %1708 = vrot.lane.b32.xlu1 %v10952_v40, %s10161_s5 }
 0x2ec   : > { %1676 = vrot.lane.b32.xlu0 %v10952_v40, %s10160_s3 }
 0x2ed   : > { %v11078_v33 = vpop.permute.xlu1 %1620 }
 0x2ee   : > { %v11080_v32 = vpop.permute.xlu0 %1688 }
 0x2ef   : > { %15669 = vst [vmem:[#allocation15_spill] sm:$0xff] %v11080_v32  ;;  %4348 = vrot.lane.b32.xlu1 %v10954_v31, %s10159_s24 }
 0x2f0   : > { %4350 = vrot.lane.b32.xlu0 %v10952_v40, %s10159_s24 }
 0x2f1   : > { %v11086_v13 = vpop.permute.xlu1 %1652 }
 0x2f2   : > { %15670 = vst [vmem:[#allocation16_spill] sm:$0xff] %v11086_v13  ;;  %v1719_v26 = vpop.permute.xlu0 %1718 }
 0x2f3   : > { %2035 = vrot.lane.b32.xlu1 %v11022_v5, %s10157_s26  ;;  %8954 = vmatprep.subr.msk.bf16.mxu1 %vm1726_vm2, %v1719_v26  ;;  %v1764_v39 = vsel %vm1726_vm2, %v1719_v26, 0 }
 0x2f4   : > { %1884 = vrot.lane.b32.xlu0 %v10954_v31, %s10157_s26  ;;  %8327 = vmatpush3.bf16.xpose.msra.mxu1 %v1764_v39 }
 0x2f5   : > { %v11094_v63 = vpop.permute.xlu1 %1684  ;;  %8955 = vmatprep.subr.msk.bf16.mxu1 %vm1726_vm2, %v1721_v59 }
 0x2f6   : > { %15671 = vst [vmem:[#allocation17_spill] sm:$0xff] %v11094_v63  ;;  %v11097_v23 = vpop.permute.xlu0 %1622 }
 0x2f7   : > { %2357 = vrot.lane.b32.xlu1 %v11031_v44, %s10157_s26 }
 0x2f8   : > { %1642 = vrot.lane.b32.xlu0 %v10954_v31, %s10158_s28 }
 0x2f9   : > { %v11103_v10 = vpop.permute.xlu1 %4221 }
 0x2fa   : > { %15672 = vst [vmem:[#allocation18_spill] sm:$0xff] %v11103_v10  ;;  %v11105_v56 = vpop.permute.xlu0 %1654 }
 0x2fb   : > { %15673 = vst [vmem:[#allocation19_spill] sm:$0xff] %v11105_v56  ;;  %4459 = vrot.lane.b32.xlu1 %v11022_v5, %s10159_s24 }
 0x2fc   : > { %1674 = vrot.lane.b32.xlu0 %v10954_v31, %s10160_s3  ;;  %8329 = vmatpush3.bf16.xpose.msra.mxu1 %v1767_v0 }
 0x2fd   : > { %v11112_v30 = vpop.permute.xlu1 %1618 }
 0x2fe   : > { %v11114_v20 = vpop.permute.xlu0 %1686 }
 0x2ff   : > { %15674 = vst [vmem:[#allocation20_spill] sm:$0xff] %v11114_v20  ;;  %4701 = vrot.lane.b32.xlu1 %v11031_v44, %s10159_s24 }
 0x300   : > { %1706 = vrot.lane.b32.xlu0 %v10954_v31, %s10161_s5 }
 0x301   : > { %v11120_v34 = vpop.permute.xlu1 %1650 }
 0x302   : > { %v11122_v27 = vpop.permute.xlu0 %4223 }
 0x303   : > { %15675 = vst [vmem:[#allocation21_spill] sm:$0xff] %v11122_v27  ;;  %2033 = vrot.lane.b32.xlu1 %v11054_v3, %s10157_s26 }
 0x304   : > { %2679 = vrot.lane.b32.xlu0 %v11038_v61, %s10157_s26 }
 0x305   : > { %v11128_v58 = vpop.permute.xlu1 %1682 }
 0x306   : > { %15676 = vst [vmem:[#allocation22_spill] sm:$0xff] %v11128_v58  ;;  %v1725_v38 = vpop.permute.xlu0 %1724 }
 0x307   : > { %2355 = vrot.lane.b32.xlu1 %v11061_v62, %s10157_s26  ;;  %v1773_v55 = vsel %vm1726_vm2, %v1725_v38, 0 }
 0x308   : > { %4699 = vrot.lane.b32.xlu0 %v11061_v62, %s10159_s24 }
 0x309   : > { %v11134_v36 = vpop.permute.xlu1 %4225 }
 0x30a   : > { %15677 = vst [vmem:[#allocation23_spill] sm:$0xff] %v11134_v36  ;;  %v11136_v60 = vpop.permute.xlu0 %1628 }
 0x30b   : > { %2677 = vrot.lane.b32.xlu1 %v11070_v22, %s10157_s26 }
 0x30c   : > { %2683 = vrot.lane.b32.xlu0 %v11094_v63, %s10157_s26 }
 0x30d   : > { %v11142_v17 = vpop.permute.xlu1 %4229 }
 0x30e   : > { %15678 = vst [vmem:[#allocation24_spill] sm:$0xff] %v11142_v17  ;;  %v11144_v42 = vpop.permute.xlu0 %1660 }
 0x30f   : > { %15679 = vst [vmem:[#allocation25_spill] sm:$0xff] %v11144_v42  ;;  %4457 = vrot.lane.b32.xlu1 %v11054_v3, %s10159_s24 }
 0x310   : > { %4461 = vrot.lane.b32.xlu0 %v11112_v30, %s10159_s24 }
 0x311   : > { %v1875_v12 = vpop.permute.xlu1 %1874 }
 0x312   : > { %v11150_v8 = vpop.permute.xlu0 %1692  ;;  %v1916_v59 = vsel %vm1726_vm2, %v1875_v12, 0 }
 0x313   : > { %15680 = vst [vmem:[#allocation26_spill] sm:$0xff] %v11150_v8  ;;  %2039 = vrot.lane.b32.xlu1 %v11078_v33, %s10157_s26 }
 0x314   : > { %4703 = vrot.lane.b32.xlu0 %v11120_v34, %s10159_s24 }
 0x315   : > { %v11156_v16 = vpop.permute.xlu1 %1632 }
 0x316   : > { %v1723_v21 = vpop.permute.xlu0 %1722 }
 0x317   : > { %2361 = vrot.lane.b32.xlu1 %v11086_v13, %s10157_s26  ;;  %8956 = vmatprep.subr.msk.bf16.mxu1 %vm1726_vm2, %v1723_v21  ;;  %v1770_v47 = vsel %vm1726_vm2, %v1723_v21, 0 }
 0x318   : > { %2043 = vrot.lane.b32.xlu0 %v11063_v14, %s10157_s26  ;;  %8331 = vmatpush3.bf16.xpose.msra.mxu1 %v1770_v47 }
 0x319   : > { %v11164_v24 = vpop.permute.xlu1 %1664  ;;  %8957 = vmatprep.subr.msk.bf16.mxu1 %vm1726_vm2, %v1725_v38 }
 0x31a   : > { %15681 = vst [vmem:[#allocation27_spill] sm:$0xff] %v11164_v24  ;;  %v11167_v43 = vpop.permute.xlu0 %1626 }
 0x31b   : > { %4463 = vrot.lane.b32.xlu1 %v11078_v33, %s10159_s24 }
 0x31c   : > { %2365 = vrot.lane.b32.xlu0 %v11072_v53, %s10157_s26 }
 0x31d   : > { %v11173_v52 = vpop.permute.xlu1 %1696 }
 0x31e   : > { %15682 = vst [vmem:[#allocation28_spill] sm:$0xff] %v11173_v52  ;;  %v11175_v54 = vpop.permute.xlu0 %1658 }
 0x31f   : > { %15683 = vst [vmem:[#allocation29_spill] sm:$0xff] %v11175_v54  ;;  %2037 = vrot.lane.b32.xlu1 %v11112_v30, %s10157_s26 }
 0x320   : > { %2687 = vrot.lane.b32.xlu0 %v11080_v32, %s10157_s26  ;;  %8333 = vmatpush3.bf16.xpose.msra.mxu1 %v1773_v55 }
 0x321   : > { %v1873_v41 = vpop.permute.xlu1 %1872 }
 0x322   : > { %8958 = vmatprep.subr.msk.bf16.mxu0 %vm1726_vm2, %v1873_v41  ;;  %v11183_v4 = vpop.permute.xlu0 %1690  ;;  %v1913_v25 = vsel %vm1726_vm2, %v1873_v41, 0 }
 0x323   : > { %15684 = vst [vmem:[#allocation30_spill] sm:$0xff] %v11183_v4  ;;  %8351 = vmatpush3.bf16.xpose.msra.mxu0 %v1913_v25  ;;  %2359 = vrot.lane.b32.xlu1 %v11120_v34, %s10157_s26 }
 0x324   : > { %8959 = vmatprep.subr.msk.bf16.mxu0 %vm1726_vm2, %v1875_v12  ;;  %2041 = vrot.lane.b32.xlu0 %v11097_v23, %s10157_s26 }
 0x325   : > { %v11191_v45 = vpop.permute.xlu1 %1630 }
 0x326   : > { %v11193_v9 = vpop.permute.xlu0 %4227 }
 0x327   : > { %15685 = vst [vmem:[#allocation31_spill] sm:$0xff] %v11193_v9  ;;  %2681 = vrot.lane.b32.xlu1 %v11128_v58, %s10157_s26  ;;  %8335 = vmatmul.mubr.msk.bf16.vlgmr.msra.gmra.mrb[0].mxu1 %vm1726_vm2, %v10844_v1 }
 0x328   : > { %2363 = vrot.lane.b32.xlu0 %v11105_v56, %s10157_s26  ;;  %8338 = vmatprep.mubr.msk.bf16.mxu1 %vm1726_vm2, %v10859_v11 }
 0x329   : > { %v11203_v51 = vpop.permute.xlu1 %1662 }
 0x32a   : > { %15686 = vst [vmem:[#allocation32_spill] sm:$0xff] %v11203_v51  ;;  %v11205_v48 = vpop.permute.xlu0 %4338 }
 0x32b   : > { %15687 = vst [vmem:[#allocation33_spill] sm:$0xff] %v11205_v48  ;;  %8353 = vmatpush3.bf16.xpose.msra.mxu0 %v1916_v59  ;;  %4467 = vrot.lane.b32.xlu1 %v11063_v14, %s10159_s24 }
 0x32c   : > { %2685 = vrot.lane.b32.xlu0 %v11114_v20, %s10157_s26 }
 0x32d   : > { %v11212_v1 = vpop.permute.xlu1 %1694 }
 0x32e   : > { %15688 = vst [vmem:[#allocation34_spill] sm:$0xff] %v11212_v1  ;;  %v11214_v7 = vpop.permute.xlu0 %4336 }
 0x32f   : > { %15689 = vst [vmem:[#allocation35_spill] sm:$0xff] %v11214_v7  ;;  %4471 = vrot.lane.b32.xlu1 %v11136_v60, %s10159_s24  ;;  %8339 = vmatmul.mubr.msk.bf16.gmra.mrb[4].mxu1 %vm1726_vm2, %v10857_v2 }
 0x330   : > { %4465 = vrot.lane.b32.xlu0 %v11097_v23, %s10159_s24  ;;  %8342 = vmatprep.mubr.msk.bf16.mxu1 %vm1726_vm2, %v10875_v28 }
 0x331   : > { %v1879_v11 = vpop.permute.xlu1 %1878 }
 0x332   : > { %v11224_v26 = vpop.permute.xlu0 %4342  ;;  %v1922_v41 = vsel %vm1726_vm2, %v1879_v11, 0 }
 0x333   : > { %15690 = vst [vmem:[#allocation36_spill] sm:$0xff] %v11224_v26  ;;  %2196 = vrot.lane.b32.xlu1 %v11156_v16, %s10157_s26 }
 0x334   : > { %2047 = vrot.lane.b32.xlu0 %v11136_v60, %s10157_s26 }
 0x335   : > { %v11230_v39 = vpop.permute.xlu1 %1636 }
 0x336   : > { %15691 = vst [vmem:[#allocation37_spill] sm:$0xff] %v11230_v39  ;;  %v1883_v0 = vpop.permute.xlu0 %1882 }
 0x337   : > { %2518 = vrot.lane.b32.xlu1 %v11164_v24, %s10157_s26  ;;  %8343 = vmatmul.mubr.msk.bf16.gmra.mrb[8].mxu1 %vm1726_vm2, %v10873_v50 }
 0x338   : > { %2369 = vrot.lane.b32.xlu0 %v11144_v42, %s10157_s26  ;;  %8346 = vmatprep.mubr.msk.bf16.mxu1 %vm1726_vm2, %v10890_v19 }
 0x339   : > { %v11240_v2 = vpop.permute.xlu1 %1668 }
 0x33a   : > { %15692 = vst [vmem:[#allocation38_spill] sm:$0xff] %v11240_v2  ;;  %v11242_v28 = vpop.permute.xlu0 %1640 }
 0x33b   : > { %15693 = vst [vmem:[#allocation39_spill] sm:$0xff] %v11242_v28  ;;  %2840 = vrot.lane.b32.xlu1 %v11173_v52, %s10157_s26 }
 0x33c   : > { %2691 = vrot.lane.b32.xlu0 %v11150_v8, %s10157_s26 }
 0x33d   : > { %v11248_v38 = vpop.permute.xlu1 %1700 }
 0x33e   : > { %15694 = vst [vmem:[#allocation40_spill] sm:$0xff] %v11248_v38  ;;  %v11250_v12 = vpop.permute.xlu0 %1672 }
 0x33f   : > { %15695 = vst [vmem:[#allocation41_spill] sm:$0xff] %v11250_v12  ;;  %2194 = vrot.lane.b32.xlu1 %v11191_v45, %s10157_s26  ;;  %8347 = vmatmul.mubr.msk.bf16.gmra.mrb[12].mxu1 %vm1726_vm2, %v10888_v18 }
 0x340   : > { %8398 = vmatprep.mubr.msk.bf16.mxu1 %vm1726_vm2, %v11054_v3  ;;  %2045 = vrot.lane.b32.xlu0 %v11167_v43, %s10157_s26 }
 0x341   : > { %v1877_v50 = vpop.permute.xlu1 %1876 }
 0x342   : > { %8960 = vmatprep.subr.msk.bf16.mxu0 %vm1726_vm2, %v1877_v50  ;;  %v11261_v19 = vpop.permute.xlu0 %4346  ;;  %v1919_v21 = vsel %vm1726_vm2, %v1877_v50, 0 }
 0x343   : > { %15696 = vst [vmem:[#allocation42_spill] sm:$0xff] %v11261_v19  ;;  %8355 = vmatpush3.bf16.xpose.msra.mxu0 %v1919_v21  ;;  %2516 = vrot.lane.b32.xlu1 %v11203_v51, %s10157_s26 }
 0x344   : > { %8961 = vmatprep.subr.msk.bf16.mxu0 %vm1726_vm2, %v1879_v11  ;;  %2367 = vrot.lane.b32.xlu0 %v11175_v54, %s10157_s26 }
 0x345   : > { %v11269_v18 = vpop.permute.xlu1 %1634 }
 0x346   : > { %v1881_v3 = vpop.permute.xlu0 %1880 }
 0x347   : > { %2838 = vrot.lane.b32.xlu1 %v11212_v1, %s10157_s26  ;;  %v1925_v21 = vsel %vm1726_vm2, %v1881_v3, 0 }
 0x348   : > { %2689 = vrot.lane.b32.xlu0 %v11183_v4, %s10157_s26 }
 0x349   : > { %v11275_v47 = vpop.permute.xlu1 %1666 }
 0x34a   : > { %15697 = vst [vmem:[#allocation43_spill] sm:$0xff] %v11275_v47  ;;  %v11277_v55 = vpop.permute.xlu0 %1638 }
 0x34b   : > { %15698 = vst [vmem:[#allocation44_spill] sm:$0xff] %v11277_v55  ;;  %8357 = vmatpush3.bf16.xpose.msra.mxu0 %v1922_v41  ;;  %4578 = vrot.lane.b32.xlu1 %v11191_v45, %s10159_s24 }
 0x34c   : > { %4469 = vrot.lane.b32.xlu0 %v11167_v43, %s10159_s24  ;;  %8962 = vmatprep.subr.msk.bf16.mxu0 %vm1726_vm2, %v1881_v3 }
 0x34d   : > { %v11285_v25 = vpop.permute.xlu1 %1698 }
 0x34e   : > { %15699 = vst [vmem:[#allocation45_spill] sm:$0xff] %v11285_v25  ;;  %v11287_v59 = vpop.permute.xlu0 %1670 }
 0x34f   : > { %15700 = vst [vmem:[#allocation46_spill] sm:$0xff] %v11287_v59  ;;  %2200 = vrot.lane.b32.xlu1 %v11230_v39, %s10157_s26 }
 0x350   : > { %4580 = vrot.lane.b32.xlu0 %v11156_v16, %s10159_s24 }
 0x351   : > { %v11293_v11 = vpop.permute.xlu1 %4340 }
 0x352   : > { %15701 = vst [vmem:[#allocation47_spill] sm:$0xff] %v11293_v11  ;;  %v11295_v50 = vpop.permute.xlu0 %1702 }
 0x353   : > { %15702 = vst [vmem:[#allocation48_spill] sm:$0xff] %v11295_v50  ;;  %2522 = vrot.lane.b32.xlu1 %v11240_v2, %s10157_s26  ;;  %8359 = vmatpush3.bf16.xpose.msra.mxu0 %v1925_v21  ;;  %v1928_v21 = vsel %vm1726_vm2, %v1883_v0, 0 }
 0x354   : > { %2204 = vrot.lane.b32.xlu0 %v11242_v28, %s10157_s26  ;;  %8963 = vmatprep.subr.msk.bf16.mxu0 %vm1726_vm2, %v1883_v0 }
 0x355   : > { %v11303_v41 = vpop.permute.xlu1 %1704 }
 0x356   : > { %15703 = vst [vmem:[#allocation49_spill] sm:$0xff] %v11303_v41  ;;  %v1887_v19 = vpop.permute.xlu0 %1886 }
 0x357   : > { %2844 = vrot.lane.b32.xlu1 %v11248_v38, %s10157_s26 }
 0x358   : > { %2202 = vrot.lane.b32.xlu0 %v11277_v55, %s10157_s26 }
 0x359   : > { %v11309_v26 = vpop.permute.xlu1 %4344 }
 0x35a   : > { %15704 = vst [vmem:[#allocation50_spill] sm:$0xff] %v11309_v26  ;;  %v11311_v3 = vpop.permute.xlu0 %1644 }
 0x35b   : > { %15705 = vst [vmem:[#allocation51_spill] sm:$0xff] %v11311_v3  ;;  %2198 = vrot.lane.b32.xlu1 %v11269_v18, %s10157_s26  ;;  %8361 = vmatpush3.bf16.xpose.msra.mxu0 %v1928_v21 }
 0x35c   : > { %2524 = vrot.lane.b32.xlu0 %v11287_v59, %s10157_s26 }
 0x35d   : > { %v11318_v11 = vpop.permute.xlu1 %1708 }
 0x35e   : > { %15706 = vst [vmem:[#allocation52_spill] sm:$0xff] %v11318_v11  ;;  %v11320_v48 = vpop.permute.xlu0 %1676 }
 0x35f   : > { %15707 = vst [vmem:[#allocation53_spill] sm:$0xff] %v11320_v48  ;;  %2520 = vrot.lane.b32.xlu1 %v11275_v47, %s10157_s26 }
 0x360   : > { %2846 = vrot.lane.b32.xlu0 %v11295_v50, %s10157_s26 }
 0x361   : > { %v11326_v26 = vpop.permute.xlu1 %4348 }
 0x362   : > { %15708 = vst [vmem:[#allocation54_spill] sm:$0xff] %v11326_v26  ;;  %v11328_v0 = vpop.permute.xlu0 %4350 }
 0x363   : > { %15709 = vst [vmem:[#allocation55_spill] sm:$0xff] %v11328_v0  ;;  %2842 = vrot.lane.b32.xlu1 %v11285_v25, %s10157_s26 }
 0x364   : > { %2208 = vrot.lane.b32.xlu0 %v11311_v3, %s10157_s26 }
 0x365   : > { %v2036_v21 = vpop.permute.xlu1 %2035 }
 0x366   : > { %v1885_v7 = vpop.permute.xlu0 %1884 }
 0x367   : > { %4582 = vrot.lane.b32.xlu1 %v11269_v18, %s10159_s24  ;;  %8964 = vmatprep.subr.msk.bf16.mxu0 %vm1726_vm2, %v1885_v7  ;;  %v1931_v17 = vsel %vm1726_vm2, %v1885_v7, 0 }
 0x368   : > { %8363 = vmatpush3.bf16.xpose.msra.mxu0 %v1931_v17  ;;  %v1934_v17 = vsel %vm1726_vm2, %v1887_v19, 0 }
 0x369   : > { %v11338_v9 = vpop.permute.xlu1 %2357  ;;  %8965 = vmatprep.subr.msk.bf16.mxu0 %vm1726_vm2, %v1887_v19 }
 0x36a   : > { %v11341_v0 = vpop.permute.xlu0 %1642 }
 0x36b   : > { %15710 = vst [vmem:[#allocation56_spill] sm:$0xff] %v11341_v0  ;;  %2526 = vrot.lane.b32.xlu1 %v11250_v12, %s10157_s26  ;;  %2206 = vrot.lane.b32.xlu0 %v11341_v0, %s10157_s26 }
 0x36d   : > { %v11347_v26 = vpop.permute.xlu1 %4459 }
 0x36e   : > { %v11349_v36 = vpop.permute.xlu0 %1674 }
 0x36f   : > { %15711 = vst [vmem:[#allocation57_spill] sm:$0xff] %v11349_v36  ;;  %2848 = vrot.lane.b32.xlu1 %v11303_v41, %s10157_s26  ;;  %2528 = vrot.lane.b32.xlu0 %v11349_v36, %s10157_s26 }
 0x370   : > { %8365 = vmatpush3.bf16.xpose.msra.mxu0 %v1934_v17 }
 0x371   : > { %v11356_v7 = vpop.permute.xlu1 %4701 }
 0x372   : > { %15712 = vst [vmem:[#allocation58_spill] sm:$0xff] %v11356_v7  ;;  %v11358_v27 = vpop.permute.xlu0 %1706 }
 0x373   : > { %15713 = vst [vmem:[#allocation59_spill] sm:$0xff] %v11358_v27  ;;  %2530 = vrot.lane.b32.xlu1 %v11320_v48, %s10157_s26  ;;  %2850 = vrot.lane.b32.xlu0 %v11358_v27, %s10157_s26 }
 0x375   : > { %v2034_v10 = vpop.permute.xlu1 %2033 }
 0x376   : > { %8966 = vmatprep.subr.msk.bf16.mxu1 %vm1726_vm2, %v2034_v10  ;;  %v11365_v41 = vpop.permute.xlu0 %2679  ;;  %v2074_v50 = vsel %vm1726_vm2, %v2034_v10, 0  ;;  %v2077_v10 = vsel %vm1726_vm2, %v2036_v21, 0 }
 0x377   : > { %8383 = vmatpush3.bf16.xpose.msra.mxu1 %v2074_v50  ;;  %2852 = vrot.lane.b32.xlu1 %v11318_v11, %s10157_s26 }
 0x378   : > { %8367 = vmatmul.mubr.msk.bf16.vlgmr.msra.gmra.mrb[32].mxu0 %vm1726_vm2, %v10902_v15  ;;  %8967 = vmatprep.subr.msk.bf16.mxu1 %vm1726_vm2, %v2036_v21 }
 0x379   : > { %8370 = vmatprep.mubr.msk.bf16.mxu0 %vm1726_vm2, %v10922_v35  ;;  %v11375_v19 = vpop.permute.xlu1 %2355 }
 0x37a   : > { %v11377_v17 = vpop.permute.xlu0 %4699  ;;  %v2396_v12 = vsel %vm1726_vm2, %v11375_v19, 0 }
 0x37b   : > { %15714 = vst [vmem:[#allocation60_spill] sm:$0xff] %v11377_v17 }
 0x37d   : > { %v11379_v7 = vpop.permute.xlu1 %2677 }
 0x37e   : > { %v11381_v27 = vpop.permute.xlu0 %2683 }
 0x37f   : > { %8385 = vmatpush3.bf16.xpose.msra.mxu1 %v2077_v10 }
 0x380   : > { %8371 = vmatmul.mubr.msk.bf16.gmra.mrb[36].mxu0 %vm1726_vm2, %v10920_v37 }
 0x381   : > { %8374 = vmatprep.mubr.msk.bf16.mxu0 %vm1726_vm2, %v10938_v46  ;;  %v11388_v15 = vpop.permute.xlu1 %4457 }
 0x382   : > { %v11390_v35 = vpop.permute.xlu0 %4461 }
 0x385   : > { %v2040_v50 = vpop.permute.xlu1 %2039 }
 0x386   : > { %v11392_v11 = vpop.permute.xlu0 %4703 }
 0x387   : > { %15715 = vst [vmem:[#allocation61_spill] sm:$0xff] %v11392_v11 }
 0x388   : > { %8375 = vmatmul.mubr.msk.bf16.gmra.mrb[40].mxu0 %vm1726_vm2, %v10936_v57 }
 0x389   : > { %8378 = vmatprep.mubr.msk.bf16.mxu0 %vm1726_vm2, %v10954_v31  ;;  %v11398_v21 = vpop.permute.xlu1 %2361 }
 0x38a   : > { %v2044_v10 = vpop.permute.xlu0 %2043 }
 0x38d   : > { %v11400_v37 = vpop.permute.xlu1 %4463 }
 0x38e   : > { %v11402_v38 = vpop.permute.xlu0 %2365 }
 0x390   : > { %8379 = vmatmul.mubr.msk.bf16.gmra.mrb[44].mxu0 %vm1726_vm2, %v10952_v40  ;;  %v2083_v40 = vsel %vm1726_vm2, %v2040_v50, 0 }
 0x391   : > { %8430 = vmatprep.mubr.msk.bf16.mxu0 %vm1726_vm2, %v11191_v45  ;;  %v2038_v46 = vpop.permute.xlu1 %2037 }
 0x392   : > { %8968 = vmatprep.subr.msk.bf16.mxu1 %vm1726_vm2, %v2038_v46  ;;  %v11409_v57 = vpop.permute.xlu0 %2687  ;;  %v2080_v31 = vsel %vm1726_vm2, %v2038_v46, 0 }
 0x393   : > { %8387 = vmatpush3.bf16.xpose.msra.mxu1 %v2080_v31 }
 0x394   : > { %8969 = vmatprep.subr.msk.bf16.mxu1 %vm1726_vm2, %v2040_v50 }
 0x395   : > { %v11413_v11 = vpop.permute.xlu1 %2359 }
 0x396   : > { %v2042_v29 = vpop.permute.xlu0 %2041 }
 0x397   : > { %v2086_v6 = vsel %vm1726_vm2, %v2042_v29, 0 }
 0x399   : > { %v11415_v49 = vpop.permute.xlu1 %2681 }
 0x39a   : > { %v11417_v25 = vpop.permute.xlu0 %2363 }
 0x39b   : > { %8389 = vmatpush3.bf16.xpose.msra.mxu1 %v2083_v40  ;;  %v2089_v40 = vsel %vm1726_vm2, %v2044_v10, 0 }
 0x39c   : > { %8970 = vmatprep.subr.msk.bf16.mxu1 %vm1726_vm2, %v2042_v29 }
 0x39d   : > { %v11421_v45 = vpop.permute.xlu1 %4467 }
 0x39e   : > { %15716 = vst [vmem:[#allocation62_spill] sm:$0xff] %v11421_v45  ;;  %v11423_v52 = vpop.permute.xlu0 %2685 }
 0x3a1   : > { %v11425_v46 = vpop.permute.xlu1 %4471 }
 0x3a2   : > { %15717 = vst [vmem:[#allocation63_spill] sm:$0xff] %v11425_v46  ;;  %v11427_v31 = vpop.permute.xlu0 %4465 }
 0x3a3   : > { %15718 = vst [vmem:[#allocation64_spill] sm:$0xff] %v11427_v31  ;;  %8391 = vmatpush3.bf16.xpose.msra.mxu1 %v2086_v6 }
 0x3a4   : > { %8971 = vmatprep.subr.msk.bf16.mxu1 %vm1726_vm2, %v2044_v10 }
 0x3a5   : > { %v2197_v17 = vpop.permute.xlu1 %2196 }
 0x3a6   : > { %v2048_v8 = vpop.permute.xlu0 %2047 }
 0x3a9   : > { %v11431_v1 = vpop.permute.xlu1 %2518 }
 0x3aa   : > { %v11433_v50 = vpop.permute.xlu0 %2369 }
 0x3ab   : > { %8393 = vmatpush3.bf16.xpose.msra.mxu1 %v2089_v40 }
 0x3ad   : > { %v11436_v48 = vpop.permute.xlu1 %2840 }
 0x3ae   : > { %v11438_v45 = vpop.permute.xlu0 %2691 }
 0x3b1   : > { %v2195_v46 = vpop.permute.xlu1 %2194 }
 0x3b2   : > { %8974 = vmatprep.subr.msk.bf16.mxu0 %vm1726_vm2, %v2195_v46  ;;  %v2046_v29 = vpop.permute.xlu0 %2045  ;;  %v2235_v6 = vsel %vm1726_vm2, %v2195_v46, 0  ;;  %v2238_v46 = vsel %vm1726_vm2, %v2197_v17, 0 }
 0x3b3   : > { %8972 = vmatprep.subr.msk.bf16.mxu1 %vm1726_vm2, %v2046_v29  ;;  %8415 = vmatpush3.bf16.xpose.msra.mxu0 %v2235_v6  ;;  %v2092_v4 = vsel %vm1726_vm2, %v2046_v29, 0  ;;  %v2095_v6 = vsel %vm1726_vm2, %v2048_v8, 0 }
 0x3b4   : > { %8395 = vmatpush3.bf16.xpose.msra.mxu1 %v2092_v4  ;;  %8975 = vmatprep.subr.msk.bf16.mxu0 %vm1726_vm2, %v2197_v17 }
 0x3b5   : > { %v11445_v10 = vpop.permute.xlu1 %2516  ;;  %8973 = vmatprep.subr.msk.bf16.mxu1 %vm1726_vm2, %v2048_v8 }
 0x3b6   : > { %v11448_v40 = vpop.permute.xlu0 %2367 }
 0x3b9   : > { %v11450_v32 = vpop.permute.xlu1 %2838 }
 0x3ba   : > { %v11452_v31 = vpop.permute.xlu0 %2689 }
 0x3bb   : > { %8417 = vmatpush3.bf16.xpose.msra.mxu0 %v2238_v46 }
 0x3bc   : > { %8397 = vmatpush3.bf16.xpose.msra.mxu1 %v2095_v6 }
 0x3bd   : > { %v11456_v29 = vpop.permute.xlu1 %4578  ;;  %8982 = vmatprep.subr.msk.bf16.mxu1 %vm1726_vm2, %v11375_v19 }
 0x3be   : > { %15719 = vst [vmem:[#allocation65_spill] sm:$0xff] %v11456_v29  ;;  %v11460_v4 = vpop.permute.xlu0 %4469 }
 0x3c1   : > { %v2201_v36 = vpop.permute.xlu1 %2200 }
 0x3c2   : > { %v11468_v8 = vpop.permute.xlu0 %4580 }
 0x3c3   : > { %8399 = vmatmul.mubr.msk.bf16.vlgmr.msra.gmra.mrb[16].mxu1 %vm1726_vm2, %v11022_v5  ;;  %15720 = vst [vmem:[#allocation66_spill] sm:$0xff] %v11468_v8  ;;  %v2399_v5 = vsel %vm1726_vm2, %v11338_v9, 0 }
 0x3c4   : > { %8402 = vmatprep.mubr.msk.bf16.mxu1 %vm1726_vm2, %v11112_v30  ;;  %8447 = vmatpush3.bf16.xpose.msra.mxu1 %v2396_v12 }
 0x3c5   : > { %v11470_v17 = vpop.permute.xlu1 %2522  ;;  %8983 = vmatprep.subr.msk.bf16.mxu1 %vm1726_vm2, %v11338_v9 }
 0x3c6   : > { %v2205_v6 = vpop.permute.xlu0 %2204 }
 0x3c9   : > { %v11474_v46 = vpop.permute.xlu1 %2844 }
 0x3ca   : > { %v2203_v19 = vpop.permute.xlu0 %2202 }
 0x3cb   : > { %8403 = vmatmul.mubr.msk.bf16.gmra.mrb[20].mxu1 %vm1726_vm2, %v11078_v33  ;;  %v2402_v33 = vsel %vm1726_vm2, %v11413_v11, 0 }
 0x3cc   : > { %8406 = vmatprep.mubr.msk.bf16.mxu1 %vm1726_vm2, %v11097_v23  ;;  %8449 = vmatpush3.bf16.xpose.msra.mxu1 %v2399_v5  ;;  %v2244_v23 = vsel %vm1726_vm2, %v2201_v36, 0  ;;  %v787_v5 = vlaneseq }
 0x3cd   : > { %v2199_v30 = vpop.permute.xlu1 %2198  ;;  %8984 = vmatprep.subr.msk.bf16.mxu1 %vm1726_vm2, %v11413_v11 }
 0x3ce   : > { %8976 = vmatprep.subr.msk.bf16.mxu0 %vm1726_vm2, %v2199_v30  ;;  %v2241_v12 = vsel %vm1726_vm2, %v2199_v30, 0  ;;  %v11496_v9 = vpop.permute.xlu0 %2524  ;;  %v2411_v30 = vsel %vm1726_vm2, %v11402_v38, 0 }
 0x3cf   : > { %8419 = vmatpush3.bf16.xpose.msra.mxu0 %v2241_v12  ;;  %v11521_v12 = vshrl.u32 %v787_v5, 7 }
 0x3d0   : > { %8977 = vmatprep.subr.msk.bf16.mxu0 %vm1726_vm2, %v2201_v36  ;;  %v2247_v36 = vsel %vm1726_vm2, %v2203_v19, 0 }
 0x3d3   : > { %8407 = vmatmul.mubr.msk.bf16.gmra.mrb[24].mxu1 %vm1726_vm2, %v11063_v14  ;;  %v2405_v14 = vsel %vm1726_vm2, %v11398_v21, 0 }
 0x3d4   : > { %8410 = vmatprep.mubr.msk.bf16.mxu1 %vm1726_vm2, %v11167_v43  ;;  %8451 = vmatpush3.bf16.xpose.msra.mxu1 %v2402_v33  ;;  %v11505_v43 = vpop.permute.xlu0 %2846  ;;  %v2414_v33 = vsel %vm1726_vm2, %v11448_v40, 0 }
 0x3d5   : > { %8985 = vmatprep.subr.msk.bf16.mxu1 %vm1726_vm2, %v11398_v21 }
 0x3d7   : > { %8421 = vmatpush3.bf16.xpose.msra.mxu0 %v2244_v23 }
 0x3d8   : > { %8978 = vmatprep.subr.msk.bf16.mxu0 %vm1726_vm2, %v2203_v19  ;;  %v2209_v11 = vpop.permute.xlu0 %2208  ;;  %v11526_v19 = vand.u32 127, %v787_v5 }
 0x3d9   : > { %v2256_v23 = vsel %vm1726_vm2, %v2209_v11, 0 }
 0x3da   : > { %vm806_vm5 = vcmp.gt.s32.totalorder %v11526_v19, %v11521_v12 }
 0x3db   : > { %8411 = vmatmul.mubr.msk.bf16.gmra.mrb[28].mxu1 %vm1726_vm2, %v11136_v60  ;;  %v2408_v60 = vsel %vm1726_vm2, %v11417_v25, 0 }
 0x3dc   : > { %8453 = vmatpush3.bf16.xpose.msra.mxu1 %v2405_v14  ;;  %8462 = vmatprep.mubr.msk.bf16.mxu1 %vm1726_vm2, %v11061_v62  ;;  %v2250_v62 = vsel %vm1726_vm2, %v2205_v6, 0  ;;  %v10162_v14 = vmov 0.0  }
 0x3dd   : > { %8986 = vmatprep.subr.msk.bf16.mxu1 %vm1726_vm2, %v11417_v25  ;;  %v2207_v21 = vpop.permute.xlu0 %2206 }
 0x3de   : > { %v2253_v25 = vsel %vm1726_vm2, %v2207_v21, 0 }
 0x3df   : > { %8423 = vmatpush3.bf16.xpose.msra.mxu0 %v2247_v36 }
 0x3e0   : > { %8979 = vmatprep.subr.msk.bf16.mxu0 %vm1726_vm2, %v2205_v6  ;;  %v790_v6 = vadd.s32 16, %v11521_v12 }
 0x3e2   : > { %vm808_vm3 = vcmp.gt.s32.totalorder %v11526_v19, %v790_v6 }
 0x3e3   : > { %v11538_v36 = vsel %vm808_vm3, -10000.0, %v10162_v14 }
 0x3e4   : > { %8455 = vmatpush3.bf16.xpose.msra.mxu1 %v2408_v60 }
 0x3e5   : > { %8987 = vmatprep.subr.msk.bf16.mxu1 %vm1726_vm2, %v11402_v38  ;;  %v789_v38 = vadd.s32 8, %v11521_v12 }
 0x3e7   : > { %8425 = vmatpush3.bf16.xpose.msra.mxu0 %v2250_v62  ;;  %vm807_vm4 = vcmp.gt.s32.totalorder %v11526_v19, %v789_v38 }
 0x3e8   : > { %8980 = vmatprep.subr.msk.bf16.mxu0 %vm1726_vm2, %v2207_v21  ;;  %v2417_v21 = vsel %vm1726_vm2, %v11433_v50, 0  ;;  %v11550_v5 = vsel %vm807_vm4, -10000.0, %v10162_v14 }
 0x3ec   : > { %8457 = vmatpush3.bf16.xpose.msra.mxu1 %v2411_v30  ;;  %v795_v30 = vadd.s32 56, %v11521_v12 }
 0x3ed   : > { %8988 = vmatprep.subr.msk.bf16.mxu1 %vm1726_vm2, %v11448_v40  ;;  %v791_v40 = vadd.s32 24, %v11521_v12 }
 0x3ee   : > { %vm813_vm7 = vcmp.gt.s32.totalorder %v11526_v19, %v795_v30 }
 0x3ef   : > { %8427 = vmatpush3.bf16.xpose.msra.mxu0 %v2253_v25  ;;  %v11554_v25 = vsel %vm806_vm5, -10000.0, %v10162_v14  ;;  %vm809_vm6 = vcmp.gt.s32.totalorder %v11526_v19, %v791_v40  ;;  %v793_v40 = vadd.s32 40, %v11521_v12  ;;  %vm5599_vm5 = vcmask 130048  }
 0x3f0   : > { %8981 = vmatprep.subr.msk.bf16.mxu0 %vm1726_vm2, %v2209_v11 }
 0x3f1   : > { %vm811_vm9 = vcmp.gt.s32.totalorder %v11526_v19, %v793_v40 }
 0x3f2   : > { %v11610_v40 = vsel %vm811_vm9, -10000.0, %v10162_v14 }
 0x3f4   : > { %8459 = vmatpush3.bf16.xpose.msra.mxu1 %v2414_v33 }
 0x3f5   : > { %8989 = vmatprep.subr.msk.bf16.mxu1 %vm1726_vm2, %v11433_v50  ;;  %v794_v50 = vadd.s32 48, %v11521_v12 }
 0x3f7   : > { %8429 = vmatpush3.bf16.xpose.msra.mxu0 %v2256_v23  ;;  %v2557_v23 = vsel %vm1726_vm2, %v11445_v10, 0  ;;  %vm812_vm8 = vcmp.gt.s32.totalorder %v11526_v19, %v794_v50  ;;  %v799_v50 = vadd.s32 88, %v11521_v12 }
 0x3f8   : > { %8990 = vmatprep.subr.msk.bf16.mxu0 %vm1726_vm2, %v11445_v10  ;;  %v11585_v10 = vsel %vm813_vm7, -10000.0, %v10162_v14 }
 0x3f9   : > { %vm817_vm11 = vcmp.gt.s32.totalorder %v11526_v19, %v799_v50 }
 0x3fa   : > { %v8336_v60 = vpop.f32.mrb[0].mxu1  ;;  %v11635_v50 = vsel %vm817_vm11, -10000.0, %v10162_v14 }
 0x3fb   : > { %v11545_v62 = vadd.f32 %v8336_v60, %v11538_v36  ;;  %v1809_v11 = vpop.f32.mrb[1].mxu1  ;;  %15723 = vst [vmem:[#allocation69_spill] sm:$0xff] %v11635_v50 }
 0x3fc   : > { %v8337_v6 = vpop.f32.mrb[2].mxu1  ;;  %8461 = vmatpush3.bf16.xpose.msra.mxu1 %v2417_v21  ;;  %v11569_v60 = vadd.f32 %v1809_v11, %v11554_v25  ;;  %v11576_v21 = vsel %vm809_vm6, -10000.0, %v10162_v14  ;;  %vm5632_vm6 = vcmask 195584  }
 0x3fd   : > { %v1812_v33 = vpop.f32.mrb[3].mxu1  ;;  %3003 = vmax.xlane.f32.xlu0 %v11545_v62  ;;  %8998 = vmatprep.subr.msk.bf16.mxu1 %vm1726_vm2, %v11379_v7  ;;  %v11588_v11 = vadd.f32 %v8337_v6, %v11576_v21 }
 0x3fe   : > { %v11562_v38 = vadd.f32 %v1812_v33, %v11550_v5  ;;  %8431 = vmatmul.mubr.msk.bf16.vlgmr.msra.gmra.mrb[48].mxu0 %vm1726_vm2, %v11156_v16  ;;  %v792_v16 = vadd.s32 32, %v11521_v12  ;;  %v2718_v33 = vsel %vm1726_vm2, %v11379_v7, 0  ;;  %v798_v7 = vadd.s32 80, %v11521_v12 }
 0x3ff   : > { %8434 = vmatprep.mubr.msk.bf16.mxu0 %vm1726_vm2, %v11269_v18  ;;  %8479 = vmatpush3.bf16.xpose.msra.mxu0 %v2557_v23  ;;  %v11597_v23 = vsel %vm812_vm8, -10000.0, %v10162_v14 }
 0x400   : > { %3001 = vmax.xlane.f32.xlu1 %v11562_v38  ;;  %8991 = vmatprep.subr.msk.bf16.mxu0 %vm1726_vm2, %v11431_v1  ;;  %vm810_vm10 = vcmp.gt.s32.totalorder %v11526_v19, %v792_v16  ;;  %v797_v16 = vadd.s32 72, %v11521_v12  ;;  %vm816_vm12 = vcmp.gt.s32.totalorder %v11526_v19, %v798_v7  ;;  %v803_v7 = vadd.s32 120, %v11521_v12 }
 0x401   : > { %2999 = vmax.xlane.f32.xlu0 %v11569_v60  ;;  %v11625_v29 = vsel %vm810_vm10, -10000.0, %v10162_v14 }
 0x402   : > { %v8340_v18 = vpop.f32.mrb[4].mxu1  ;;  %vm815_vm13 = vcmp.gt.s32.totalorder %v11526_v19, %v797_v16  ;;  %vm821_vm15 = vcmp.gt.s32.totalorder %v11526_v19, %v803_v7 }
 0x403   : > { %v1825_v30 = vpop.f32.mrb[5].mxu1  ;;  %8463 = vmatmul.mubr.msk.bf16.vlgmr.msra.gmra.mrb[32].mxu1 %vm1726_vm2, %v11031_v44  ;;  %v11661_v16 = vsel %vm815_vm13, -10000.0, %v10162_v14  ;;  %v11686_v7 = vsel %vm821_vm15, -10000.0, %v10162_v14 }
 0x404   : > { %v8341_v8 = vpop.f32.mrb[6].mxu1  ;;  %8466 = vmatprep.mubr.msk.bf16.mxu1 %vm1726_vm2, %v11120_v34  ;;  %8511 = vmatpush3.bf16.xpose.msra.mxu1 %v2718_v33  ;;  %v11615_v34 = vadd.f32 %v8340_v18, %v11597_v23  ;;  %v2521_v33 = vpop.permute.xlu1 %2520 }
 0x405   : > { %v11603_v6 = vadd.f32 %v8341_v8, %v11585_v10  ;;  %v1828_v44 = vpop.f32.mrb[7].mxu1  ;;  %3005 = vmax.xlane.f32.xlu0 %v11588_v11  ;;  %8999 = vmatprep.subr.msk.bf16.mxu1 %vm1726_vm2, %v11365_v41  ;;  %v2560_v8 = vsel %vm1726_vm2, %v11431_v1, 0  ;;  %v796_v1 = vadd.s32 64, %v11521_v12 }
 0x406   : > { %8435 = vmatmul.mubr.msk.bf16.gmra.mrb[52].mxu0 %vm1726_vm2, %v11230_v39  ;;  %15722 = vst [vmem:[#allocation68_spill] sm:$0xff] %v11615_v34  ;;  %v11628_v18 = vadd.f32 %v1828_v44, %v11610_v40  ;;  %v11638_v39 = vadd.f32 %v1825_v30, %v11625_v29  ;;  %v2721_v44 = vsel %vm1726_vm2, %v11365_v41, 0  ;;  %v802_v41 = vadd.s32 112, %v11521_v12 }
 0x407   : > { %15721 = vst [vmem:[#allocation67_spill] sm:$0xff] %v11603_v6  ;;  %3013 = vmax.xlane.f32.xlu1 %v11603_v6  ;;  %8438 = vmatprep.mubr.msk.bf16.mxu0 %vm1726_vm2, %v11277_v55  ;;  %vm814_vm14 = vcmp.gt.s32.totalorder %v11526_v19, %v796_v1  ;;  %v801_v1 = vadd.s32 104, %v11521_v12 }
 0x408   : > { %8481 = vmatpush3.bf16.xpose.msra.mxu0 %v2560_v8  ;;  %v11648_v8 = vsel %vm816_vm12, -10000.0, %v10162_v14  ;;  %vm820_vm0 = vcmp.gt.s32.totalorder %v11526_v19, %v802_v41  ;;  %v11697_v41 = vpop.permute.xlu1 %2842 }
 0x409   : > { %8992 = vmatprep.subr.msk.bf16.mxu0 %vm1726_vm2, %v2521_v33  ;;  %3011 = vmax.xlane.f32.xlu0 %v11615_v34  ;;  %vm819_vm3 = vcmp.gt.s32.totalorder %v11526_v19, %v801_v1 }
 0x40a   : > { %v8344_v55 = vpop.f32.mrb[8].mxu1 }
 0x40b   : > { %v1841_v6 = vpop.f32.mrb[9].mxu1  ;;  %3009 = vmax.xlane.f32.xlu1 %v11628_v18  ;;  %8467 = vmatmul.mubr.msk.bf16.gmra.mrb[36].mxu1 %vm1726_vm2, %v11086_v13 }
 0x40c   : > { %v8345_v34 = vpop.f32.mrb[10].mxu1  ;;  %8470 = vmatprep.mubr.msk.bf16.mxu1 %vm1726_vm2, %v11105_v56  ;;  %8513 = vmatpush3.bf16.xpose.msra.mxu1 %v2721_v44  ;;  %v11666_v44 = vadd.f32 %v8344_v55, %v11648_v8  ;;  %v11675_v56 = vsel %vm814_vm14, -10000.0, %v10162_v14  ;;  %v800_v55 = vadd.s32 96, %v11521_v12  ;;  %v11700_v12 = vsel %vm820_vm0, -10000.0, %v10162_v14 }
 0x40d   : > { %v11654_v30 = vadd.f32 %v8345_v34, %v11635_v50  ;;  %v1844_v13 = vpop.f32.mrb[11].mxu1  ;;  %3007 = vmax.xlane.f32.xlu0 %v11638_v39  ;;  %9000 = vmatprep.subr.msk.bf16.mxu1 %vm1726_vm2, %v11415_v49  ;;  %v2563_v34 = vsel %vm1726_vm2, %v2521_v33, 0 }
 0x40e   : > { %8439 = vmatmul.mubr.msk.bf16.gmra.mrb[56].mxu0 %vm1726_vm2, %v11242_v28  ;;  %15724 = vst [vmem:[#allocation70_spill] sm:$0xff] %v11666_v44  ;;  %v11678_v28 = vadd.f32 %v1844_v13, %v11661_v16  ;;  %v2724_v13 = vsel %vm1726_vm2, %v11415_v49, 0  ;;  %vm818_vm4 = vcmp.gt.s32.totalorder %v11526_v19, %v800_v55  ;;  %v11712_v49 = vsel %vm819_vm3, -10000.0, %v10162_v14 }
 0x40f   : > { %3021 = vmax.xlane.f32.xlu1 %v11654_v30  ;;  %8442 = vmatprep.mubr.msk.bf16.mxu0 %vm1726_vm2, %v11341_v0  ;;  %v11689_v0 = vadd.f32 %v1841_v6, %v11675_v56  ;;  %v2566_v19 = vsel %vm1726_vm2, %v11470_v17, 0 }
 0x410   : > { %8483 = vmatpush3.bf16.xpose.msra.mxu0 %v2563_v34 }
 0x411   : > { %8993 = vmatprep.subr.msk.bf16.mxu0 %vm1726_vm2, %v11470_v17  ;;  %3019 = vmax.xlane.f32.xlu0 %v11666_v44  ;;  %v2727_v17 = vsel %vm1726_vm2, %v11381_v27, 0 }
 0x412   : > { %v8348_v33 = vpop.f32.mrb[12].mxu1 }
 0x413   : > { %v1857_v34 = vpop.f32.mrb[13].mxu1  ;;  %3017 = vmax.xlane.f32.xlu1 %v11678_v28  ;;  %8471 = vmatmul.mubr.msk.bf16.gmra.mrb[40].mxu1 %vm1726_vm2, %v11072_v53  ;;  %v11717_v1 = vadd.f32 %v8348_v33, %v11700_v12  ;;  %v11733_v33 = vpop.permute.xlu1 %4582 }
 0x414   : > { %v8349_v44 = vpop.f32.mrb[14].mxu1  ;;  %8474 = vmatprep.mubr.msk.bf16.mxu1 %vm1726_vm2, %v11175_v54  ;;  %8515 = vmatpush3.bf16.xpose.msra.mxu1 %v2724_v13  ;;  %15725 = vst [vmem:[#allocation71_spill] sm:$0xff] %v11733_v33 }
 0x415   : > { %v11706_v6 = vadd.f32 %v8349_v44, %v11686_v7  ;;  %v1860_v53 = vpop.f32.mrb[15].mxu1  ;;  %3015 = vmax.xlane.f32.xlu0 %v11689_v0  ;;  %9001 = vmatprep.subr.msk.bf16.mxu1 %vm1726_vm2, %v11381_v27  ;;  %v11725_v44 = vsel %vm818_vm4, -10000.0, %v10162_v14 }
 0x416   : > { %8443 = vmatmul.mubr.msk.bf16.gmra.mrb[60].mxu0 %vm1726_vm2, %v11311_v3  ;;  %v11728_v55 = vadd.f32 %v1860_v53, %v11712_v49  ;;  %v11736_v13 = vadd.f32 %v1857_v34, %v11725_v44  ;;  %v2569_v53 = vsel %vm1726_vm2, %v11496_v9, 0  ;;  %v2730_v34 = vsel %vm1726_vm2, %v11423_v52, 0 }
 0x417   : > { %3029 = vmax.xlane.f32.xlu1 %v11706_v6  ;;  %8494 = vmatprep.mubr.msk.bf16.mxu0 %vm1726_vm2, %v11203_v51  ;;  %v2527_v14 = vpop.permute.xlu1 %2526 }
 0x418   : > { %8485 = vmatpush3.bf16.xpose.msra.mxu0 %v2566_v19  ;;  %v2572_v27 = vsel %vm1726_vm2, %v2527_v14, 0  ;;  %v2529_v19 = vpop.permute.xlu0 %2528 }
 0x419   : > { %8994 = vmatprep.subr.msk.bf16.mxu0 %vm1726_vm2, %v11496_v9  ;;  %3027 = vmax.xlane.f32.xlu0 %v11717_v1  ;;  %v2733_v9 = vsel %vm1726_vm2, %v11409_v57, 0 }
 0x41b   : > { %3025 = vmax.xlane.f32.xlu1 %v11728_v55  ;;  %8475 = vmatmul.mubr.msk.bf16.gmra.mrb[44].mxu1 %vm1726_vm2, %v11144_v42 }
 0x41c   : > { %8517 = vmatpush3.bf16.xpose.msra.mxu1 %v2727_v17  ;;  %8526 = vmatprep.mubr.msk.bf16.mxu1 %vm1726_vm2, %v11070_v22  ;;  %v11757_v17 = vpop.permute.xlu1 %2848 }
 0x41d   : > { %3023 = vmax.xlane.f32.xlu0 %v11736_v13  ;;  %9002 = vmatprep.subr.msk.bf16.mxu1 %vm1726_vm2, %v11423_v52  ;;  %v2575_v52 = vsel %vm1726_vm2, %v2529_v19, 0 }
 0x420   : > { %8487 = vmatpush3.bf16.xpose.msra.mxu0 %v2569_v53  ;;  %v2531_v53 = vpop.permute.xlu1 %2530 }
 0x421   : > { %8995 = vmatprep.subr.msk.bf16.mxu0 %vm1726_vm2, %v2527_v14  ;;  %v2736_v14 = vsel %vm1726_vm2, %v11452_v31, 0 }
 0x424   : > { %8519 = vmatpush3.bf16.xpose.msra.mxu1 %v2730_v34  ;;  %v2578_v34 = vsel %vm1726_vm2, %v2531_v53, 0 }
 0x425   : > { %9003 = vmatprep.subr.msk.bf16.mxu1 %vm1726_vm2, %v11409_v57  ;;  %v2739_v57 = vsel %vm1726_vm2, %v11438_v45, 0 }
 0x428   : > { %8489 = vmatpush3.bf16.xpose.msra.mxu0 %v2572_v27 }
 0x429   : > { %8996 = vmatprep.subr.msk.bf16.mxu0 %vm1726_vm2, %v2529_v19 }
 0x42c   : > { %8521 = vmatpush3.bf16.xpose.msra.mxu1 %v2733_v9  ;;  %v15726_v9 = vld [vmem:[#allocation41_spill] sm:$0xff] }
 0x42d   : > { %9004 = vmatprep.subr.msk.bf16.mxu1 %vm1726_vm2, %v11452_v31  ;;  %v2879_v31 = vsel %vm1726_vm2, %v11450_v32, 0 }
 0x430   : > { %8491 = vmatpush3.bf16.xpose.msra.mxu0 %v2575_v52 }
 0x431   : > { %8997 = vmatprep.subr.msk.bf16.mxu0 %vm1726_vm2, %v2531_v53  ;;  %v15727_v53 = vld [vmem:[#allocation57_spill] sm:$0xff] }
 0x434   : > { %8523 = vmatpush3.bf16.xpose.msra.mxu1 %v2736_v14 }
 0x435   : > { %9005 = vmatprep.subr.msk.bf16.mxu1 %vm1726_vm2, %v11438_v45 }
 0x438   : > { %8493 = vmatpush3.bf16.xpose.msra.mxu0 %v2578_v34  ;;  %v15728_v34 = vld [vmem:[#allocation64_spill] sm:$0xff] }
 0x439   : > { %9006 = vmatprep.subr.msk.bf16.mxu0 %vm1726_vm2, %v11450_v32  ;;  %v2882_v32 = vsel %vm1726_vm2, %v11436_v48, 0 }
 0x43c   : > { %8525 = vmatpush3.bf16.xpose.msra.mxu1 %v2739_v57 }
 0x43d   : > { %8638 = vmatprep.subr.bf16.mxu1 %v11388_v15 }
 0x43f   : > { %8495 = vmatmul.mubr.msk.bf16.vlgmr.msra.gmra.mrb[64].mxu0 %vm1726_vm2, %v11164_v24 }
 0x440   : > { %8498 = vmatprep.mubr.msk.bf16.mxu0 %vm1726_vm2, %v11275_v47  ;;  %8543 = vmatpush3.bf16.xpose.msra.mxu0 %v2879_v31  ;;  %v15729_v31 = vld [vmem:[#allocation15_spill] sm:$0xff]  ;;  %v15755_v47 = vld [vmem:[#allocation52_spill] sm:$0xff] }
 0x441   : > { %9007 = vmatprep.subr.msk.bf16.mxu0 %vm1726_vm2, %v11436_v48 }
 0x443   : > { %8527 = vmatmul.mubr.msk.bf16.vlgmr.msra.gmra.mrb[48].mxu1 %vm1726_vm2, %v11038_v61 }
 0x444   : > { %8530 = vmatprep.mubr.msk.bf16.mxu1 %vm1726_vm2, %v11128_v58  ;;  %8639 = vmatpush3.bf16.msra.mxu1 %v11388_v15 }
 0x445   : > { %8640 = vmatprep.subr.bf16.mxu1 %v11347_v26 }
 0x447   : > { %8499 = vmatmul.mubr.msk.bf16.gmra.mrb[68].mxu0 %vm1726_vm2, %v11240_v2  ;;  %v15744_v2 = vld [vmem:[#allocation11_spill] sm:$0xff] }
 0x448   : > { %8502 = vmatprep.mubr.msk.bf16.mxu0 %vm1726_vm2, %v11287_v59  ;;  %8545 = vmatpush3.bf16.xpose.msra.mxu0 %v2882_v32  ;;  %v2894_v59 = vsel %vm1726_vm2, %v11757_v17, 0 }
 0x449   : > { %9008 = vmatprep.subr.msk.bf16.mxu0 %vm1726_vm2, %v11697_v41  ;;  %8641 = vmatpush3.bf16.msra.mxu1 %v11347_v26 }
 0x44a   : > { %8642 = vmatprep.subr.bf16.mxu1 %v11390_v35 }
 0x44b   : > { %v8368_v15 = vpop.f32.mrb[32].mxu0  ;;  %8531 = vmatmul.mubr.msk.bf16.gmra.mrb[52].mxu1 %vm1726_vm2, %v11094_v63 }
 0x44c   : > { %v11802_v45 = vadd.f32 %v8368_v15, %v11538_v36  ;;  %v1970_v27 = vpop.f32.mrb[33].mxu0  ;;  %8534 = vmatprep.mubr.msk.bf16.mxu1 %vm1726_vm2, %v11114_v20 }
 0x44d   : > { %v8369_v48 = vpop.f32.mrb[34].mxu0  ;;  %8643 = vmatpush3.bf16.msra.mxu1 %v11390_v35  ;;  %v11815_v52 = vadd.f32 %v1970_v27, %v11554_v25  ;;  %v2885_v35 = vsel %vm1726_vm2, %v11697_v41, 0 }
 0x44e   : > { %v11808_v19 = vadd.f32 %v8369_v48, %v11576_v21  ;;  %v1973_v26 = vpop.f32.mrb[35].mxu0  ;;  %3035 = vmax.xlane.f32.xlu0 %v11802_v45  ;;  %8644 = vmatprep.subr.bf16.mxu1 %v11400_v37 }
 0x44f   : > { %8503 = vmatmul.mubr.msk.bf16.gmra.mrb[72].mxu0 %vm1726_vm2, %v15726_v9  ;;  %v11824_v14 = vadd.f32 %v1973_v26, %v11550_v5  ;;  %v15731_v26 = vld [vmem:[#allocation62_spill] sm:$0xff] }
 0x450   : > { %3037 = vmax.xlane.f32.xlu1 %v11808_v19  ;;  %8506 = vmatprep.mubr.msk.bf16.mxu0 %vm1726_vm2, %v15727_v53  ;;  %v2888_v53 = vsel %vm1726_vm2, %v11474_v46, 0 }
 0x451   : > { %8547 = vmatpush3.bf16.xpose.msra.mxu0 %v2885_v35  ;;  %8645 = vmatpush3.bf16.msra.mxu1 %v11400_v37  ;;  %v15730_v37 = vld [vmem:[#allocation30_spill] sm:$0xff]  ;;  %v15732_v35 = vld [vmem:[#allocation53_spill] sm:$0xff] }
 0x452   : > { %9009 = vmatprep.subr.msk.bf16.mxu0 %vm1726_vm2, %v11474_v46  ;;  %3031 = vmax.xlane.f32.xlu0 %v11815_v52 }
 0x453   : > { %8646 = vmatprep.subr.bf16.mxu1 %v15728_v34  ;;  %v8372_v57 = vpop.f32.mrb[36].mxu0  ;;  %8535 = vmatmul.mubr.msk.bf16.gmra.mrb[56].mxu1 %vm1726_vm2, %v15729_v31  ;;  %v15736_v31 = vld [vmem:[#allocation63_spill] sm:$0xff] }
 0x454   : > { %v11833_v32 = vadd.f32 %v8372_v57, %v11597_v23  ;;  %v1986_v41 = vpop.f32.mrb[37].mxu0  ;;  %3033 = vmax.xlane.f32.xlu1 %v11824_v14  ;;  %8538 = vmatprep.mubr.msk.bf16.mxu1 %vm1726_vm2, %v15730_v37 }
 0x455   : > { %v8373_v15 = vpop.f32.mrb[38].mxu0  ;;  %8647 = vmatpush3.bf16.msra.mxu1 %v15728_v34  ;;  %v11847_v57 = vadd.f32 %v1986_v41, %v11625_v29  ;;  %v15733_v34 = vld [vmem:[#allocation34_spill] sm:$0xff] }
 0x456   : > { %v11840_v27 = vadd.f32 %v8373_v15, %v11585_v10  ;;  %v1989_v48 = vpop.f32.mrb[39].mxu0  ;;  %3043 = vmax.xlane.f32.xlu0 %v11833_v32  ;;  %8648 = vmatprep.subr.bf16.mxu1 %v15731_v26 }
 0x457   : > { %8507 = vmatmul.mubr.msk.bf16.gmra.mrb[76].mxu0 %vm1726_vm2, %v15732_v35  ;;  %v11856_v15 = vadd.f32 %v1989_v48, %v11610_v40  ;;  %v15734_v35 = vld [vmem:[#allocation26_spill] sm:$0xff] }
 0x458   : > { %3045 = vmax.xlane.f32.xlu1 %v11840_v27  ;;  %8558 = vmatprep.mubr.msk.bf16.mxu0 %vm1726_vm2, %v15733_v34 }
 0x459   : > { %8549 = vmatpush3.bf16.xpose.msra.mxu0 %v2888_v53  ;;  %8649 = vmatpush3.bf16.msra.mxu1 %v15731_v26 }
 0x45a   : > { %9010 = vmatprep.subr.msk.bf16.mxu0 %vm1726_vm2, %v11505_v43  ;;  %3039 = vmax.xlane.f32.xlu0 %v11847_v57 }
 0x45b   : > { %8650 = vmatprep.subr.bf16.mxu1 %v11460_v4  ;;  %v8376_v41 = vpop.f32.mrb[40].mxu0  ;;  %8539 = vmatmul.mubr.msk.bf16.gmra.mrb[60].mxu1 %vm1726_vm2, %v15734_v35 }
 0x45c   : > { %v11865_v46 = vadd.f32 %v8376_v41, %v11648_v8  ;;  %v2002_v53 = vpop.f32.mrb[41].mxu0  ;;  %3041 = vmax.xlane.f32.xlu1 %v11856_v15  ;;  %v2891_v41 = vsel %vm1726_vm2, %v11505_v43, 0 }
 0x45d   : > { %v8377_v26 = vpop.f32.mrb[42].mxu0  ;;  %8651 = vmatpush3.bf16.msra.mxu1 %v11460_v4  ;;  %v11875_v37 = vadd.f32 %v2002_v53, %v11675_v56 }
 0x45e   : > { %v11870_v48 = vadd.f32 %v8377_v26, %v11635_v50  ;;  %v2005_v34 = vpop.f32.mrb[43].mxu0  ;;  %3051 = vmax.xlane.f32.xlu0 %v11865_v46  ;;  %8652 = vmatprep.subr.bf16.mxu1 %v15736_v31  ;;  %v15738_v26 = vld [vmem:[#allocation60_spill] sm:$0xff] }
 0x45f   : > { %15737 = vst [vmem:[#allocation62_spill] sm:$0xff] %v11875_v37  ;;  %v11882_v4 = vadd.f32 %v2005_v34, %v11661_v16 }
 0x460   : > { %15735 = vst [vmem:[#allocation64_spill] sm:$0xff] %v11870_v48  ;;  %3053 = vmax.xlane.f32.xlu1 %v11870_v48 }
 0x461   : > { %8551 = vmatpush3.bf16.xpose.msra.mxu0 %v2891_v41  ;;  %8653 = vmatpush3.bf16.msra.mxu1 %v15736_v31 }
 0x462   : > { %9011 = vmatprep.subr.msk.bf16.mxu0 %vm1726_vm2, %v11757_v17  ;;  %3047 = vmax.xlane.f32.xlu0 %v11875_v37  ;;  %v15741_v17 = vld [vmem:[#allocation9_spill] sm:$0xff] }
 0x463   : > { %8702 = vmatprep.subr.bf16.mxu1 %v15738_v26  ;;  %v8380_v53 = vpop.f32.mrb[44].mxu0 }
 0x464   : > { %v11889_v35 = vadd.f32 %v8380_v53, %v11700_v12  ;;  %v2018_v9 = vpop.f32.mrb[45].mxu0  ;;  %3049 = vmax.xlane.f32.xlu1 %v11882_v4  ;;  %v2851_v53 = vpop.permute.xlu0 %2850 }
 0x465   : > { %v8381_v43 = vpop.f32.mrb[46].mxu0  ;;  %v11897_v41 = vadd.f32 %v2018_v9, %v11725_v44  ;;  %v2853_v9 = vpop.permute.xlu1 %2852 }
 0x466   : > { %v11893_v31 = vadd.f32 %v8381_v43, %v11686_v7  ;;  %v2021_v34 = vpop.f32.mrb[47].mxu0  ;;  %3059 = vmax.xlane.f32.xlu0 %v11889_v35  ;;  %v2897_v43 = vsel %vm1726_vm2, %v2851_v53, 0  ;;  %v2900_v20 = vsel %vm1726_vm2, %v2853_v9, 0 }
 0x467   : > { %15740 = vst [vmem:[#allocation72_spill] sm:$0xff] %v11897_v41  ;;  %v11903_v63 = vadd.f32 %v2021_v34, %v11712_v49  ;;  %v15743_v34 = vld [vmem:[#allocation45_spill] sm:$0xff] }
 0x468   : > { %15739 = vst [vmem:[#allocation63_spill] sm:$0xff] %v11893_v31  ;;  %3061 = vmax.xlane.f32.xlu1 %v11893_v31 }
 0x469   : > { %8553 = vmatpush3.bf16.xpose.msra.mxu0 %v2894_v59  ;;  %v15742_v59 = vld [vmem:[#allocation28_spill] sm:$0xff] }
 0x46a   : > { %9012 = vmatprep.subr.msk.bf16.mxu0 %vm1726_vm2, %v2851_v53  ;;  %3055 = vmax.xlane.f32.xlu0 %v11897_v41  ;;  %v15745_v53 = vld [vmem:[#allocation12_spill] sm:$0xff] }
 0x46c   : > { %3057 = vmax.xlane.f32.xlu1 %v11903_v63 }
 0x471   : > { %8555 = vmatpush3.bf16.xpose.msra.mxu0 %v2897_v43  ;;  %v15746_v43 = vld [vmem:[#allocation40_spill] sm:$0xff] }
 0x472   : > { %9013 = vmatprep.subr.msk.bf16.mxu0 %vm1726_vm2, %v2853_v9  ;;  %v15748_v9 = vld [vmem:[#allocation18_spill] sm:$0xff] }
 0x479   : > { %8557 = vmatpush3.bf16.xpose.msra.mxu0 %v2900_v20  ;;  %v15747_v20 = vld [vmem:[#allocation48_spill] sm:$0xff] }
 0x47a   : > { %8574 = vmatprep.subr.bf16.mxu0 %v15741_v17 }
 0x480   : > { %8559 = vmatmul.mubr.msk.bf16.vlgmr.msra.gmra.mrb[80].mxu0 %vm1726_vm2, %v15742_v59  ;;  %v15749_v59 = vld [vmem:[#allocation21_spill] sm:$0xff] }
 0x481   : > { %8562 = vmatprep.mubr.msk.bf16.mxu0 %vm1726_vm2, %v15743_v34  ;;  %8575 = vmatpush3.bf16.msra.mxu0 %v15741_v17  ;;  %v15750_v17 = vld [vmem:[#allocation49_spill] sm:$0xff] }
 0x482   : > { %8576 = vmatprep.subr.bf16.mxu0 %v15744_v2 }
 0x485   : > { %8577 = vmatpush3.bf16.msra.mxu0 %v15744_v2  ;;  %v15751_v2 = vld [vmem:[#allocation59_spill] sm:$0xff] }
 0x486   : > { %8578 = vmatprep.subr.bf16.mxu0 %v15745_v53 }
 0x488   : > { %8563 = vmatmul.mubr.msk.bf16.gmra.mrb[84].mxu0 %vm1726_vm2, %v15746_v43  ;;  %v15752_v43 = vld [vmem:[#allocation23_spill] sm:$0xff] }
 0x489   : > { %8566 = vmatprep.mubr.msk.bf16.mxu0 %vm1726_vm2, %v15747_v20  ;;  %8579 = vmatpush3.bf16.msra.mxu0 %v15745_v53  ;;  %v15753_v20 = vld [vmem:[#allocation31_spill] sm:$0xff] }
 0x48a   : > { %8580 = vmatprep.subr.bf16.mxu0 %v15748_v9 }
 0x48d   : > { %8581 = vmatpush3.bf16.msra.mxu0 %v15748_v9 }
 0x48e   : > { %8582 = vmatprep.subr.bf16.mxu0 %v15749_v59 }
 0x490   : > { %8567 = vmatmul.mubr.msk.bf16.gmra.mrb[88].mxu0 %vm1726_vm2, %v15750_v17 }
 0x491   : > { %8570 = vmatprep.mubr.msk.bf16.mxu0 %vm1726_vm2, %v15751_v2  ;;  %8583 = vmatpush3.bf16.msra.mxu0 %v15749_v59 }
 0x492   : > { %8584 = vmatprep.subr.bf16.mxu0 %v15752_v43 }
 0x495   : > { %8585 = vmatpush3.bf16.msra.mxu0 %v15752_v43  ;;  %v15757_v43 = vld [vmem:[#allocation24_spill] sm:$0xff] }
 0x496   : > { %8586 = vmatprep.subr.bf16.mxu0 %v15753_v20  ;;  %v8400_v53 = vpop.f32.mrb[16].mxu1 }
 0x497   : > { %v11937_v34 = vadd.f32 %v8400_v53, %v11538_v36  ;;  %v2131_v9 = vpop.f32.mrb[17].mxu1 }
 0x498   : > { %8571 = vmatmul.mubr.msk.bf16.gmra.mrb[92].mxu0 %vm1726_vm2, %v15755_v47  ;;  %v8401_v17 = vpop.f32.mrb[18].mxu1  ;;  %v11948_v61 = vadd.f32 %v2131_v9, %v11554_v25 }
 0x499   : > { %15754 = vst [vmem:[#allocation9_spill] sm:$0xff] %v11937_v34  ;;  %8587 = vmatpush3.bf16.msra.mxu0 %v15753_v20  ;;  %v11943_v2 = vadd.f32 %v8401_v17, %v11576_v21  ;;  %3067 = vmax.xlane.f32.xlu0 %v11937_v34  ;;  %v2134_v59 = vpop.f32.mrb[19].mxu1  ;;  %v15760_v20 = vld [vmem:[#allocation35_spill] sm:$0xff] }
 0x49a   : > { %8588 = vmatprep.subr.bf16.mxu0 %v15757_v43  ;;  %15758 = vst [vmem:[#allocation12_spill] sm:$0xff] %v11948_v61  ;;  %v11952_v53 = vadd.f32 %v2134_v59, %v11550_v5 }
 0x49b   : > { %15756 = vst [vmem:[#allocation11_spill] sm:$0xff] %v11943_v2  ;;  %3069 = vmax.xlane.f32.xlu1 %v11943_v2 }
 0x49c   : > { %15759 = vst [vmem:[#allocation18_spill] sm:$0xff] %v11952_v53 }
 0x49d   : > { %8589 = vmatpush3.bf16.msra.mxu0 %v15757_v43  ;;  %3063 = vmax.xlane.f32.xlu0 %v11948_v61 }
 0x49e   : > { %8606 = vmatprep.subr.bf16.mxu0 %v15760_v20  ;;  %v8404_v17 = vpop.f32.mrb[20].mxu1 }
 0x49f   : > { %v11958_v47 = vadd.f32 %v8404_v17, %v11597_v23  ;;  %v2147_v58 = vpop.f32.mrb[21].mxu1  ;;  %3065 = vmax.xlane.f32.xlu1 %v11952_v53 }
 0x4a0   : > { %v8405_v9 = vpop.f32.mrb[22].mxu1  ;;  %v11966_v59 = vadd.f32 %v2147_v58, %v11625_v29 }
 0x4a1   : > { %15761 = vst [vmem:[#allocation21_spill] sm:$0xff] %v11958_v47  ;;  %v11962_v24 = vadd.f32 %v8405_v9, %v11585_v10  ;;  %v2150_v51 = vpop.f32.mrb[23].mxu1  ;;  %3075 = vmax.xlane.f32.xlu0 %v11958_v47 }
 0x4a2   : > { %15763 = vst [vmem:[#allocation31_spill] sm:$0xff] %v11966_v59  ;;  %v11970_v43 = vadd.f32 %v2150_v51, %v11610_v40 }
 0x4a3   : > { %15762 = vst [vmem:[#allocation23_spill] sm:$0xff] %v11962_v24  ;;  %3077 = vmax.xlane.f32.xlu1 %v11962_v24  ;;  %v3002_v24 = vpop.xlane.xlu1 %3001 }
 0x4a4   : > { %15764 = vst [vmem:[#allocation24_spill] sm:$0xff] %v11970_v43 }
 0x4a5   : > { %3071 = vmax.xlane.f32.xlu0 %v11966_v59 }
 0x4a6   : > { %v8408_v17 = vpop.f32.mrb[24].mxu1 }
 0x4a7   : > { %v11974_v42 = vadd.f32 %v8408_v17, %v11648_v8  ;;  %v2163_v22 = vpop.f32.mrb[25].mxu1  ;;  %3073 = vmax.xlane.f32.xlu1 %v11970_v43 }
 0x4a8   : > { %v8409_v9 = vpop.f32.mrb[26].mxu1  ;;  %v11982_v26 = vadd.f32 %v2163_v22, %v11675_v56 }
 0x4a9   : > { %15765 = vst [vmem:[#allocation73_spill] sm:$0xff] %v11974_v42  ;;  %v11978_v3 = vadd.f32 %v8409_v9, %v11635_v50  ;;  %v2166_v58 = vpop.f32.mrb[27].mxu1  ;;  %3083 = vmax.xlane.f32.xlu0 %v11974_v42 }
 0x4aa   : > { %15767 = vst [vmem:[#allocation75_spill] sm:$0xff] %v11982_v26  ;;  %v11986_v51 = vadd.f32 %v2166_v58, %v11661_v16 }
 0x4ab   : > { %15766 = vst [vmem:[#allocation74_spill] sm:$0xff] %v11978_v3  ;;  %3085 = vmax.xlane.f32.xlu1 %v11978_v3 }
 0x4ac   : > { %15768 = vst [vmem:[#allocation76_spill] sm:$0xff] %v11986_v51 }
 0x4ad   : > { %3079 = vmax.xlane.f32.xlu0 %v11982_v26 }
 0x4ae   : > { %v8412_v17 = vpop.f32.mrb[28].mxu1 }
 0x4af   : > { %v11990_v54 = vadd.f32 %v8412_v17, %v11700_v12  ;;  %v2179_v33 = vpop.f32.mrb[29].mxu1  ;;  %3081 = vmax.xlane.f32.xlu1 %v11986_v51  ;;  %v3004_v17 = vpop.xlane.xlu0 %3003 }
 0x4b0   : > { %v8413_v9 = vpop.f32.mrb[30].mxu1  ;;  %v11998_v3 = vadd.f32 %v2179_v33, %v11725_v44 }
 0x4b1   : > { %15769 = vst [vmem:[#allocation77_spill] sm:$0xff] %v11990_v54  ;;  %v11994_v43 = vadd.f32 %v8413_v9, %v11686_v7  ;;  %v2182_v22 = vpop.f32.mrb[31].mxu1  ;;  %3091 = vmax.xlane.f32.xlu0 %v11990_v54  ;;  %v3257_v9 = vsub.f32 %v11545_v62, %v3004_v17 }
 0x4b2   : > { %15771 = vst [vmem:[#allocation79_spill] sm:$0xff] %v11998_v3  ;;  %v12002_v58 = vadd.f32 %v2182_v22, %v11712_v49  ;;  %v3014_v22 = vpop.xlane.xlu1 %3013 }
 0x4b3   : > { %15770 = vst [vmem:[#allocation78_spill] sm:$0xff] %v11994_v43  ;;  %3093 = vmax.xlane.f32.xlu1 %v11994_v43  ;;  %v3000_v51 = vpop.xlane.xlu0 %2999 }
 0x4b4   : > { %15772 = vst [vmem:[#allocation80_spill] sm:$0xff] %v12002_v58  ;;  %v3255_v2 = vsub.f32 %v11569_v60, %v3000_v51 }
 0x4b5   : > { %3087 = vmax.xlane.f32.xlu0 %v11998_v3  ;;  %v3387_v3 = vmul.f32 1.442695, %v3257_v9 }
 0x4b7   : > { %3089 = vmax.xlane.f32.xlu1 %v12002_v58  ;;  %v3006_v43 = vpop.xlane.xlu0 %3005  ;;  %9381 = vpow2.f32 %v3387_v3  ;;  %v15779_v3 = vld [vmem:[#allocation67_spill] sm:$0xff] }
 0x4b8   : > { %v3258_v60 = vsub.f32 %v11588_v11, %v3006_v43  ;;  %v3256_v11 = vsub.f32 %v11562_v38, %v3002_v24  ;;  %v3262_v47 = vsub.f32 %v15779_v3, %v3014_v22 }
 0x4ba   : > { %v3389_v43 = vmul.f32 1.442695, %v3258_v60  ;;  %v3397_v22 = vmul.f32 1.442695, %v3262_v47 }
 0x4bb   : > { %v3012_v24 = vpop.xlane.xlu0 %3011 }
 0x4d1   : > { %v8432_v53 = vpop.f32.mrb[48].mxu0 }
 0x4d2   : > { %v12008_v54 = vadd.f32 %v8432_v53, %v11538_v36  ;;  %v2292_v33 = vpop.f32.mrb[49].mxu0  ;;  %v3383_v53 = vmul.f32 1.442695, %v3255_v2 }
 0x4d3   : > { %v8433_v20 = vpop.f32.mrb[50].mxu0  ;;  %v12016_v42 = vadd.f32 %v2292_v33, %v11554_v25 }
 0x4d4   : > { %15773 = vst [vmem:[#allocation81_spill] sm:$0xff] %v12008_v54  ;;  %v12012_v26 = vadd.f32 %v8433_v20, %v11576_v21  ;;  %3099 = vmax.xlane.f32.xlu0 %v12008_v54  ;;  %v2295_v58 = vpop.f32.mrb[51].mxu0  ;;  %v3010_v54 = vpop.xlane.xlu1 %3009  ;;  %9383 = vpow2.f32 %v3383_v53 }
 0x4d5   : > { %15775 = vst [vmem:[#allocation83_spill] sm:$0xff] %v12016_v42  ;;  %v12025_v17 = vadd.f32 %v2295_v58, %v11550_v5  ;;  %9385 = vpow2.f32 %v3389_v43  ;;  %v15783_v43 = vld [vmem:[#allocation68_spill] sm:$0xff] }
 0x4d6   : > { %15774 = vst [vmem:[#allocation82_spill] sm:$0xff] %v12012_v26  ;;  %v12018_v62 = vpop.f32.mrb[32].mxu1  ;;  %3101 = vmax.xlane.f32.xlu1 %v12012_v26  ;;  %v3261_v34 = vsub.f32 %v15783_v43, %v3012_v24 }
 0x4d7   : > { %v12022_v51 = vpop.f32.mrb[33].mxu1  ;;  %15776 = vst [vmem:[#allocation84_spill] sm:$0xff] %v12025_v17 }
 0x4d8   : > { %v12027_v20 = vpop.f32.mrb[34].mxu1  ;;  %3095 = vmax.xlane.f32.xlu0 %v12016_v42  ;;  %v3022_v53 = vpop.xlane.xlu1 %3021 }
 0x4d9   : > { %v8436_v9 = vpop.f32.mrb[52].mxu0  ;;  %v12030_v33 = vpop.f32.mrb[35].mxu1 }
 0x4da   : > { %v12033_v59 = vadd.f32 %v8436_v9, %v11597_v23  ;;  %v2308_v2 = vpop.f32.mrb[53].mxu0  ;;  %3097 = vmax.xlane.f32.xlu1 %v12025_v17  ;;  %v3385_v17 = vmul.f32 1.442695, %v3256_v11  ;;  %v12060_v11 = vpop.eup %9381 }
 0x4db   : > { %v8437_v58 = vpop.f32.mrb[54].mxu0  ;;  %v12043_v61 = vadd.f32 %v2308_v2, %v11625_v29  ;;  %v3260_v2 = vsub.f32 %v11628_v18, %v3010_v54  ;;  %15782 = vst [vmem:[#allocation88_spill] sm:$0xff] %v12060_v11  ;;  %v3008_v54 = vpop.xlane.xlu0 %3007  ;;  %v3266_v18 = vsub.f32 %v11654_v30, %v3022_v53 }
 0x4dc   : > { %15777 = vst [vmem:[#allocation85_spill] sm:$0xff] %v12033_v59  ;;  %v12038_v26 = vadd.f32 %v8437_v58, %v11585_v10  ;;  %v2311_v42 = vpop.f32.mrb[55].mxu0  ;;  %3107 = vmax.xlane.f32.xlu0 %v12033_v59  ;;  %9387 = vpow2.f32 %v3385_v17  ;;  %v3395_v17 = vmul.f32 1.442695, %v3261_v34  ;;  %v3259_v34 = vsub.f32 %v11638_v39, %v3008_v54 }
 0x4dd   : > { %15780 = vst [vmem:[#allocation67_spill] sm:$0xff] %v12043_v61  ;;  %v12051_v60 = vadd.f32 %v2311_v42, %v11610_v40  ;;  %9389 = vpow2.f32 %v3397_v22  ;;  %v3393_v47 = vmul.f32 1.442695, %v3260_v2  ;;  %v3405_v2 = vmul.f32 1.442695, %v3266_v18 }
 0x4de   : > { %15778 = vst [vmem:[#allocation86_spill] sm:$0xff] %v12038_v26  ;;  %v12045_v9 = vpop.f32.mrb[36].mxu1  ;;  %3109 = vmax.xlane.f32.xlu1 %v12038_v26  ;;  %v12064_v41 = vpop.eup %9383  ;;  %v3391_v18 = vmul.f32 1.442695, %v3259_v34 }
 0x4df   : > { %v12048_v38 = vpop.f32.mrb[37].mxu1  ;;  %15781 = vst [vmem:[#allocation87_spill] sm:$0xff] %v12051_v60  ;;  %15784 = vst [vmem:[#allocation68_spill] sm:$0xff] %v12064_v41  ;;  %v12078_v22 = vpop.eup %9385  ;;  %9391 = vpow2.f32 %v3393_v47 }
 0x4e0   : > { %v12053_v58 = vpop.f32.mrb[38].mxu1  ;;  %3103 = vmax.xlane.f32.xlu0 %v12043_v61  ;;  %v3018_v61 = vpop.xlane.xlu1 %3017  ;;  %15787 = vst [vmem:[#allocation91_spill] sm:$0xff] %v12078_v22  ;;  %9393 = vpow2.f32 %v3395_v17 }
 0x4e1   : > { %v8440_v3 = vpop.f32.mrb[56].mxu0  ;;  %v12057_v59 = vpop.f32.mrb[39].mxu1  ;;  %v3264_v30 = vsub.f32 %v11678_v28, %v3018_v61  ;;  %9395 = vpow2.f32 %v3405_v2 }
 0x4e2   : > { %v2324_v26 = vpop.f32.mrb[57].mxu0  ;;  %3105 = vmax.xlane.f32.xlu1 %v12051_v60  ;;  %v12068_v48 = vadd.f32 %v8440_v3, %v11648_v8 }
 0x4e3   : > { %v8441_v42 = vpop.f32.mrb[58].mxu0  ;;  %v12082_v3 = vadd.f32 %v2324_v26, %v11675_v56  ;;  %v3401_v61 = vmul.f32 1.442695, %v3264_v30 }
 0x4e4   : > { %v2327_v31 = vpop.f32.mrb[59].mxu0  ;;  %3643 = vadd.xlane.f32.xlu0 %v12060_v11  ;;  %15785 = vst [vmem:[#allocation89_spill] sm:$0xff] %v12068_v48  ;;  %v3030_v39 = vpop.xlane.xlu1 %3029  ;;  %v12101_v54 = vadd.f32 %v8441_v42, %v11635_v50 }
 0x4e5   : > { %15788 = vst [vmem:[#allocation92_spill] sm:$0xff] %v12082_v3  ;;  %9397 = vpow2.f32 %v3401_v61  ;;  %v3270_v42 = vsub.f32 %v11706_v6, %v3030_v39 }
 0x4e6   : > { %v12070_v60 = vpop.f32.mrb[40].mxu1  ;;  %3639 = vadd.xlane.f32.xlu1 %v12064_v41  ;;  %v12091_v47 = vpop.eup %9387  ;;  %15792 = vst [vmem:[#allocation96_spill] sm:$0xff] %v12101_v54  ;;  %9399 = vpow2.f32 %v3391_v18 }
 0x4e7   : > { %v12073_v24 = vpop.f32.mrb[41].mxu1  ;;  %15789 = vst [vmem:[#allocation93_spill] sm:$0xff] %v12091_v47  ;;  %v12096_v26 = vpop.eup %9389 }
 0x4e8   : > { %v12075_v43 = vpop.f32.mrb[42].mxu1  ;;  %3115 = vmax.xlane.f32.xlu0 %v12068_v48  ;;  %v3020_v48 = vpop.xlane.xlu0 %3019  ;;  %15790 = vst [vmem:[#allocation94_spill] sm:$0xff] %v12096_v26 }
 0x4e9   : > { %15786 = vst [vmem:[#allocation90_spill] sm:$0xff] %v12075_v43  ;;  %v8444_v53 = vpop.f32.mrb[60].mxu0  ;;  %v12084_v11 = vpop.f32.mrb[43].mxu1 }
 0x4ea   : > { %v2340_v41 = vpop.f32.mrb[61].mxu0  ;;  %3645 = vadd.xlane.f32.xlu1 %v12078_v22 }
 0x4eb   : > { %v8445_v37 = vpop.f32.mrb[62].mxu0 }
 0x4ec   : > { %v12088_v43 = vpop.f32.mrb[63].mxu0  ;;  %3111 = vmax.xlane.f32.xlu0 %v12082_v3  ;;  %v3016_v30 = vpop.xlane.xlu0 %3015 }
 0x4ed   : > { %v12109_v3 = vpop.eup %9391 }
 0x4ee   : > { %v12093_v28 = vpop.f32.mrb[44].mxu1  ;;  %3641 = vadd.xlane.f32.xlu1 %v12091_v47  ;;  %15795 = vst [vmem:[#allocation99_spill] sm:$0xff] %v12109_v3  ;;  %v12112_v34 = vpop.eup %9393 }
 0x4ef   : > { %v12098_v17 = vpop.f32.mrb[45].mxu1  ;;  %15796 = vst [vmem:[#allocation100_spill] sm:$0xff] %v12112_v34  ;;  %v3026_v47 = vpop.xlane.xlu1 %3025 }
 0x4f0   : > { %15791 = vst [vmem:[#allocation95_spill] sm:$0xff] %v12098_v17  ;;  %v12103_v22 = vpop.f32.mrb[46].mxu1  ;;  %3653 = vadd.xlane.f32.xlu0 %v12096_v26  ;;  %v3028_v61 = vpop.xlane.xlu0 %3027  ;;  %v12119_v26 = vadd.f32 %v2327_v31, %v11661_v16  ;;  %v3268_v18 = vsub.f32 %v11728_v55, %v3026_v47  ;;  %v12132_v31 = vadd.f32 %v12018_v62, %v11538_v36 }
 0x4f1   : > { %15793 = vst [vmem:[#allocation97_spill] sm:$0xff] %v12103_v22  ;;  %v12106_v2 = vpop.f32.mrb[47].mxu1  ;;  %v12116_v22 = vpop.eup %9395  ;;  %v3263_v62 = vsub.f32 %v11689_v0, %v3016_v30 }
 0x4f2   : > { %15794 = vst [vmem:[#allocation98_spill] sm:$0xff] %v12106_v2  ;;  %3117 = vmax.xlane.f32.xlu1 %v12101_v54  ;;  %15797 = vst [vmem:[#allocation101_spill] sm:$0xff] %v12116_v22  ;;  %v3413_v54 = vmul.f32 1.442695, %v3270_v42  ;;  %v15800_v2 = vld [vmem:[#allocation70_spill] sm:$0xff]  ;;  %v12138_v42 = vadd.f32 %v8444_v53, %v11700_v12 }
 0x4f3   : > { %15798 = vst [vmem:[#allocation102_spill] sm:$0xff] %v12119_v26  ;;  %v3265_v6 = vsub.f32 %v15800_v2, %v3020_v48  ;;  %15802 = vst [vmem:[#allocation104_spill] sm:$0xff] %v12132_v31  ;;  %v12135_v47 = vpop.xlane.xlu1 %3037  ;;  %v12143_v48 = vadd.f32 %v12022_v51, %v11554_v25  ;;  %v12148_v2 = vadd.f32 %v2340_v41, %v11725_v44  ;;  %v3399_v51 = vmul.f32 1.442695, %v3263_v62 }
 0x4f4   : > { %3649 = vadd.xlane.f32.xlu0 %v12109_v3  ;;  %v12124_v3 = vpop.eup %9397  ;;  %9401 = vpow2.f32 %v3413_v54  ;;  %v3024_v17 = vpop.xlane.xlu0 %3023  ;;  %15803 = vst [vmem:[#allocation105_spill] sm:$0xff] %v12138_v42  ;;  %v12173_v62 = vadd.f32 %v12045_v9, %v11597_v23 }
 0x4f5   : > { %15799 = vst [vmem:[#allocation103_spill] sm:$0xff] %v12124_v3  ;;  %v12128_v39 = vpop.eup %9399  ;;  %v3403_v55 = vmul.f32 1.442695, %v3265_v6  ;;  %15804 = vst [vmem:[#allocation106_spill] sm:$0xff] %v12143_v48  ;;  %v3267_v9 = vsub.f32 %v11736_v13, %v3024_v17 }
 0x4f6   : > { %3651 = vadd.xlane.f32.xlu1 %v12112_v34  ;;  %15801 = vst [vmem:[#allocation70_spill] sm:$0xff] %v12128_v39  ;;  %v3409_v34 = vmul.f32 1.442695, %v3268_v18  ;;  %15805 = vst [vmem:[#allocation107_spill] sm:$0xff] %v12148_v2 }
 0x4f7   : > { %v3034_v18 = vpop.xlane.xlu1 %3033  ;;  %15810 = vst [vmem:[#allocation112_spill] sm:$0xff] %v12173_v62  ;;  %v3407_v13 = vmul.f32 1.442695, %v3267_v9 }
 0x4f8   : > { %3661 = vadd.xlane.f32.xlu0 %v12116_v22  ;;  %9403 = vpow2.f32 %v3409_v34  ;;  %v3036_v54 = vpop.xlane.xlu0 %3035  ;;  %v3272_v41 = vsub.f32 %v11824_v14, %v3034_v18  ;;  %v12178_v18 = vadd.f32 %v12088_v43, %v11712_v49 }
 0x4f9   : > { %9405 = vpow2.f32 %v3403_v55  ;;  %v3273_v53 = vsub.f32 %v11802_v45, %v3036_v54  ;;  %v3269_v45 = vsub.f32 %v11717_v1, %v3028_v61  ;;  %v12183_v1 = vadd.f32 %v12048_v38, %v11625_v29 }
 0x4fa   : > { %3113 = vmax.xlane.f32.xlu1 %v12119_v26  ;;  %9407 = vpow2.f32 %v3399_v51  ;;  %15811 = vst [vmem:[#allocation113_spill] sm:$0xff] %v12178_v18 }
 0x4fb   : > { %v3419_v0 = vmul.f32 1.442695, %v3273_v53  ;;  %v12166_v55 = vpop.xlane.xlu1 %3045  ;;  %v3411_v53 = vmul.f32 1.442695, %v3269_v45  ;;  %15812 = vst [vmem:[#allocation114_spill] sm:$0xff] %v12183_v1 }
 0x4fc   : > { %3657 = vadd.xlane.f32.xlu0 %v12124_v3  ;;  %v12155_v6 = vpop.xlane.xlu0 %3031 }
 0x4fd   : > { %9409 = vpow2.f32 %v3419_v0 }
 0x4fe   : > { %3647 = vadd.xlane.f32.xlu1 %v12128_v39  ;;  %v12153_v34 = vpop.eup %9401 }
 0x4ff   : > { %15806 = vst [vmem:[#allocation108_spill] sm:$0xff] %v12153_v34  ;;  %v3042_v61 = vpop.xlane.xlu1 %3041 }
 0x500   : > { %3131 = vmax.xlane.f32.xlu0 %v12132_v31  ;;  %v3044_v14 = vpop.xlane.xlu0 %3043 }
 0x501   : > { %v3277_v38 = vsub.f32 %v11833_v32, %v3044_v14  ;;  %v3276_v14 = vsub.f32 %v11856_v15, %v3042_v61 }
 0x502   : > { %3123 = vmax.xlane.f32.xlu1 %v12138_v42  ;;  %v12158_v42 = vadd.f32 %v8445_v37, %v11686_v7  ;;  %v12163_v30 = vpop.eup %9403  ;;  %v3417_v37 = vmul.f32 1.442695, %v3272_v41 }
 0x503   : > { %15808 = vst [vmem:[#allocation110_spill] sm:$0xff] %v12163_v30  ;;  %v12169_v54 = vpop.eup %9405  ;;  %v3427_v32 = vmul.f32 1.442695, %v3277_v38  ;;  %v3425_v15 = vmul.f32 1.442695, %v3276_v14 }
 0x504   : > { %3127 = vmax.xlane.f32.xlu0 %v12143_v48  ;;  %15807 = vst [vmem:[#allocation109_spill] sm:$0xff] %v12158_v42  ;;  %15809 = vst [vmem:[#allocation111_spill] sm:$0xff] %v12169_v54  ;;  %9411 = vpow2.f32 %v3417_v37  ;;  %v12191_v41 = vpop.xlane.xlu0 %3039  ;;  %v12196_v45 = vpop.eup %9407 }
 0x505   : > { %9413 = vpow2.f32 %v3411_v53  ;;  %15813 = vst [vmem:[#allocation115_spill] sm:$0xff] %v12196_v45 }
 0x506   : > { %3119 = vmax.xlane.f32.xlu1 %v12148_v2  ;;  %v12210_v2 = vadd.f32 %v12027_v20, %v11576_v21  ;;  %9415 = vpow2.f32 %v3407_v13 }
 0x507   : > { %v12204_v53 = vpop.eup %9409  ;;  %9417 = vpow2.f32 %v3427_v32  ;;  %v12248_v32 = vadd.f32 %v12030_v33, %v11550_v5  ;;  %v3274_v33 = vsub.f32 %v11808_v19, %v12135_v47 }
 0x508   : > { %3669 = vadd.xlane.f32.xlu0 %v12153_v34  ;;  %15814 = vst [vmem:[#allocation116_spill] sm:$0xff] %v12204_v53  ;;  %15815 = vst [vmem:[#allocation117_spill] sm:$0xff] %v12210_v2  ;;  %v3052_v34 = vpop.xlane.xlu0 %3051  ;;  %9419 = vpow2.f32 %v3425_v15 }
 0x509   : > { %v3281_v61 = vsub.f32 %v11865_v46, %v3052_v34  ;;  %15819 = vst [vmem:[#allocation121_spill] sm:$0xff] %v12248_v32  ;;  %v3421_v47 = vmul.f32 1.442695, %v3274_v33 }
 0x50a   : > { %3125 = vmax.xlane.f32.xlu1 %v12158_v42 }
 0x50c   : > { %3665 = vadd.xlane.f32.xlu0 %v12163_v30  ;;  %v12250_v46 = vpop.xlane.xlu0 %3047 }
 0x50e   : > { %3659 = vadd.xlane.f32.xlu1 %v12169_v54  ;;  %v12223_v9 = vpop.eup %9411 }
 0x50f   : > { %15816 = vst [vmem:[#allocation118_spill] sm:$0xff] %v12223_v9 }
 0x510   : > { %3139 = vmax.xlane.f32.xlu0 %v12173_v62 }
 0x512   : > { %v12185_v51 = vpop.f32.mrb[64].mxu0  ;;  %3121 = vmax.xlane.f32.xlu1 %v12178_v18  ;;  %v12212_v18 = vpop.xlane.xlu1 %3053 }
 0x513   : > { %v12189_v0 = vpop.f32.mrb[65].mxu0 }
 0x514   : > { %v12193_v43 = vpop.f32.mrb[66].mxu0  ;;  %3135 = vmax.xlane.f32.xlu0 %v12183_v1 }
 0x515   : > { %v12199_v37 = vpop.f32.mrb[67].mxu0 }
 0x516   : > { %v12201_v42 = vpop.f32.mrb[48].mxu1  ;;  %3655 = vadd.xlane.f32.xlu1 %v12196_v45  ;;  %v3050_v48 = vpop.xlane.xlu1 %3049 }
 0x517   : > { %v12206_v17 = vpop.f32.mrb[49].mxu1  ;;  %v3280_v14 = vsub.f32 %v11882_v4, %v3050_v48 }
 0x518   : > { %v12214_v26 = vpop.f32.mrb[50].mxu1  ;;  %3675 = vadd.xlane.f32.xlu0 %v12204_v53  ;;  %v12230_v53 = vpop.eup %9413 }
 0x519   : > { %v12218_v1 = vpop.f32.mrb[51].mxu1  ;;  %15817 = vst [vmem:[#allocation119_spill] sm:$0xff] %v12230_v53  ;;  %v12274_v4 = vpop.eup %9415 }
 0x51a   : > { %v12220_v62 = vpop.f32.mrb[68].mxu0  ;;  %3133 = vmax.xlane.f32.xlu1 %v12210_v2  ;;  %v12237_v2 = vadd.f32 %v12070_v60, %v11648_v8  ;;  %v3435_v60 = vmul.f32 1.442695, %v3281_v61  ;;  %v12269_v15 = vpop.xlane.xlu1 %3061  ;;  %15821 = vst [vmem:[#allocation123_spill] sm:$0xff] %v12274_v4 }
 0x51b   : > { %v12225_v20 = vpop.f32.mrb[69].mxu0  ;;  %v12281_v19 = vpop.eup %9417 }
 0x51c   : > { %v12227_v30 = vpop.f32.mrb[70].mxu0  ;;  %3673 = vadd.xlane.f32.xlu0 %v12223_v9  ;;  %15818 = vst [vmem:[#allocation120_spill] sm:$0xff] %v12237_v2  ;;  %v3271_v9 = vsub.f32 %v11815_v52, %v12155_v6  ;;  %v12260_v52 = vadd.f32 %v12073_v24, %v11675_v56  ;;  %9421 = vpow2.f32 %v3435_v60  ;;  %v3433_v24 = vmul.f32 1.442695, %v3280_v14  ;;  %15823 = vst [vmem:[#allocation125_spill] sm:$0xff] %v12281_v19 }
 0x51d   : > { %v12233_v38 = vpop.f32.mrb[71].mxu0 }
 0x51e   : > { %v12239_v13 = vpop.f32.mrb[52].mxu1  ;;  %3667 = vadd.xlane.f32.xlu1 %v12230_v53  ;;  %15820 = vst [vmem:[#allocation122_spill] sm:$0xff] %v12260_v52  ;;  %v3415_v22 = vmul.f32 1.442695, %v3271_v9 }
 0x51f   : > { %v12244_v31 = vpop.f32.mrb[53].mxu1 }
 0x520   : > { %v12252_v34 = vpop.f32.mrb[54].mxu1  ;;  %3147 = vmax.xlane.f32.xlu0 %v12237_v2  ;;  %v3060_v2 = vpop.xlane.xlu0 %3059  ;;  %9423 = vpow2.f32 %v3415_v22 }
 0x521   : > { %v12256_v53 = vpop.f32.mrb[55].mxu1  ;;  %9425 = vpow2.f32 %v3433_v24  ;;  %v3285_v60 = vsub.f32 %v11889_v35, %v3060_v2  ;;  %v12298_v22 = vpop.eup %9419 }
 0x522   : > { %v12262_v6 = vpop.f32.mrb[72].mxu0  ;;  %3129 = vmax.xlane.f32.xlu1 %v12248_v32  ;;  %15826 = vst [vmem:[#allocation128_spill] sm:$0xff] %v12298_v22  ;;  %9427 = vpow2.f32 %v3421_v47 }
 0x523   : > { %v12267_v3 = vpop.f32.mrb[73].mxu0  ;;  %v3443_v35 = vmul.f32 1.442695, %v3285_v60 }
 0x524   : > { %v12271_v61 = vpop.f32.mrb[74].mxu0  ;;  %3143 = vmax.xlane.f32.xlu0 %v12260_v52  ;;  %v12287_v52 = vadd.f32 %v12053_v58, %v11585_v10  ;;  %v12304_v58 = vadd.f32 %v12057_v59, %v11610_v40  ;;  %v12319_v59 = vpop.xlane.xlu0 %3055 }
 0x525   : > { %v12276_v48 = vpop.f32.mrb[75].mxu0  ;;  %9429 = vpow2.f32 %v3443_v35  ;;  %v12344_v35 = vadd.f32 %v12193_v43, %v11576_v21  ;;  %v12361_v43 = vadd.f32 %v12084_v11, %v11661_v16 }
 0x526   : > { %v12278_v32 = vpop.f32.mrb[56].mxu1  ;;  %3663 = vadd.xlane.f32.xlu1 %v12274_v4  ;;  %15825 = vst [vmem:[#allocation127_spill] sm:$0xff] %v12287_v52  ;;  %v3058_v4 = vpop.xlane.xlu1 %3057  ;;  %15827 = vst [vmem:[#allocation129_spill] sm:$0xff] %v12304_v58 }
 0x527   : > { %15822 = vst [vmem:[#allocation124_spill] sm:$0xff] %v12278_v32  ;;  %v12283_v9 = vpop.f32.mrb[57].mxu1  ;;  %v3284_v2 = vsub.f32 %v11903_v63, %v3058_v4  ;;  %v12315_v47 = vpop.eup %9421  ;;  %15833 = vst [vmem:[#allocation135_spill] sm:$0xff] %v12344_v35 }
 0x528   : > { %15824 = vst [vmem:[#allocation126_spill] sm:$0xff] %v12283_v9  ;;  %v12289_v54 = vpop.f32.mrb[58].mxu1  ;;  %3683 = vadd.xlane.f32.xlu0 %v12281_v19  ;;  %15828 = vst [vmem:[#allocation130_spill] sm:$0xff] %v12315_v47 }
 0x529   : > { %v12293_v14 = vpop.f32.mrb[59].mxu1  ;;  %v3441_v4 = vmul.f32 1.442695, %v3284_v2  ;;  %15837 = vst [vmem:[#allocation137_spill] sm:$0xff] %v12361_v43 }
 0x52a   : > { %v12295_v45 = vpop.f32.mrb[76].mxu0  ;;  %3141 = vmax.xlane.f32.xlu1 %v12287_v52  ;;  %v3275_v52 = vsub.f32 %v11847_v57, %v12191_v41  ;;  %v12326_v63 = vpop.eup %9423  ;;  %v3278_v57 = vsub.f32 %v11840_v27, %v12166_v55  ;;  %v15834_v27 = vld [vmem:[#allocation90_spill] sm:$0xff] }
 0x52b   : > { %v12300_v33 = vpop.f32.mrb[77].mxu0  ;;  %15830 = vst [vmem:[#allocation132_spill] sm:$0xff] %v12326_v63  ;;  %9431 = vpow2.f32 %v3441_v4  ;;  %v12349_v55 = vadd.f32 %v15834_v27, %v11635_v50 }
 0x52c   : > { %v12306_v19 = vpop.f32.mrb[78].mxu0  ;;  %3681 = vadd.xlane.f32.xlu0 %v12298_v22  ;;  %v3423_v41 = vmul.f32 1.442695, %v3275_v52  ;;  %v12335_v22 = vpop.xlane.xlu0 %3067  ;;  %v3429_v2 = vmul.f32 1.442695, %v3278_v57 }
 0x52d   : > { %v12310_v24 = vpop.f32.mrb[79].mxu0  ;;  %15835 = vst [vmem:[#allocation90_spill] sm:$0xff] %v12349_v55 }
 0x52e   : > { %v12312_v9 = vpop.f32.mrb[60].mxu1  ;;  %3137 = vmax.xlane.f32.xlu1 %v12304_v58  ;;  %v12331_v58 = vpop.eup %9425  ;;  %9433 = vpow2.f32 %v3423_v41 }
 0x52f   : > { %v12321_v32 = vpop.f32.mrb[61].mxu1  ;;  %15831 = vst [vmem:[#allocation133_spill] sm:$0xff] %v12331_v58  ;;  %9435 = vpow2.f32 %v3429_v2  ;;  %v12376_v2 = vadd.f32 %v12227_v30, %v11585_v10  ;;  %v12395_v30 = vadd.f32 %v12093_v28, %v11700_v12 }
 0x530   : > { %v12323_v39 = vpop.f32.mrb[62].mxu1  ;;  %3691 = vadd.xlane.f32.xlu0 %v12315_v47  ;;  %v12340_v47 = vpop.xlane.xlu1 %3069 }
 0x531   : > { %15829 = vst [vmem:[#allocation131_spill] sm:$0xff] %v12323_v39  ;;  %v12328_v60 = vpop.f32.mrb[63].mxu1  ;;  %v12338_v39 = vpop.eup %9427  ;;  %15840 = vst [vmem:[#allocation140_spill] sm:$0xff] %v12376_v2 }
 0x532   : > { %3671 = vadd.xlane.f32.xlu1 %v12326_v63  ;;  %15832 = vst [vmem:[#allocation134_spill] sm:$0xff] %v12338_v39  ;;  %v12352_v52 = vpop.xlane.xlu0 %3063  ;;  %v12355_v4 = vpop.eup %9429 }
 0x533   : > { %15836 = vst [vmem:[#allocation136_spill] sm:$0xff] %v12355_v4 }
 0x534   : > { %3689 = vadd.xlane.f32.xlu0 %v12331_v58  ;;  %v12357_v58 = vpop.xlane.xlu1 %3065 }
 0x535   : > { %v12365_v57 = vpop.eup %9431 }
 0x536   : > { %3677 = vadd.xlane.f32.xlu1 %v12338_v39  ;;  %15838 = vst [vmem:[#allocation138_spill] sm:$0xff] %v12365_v57  ;;  %v12367_v41 = vpop.xlane.xlu0 %3075 }
 0x538   : > { %3165 = vmax.xlane.f32.xlu0 %v12344_v35  ;;  %v12370_v27 = vpop.eup %9433  ;;  %v12372_v35 = vpop.xlane.xlu1 %3077 }
 0x539   : > { %15839 = vst [vmem:[#allocation139_spill] sm:$0xff] %v12370_v27  ;;  %v12380_v11 = vpop.eup %9435 }
 0x53a   : > { %3149 = vmax.xlane.f32.xlu1 %v12349_v55  ;;  %15841 = vst [vmem:[#allocation141_spill] sm:$0xff] %v12380_v11  ;;  %v12382_v55 = vpop.xlane.xlu0 %3071 }
 0x53c   : > { %3699 = vadd.xlane.f32.xlu0 %v12355_v4  ;;  %v15843_v4 = vld [vmem:[#allocation62_spill] sm:$0xff]  ;;  %v12391_v39 = vpop.xlane.xlu1 %3073 }
 0x53d   : > { %15844 = vst [vmem:[#allocation62_spill] sm:$0xff] %v12395_v30 }
 0x53e   : > { %3145 = vmax.xlane.f32.xlu1 %v12361_v43  ;;  %v12386_v43 = vadd.f32 %v12233_v38, %v11610_v40  ;;  %v15846_v38 = vld [vmem:[#allocation64_spill] sm:$0xff]  ;;  %v12405_v63 = vpop.xlane.xlu0 %3083 }
 0x540   : > { %3697 = vadd.xlane.f32.xlu0 %v12365_v57  ;;  %15842 = vst [vmem:[#allocation142_spill] sm:$0xff] %v12386_v43  ;;  %v3279_v57 = vsub.f32 %v15843_v4, %v12250_v46  ;;  %v15847_v46 = vld [vmem:[#allocation95_spill] sm:$0xff]  ;;  %v12412_v28 = vpop.xlane.xlu1 %3085 }
 0x541   : > { %v12409_v4 = vadd.f32 %v15847_v46, %v11725_v44  ;;  %15849 = vst [vmem:[#allocation95_spill] sm:$0xff] %v12412_v28  ;;  %v12428_v46 = vadd.f32 %v12295_v45, %v11700_v12  ;;  %v12446_v45 = vadd.f32 %v12300_v33, %v11725_v44  ;;  %v15863_v33 = vld [vmem:[#allocation72_spill] sm:$0xff] }
 0x542   : > { %3679 = vadd.xlane.f32.xlu1 %v12370_v27  ;;  %v3431_v27 = vmul.f32 1.442695, %v3279_v57 }
 0x543   : > { %15848 = vst [vmem:[#allocation64_spill] sm:$0xff] %v12409_v4  ;;  %15853 = vst [vmem:[#allocation145_spill] sm:$0xff] %v12428_v46 }
 0x544   : > { %3173 = vmax.xlane.f32.xlu0 %v12376_v2  ;;  %v12400_v2 = vadd.f32 %v12271_v61, %v11635_v50  ;;  %v12416_v61 = vadd.f32 %v12276_v48, %v11661_v16  ;;  %9437 = vpow2.f32 %v3431_v27  ;;  %v12431_v48 = vpop.xlane.xlu1 %3081  ;;  %v15855_v27 = vld [vmem:[#allocation98_spill] sm:$0xff]  ;;  %15858 = vst [vmem:[#allocation148_spill] sm:$0xff] %v12446_v45 }
 0x545   : > { %15854 = vst [vmem:[#allocation146_spill] sm:$0xff] %v12431_v48 }
 0x546   : > { %3685 = vadd.xlane.f32.xlu1 %v12380_v11  ;;  %15845 = vst [vmem:[#allocation143_spill] sm:$0xff] %v12400_v2  ;;  %v3282_v11 = vsub.f32 %v15846_v38, %v12212_v18  ;;  %15850 = vst [vmem:[#allocation144_spill] sm:$0xff] %v12416_v61  ;;  %v15851_v18 = vld [vmem:[#allocation97_spill] sm:$0xff]  ;;  %v12424_v38 = vpop.xlane.xlu0 %3079 }
 0x547   : > { %v12421_v57 = vadd.f32 %v15851_v18, %v11686_v7 }
 0x548   : > { %3169 = vmax.xlane.f32.xlu0 %v12386_v43  ;;  %v3437_v43 = vmul.f32 1.442695, %v3282_v11  ;;  %v12437_v11 = vadd.f32 %v15855_v27, %v11712_v49 }
 0x549   : > { %15852 = vst [vmem:[#allocation97_spill] sm:$0xff] %v12421_v57 }
 0x54a   : > { %3155 = vmax.xlane.f32.xlu1 %v12395_v30  ;;  %9439 = vpow2.f32 %v3437_v43  ;;  %15856 = vst [vmem:[#allocation98_spill] sm:$0xff] %v12437_v11  ;;  %v12451_v43 = vpop.xlane.xlu0 %3091  ;;  %v12456_v30 = vpop.xlane.xlu1 %3093 }
 0x54b   : > { %15861 = vst [vmem:[#allocation151_spill] sm:$0xff] %v12456_v30 }
 0x54c   : > { %3181 = vmax.xlane.f32.xlu0 %v12400_v2 }
 0x54e   : > { %3151 = vmax.xlane.f32.xlu1 %v12409_v4  ;;  %v12454_v27 = vpop.eup %9437  ;;  %v3283_v4 = vsub.f32 %v15863_v33, %v12319_v59  ;;  %v12472_v28 = vpop.xlane.xlu0 %3087  ;;  %v15867_v59 = vld [vmem:[#allocation63_spill] sm:$0xff] }
 0x54f   : > { %15860 = vst [vmem:[#allocation150_spill] sm:$0xff] %v12454_v27  ;;  %v3286_v33 = vsub.f32 %v15867_v59, %v12269_v15 }
 0x550   : > { %3177 = vmax.xlane.f32.xlu0 %v12416_v61 }
 0x552   : > { %3157 = vmax.xlane.f32.xlu1 %v12421_v57 }
 0x553   : > { %v12433_v2 = vpop.f32.mrb[80].mxu0 }
 0x554   : > { %v12439_v18 = vpop.f32.mrb[81].mxu0  ;;  %3187 = vmax.xlane.f32.xlu0 %v12428_v46  ;;  %v12460_v46 = vadd.f32 %v12214_v26, %v11576_v21  ;;  %v12478_v26 = vadd.f32 %v12218_v1, %v11550_v5  ;;  %v12496_v1 = vadd.f32 %v12252_v34, %v11585_v10 }
 0x555   : > { %v12442_v61 = vpop.f32.mrb[82].mxu0 }
 0x556   : > { %15857 = vst [vmem:[#allocation147_spill] sm:$0xff] %v12442_v61  ;;  %v12448_v57 = vpop.f32.mrb[83].mxu0  ;;  %3153 = vmax.xlane.f32.xlu1 %v12437_v11  ;;  %15862 = vst [vmem:[#allocation152_spill] sm:$0xff] %v12460_v46  ;;  %v12485_v61 = vpop.xlane.xlu1 %3089 }
 0x557   : > { %15859 = vst [vmem:[#allocation149_spill] sm:$0xff] %v12448_v57  ;;  %15866 = vst [vmem:[#allocation154_spill] sm:$0xff] %v12478_v26  ;;  %v3439_v57 = vmul.f32 1.442695, %v3283_v4 }
 0x558   : > { %3183 = vmax.xlane.f32.xlu0 %v12446_v45  ;;  %v12470_v45 = vpop.eup %9439  ;;  %15869 = vst [vmem:[#allocation155_spill] sm:$0xff] %v12496_v1 }
 0x559   : > { %15864 = vst [vmem:[#allocation72_spill] sm:$0xff] %v12470_v45  ;;  %9441 = vpow2.f32 %v3439_v57 }
 0x55a   : > { %3687 = vadd.xlane.f32.xlu1 %v12454_v27 }
 0x55b   : > { %v12465_v48 = vpop.f32.mrb[84].mxu0 }
 0x55c   : > { %v12467_v11 = vpop.f32.mrb[85].mxu0  ;;  %3197 = vmax.xlane.f32.xlu0 %v12460_v46  ;;  %v12489_v46 = vadd.f32 %v12185_v51, %v11538_v36  ;;  %v12505_v51 = vadd.f32 %v12189_v0, %v11554_v25  ;;  %v12525_v0 = vadd.f32 %v12199_v37, %v11550_v5 }
 0x55d   : > { %v12474_v30 = vpop.f32.mrb[86].mxu0 }
 0x55e   : > { %15865 = vst [vmem:[#allocation153_spill] sm:$0xff] %v12474_v30  ;;  %v12480_v27 = vpop.f32.mrb[87].mxu0  ;;  %3693 = vadd.xlane.f32.xlu1 %v12470_v45  ;;  %15868 = vst [vmem:[#allocation63_spill] sm:$0xff] %v12489_v46  ;;  %v3445_v45 = vmul.f32 1.442695, %v3286_v33  ;;  %v12516_v33 = vadd.f32 %v12256_v53, %v11610_v40  ;;  %v12534_v53 = vadd.f32 %v12289_v54, %v11635_v50 }
 0x55f   : > { %15871 = vst [vmem:[#allocation157_spill] sm:$0xff] %v12505_v51  ;;  %15876 = vst [vmem:[#allocation162_spill] sm:$0xff] %v12525_v0 }
 0x560   : > { %3193 = vmax.xlane.f32.xlu0 %v12478_v26  ;;  %15874 = vst [vmem:[#allocation160_spill] sm:$0xff] %v12516_v33  ;;  %9443 = vpow2.f32 %v3445_v45 }
 0x561   : > { %v12492_v30 = vpop.xlane.xlu0 %3099 }
 0x562   : > { %3163 = vmax.xlane.f32.xlu1 %v12489_v46 }
 0x563   : > { %v12499_v15 = vpop.f32.mrb[88].mxu0  ;;  %v12501_v4 = vpop.xlane.xlu1 %3101 }
 0x564   : > { %15870 = vst [vmem:[#allocation156_spill] sm:$0xff] %v12501_v4  ;;  %v12507_v59 = vpop.f32.mrb[89].mxu0  ;;  %3205 = vmax.xlane.f32.xlu0 %v12496_v1  ;;  %v15877_v1 = vld [vmem:[#allocation9_spill] sm:$0xff]  ;;  %v12544_v37 = vpop.eup %9441 }
 0x565   : > { %v12510_v26 = vpop.f32.mrb[90].mxu0  ;;  %v12512_v34 = vpop.xlane.xlu0 %3095  ;;  %v3289_v4 = vsub.f32 %v15877_v1, %v12335_v22  ;;  %15878 = vst [vmem:[#allocation9_spill] sm:$0xff] %v12534_v53  ;;  %15880 = vst [vmem:[#allocation164_spill] sm:$0xff] %v12544_v37  ;;  %v15881_v22 = vld [vmem:[#allocation12_spill] sm:$0xff] }
 0x566   : > { %15872 = vst [vmem:[#allocation158_spill] sm:$0xff] %v12510_v26  ;;  %15873 = vst [vmem:[#allocation159_spill] sm:$0xff] %v12512_v34  ;;  %v12518_v57 = vpop.f32.mrb[91].mxu0  ;;  %3159 = vmax.xlane.f32.xlu1 %v12505_v51  ;;  %v3287_v1 = vsub.f32 %v15881_v22, %v12352_v52 }
 0x567   : > { %15875 = vst [vmem:[#allocation161_spill] sm:$0xff] %v12518_v57  ;;  %v12521_v46 = vpop.xlane.xlu1 %3097 }
 0x568   : > { %3201 = vmax.xlane.f32.xlu0 %v12516_v33  ;;  %v3451_v33 = vmul.f32 1.442695, %v3289_v4  ;;  %v3447_v52 = vmul.f32 1.442695, %v3287_v1  ;;  %v12583_v1 = vadd.f32 %v12225_v20, %v11625_v29 }
 0x569   : > { %v12530_v34 = vpop.xlane.xlu0 %3107 }
 0x56a   : > { %3161 = vmax.xlane.f32.xlu1 %v12525_v0  ;;  %v12554_v0 = vadd.f32 %v12293_v14, %v11661_v16  ;;  %v12562_v4 = vpop.eup %9443  ;;  %9445 = vpow2.f32 %v3451_v33  ;;  %v12578_v33 = vadd.f32 %v12321_v32, %v11725_v44  ;;  %15890 = vst [vmem:[#allocation172_spill] sm:$0xff] %v12583_v1 }
 0x56b   : > { %v12537_v45 = vpop.f32.mrb[92].mxu0  ;;  %v12539_v51 = vpop.xlane.xlu1 %3109  ;;  %15885 = vst [vmem:[#allocation167_spill] sm:$0xff] %v12562_v4  ;;  %9447 = vpow2.f32 %v3447_v52 }
 0x56c   : > { %15879 = vst [vmem:[#allocation163_spill] sm:$0xff] %v12539_v51  ;;  %v12541_v57 = vpop.f32.mrb[93].mxu0  ;;  %3213 = vmax.xlane.f32.xlu0 %v12534_v53  ;;  %15883 = vst [vmem:[#allocation165_spill] sm:$0xff] %v12554_v0  ;;  %v12566_v53 = vadd.f32 %v12312_v9, %v11700_v12 }
 0x56d   : > { %v12548_v26 = vpop.f32.mrb[94].mxu0  ;;  %v12550_v54 = vpop.xlane.xlu0 %3103  ;;  %15889 = vst [vmem:[#allocation171_spill] sm:$0xff] %v12578_v33 }
 0x56e   : > { %15882 = vst [vmem:[#allocation12_spill] sm:$0xff] %v12548_v26  ;;  %v12556_v50 = vpop.f32.mrb[95].mxu0  ;;  %3695 = vadd.xlane.f32.xlu1 %v12544_v37  ;;  %15886 = vst [vmem:[#allocation168_spill] sm:$0xff] %v12566_v53 }
 0x56f   : > { %15884 = vst [vmem:[#allocation166_spill] sm:$0xff] %v12556_v50  ;;  %v12559_v51 = vpop.xlane.xlu1 %3105  ;;  %v12571_v50 = vadd.f32 %v12220_v62, %v11597_v23  ;;  %v15891_v62 = vld [vmem:[#allocation21_spill] sm:$0xff] }
 0x570   : > { %3209 = vmax.xlane.f32.xlu0 %v12554_v0 }
 0x571   : > { %v3644_v22 = vpop.xlane.xlu0 %3643  ;;  %15887 = vst [vmem:[#allocation169_spill] sm:$0xff] %v12571_v50 }
 0x572   : > { %3701 = vadd.xlane.f32.xlu1 %v12562_v4  ;;  %v3293_v4 = vsub.f32 %v15891_v62, %v12367_v41  ;;  %v15895_v41 = vld [vmem:[#allocation31_spill] sm:$0xff] }
 0x573   : > { %v3640_v14 = vpop.xlane.xlu1 %3639 }
 0x574   : > { %3219 = vmax.xlane.f32.xlu0 %v12566_v53  ;;  %v12591_v32 = vpop.eup %9445  ;;  %v3459_v20 = vmul.f32 1.442695, %v3293_v4  ;;  %v12612_v4 = vadd.f32 %v12433_v2, %v11538_v36  ;;  %v12624_v2 = vadd.f32 %v12439_v18, %v11554_v25  ;;  %v15907_v18 = vld [vmem:[#allocation73_spill] sm:$0xff] }
 0x575   : > { %v12574_v0 = vpop.xlane.xlu0 %3115  ;;  %15893 = vst [vmem:[#allocation173_spill] sm:$0xff] %v12591_v32  ;;  %v3297_v26 = vsub.f32 %v15907_v18, %v12405_v63 }
 0x576   : > { %15888 = vst [vmem:[#allocation170_spill] sm:$0xff] %v12574_v0  ;;  %3171 = vmax.xlane.f32.xlu1 %v12571_v50  ;;  %v12595_v50 = vadd.f32 %v12262_v6, %v11648_v8  ;;  %15899 = vst [vmem:[#allocation177_spill] sm:$0xff] %v12612_v4 }
 0x577   : > { %v3646_v9 = vpop.xlane.xlu1 %3645  ;;  %15901 = vst [vmem:[#allocation179_spill] sm:$0xff] %v12624_v2  ;;  %v3467_v63 = vmul.f32 1.442695, %v3297_v26 }
 0x578   : > { %3215 = vmax.xlane.f32.xlu0 %v12578_v33  ;;  %9449 = vrcp.f32 %v3646_v9  ;;  %15894 = vst [vmem:[#allocation174_spill] sm:$0xff] %v12595_v50  ;;  %v3291_v9 = vsub.f32 %v15895_v41, %v12382_v55 }
 0x579   : > { %v12588_v52 = vpop.xlane.xlu0 %3111  ;;  %9451 = vrcp.f32 %v3640_v14  ;;  %v12601_v14 = vpop.eup %9447 }
 0x57a   : > { %15892 = vst [vmem:[#allocation21_spill] sm:$0xff] %v12588_v52  ;;  %3167 = vmax.xlane.f32.xlu1 %v12583_v1  ;;  %9453 = vrcp.f32 %v3644_v22  ;;  %15896 = vst [vmem:[#allocation31_spill] sm:$0xff] %v12601_v14  ;;  %v12607_v22 = vadd.f32 %v12267_v3, %v11675_v56  ;;  %v3455_v6 = vmul.f32 1.442695, %v3291_v9  ;;  %v12617_v1 = vadd.f32 %v12306_v19, %v11686_v7  ;;  %v15904_v52 = vld [vmem:[#allocation93_spill] sm:$0xff] }
 0x57b   : > { %v3642_v53 = vpop.xlane.xlu1 %3641 }
 0x57c   : > { %9455 = vrcp.f32 %v3642_v53  ;;  %3707 = vadd.xlane.f32.xlu0 %v12591_v32  ;;  %15898 = vst [vmem:[#allocation176_spill] sm:$0xff] %v12607_v22  ;;  %15900 = vst [vmem:[#allocation178_spill] sm:$0xff] %v12617_v1  ;;  %v15902_v32 = vld [vmem:[#allocation91_spill] sm:$0xff] }
 0x57d   : > { %v3654_v62 = vpop.xlane.xlu0 %3653  ;;  %9457 = vpow2.f32 %v3459_v20 }
 0x57e   : > { %3179 = vmax.xlane.f32.xlu1 %v12595_v50  ;;  %9459 = vpow2.f32 %v3455_v6  ;;  %v12634_v6 = vadd.f32 %v12310_v24, %v11712_v49 }
 0x57f   : > { %v12603_v33 = vpop.xlane.xlu1 %3117 }
 0x580   : > { %15897 = vst [vmem:[#allocation175_spill] sm:$0xff] %v12603_v33  ;;  %3703 = vadd.xlane.f32.xlu0 %v12601_v14  ;;  %v15903_v33 = vld [vmem:[#allocation68_spill] sm:$0xff]  ;;  %15905 = vst [vmem:[#allocation91_spill] sm:$0xff] %v12634_v6 }
 0x581   : > { %v3650_v53 = vpop.xlane.xlu0 %3649 }
 0x582   : > { %3175 = vmax.xlane.f32.xlu1 %v12607_v22  ;;  %v9450_v55 = vpop.eup %9449 }
 0x583   : > { %v3652_v41 = vpop.xlane.xlu1 %3651  ;;  %v9452_v50 = vpop.eup %9451  ;;  %v4026_v22 = vmul.f32 %v9450_v55, %v15902_v32 }
 0x584   : > { %3227 = vmax.xlane.f32.xlu0 %v12612_v4  ;;  %v9454_v3 = vpop.eup %9453  ;;  %v4023_v19 = vmul.f32 %v9452_v50, %v15903_v33  ;;  %v15906_v4 = vld [vmem:[#allocation88_spill] sm:$0xff]  ;;  %9461 = vrcp.f32 %v3652_v41  ;;  %v15909_v41 = vld [vmem:[#allocation35_spill] sm:$0xff] }
 0x585   : > { %v12620_v20 = vpop.xlane.xlu0 %3661  ;;  %v4025_v0 = vmul.f32 %v9454_v3, %v15906_v4  ;;  %9463 = vrcp.f32 %v3650_v53  ;;  %v15912_v3 = vld [vmem:[#allocation47_spill] sm:$0xff] }
 0x586   : > { %v9456_v9 = vpop.eup %9455  ;;  %3189 = vmax.xlane.f32.xlu1 %v12617_v1  ;;  %9465 = vrcp.f32 %v3654_v62  ;;  %v12671_v62 = vadd.f32 %v12465_v48, %v11597_v23  ;;  %v15921_v1 = vld [vmem:[#allocation79_spill] sm:$0xff] }
 0x587   : > { %v12628_v14 = vpop.xlane.xlu1 %3113  ;;  %v4024_v37 = vmul.f32 %v9456_v9, %v15904_v52  ;;  %v4152_v50 = vpack.c.bf16 %v4026_v22, %v4025_v0  ;;  %v12643_v33 = vpop.eup %9457  ;;  %v12647_v52 = vadd.f32 %v12201_v42, %v11538_v36  ;;  %v15910_v22 = vld [vmem:[#allocation33_spill] sm:$0xff]  ;;  %v12663_v42 = vadd.f32 %v12206_v17, %v11554_v25 }
 0x588   : > { %3223 = vmax.xlane.f32.xlu0 %v12624_v2  ;;  %v12657_v53 = vpop.eup %9459  ;;  %15911 = vst [vmem:[#allocation68_spill] sm:$0xff] %v12671_v62  ;;  %v12679_v17 = vadd.f32 %v12239_v13, %v11597_v23  ;;  %v15916_v23 = vld [vmem:[#allocation11_spill] sm:$0xff] }
 0x589   : > { %v12640_v32 = vpop.xlane.xlu0 %3657  ;;  %v4151_v55 = vpack.c.bf16 %v4024_v37, %v4023_v19  ;;  %v15908_v37 = vld [vmem:[#allocation75_spill] sm:$0xff]  ;;  %v3290_v13 = vsub.f32 %v15916_v23, %v12340_v47  ;;  %v3299_v47 = vsub.f32 %v15921_v1, %v12472_v28 }
 0x58a   : > { %3185 = vmax.xlane.f32.xlu1 %v12634_v6  ;;  %v3295_v4 = vsub.f32 %v15908_v37, %v12424_v38  ;;  %15913 = vst [vmem:[#allocation93_spill] sm:$0xff] %v12679_v17  ;;  %v15917_v37 = vld [vmem:[#allocation100_spill] sm:$0xff] }
 0x58b   : > { %8590 = vmatprep.mubr.bf16.mxu0 %v4151_v55  ;;  %v3648_v24 = vpop.xlane.xlu1 %3647  ;;  %v12687_v55 = vadd.f32 %v12467_v11, %v11625_v29  ;;  %v3471_v1 = vmul.f32 1.442695, %v3299_v47 }
 0x58c   : > { %3715 = vadd.xlane.f32.xlu0 %v12643_v33  ;;  %8591 = vmatmul.mubr.bf16.vlgmr.msra.gmra.mrb[96].mxu0 %v4152_v50  ;;  %9467 = vrcp.f32 %v3648_v24  ;;  %v3463_v38 = vmul.f32 1.442695, %v3295_v4  ;;  %v15915_v50 = vld [vmem:[#allocation36_spill] sm:$0xff] }
 0x58d   : > { %8607 = vmatpush3.bf16.msra.mxu0 %v15909_v41  ;;  %v12653_v0 = vpop.xlane.xlu0 %3131  ;;  %9469 = vpow2.f32 %v3467_v63  ;;  %15914 = vst [vmem:[#allocation88_spill] sm:$0xff] %v12687_v55  ;;  %v12698_v41 = vadd.f32 %v12244_v31, %v11625_v29  ;;  %v15923_v29 = vld [vmem:[#allocation50_spill] sm:$0xff] }
 0x58e   : > { %8608 = vmatprep.subr.bf16.mxu0 %v15910_v22  ;;  %3195 = vmax.xlane.f32.xlu1 %v12647_v52  ;;  %v9462_v25 = vpop.eup %9461  ;;  %9471 = vpow2.f32 %v3463_v38  ;;  %v15919_v38 = vld [vmem:[#allocation70_spill] sm:$0xff] }
 0x58f   : > { %v12659_v36 = vpop.xlane.xlu1 %3123  ;;  %v9464_v19 = vpop.eup %9463  ;;  %v4029_v4 = vmul.f32 %v9462_v25, %v15917_v37  ;;  %v15922_v25 = vld [vmem:[#allocation94_spill] sm:$0xff] }
 0x590   : > { %3711 = vadd.xlane.f32.xlu0 %v12657_v53  ;;  %v9466_v48 = vpop.eup %9465 }
 0x591   : > { %8609 = vmatpush3.bf16.msra.mxu0 %v15910_v22  ;;  %v12667_v26 = vpop.xlane.xlu0 %3127  ;;  %v15918_v22 = vld [vmem:[#allocation77_spill] sm:$0xff]  ;;  %v4030_v37 = vmul.f32 %v9466_v48, %v15922_v25 }
 0x592   : > { %8610 = vmatprep.subr.bf16.mxu0 %v15912_v3  ;;  %3191 = vmax.xlane.f32.xlu1 %v12663_v42  ;;  %v3301_v11 = vsub.f32 %v15918_v22, %v12451_v43  ;;  %v3453_v22 = vmul.f32 1.442695, %v3290_v13 }
 0x593   : > { %v12675_v9 = vpop.xlane.xlu1 %3119 }
 0x594   : > { %3235 = vmax.xlane.f32.xlu0 %v12671_v62  ;;  %v15920_v62 = vld [vmem:[#allocation99_spill] sm:$0xff]  ;;  %v3475_v28 = vmul.f32 1.442695, %v3301_v11  ;;  %9473 = vpow2.f32 %v3453_v22 }
 0x595   : > { %8611 = vmatpush3.bf16.msra.mxu0 %v15912_v3  ;;  %v12683_v18 = vpop.xlane.xlu0 %3669  ;;  %v4028_v2 = vmul.f32 %v9464_v19, %v15920_v62  ;;  %v15924_v62 = vld [vmem:[#allocation124_spill] sm:$0xff]  ;;  %v15932_v22 = vld [vmem:[#allocation131_spill] sm:$0xff] }
 0x596   : > { %8612 = vmatprep.subr.bf16.mxu0 %v15915_v50  ;;  %3203 = vmax.xlane.f32.xlu1 %v12679_v17  ;;  %v9468_v24 = vpop.eup %9467  ;;  %v12717_v19 = vadd.f32 %v15924_v62, %v11648_v8  ;;  %9475 = vpow2.f32 %v3475_v28  ;;  %v15936_v62 = vld [vmem:[#allocation55_spill] sm:$0xff]  ;;  %v12767_v28 = vadd.f32 %v12328_v60, %v11712_v49 }
 0x597   : > { %v12693_v63 = vpop.xlane.xlu1 %3125  ;;  %v4027_v3 = vmul.f32 %v9468_v24, %v15919_v38  ;;  %v12713_v43 = vpop.eup %9469  ;;  %v4154_v38 = vpack.c.bf16 %v4030_v37, %v4029_v4  ;;  %v15927_v4 = vld [vmem:[#allocation42_spill] sm:$0xff]  ;;  %9477 = vpow2.f32 %v3471_v1  ;;  %v12740_v37 = vadd.f32 %v12499_v15, %v11648_v8  ;;  %v15938_v1 = vld [vmem:[#allocation81_spill] sm:$0xff] }
 0x598   : > { %3231 = vmax.xlane.f32.xlu0 %v12687_v55  ;;  %15925 = vst [vmem:[#allocation73_spill] sm:$0xff] %v12717_v19  ;;  %9479 = vrcp.f32 %v12620_v20  ;;  %v12756_v15 = vadd.f32 %v12507_v59, %v11675_v56  ;;  %v15935_v20 = vld [vmem:[#allocation23_spill] sm:$0xff]  ;;  %15937 = vst [vmem:[#allocation36_spill] sm:$0xff] %v12767_v28 }
 0x599   : > { %8613 = vmatpush3.bf16.msra.mxu0 %v15915_v50  ;;  %v12708_v23 = vpop.xlane.xlu0 %3665  ;;  %v4153_v31 = vpack.c.bf16 %v4028_v2, %v4027_v3  ;;  %v12724_v2 = vpop.eup %9471  ;;  %v15926_v50 = vld [vmem:[#allocation18_spill] sm:$0xff]  ;;  %15930 = vst [vmem:[#allocation35_spill] sm:$0xff] %v12740_v37  ;;  %v15943_v55 = vld [vmem:[#allocation111_spill] sm:$0xff] }
 0x59a   : > { %8614 = vmatprep.subr.bf16.mxu0 %v15923_v29  ;;  %3199 = vmax.xlane.f32.xlu1 %v12698_v41  ;;  %v3288_v13 = vsub.f32 %v15926_v50, %v12357_v58  ;;  %v15928_v3 = vld [vmem:[#allocation126_spill] sm:$0xff]  ;;  %15934 = vst [vmem:[#allocation47_spill] sm:$0xff] %v12756_v15  ;;  %v15939_v50 = vld [vmem:[#allocation84_spill] sm:$0xff] }
 0x59b   : > { %v3660_v24 = vpop.xlane.xlu1 %3659  ;;  %8594 = vmatprep.mubr.bf16.mxu0 %v4153_v31  ;;  %v12733_v47 = vadd.f32 %v15928_v3, %v11675_v56  ;;  %v3305_v56 = vsub.f32 %v15938_v1, %v12492_v30 }
 0x59c   : > { %3723 = vadd.xlane.f32.xlu0 %v12713_v43  ;;  %8595 = vmatmul.mubr.bf16.gmra.mrb[100].mxu0 %v4154_v38  ;;  %v3449_v58 = vmul.f32 1.442695, %v3288_v13  ;;  %9481 = vrcp.f32 %v3660_v24  ;;  %v12748_v38 = vadd.f32 %v15932_v22, %v11686_v7  ;;  %v3294_v24 = vsub.f32 %v15935_v20, %v12372_v35 }
 0x59d   : > { %v12720_v48 = vpop.xlane.xlu0 %3139  ;;  %8615 = vmatpush3.bf16.msra.mxu0 %v15923_v29  ;;  %15929 = vst [vmem:[#allocation75_spill] sm:$0xff] %v12733_v47  ;;  %v15931_v29 = vld [vmem:[#allocation54_spill] sm:$0xff]  ;;  %9483 = vrcp.f32 %v12640_v32  ;;  %v3304_v13 = vsub.f32 %v15939_v50, %v12521_v46  ;;  %v15941_v50 = vld [vmem:[#allocation24_spill] sm:$0xff] }
 0x59e   : > { %3211 = vmax.xlane.f32.xlu1 %v12717_v19  ;;  %8616 = vmatprep.subr.bf16.mxu0 %v15927_v4  ;;  %15933 = vst [vmem:[#allocation33_spill] sm:$0xff] %v12748_v38  ;;  %v12772_v59 = vpop.eup %9473  ;;  %v3461_v3 = vmul.f32 1.442695, %v3294_v24 }
 0x59f   : > { %v12729_v11 = vpop.xlane.xlu1 %3121  ;;  %v3481_v46 = vmul.f32 1.442695, %v3304_v13 }
 0x5a0   : > { %3719 = vadd.xlane.f32.xlu0 %v12724_v2  ;;  %v12778_v35 = vpop.eup %9475 }
 0x5a1   : > { %v12736_v25 = vpop.xlane.xlu0 %3135  ;;  %8617 = vmatpush3.bf16.msra.mxu0 %v15927_v4  ;;  %v12782_v60 = vpop.eup %9477 }
 0x5a2   : > { %3207 = vmax.xlane.f32.xlu1 %v12733_v47  ;;  %8618 = vmatprep.subr.bf16.mxu0 %v15931_v29 }
 0x5a3   : > { %v3656_v31 = vpop.xlane.xlu1 %3655 }
 0x5a4   : > { %3243 = vmax.xlane.f32.xlu0 %v12740_v37  ;;  %9485 = vrcp.f32 %v3656_v31  ;;  %v3483_v31 = vmul.f32 1.442695, %v3305_v56  ;;  %v3292_v37 = vsub.f32 %v15941_v50, %v12391_v39  ;;  %v15942_v56 = vld [vmem:[#allocation115_spill] sm:$0xff]  ;;  %v12805_v39 = vadd.f32 %v12537_v45, %v11700_v12  ;;  %v15950_v45 = vld [vmem:[#allocation85_spill] sm:$0xff] }
 0x5a5   : > { %v12752_v8 = vpop.xlane.xlu0 %3675  ;;  %8619 = vmatpush3.bf16.msra.mxu0 %v15931_v29  ;;  %9487 = vpow2.f32 %v3449_v58  ;;  %v15940_v58 = vld [vmem:[#allocation65_spill] sm:$0xff]  ;;  %v9480_v29 = vpop.eup %9479  ;;  %v15956_v50 = vld [vmem:[#allocation95_spill] sm:$0xff] }
 0x5a6   : > { %3221 = vmax.xlane.f32.xlu1 %v12748_v38  ;;  %8620 = vmatprep.subr.bf16.mxu0 %v15936_v62  ;;  %v9482_v22 = vpop.eup %9481  ;;  %9489 = vpow2.f32 %v3461_v3  ;;  %v15945_v3 = vld [vmem:[#allocation103_spill] sm:$0xff]  ;;  %15946 = vst [vmem:[#allocation11_spill] sm:$0xff] %v12805_v39 }
 0x5a7   : > { %v12763_v32 = vpop.xlane.xlu1 %3133  ;;  %v9484_v1 = vpop.eup %9483  ;;  %9491 = vpow2.f32 %v3483_v31  ;;  %v4033_v38 = vmul.f32 %v9482_v22, %v15943_v55  ;;  %v15947_v31 = vld [vmem:[#allocation101_spill] sm:$0xff]  ;;  %v3457_v55 = vmul.f32 1.442695, %v3292_v37 }
 0x5a8   : > { %3239 = vmax.xlane.f32.xlu0 %v12756_v15  ;;  %9493 = vpow2.f32 %v3481_v46  ;;  %v4032_v47 = vmul.f32 %v9484_v1, %v15945_v3 }
 0x5a9   : > { %v12776_v4 = vpop.xlane.xlu0 %3673  ;;  %8621 = vmatpush3.bf16.msra.mxu0 %v15936_v62 }
 0x5aa   : > { %3217 = vmax.xlane.f32.xlu1 %v12767_v28  ;;  %8670 = vmatprep.subr.bf16.mxu0 %v15940_v58  ;;  %v15944_v28 = vld [vmem:[#allocation87_spill] sm:$0xff] }
 0x5ab   : > { %v3668_v30 = vpop.xlane.xlu1 %3667  ;;  %v3308_v6 = vsub.f32 %v15944_v28, %v12559_v51  ;;  %v15948_v51 = vld [vmem:[#allocation147_spill] sm:$0xff] }
 0x5ac   : > { %3731 = vadd.xlane.f32.xlu0 %v12778_v35  ;;  %9495 = vrcp.f32 %v3668_v30  ;;  %v12812_v28 = vadd.f32 %v15948_v51, %v11576_v21  ;;  %v3309_v30 = vsub.f32 %v15950_v45, %v12530_v34  ;;  %v15954_v34 = vld [vmem:[#allocation104_spill] sm:$0xff] }
 0x5ad   : > { %v12786_v20 = vpop.xlane.xlu0 %3147  ;;  %9497 = vrcp.f32 %v12708_v23  ;;  %v3489_v1 = vmul.f32 1.442695, %v3308_v6  ;;  %v12822_v23 = vadd.f32 %v12541_v57, %v11725_v44  ;;  %v3321_v6 = vsub.f32 %v15954_v34, %v12653_v0 }
 0x5ae   : > { %3709 = vadd.xlane.f32.xlu1 %v12772_v59  ;;  %v9486_v62 = vpop.eup %9485  ;;  %15949 = vst [vmem:[#allocation100_spill] sm:$0xff] %v12812_v28  ;;  %9499 = vrcp.f32 %v12683_v18  ;;  %v15952_v18 = vld [vmem:[#allocation149_spill] sm:$0xff] }
 0x5af   : > { %v12791_v24 = vpop.xlane.xlu1 %3129  ;;  %v4031_v15 = vmul.f32 %v9486_v62, %v15942_v56  ;;  %v12796_v13 = vpop.eup %9487  ;;  %v4034_v62 = vmul.f32 %v9480_v29, %v15947_v31  ;;  %15951 = vst [vmem:[#allocation77_spill] sm:$0xff] %v12822_v23  ;;  %v3515_v31 = vmul.f32 1.442695, %v3321_v6  ;;  %v15961_v6 = vld [vmem:[#allocation119_spill] sm:$0xff] }
 0x5b0   : > { %3727 = vadd.xlane.f32.xlu0 %v12782_v60 }
 0x5b1   : > { %v12800_v19 = vpop.xlane.xlu0 %3143  ;;  %v4155_v46 = vpack.c.bf16 %v4032_v47, %v4031_v15  ;;  %v4156_v12 = vpack.c.bf16 %v4034_v62, %v4033_v38  ;;  %v12829_v47 = vadd.f32 %v15952_v18, %v11550_v5  ;;  %v12834_v38 = vpop.eup %9489  ;;  %v3491_v15 = vmul.f32 1.442695, %v3309_v30  ;;  %v15957_v5 = vld [vmem:[#allocation74_spill] sm:$0xff] }
 0x5b2   : > { %3705 = vadd.xlane.f32.xlu1 %v12796_v13  ;;  %v12838_v57 = vpop.eup %9491  ;;  %v3298_v56 = vsub.f32 %v15957_v5, %v15956_v50  ;;  %v15959_v30 = vld [vmem:[#allocation146_spill] sm:$0xff] }
 0x5b3   : > { %v3664_v22 = vpop.xlane.xlu1 %3663  ;;  %8598 = vmatprep.mubr.bf16.mxu0 %v4155_v46  ;;  %15953 = vst [vmem:[#allocation70_spill] sm:$0xff] %v12829_v47  ;;  %15955 = vst [vmem:[#allocation99_spill] sm:$0xff] %v12838_v57  ;;  %v12841_v29 = vpop.eup %9493  ;;  %v15963_v5 = vld [vmem:[#allocation110_spill] sm:$0xff] }
 0x5b4   : > { %3251 = vmax.xlane.f32.xlu0 %v12805_v39  ;;  %9501 = vrcp.f32 %v3664_v22  ;;  %8599 = vmatmul.mubr.bf16.gmra.mrb[104].mxu0 %v4156_v12  ;;  %v3469_v45 = vmul.f32 1.442695, %v3298_v56  ;;  %v15964_v56 = vld [vmem:[#allocation112_spill] sm:$0xff] }
 0x5b5   : > { %v12818_v37 = vpop.xlane.xlu0 %3683  ;;  %9503 = vpow2.f32 %v3457_v55  ;;  %v15958_v55 = vld [vmem:[#allocation106_spill] sm:$0xff] }
 0x5b6   : > { %3229 = vmax.xlane.f32.xlu1 %v12812_v28  ;;  %9505 = vpow2.f32 %v3489_v1  ;;  %v9496_v0 = vpop.eup %9495  ;;  %v3319_v22 = vsub.f32 %v15958_v55, %v12667_v26  ;;  %v15960_v1 = vld [vmem:[#allocation76_spill] sm:$0xff] }
 0x5b7   : > { %v12825_v21 = vpop.xlane.xlu1 %3141  ;;  %v9498_v62 = vpop.eup %9497  ;;  %9507 = vpow2.f32 %v3491_v15  ;;  %v3296_v18 = vsub.f32 %v15960_v1, %v15959_v30  ;;  %v4037_v50 = vmul.f32 %v9496_v0, %v15961_v6  ;;  %v15962_v15 = vld [vmem:[#allocation123_spill] sm:$0xff] }
 0x5b8   : > { %3247 = vmax.xlane.f32.xlu0 %v12822_v23  ;;  %v9500_v51 = vpop.eup %9499  ;;  %9509 = vrcp.f32 %v12776_v4  ;;  %v4036_v55 = vmul.f32 %v9498_v62, %v15963_v5  ;;  %v3511_v23 = vmul.f32 1.442695, %v3319_v22  ;;  %v15965_v4 = vld [vmem:[#allocation108_spill] sm:$0xff]  ;;  %v15967_v22 = vld [vmem:[#allocation153_spill] sm:$0xff]  ;;  %v15974_v5 = vld [vmem:[#allocation78_spill] sm:$0xff] }
 0x5b9   : > { %v12836_v44 = vpop.xlane.xlu0 %3681  ;;  %9511 = vpow2.f32 %v3515_v31  ;;  %v4038_v1 = vmul.f32 %v9500_v51, %v15965_v4  ;;  %v3465_v62 = vmul.f32 1.442695, %v3296_v18 }
 0x5ba   : > { %3225 = vmax.xlane.f32.xlu1 %v12829_v47  ;;  %v3325_v47 = vsub.f32 %v15964_v56, %v12720_v48 }
 0x5bb   : > { %v12845_v3 = vpop.xlane.xlu1 %3137  ;;  %v4158_v6 = vpack.c.bf16 %v4038_v1, %v4037_v50 }
 0x5bc   : > { %3739 = vadd.xlane.f32.xlu0 %v12838_v57  ;;  %v3523_v48 = vmul.f32 1.442695, %v3325_v47 }
 0x5bd   : > { %v12850_v46 = vpop.xlane.xlu0 %3691 }
 0x5be   : > { %3717 = vadd.xlane.f32.xlu1 %v12834_v38  ;;  %v9502_v12 = vpop.eup %9501 }
 0x5bf   : > { %v3672_v34 = vpop.xlane.xlu1 %3671  ;;  %v4035_v26 = vmul.f32 %v9502_v12, %v15962_v15  ;;  %v12860_v39 = vpop.eup %9503  ;;  %v12873_v15 = vadd.f32 %v15967_v22, %v11585_v10  ;;  %v12887_v10 = vadd.f32 %v12480_v27, %v11610_v40  ;;  %v15975_v40 = vld [vmem:[#allocation132_spill] sm:$0xff] }
 0x5c0   : > { %3737 = vadd.xlane.f32.xlu0 %v12841_v29  ;;  %9513 = vrcp.f32 %v3672_v34  ;;  %v12869_v31 = vpop.eup %9505 }
 0x5c1   : > { %v12864_v30 = vpop.xlane.xlu0 %3689  ;;  %9515 = vrcp.f32 %v12752_v8  ;;  %v4157_v0 = vpack.c.bf16 %v4036_v55, %v4035_v26  ;;  %15966 = vst [vmem:[#allocation79_spill] sm:$0xff] %v12869_v31  ;;  %15968 = vst [vmem:[#allocation94_spill] sm:$0xff] %v12873_v15  ;;  %v15969_v8 = vld [vmem:[#allocation114_spill] sm:$0xff]  ;;  %v15973_v26 = vld [vmem:[#allocation151_spill] sm:$0xff] }
 0x5c2   : > { %3713 = vadd.xlane.f32.xlu1 %v12860_v39  ;;  %9517 = vpow2.f32 %v3469_v45  ;;  %v3323_v51 = vsub.f32 %v15969_v8, %v12736_v25  ;;  %v12881_v45 = vpop.eup %9507  ;;  %15971 = vst [vmem:[#allocation124_spill] sm:$0xff] %v12887_v10  ;;  %v3302_v55 = vsub.f32 %v15974_v5, %v15973_v26  ;;  %v15977_v26 = vld [vmem:[#allocation80_spill] sm:$0xff] }
 0x5c3   : > { %v3678_v12 = vpop.xlane.xlu1 %3677  ;;  %8602 = vmatprep.mubr.bf16.mxu0 %v4157_v0  ;;  %15970 = vst [vmem:[#allocation50_spill] sm:$0xff] %v12881_v45  ;;  %v15976_v0 = vld [vmem:[#allocation118_spill] sm:$0xff]  ;;  %v3300_v5 = vsub.f32 %v15977_v26, %v12485_v61 }
 0x5c4   : > { %9519 = vrcp.f32 %v3678_v12  ;;  %3745 = vadd.xlane.f32.xlu0 %v12869_v31  ;;  %8603 = vmatmul.mubr.bf16.gmra.mrb[108].mxu0 %v4158_v6  ;;  %v3519_v47 = vmul.f32 1.442695, %v3323_v51 }
 0x5c5   : > { %9521 = vpow2.f32 %v3511_v23  ;;  %v12878_v34 = vpop.xlane.xlu0 %3165  ;;  %v9510_v23 = vpop.eup %9509 }
 0x5c6   : > { %3237 = vmax.xlane.f32.xlu1 %v12873_v15  ;;  %9523 = vpow2.f32 %v3465_v62  ;;  %v12892_v50 = vpop.eup %9511  ;;  %v4040_v62 = vmul.f32 %v9510_v23, %v15976_v0  ;;  %v15978_v15 = vld [vmem:[#allocation116_spill] sm:$0xff]  ;;  %v15979_v23 = vld [vmem:[#allocation134_spill] sm:$0xff] }
 0x5c7   : > { %v12883_v18 = vpop.xlane.xlu1 %3149  ;;  %9525 = vpow2.f32 %v3523_v48  ;;  %15972 = vst [vmem:[#allocation18_spill] sm:$0xff] %v12892_v50  ;;  %v3477_v48 = vmul.f32 1.442695, %v3302_v55  ;;  %v15983_v0 = vld [vmem:[#allocation158_spill] sm:$0xff] }
 0x5c8   : > { %3747 = vadd.xlane.f32.xlu0 %v12881_v45  ;;  %9527 = vpow2.f32 %v3519_v47  ;;  %v15999_v45 = vld [vmem:[#allocation141_spill] sm:$0xff] }
 0x5c9   : > { %v12890_v25 = vpop.xlane.xlu0 %3699  ;;  %9529 = vrcp.f32 %v12836_v44  ;;  %v3473_v44 = vmul.f32 1.442695, %v3300_v5  ;;  %v15989_v5 = vld [vmem:[#allocation71_spill] sm:$0xff] }
 0x5ca   : > { %3233 = vmax.xlane.f32.xlu1 %v12887_v10  ;;  %v9514_v56 = vpop.eup %9513 }
 0x5cb   : > { %v12897_v4 = vpop.xlane.xlu1 %3145  ;;  %v9516_v1 = vpop.eup %9515  ;;  %v4039_v27 = vmul.f32 %v9514_v56, %v15975_v40 }
 0x5cc   : > { %3771 = vadd.xlane.f32.xlu0 %v12892_v50  ;;  %v12902_v12 = vpop.eup %9517  ;;  %v4041_v10 = vmul.f32 %v9516_v1, %v15978_v15  ;;  %v15982_v1 = vld [vmem:[#allocation69_spill] sm:$0xff] }
 0x5cd   : > { %v12904_v6 = vpop.xlane.xlu0 %3697  ;;  %v4159_v8 = vpack.c.bf16 %v4040_v62, %v4039_v27  ;;  %v12925_v62 = vadd.f32 %v15983_v0, %v15982_v1 }
 0x5ce   : > { %v9520_v22 = vpop.eup %9519  ;;  %3725 = vadd.xlane.f32.xlu1 %v12902_v12 }
 0x5cf   : > { %v12907_v51 = vpop.eup %9521  ;;  %v4042_v56 = vmul.f32 %v9520_v22, %v15979_v23  ;;  %v3680_v40 = vpop.xlane.xlu1 %3679  ;;  %8622 = vmatprep.mubr.bf16.mxu0 %v4159_v8  ;;  %15984 = vst [vmem:[#allocation54_spill] sm:$0xff] %v12925_v62  ;;  %v15987_v8 = vld [vmem:[#allocation161_spill] sm:$0xff] }
 0x5d0   : > { %3767 = vadd.xlane.f32.xlu0 %v12907_v51  ;;  %v12915_v47 = vpop.eup %9523  ;;  %9531 = vrcp.f32 %v3680_v40  ;;  %v12939_v26 = vadd.f32 %v15987_v8, %v11661_v16  ;;  %v15991_v40 = vld [vmem:[#allocation159_spill] sm:$0xff] }
 0x5d1   : > { %v12917_v55 = vpop.xlane.xlu0 %3173  ;;  %v4160_v27 = vpack.c.bf16 %v4042_v56, %v4041_v10  ;;  %9533 = vrcp.f32 %v12818_v37  ;;  %v12921_v61 = vpop.eup %9525  ;;  %v15985_v10 = vld [vmem:[#allocation66_spill] sm:$0xff]  ;;  %v15993_v16 = vld [vmem:[#allocation139_spill] sm:$0xff] }
 0x5d2   : > { %15980 = vst [vmem:[#allocation42_spill] sm:$0xff] %v12917_v55  ;;  %3721 = vadd.xlane.f32.xlu1 %v12915_v47  ;;  %15981 = vst [vmem:[#allocation126_spill] sm:$0xff] %v12921_v61  ;;  %9535 = vpow2.f32 %v3477_v48  ;;  %v12933_v22 = vpop.eup %9527  ;;  %v15998_v55 = vld [vmem:[#allocation125_spill] sm:$0xff] }
 0x5d3   : > { %v3686_v15 = vpop.xlane.xlu1 %3685  ;;  %8623 = vmatmul.mubr.bf16.vlgmr.msra.gmra.mrb[112].mxu0 %v4160_v27  ;;  %15986 = vst [vmem:[#allocation131_spill] sm:$0xff] %v12933_v22  ;;  %15988 = vst [vmem:[#allocation23_spill] sm:$0xff] %v12939_v26  ;;  %v15992_v27 = vld [vmem:[#allocation83_spill] sm:$0xff] }
 0x5d4   : > { %9537 = vrcp.f32 %v3686_v15  ;;  %8671 = vmatpush3.bf16.msra.mxu0 %v15940_v58  ;;  %3779 = vadd.xlane.f32.xlu0 %v12921_v61  ;;  %v9530_v58 = vpop.eup %9529  ;;  %v15996_v61 = vld [vmem:[#allocation156_spill] sm:$0xff] }
 0x5d5   : > { %8672 = vmatprep.subr.bf16.mxu0 %v15985_v10  ;;  %v12930_v37 = vpop.xlane.xlu0 %3169  ;;  %9539 = vpow2.f32 %v3473_v44  ;;  %v3303_v44 = vsub.f32 %v15992_v27, %v15991_v40 }
 0x5d6   : > { %3245 = vmax.xlane.f32.xlu1 %v12925_v62 }
 0x5d7   : > { %v12935_v48 = vpop.xlane.xlu1 %3155  ;;  %v3479_v27 = vmul.f32 1.442695, %v3303_v44 }
 0x5d8   : > { %8673 = vmatpush3.bf16.msra.mxu0 %v15985_v10  ;;  %3775 = vadd.xlane.f32.xlu0 %v12933_v22  ;;  %v15994_v10 = vld [vmem:[#allocation128_spill] sm:$0xff] }
 0x5d9   : > { %8674 = vmatprep.subr.bf16.mxu0 %v15989_v5  ;;  %v12944_v23 = vpop.xlane.xlu0 %3181  ;;  %v4044_v8 = vmul.f32 %v9530_v58, %v15994_v10  ;;  %9541 = vpow2.f32 %v3479_v27 }
 0x5da   : > { %15990 = vst [vmem:[#allocation55_spill] sm:$0xff] %v12944_v23  ;;  %3241 = vmax.xlane.f32.xlu1 %v12939_v26  ;;  %v9532_v56 = vpop.eup %9531  ;;  %v15997_v26 = vld [vmem:[#allocation82_spill] sm:$0xff] }
 0x5db   : > { %v12949_v15 = vpop.xlane.xlu1 %3151  ;;  %v9534_v1 = vpop.eup %9533  ;;  %v4043_v0 = vmul.f32 %v9532_v56, %v15993_v16  ;;  %v3306_v22 = vsub.f32 %v15997_v26, %v15996_v61  ;;  %v16001_v61 = vld [vmem:[#allocation67_spill] sm:$0xff] }
 0x5dc   : > { %8675 = vmatpush3.bf16.msra.mxu0 %v15989_v5  ;;  %v12954_v62 = vpop.eup %9535  ;;  %v4045_v5 = vmul.f32 %v9534_v1, %v15998_v55  ;;  %v3307_v26 = vsub.f32 %v16001_v61, %v12550_v54  ;;  %v16002_v55 = vld [vmem:[#allocation12_spill] sm:$0xff]  ;;  %v16007_v54 = vld [vmem:[#allocation166_spill] sm:$0xff] }
 0x5dd   : > { %v12956_v28 = vpop.xlane.xlu0 %3177  ;;  %v4161_v40 = vpack.c.bf16 %v4044_v8, %v4043_v0  ;;  %v12976_v1 = vadd.f32 %v16002_v55, %v11686_v7  ;;  %v12986_v27 = vadd.f32 %v16007_v54, %v11712_v49  ;;  %v16010_v49 = vld [vmem:[#allocation37_spill] sm:$0xff]  ;;  %v16015_v54 = vld [vmem:[#allocation19_spill] sm:$0xff] }
 0x5de   : > { %15995 = vst [vmem:[#allocation81_spill] sm:$0xff] %v12956_v28  ;;  %v9538_v23 = vpop.eup %9537  ;;  %3733 = vadd.xlane.f32.xlu1 %v12954_v62  ;;  %v3485_v28 = vmul.f32 1.442695, %v3306_v22  ;;  %v16006_v22 = vld [vmem:[#allocation86_spill] sm:$0xff]  ;;  %v3487_v8 = vmul.f32 1.442695, %v3307_v26 }
 0x5df   : > { %v12961_v50 = vpop.xlane.xlu1 %3157  ;;  %v4046_v56 = vmul.f32 %v9538_v23, %v15999_v45  ;;  %8626 = vmatprep.mubr.bf16.mxu0 %v4161_v40  ;;  %v12965_v58 = vpop.eup %9539  ;;  %16003 = vst [vmem:[#allocation65_spill] sm:$0xff] %v12976_v1  ;;  %v16005_v23 = vld [vmem:[#allocation163_spill] sm:$0xff]  ;;  %16008 = vst [vmem:[#allocation115_spill] sm:$0xff] %v12986_v27  ;;  %v16011_v26 = vld [vmem:[#allocation121_spill] sm:$0xff] }
 0x5e0   : > { %9543 = vpow2.f32 %v3485_v28  ;;  %v3310_v0 = vsub.f32 %v16006_v22, %v16005_v23  ;;  %v16009_v28 = vld [vmem:[#allocation117_spill] sm:$0xff]  ;;  %v3320_v55 = vsub.f32 %v16011_v26, %v12791_v24 }
 0x5e1   : > { %v12967_v16 = vpop.xlane.xlu0 %3187  ;;  %v4162_v10 = vpack.c.bf16 %v4046_v56, %v4045_v5  ;;  %9545 = vrcp.f32 %v12864_v30  ;;  %v3322_v56 = vsub.f32 %v16009_v28, %v12763_v32  ;;  %v16017_v26 = vld [vmem:[#allocation133_spill] sm:$0xff] }
 0x5e2   : > { %16000 = vst [vmem:[#allocation84_spill] sm:$0xff] %v12967_v16  ;;  %3729 = vadd.xlane.f32.xlu1 %v12965_v58  ;;  %v3493_v7 = vmul.f32 1.442695, %v3310_v0  ;;  %v3513_v28 = vmul.f32 1.442695, %v3320_v55 }
 0x5e3   : > { %v12972_v44 = vpop.xlane.xlu1 %3153  ;;  %8627 = vmatmul.mubr.bf16.gmra.mrb[116].mxu0 %v4162_v10  ;;  %v12994_v30 = vpop.eup %9541 }
 0x5e5   : > { %v12978_v45 = vpop.xlane.xlu0 %3183 }
 0x5e6   : > { %16004 = vst [vmem:[#allocation24_spill] sm:$0xff] %v12978_v45  ;;  %3253 = vmax.xlane.f32.xlu1 %v12976_v1 }
 0x5e7   : > { %v3688_v40 = vpop.xlane.xlu1 %3687 }
 0x5e8   : > { %9547 = vrcp.f32 %v3688_v40 }
 0x5e9   : > { %v12988_v5 = vpop.xlane.xlu0 %3197  ;;  %9549 = vrcp.f32 %v12850_v46  ;;  %v3517_v46 = vmul.f32 1.442695, %v3322_v56 }
 0x5ea   : > { %3249 = vmax.xlane.f32.xlu1 %v12986_v27  ;;  %9551 = vpow2.f32 %v3487_v8  ;;  %v13005_v22 = vpop.eup %9543  ;;  %v16014_v8 = vld [vmem:[#allocation127_spill] sm:$0xff] }
 0x5eb   : > { %v3694_v10 = vpop.xlane.xlu1 %3693  ;;  %16012 = vst [vmem:[#allocation111_spill] sm:$0xff] %v13005_v22  ;;  %v9546_v32 = vpop.eup %9545  ;;  %v3326_v40 = vsub.f32 %v16014_v8, %v12825_v21 }
 0x5ec   : > { %9553 = vrcp.f32 %v3694_v10  ;;  %v16016_v10 = vld [vmem:[#allocation150_spill] sm:$0xff]  ;;  %v4048_v1 = vmul.f32 %v9546_v32, %v16017_v26 }
 0x5ed   : > { %v12996_v61 = vpop.xlane.xlu0 %3193  ;;  %9555 = vpow2.f32 %v3493_v7  ;;  %v3525_v8 = vmul.f32 1.442695, %v3326_v40 }
 0x5ee   : > { %3735 = vadd.xlane.f32.xlu1 %v12994_v30  ;;  %4584 = vrot.lane.b32.xlu0 %v16010_v49, %s10159_s24  ;;  %9557 = vpow2.f32 %v3517_v46  ;;  %v16020_v46 = vld [vmem:[#allocation129_spill] sm:$0xff] }
 0x5ef   : > { %v13003_v23 = vpop.xlane.xlu1 %3163  ;;  %9559 = vpow2.f32 %v3513_v28  ;;  %v3324_v55 = vsub.f32 %v16020_v46, %v12845_v3 }
 0x5f0   : > { %9561 = vpow2.f32 %v3525_v8 }
 0x5f1   : > { %v13007_v0 = vpop.xlane.xlu0 %3205  ;;  %9563 = vrcp.f32 %v12904_v6 }
 0x5f2   : > { %16013 = vst [vmem:[#allocation87_spill] sm:$0xff] %v13007_v0  ;;  %3741 = vadd.xlane.f32.xlu1 %v13005_v22  ;;  %4707 = vrot.lane.b32.xlu0 %v16015_v54, %s10159_s24  ;;  %v9548_v7 = vpop.eup %9547  ;;  %v16021_v0 = vld [vmem:[#allocation130_spill] sm:$0xff] }
 0x5f3   : > { %v13014_v56 = vpop.xlane.xlu1 %3159  ;;  %v9550_v24 = vpop.eup %9549  ;;  %v4047_v49 = vmul.f32 %v9548_v7, %v16016_v10  ;;  %v16022_v7 = vld [vmem:[#allocation72_spill] sm:$0xff] }
 0x5f4   : > { %v13018_v27 = vpop.eup %9551  ;;  %v4049_v31 = vmul.f32 %v9550_v24, %v16021_v0 }
 0x5f5   : > { %16018 = vst [vmem:[#allocation103_spill] sm:$0xff] %v13018_v27  ;;  %v13020_v45 = vpop.xlane.xlu0 %3201  ;;  %v4163_v16 = vpack.c.bf16 %v4048_v1, %v4047_v49  ;;  %v3521_v1 = vmul.f32 1.442695, %v3324_v55  ;;  %v16029_v49 = vld [vmem:[#allocation122_spill] sm:$0xff] }
 0x5f6   : > { %16019 = vst [vmem:[#allocation101_spill] sm:$0xff] %v13020_v45  ;;  %v9554_v21 = vpop.eup %9553  ;;  %3743 = vadd.xlane.f32.xlu1 %v13018_v27  ;;  %v16032_v55 = vld [vmem:[#allocation170_spill] sm:$0xff] }
 0x5f7   : > { %v13025_v54 = vpop.xlane.xlu1 %3161  ;;  %v4050_v10 = vmul.f32 %v9554_v21, %v16022_v7  ;;  %8630 = vmatprep.mubr.bf16.mxu0 %v4163_v16  ;;  %v13029_v32 = vpop.eup %9555  ;;  %v16027_v16 = vld [vmem:[#allocation102_spill] sm:$0xff]  ;;  %v3327_v21 = vsub.f32 %v16029_v49, %v12800_v19  ;;  %v16033_v7 = vld [vmem:[#allocation89_spill] sm:$0xff] }
 0x5f8   : > { %16023 = vst [vmem:[#allocation147_spill] sm:$0xff] %v13029_v32  ;;  %v13035_v3 = vpop.eup %9557  ;;  %v3312_v28 = vsub.f32 %v16027_v16, %v12628_v14  ;;  %v16036_v49 = vld [vmem:[#allocation138_spill] sm:$0xff] }
 0x5f9   : > { %v13031_v26 = vpop.xlane.xlu0 %3213  ;;  %v4164_v45 = vpack.c.bf16 %v4050_v10, %v4049_v31  ;;  %16025 = vst [vmem:[#allocation149_spill] sm:$0xff] %v13035_v3  ;;  %v13043_v24 = vpop.eup %9559  ;;  %v3313_v10 = vsub.f32 %v16033_v7, %v16032_v55  ;;  %v16038_v55 = vld [vmem:[#allocation120_spill] sm:$0xff] }
 0x5fa   : > { %16024 = vst [vmem:[#allocation85_spill] sm:$0xff] %v13031_v26  ;;  %3749 = vadd.xlane.f32.xlu1 %v13029_v32  ;;  %v13052_v14 = vpop.eup %9561 }
 0x5fb   : > { %v3696_v40 = vpop.xlane.xlu1 %3695  ;;  %8631 = vmatmul.mubr.bf16.gmra.mrb[120].mxu0 %v4164_v45  ;;  %v3497_v45 = vmul.f32 1.442695, %v3312_v28  ;;  %16030 = vst [vmem:[#allocation74_spill] sm:$0xff] %v13052_v14  ;;  %v16035_v28 = vld [vmem:[#allocation164_spill] sm:$0xff] }
 0x5fc   : > { %9565 = vrcp.f32 %v3696_v40 }
 0x5fd   : > { %v13037_v0 = vpop.xlane.xlu0 %3209  ;;  %9567 = vrcp.f32 %v12890_v25  ;;  %v9564_v25 = vpop.eup %9563 }
 0x5fe   : > { %16026 = vst [vmem:[#allocation104_spill] sm:$0xff] %v13037_v0  ;;  %3773 = vadd.xlane.f32.xlu1 %v13035_v3  ;;  %9569 = vpow2.f32 %v3521_v1  ;;  %v3527_v1 = vmul.f32 1.442695, %v3327_v21  ;;  %v3499_v3 = vmul.f32 1.442695, %v3313_v10 }
 0x5ff   : > { %v3702_v31 = vpop.xlane.xlu1 %3701 }
 0x600   : > { %9571 = vrcp.f32 %v3702_v31 }
 0x601   : > { %v13045_v6 = vpop.xlane.xlu0 %3219  ;;  %9573 = vpow2.f32 %v3497_v45  ;;  %v3329_v45 = vsub.f32 %v16038_v55, %v12786_v20 }
 0x602   : > { %16028 = vst [vmem:[#allocation95_spill] sm:$0xff] %v13045_v6  ;;  %3769 = vadd.xlane.f32.xlu1 %v13043_v24  ;;  %v4052_v6 = vmul.f32 %v9564_v25, %v16036_v49  ;;  %9575 = vpow2.f32 %v3527_v1 }
 0x603   : > { %v13050_v8 = vpop.xlane.xlu1 %3171  ;;  %9577 = vpow2.f32 %v3499_v3  ;;  %v3531_v32 = vmul.f32 1.442695, %v3329_v45 }
 0x605   : > { %v13054_v46 = vpop.xlane.xlu0 %3215  ;;  %9579 = vpow2.f32 %v3531_v32  ;;  %v16050_v32 = vld [vmem:[#allocation16_spill] sm:$0xff] }
 0x606   : > { %16031 = vst [vmem:[#allocation106_spill] sm:$0xff] %v13054_v46  ;;  %3781 = vadd.xlane.f32.xlu1 %v13052_v14  ;;  %v9566_v40 = vpop.eup %9565  ;;  %v16040_v14 = vld [vmem:[#allocation136_spill] sm:$0xff] }
 0x607   : > { %v13059_v16 = vpop.xlane.xlu1 %3167  ;;  %v9568_v19 = vpop.eup %9567  ;;  %v4051_v31 = vmul.f32 %v9566_v40, %v16035_v28  ;;  %v16041_v40 = vld [vmem:[#allocation167_spill] sm:$0xff] }
 0x608   : > { %16034 = vst [vmem:[#allocation146_spill] sm:$0xff] %v13059_v16  ;;  %v13063_v26 = vpop.eup %9569  ;;  %v4053_v16 = vmul.f32 %v9568_v19, %v16040_v14 }
 0x609   : > { %16037 = vst [vmem:[#allocation76_spill] sm:$0xff] %v13063_v26  ;;  %v13065_v0 = vpop.xlane.xlu0 %3707  ;;  %v4165_v21 = vpack.c.bf16 %v4052_v6, %v4051_v31 }
 0x60a   : > { %v9572_v46 = vpop.eup %9571  ;;  %3777 = vadd.xlane.f32.xlu1 %v13063_v26  ;;  %v16061_v26 = vld [vmem:[#allocation96_spill] sm:$0xff] }
 0x60b   : > { %v13070_v7 = vpop.xlane.xlu1 %3179  ;;  %v4054_v28 = vmul.f32 %v9572_v46, %v16041_v40  ;;  %8634 = vmatprep.mubr.bf16.mxu0 %v4165_v21  ;;  %v13076_v10 = vpop.eup %9573  ;;  %v16052_v21 = vld [vmem:[#allocation44_spill] sm:$0xff] }
 0x60c   : > { %16039 = vst [vmem:[#allocation119_spill] sm:$0xff] %v13070_v7  ;;  %16043 = vst [vmem:[#allocation110_spill] sm:$0xff] %v13076_v10  ;;  %v13083_v14 = vpop.eup %9575 }
 0x60d   : > { %v3704_v25 = vpop.xlane.xlu0 %3703  ;;  %v4166_v49 = vpack.c.bf16 %v4054_v28, %v4053_v16  ;;  %16046 = vst [vmem:[#allocation153_spill] sm:$0xff] %v13083_v14  ;;  %v13090_v1 = vpop.eup %9577 }
 0x60e   : > { %16049 = vst [vmem:[#allocation78_spill] sm:$0xff] %v13090_v1 }
 0x60f   : > { %v13074_v57 = vpop.xlane.xlu1 %3175  ;;  %8635 = vmatmul.mubr.bf16.gmra.mrb[124].mxu0 %v4166_v49  ;;  %v13099_v31 = vpop.eup %9579 }
 0x610   : > { %16042 = vst [vmem:[#allocation123_spill] sm:$0xff] %v13074_v57  ;;  %16051 = vst [vmem:[#allocation132_spill] sm:$0xff] %v13099_v31  ;;  %v16057_v57 = vld [vmem:[#allocation21_spill] sm:$0xff] }
 0x611   : > { %3753 = vadd.xlane.f32.xlu0 %v13076_v10  ;;  %v13079_v20 = vpop.xlane.xlu0 %3227 }
 0x612   : > { %16044 = vst [vmem:[#allocation112_spill] sm:$0xff] %v13079_v20 }
 0x613   : > { %v13081_v6 = vpop.xlane.xlu1 %3189 }
 0x614   : > { %16045 = vst [vmem:[#allocation108_spill] sm:$0xff] %v13081_v6 }
 0x615   : > { %3783 = vadd.xlane.f32.xlu0 %v13083_v14  ;;  %v13086_v46 = vpop.xlane.xlu0 %3223 }
 0x616   : > { %16047 = vst [vmem:[#allocation114_spill] sm:$0xff] %v13086_v46 }
 0x617   : > { %v13088_v3 = vpop.xlane.xlu1 %3185 }
 0x618   : > { %16048 = vst [vmem:[#allocation151_spill] sm:$0xff] %v13088_v3 }
 0x619   : > { %3755 = vadd.xlane.f32.xlu0 %v13090_v1  ;;  %v13093_v16 = vpop.xlane.xlu0 %3715 }
 0x61b   : > { %v13095_v19 = vpop.xlane.xlu1 %3195  ;;  %4705 = vrot.lane.b32.xlu1 %v16050_v32, %s10159_s24 }
 0x61d   : > { %3787 = vadd.xlane.f32.xlu0 %v13099_v31  ;;  %v13102_v55 = vpop.xlane.xlu0 %3711  ;;  %v16058_v31 = vld [vmem:[#allocation92_spill] sm:$0xff] }
 0x61e   : > { %v3311_v14 = vsub.f32 %v16058_v31, %v16057_v57  ;;  %v16067_v57 = vld [vmem:[#allocation29_spill] sm:$0xff] }
 0x61f   : > { %v13104_v45 = vpop.xlane.xlu1 %3191  ;;  %4586 = vrot.lane.b32.xlu1 %v16052_v21, %s10159_s24 }
 0x620   : > { %v3495_v10 = vmul.f32 1.442695, %v3311_v14 }
 0x621   : > { %v13108_v40 = vpop.xlane.xlu0 %3235 }
 0x622   : > { %16053 = vst [vmem:[#allocation118_spill] sm:$0xff] %v13108_v40  ;;  %v16060_v40 = vld [vmem:[#allocation175_spill] sm:$0xff]  ;;  %9581 = vpow2.f32 %v3495_v10  ;;  %v16071_v10 = vld [vmem:[#allocation113_spill] sm:$0xff] }
 0x623   : > { %v13110_v28 = vpop.xlane.xlu1 %3203  ;;  %v3314_v7 = vsub.f32 %v16061_v26, %v16060_v40 }
 0x625   : > { %v13112_v49 = vpop.xlane.xlu0 %3231 }
 0x626   : > { %16054 = vst [vmem:[#allocation80_spill] sm:$0xff] %v13112_v49  ;;  %v16063_v49 = vld [vmem:[#allocation39_spill] sm:$0xff] }
 0x627   : > { %v13114_v20 = vpop.xlane.xlu1 %3199 }
 0x629   : > { %v13116_v32 = vpop.xlane.xlu0 %3723 }
 0x62b   : > { %v13118_v46 = vpop.xlane.xlu1 %3211 }
 0x62c   : > { %16055 = vst [vmem:[#allocation116_spill] sm:$0xff] %v13118_v46  ;;  %v16064_v46 = vld [vmem:[#allocation137_spill] sm:$0xff] }
 0x62d   : > { %v13120_v6 = vpop.xlane.xlu0 %3719  ;;  %v3328_v27 = vsub.f32 %v16064_v46, %v12897_v4 }
 0x62f   : > { %v13122_v3 = vpop.xlane.xlu1 %3207  ;;  %v3529_v31 = vmul.f32 1.442695, %v3328_v27  ;;  %v13151_v27 = vpop.eup %9581 }
 0x630   : > { %16056 = vst [vmem:[#allocation134_spill] sm:$0xff] %v13122_v3  ;;  %v3501_v3 = vmul.f32 1.442695, %v3314_v7  ;;  %16070 = vst [vmem:[#allocation159_spill] sm:$0xff] %v13151_v27 }
 0x631   : > { %v13126_v21 = vpop.xlane.xlu0 %3243 }
 0x632   : > { %16059 = vst [vmem:[#allocation69_spill] sm:$0xff] %v13126_v21  ;;  %9583 = vpow2.f32 %v3501_v3  ;;  %v3316_v3 = vsub.f32 %v16071_v10, %v12729_v11 }
 0x633   : > { %v13130_v1 = vpop.xlane.xlu1 %3221  ;;  %4588 = vrot.lane.b32.xlu0 %v16063_v49, %s10159_s24  ;;  %v16068_v49 = vld [vmem:[#allocation90_spill] sm:$0xff]  ;;  %9585 = vpow2.f32 %v3529_v31 }
 0x634   : > { %16062 = vst [vmem:[#allocation158_spill] sm:$0xff] %v13130_v1  ;;  %v3330_v14 = vsub.f32 %v16068_v49, %v12883_v18  ;;  %v16073_v18 = vld [vmem:[#allocation64_spill] sm:$0xff] }
 0x635   : > { %v13136_v22 = vpop.xlane.xlu0 %3239 }
 0x636   : > { %16065 = vst [vmem:[#allocation66_spill] sm:$0xff] %v13136_v22  ;;  %v3533_v46 = vmul.f32 1.442695, %v3330_v14  ;;  %v3505_v14 = vmul.f32 1.442695, %v3316_v3  ;;  %v16079_v3 = vld [vmem:[#allocation31_spill] sm:$0xff] }
 0x637   : > { %v13138_v17 = vpop.xlane.xlu1 %3217  ;;  %4711 = vrot.lane.b32.xlu0 %v16067_v57, %s10159_s24 }
 0x638   : > { %16066 = vst [vmem:[#allocation161_spill] sm:$0xff] %v13138_v17  ;;  %v16080_v17 = vld [vmem:[#allocation173_spill] sm:$0xff] }
 0x639   : > { %v13142_v26 = vpop.xlane.xlu0 %3731 }
 0x63b   : > { %v3710_v40 = vpop.xlane.xlu1 %3709 }
 0x63c   : > { %9587 = vrcp.f32 %v3710_v40  ;;  %v13160_v31 = vpop.eup %9583 }
 0x63d   : > { %v13146_v4 = vpop.xlane.xlu0 %3727  ;;  %9589 = vrcp.f32 %v3704_v25  ;;  %v3331_v25 = vsub.f32 %v16073_v18, %v12949_v15  ;;  %v13164_v40 = vpop.eup %9585  ;;  %v16078_v18 = vld [vmem:[#allocation105_spill] sm:$0xff] }
 0x63e   : > { %9591 = vrcp.f32 %v13065_v0  ;;  %16075 = vst [vmem:[#allocation128_spill] sm:$0xff] %v13164_v40 }
 0x63f   : > { %v3706_v7 = vpop.xlane.xlu1 %3705  ;;  %v3535_v10 = vmul.f32 1.442695, %v3331_v25 }
 0x640   : > { %9593 = vrcp.f32 %v3706_v7 }
 0x641   : > { %v13149_v57 = vpop.xlane.xlu0 %3251  ;;  %9595 = vpow2.f32 %v3533_v46 }
 0x642   : > { %16069 = vst [vmem:[#allocation71_spill] sm:$0xff] %v13149_v57  ;;  %9597 = vpow2.f32 %v3505_v14 }
 0x643   : > { %v13155_v21 = vpop.xlane.xlu1 %3229  ;;  %3751 = vadd.xlane.f32.xlu1 %v13151_v27  ;;  %9599 = vpow2.f32 %v3535_v10 }
 0x644   : > { %16072 = vst [vmem:[#allocation83_spill] sm:$0xff] %v13155_v21  ;;  %v3317_v21 = vsub.f32 %v16078_v18, %v12659_v36 }
 0x645   : > { %v13162_v0 = vpop.xlane.xlu0 %3247 }
 0x646   : > { %16074 = vst [vmem:[#allocation139_spill] sm:$0xff] %v13162_v0  ;;  %v9588_v49 = vpop.eup %9587 }
 0x647   : > { %v13166_v7 = vpop.xlane.xlu1 %3225  ;;  %3785 = vadd.xlane.f32.xlu1 %v13164_v40  ;;  %v9590_v11 = vpop.eup %9589  ;;  %v4058_v15 = vmul.f32 %v9588_v49, %v12772_v59  ;;  %v3507_v59 = vmul.f32 1.442695, %v3317_v21  ;;  %v16081_v49 = vld [vmem:[#allocation62_spill] sm:$0xff] }
 0x648   : > { %16076 = vst [vmem:[#allocation156_spill] sm:$0xff] %v13166_v7  ;;  %v9592_v57 = vpop.eup %9591  ;;  %v4055_v1 = vmul.f32 %v9590_v11, %v16079_v3  ;;  %v3333_v14 = vsub.f32 %v16081_v49, %v12935_v48 }
 0x649   : > { %v13169_v22 = vpop.xlane.xlu0 %3739  ;;  %v4057_v25 = vmul.f32 %v9592_v57, %v16080_v17  ;;  %v16082_v17 = vld [vmem:[#allocation60_spill] sm:$0xff] }
 0x64a   : > { %16077 = vst [vmem:[#allocation82_spill] sm:$0xff] %v13169_v22  ;;  %v9594_v46 = vpop.eup %9593 }
 0x64b   : > { %v3718_v0 = vpop.xlane.xlu1 %3717  ;;  %3757 = vadd.xlane.f32.xlu1 %v13160_v31  ;;  %v4056_v7 = vmul.f32 %v9594_v46, %v12796_v13  ;;  %v13180_v22 = vpop.eup %9595  ;;  %v4168_v36 = vpack.c.bf16 %v4058_v15, %v4057_v25 }
 0x64c   : > { %9601 = vrcp.f32 %v3718_v0  ;;  %v13193_v57 = vpop.eup %9597 }
 0x64d   : > { %v13178_v40 = vpop.xlane.xlu0 %3737  ;;  %v4167_v27 = vpack.c.bf16 %v4056_v7, %v4055_v1  ;;  %9603 = vrcp.f32 %v13102_v55  ;;  %v16083_v1 = vld [vmem:[#allocation58_spill] sm:$0xff]  ;;  %v3539_v55 = vmul.f32 1.442695, %v3333_v14 }
 0x64e   : > { %9605 = vrcp.f32 %v13093_v16  ;;  %v13198_v16 = vpop.eup %9599 }
 0x64f   : > { %v3714_v11 = vpop.xlane.xlu1 %3713  ;;  %3789 = vadd.xlane.f32.xlu1 %v13180_v22  ;;  %8654 = vmatprep.mubr.bf16.mxu1 %v4167_v27  ;;  %v16084_v27 = vld [vmem:[#allocation61_spill] sm:$0xff] }
 0x650   : > { %9607 = vrcp.f32 %v3714_v11  ;;  %8655 = vmatmul.mubr.bf16.vlgmr.msra.gmra.mrb[64].mxu1 %v4168_v36 }
 0x651   : > { %8703 = vmatpush3.bf16.msra.mxu1 %v16082_v17  ;;  %v13188_v13 = vpop.xlane.xlu0 %3745  ;;  %9609 = vpow2.f32 %v3507_v59 }
 0x652   : > { %8704 = vmatprep.subr.bf16.mxu1 %v16083_v1  ;;  %9611 = vpow2.f32 %v3539_v55 }
 0x653   : > { %v13191_v21 = vpop.xlane.xlu1 %3237 }
 0x655   : > { %8705 = vmatpush3.bf16.msra.mxu1 %v16083_v1  ;;  %v13196_v48 = vpop.xlane.xlu0 %3747 }
 0x656   : > { %8706 = vmatprep.subr.bf16.mxu1 %v16084_v27  ;;  %3761 = vadd.xlane.f32.xlu0 %v13193_v57  ;;  %v9602_v0 = vpop.eup %9601 }
 0x657   : > { %v13202_v7 = vpop.xlane.xlu1 %3233  ;;  %v9604_v10 = vpop.eup %9603  ;;  %v4062_v3 = vmul.f32 %v9602_v0, %v12834_v38 }
 0x658   : > { %v9606_v46 = vpop.eup %9605  ;;  %v4059_v36 = vmul.f32 %v9604_v10, %v12657_v53  ;;  %v16090_v10 = vld [vmem:[#allocation56_spill] sm:$0xff] }
 0x659   : > { %8707 = vmatpush3.bf16.msra.mxu1 %v16084_v27  ;;  %v13205_v15 = vpop.xlane.xlu0 %3771  ;;  %v4061_v49 = vmul.f32 %v9606_v46, %v12643_v33  ;;  %v16087_v33 = vld [vmem:[#allocation14_spill] sm:$0xff] }
 0x65a   : > { %v9608_v18 = vpop.eup %9607  ;;  %3791 = vadd.xlane.f32.xlu0 %v13198_v16 }
 0x65b   : > { %v3726_v25 = vpop.xlane.xlu1 %3725  ;;  %v4060_v59 = vmul.f32 %v9608_v18, %v12860_v39  ;;  %v13212_v14 = vpop.eup %9609  ;;  %v4170_v1 = vpack.c.bf16 %v4062_v3, %v4061_v49 }
 0x65c   : > { %9613 = vrcp.f32 %v3726_v25  ;;  %v13225_v39 = vpop.eup %9611 }
 0x65d   : > { %v13214_v11 = vpop.xlane.xlu0 %3767  ;;  %v4169_v17 = vpack.c.bf16 %v4060_v59, %v4059_v36  ;;  %9615 = vrcp.f32 %v13120_v6 }
 0x65e   : > { %3763 = vadd.xlane.f32.xlu0 %v13212_v14  ;;  %9617 = vrcp.f32 %v13116_v32 }
 0x65f   : > { %v3722_v38 = vpop.xlane.xlu1 %3721  ;;  %v13219_v55 = vpop.f32.mrb[96].mxu0  ;;  %8658 = vmatprep.mubr.bf16.mxu1 %v4169_v17 }
 0x660   : > { %16085 = vst [vmem:[#allocation125_spill] sm:$0xff] %v13219_v55  ;;  %9619 = vrcp.f32 %v3722_v38  ;;  %v13221_v53 = vpop.f32.mrb[97].mxu0  ;;  %4709 = vrot.lane.b32.xlu1 %v16087_v33, %s10159_s24  ;;  %8659 = vmatmul.mubr.bf16.gmra.mrb[68].mxu1 %v4170_v1 }
 0x661   : > { %16086 = vst [vmem:[#allocation141_spill] sm:$0xff] %v13221_v53  ;;  %v13227_v27 = vpop.f32.mrb[98].mxu0  ;;  %v13229_v6 = vpop.xlane.xlu0 %3779 }
 0x662   : > { %16088 = vst [vmem:[#allocation67_spill] sm:$0xff] %v13227_v27  ;;  %v13231_v0 = vpop.f32.mrb[99].mxu0  ;;  %3795 = vadd.xlane.f32.xlu0 %v13225_v39 }
 0x663   : > { %16089 = vst [vmem:[#allocation12_spill] sm:$0xff] %v13231_v0  ;;  %v13234_v32 = vpop.xlane.xlu1 %3245 }
 0x664   : > { %4590 = vrot.lane.b32.xlu1 %v16090_v10, %s10159_s24 }
 0x665   : > { %v13238_v46 = vpop.xlane.xlu0 %3775 }
 0x666   : > { %v9614_v18 = vpop.eup %9613 }
 0x667   : > { %v13240_v3 = vpop.xlane.xlu1 %3241  ;;  %v9616_v25 = vpop.eup %9615  ;;  %v4066_v17 = vmul.f32 %v9614_v18, %v12902_v12  ;;  %v16095_v18 = vld [vmem:[#allocation107_spill] sm:$0xff] }
 0x668   : > { %v9618_v36 = vpop.eup %9617  ;;  %v4063_v38 = vmul.f32 %v9616_v25, %v12724_v2 }
 0x669   : > { %v4585_v59 = vpop.permute.xlu0 %4584  ;;  %v4065_v10 = vmul.f32 %v9618_v36, %v12713_v43 }
 0x66a   : > { %v9620_v49 = vpop.eup %9619  ;;  %8676 = vmatprep.subr.bf16.mxu0 %v4585_v59 }
 0x66b   : > { %v3734_v1 = vpop.xlane.xlu1 %3733  ;;  %8677 = vmatpush3.bf16.msra.mxu0 %v4585_v59  ;;  %v4064_v33 = vmul.f32 %v9620_v49, %v12915_v47  ;;  %v4172_v0 = vpack.c.bf16 %v4066_v17, %v4065_v10  ;;  %v16097_v59 = vld [vmem:[#allocation98_spill] sm:$0xff]  ;;  %v16098_v10 = vld [vmem:[#allocation13_spill] sm:$0xff] }
 0x66c   : > { %9621 = vrcp.f32 %v3734_v1  ;;  %v3332_v49 = vsub.f32 %v16097_v59, %v12972_v44 }
 0x66d   : > { %v4171_v53 = vpack.c.bf16 %v4064_v33, %v4063_v38  ;;  %9623 = vrcp.f32 %v13146_v4  ;;  %v3315_v4 = vsub.f32 %v16095_v18, %v12675_v9 }
 0x66e   : > { %9625 = vrcp.f32 %v13142_v26  ;;  %v3537_v44 = vmul.f32 1.442695, %v3332_v49  ;;  %v16101_v49 = vld [vmem:[#allocation162_spill] sm:$0xff] }
 0x66f   : > { %v3730_v55 = vpop.xlane.xlu1 %3729  ;;  %8662 = vmatprep.mubr.bf16.mxu1 %v4171_v53  ;;  %v13248_v27 = vpop.f32.mrb[100].mxu0  ;;  %v3503_v53 = vmul.f32 1.442695, %v3315_v4  ;;  %v16099_v4 = vld [vmem:[#allocation109_spill] sm:$0xff] }
 0x670   : > { %9627 = vrcp.f32 %v3730_v55  ;;  %16091 = vst [vmem:[#allocation163_spill] sm:$0xff] %v13248_v27  ;;  %8663 = vmatmul.mubr.bf16.gmra.mrb[72].mxu1 %v4172_v0  ;;  %v13250_v12 = vpop.f32.mrb[101].mxu0  ;;  %v16096_v55 = vld [vmem:[#allocation51_spill] sm:$0xff] }
 0x671   : > { %16092 = vst [vmem:[#allocation86_spill] sm:$0xff] %v13250_v12  ;;  %v13252_v2 = vpop.f32.mrb[102].mxu0  ;;  %9629 = vrcp.f32 %v13178_v40 }
 0x672   : > { %16093 = vst [vmem:[#allocation166_spill] sm:$0xff] %v13252_v2  ;;  %v13254_v47 = vpop.f32.mrb[103].mxu0  ;;  %9631 = vpow2.f32 %v3503_v53 }
 0x673   : > { %16094 = vst [vmem:[#allocation117_spill] sm:$0xff] %v13254_v47  ;;  %v13256_v43 = vpop.xlane.xlu1 %3253 }
 0x676   : > { %v9622_v25 = vpop.eup %9621 }
 0x677   : > { %v13260_v36 = vpop.xlane.xlu1 %3249  ;;  %v9624_v26 = vpop.eup %9623  ;;  %v4070_v1 = vmul.f32 %v9622_v25, %v12954_v62 }
 0x678   : > { %4592 = vrot.lane.b32.xlu0 %v16096_v55, %s10159_s24  ;;  %v9626_v0 = vpop.eup %9625  ;;  %v4067_v9 = vmul.f32 %v9624_v26, %v12782_v60  ;;  %v3318_v55 = vsub.f32 %v16099_v4, %v12693_v63 }
 0x679   : > { %v4069_v18 = vmul.f32 %v9626_v0, %v12778_v35 }
 0x67a   : > { %v9628_v17 = vpop.eup %9627  ;;  %v3509_v60 = vmul.f32 1.442695, %v3318_v55 }
 0x67b   : > { %v3736_v38 = vpop.xlane.xlu1 %3735  ;;  %v4068_v33 = vmul.f32 %v9628_v17, %v12965_v58  ;;  %v4174_v62 = vpack.c.bf16 %v4070_v1, %v4069_v18  ;;  %v16100_v58 = vld [vmem:[#allocation97_spill] sm:$0xff]  ;;  %v9630_v53 = vpop.eup %9629  ;;  %v3336_v17 = vsub.f32 %v16101_v49, %v13025_v54 }
 0x67c   : > { %4941 = vrot.lane.b32.xlu0 %v16098_v10, %s10159_s24  ;;  %9633 = vrcp.f32 %v3736_v38  ;;  %v3334_v40 = vsub.f32 %v16100_v58, %v12961_v50  ;;  %v13281_v0 = vpop.eup %9631  ;;  %v4072_v50 = vmul.f32 %v9630_v53, %v12841_v29  ;;  %v3353_v53 = vsub.f32 %v12647_v52, %v13095_v19 }
 0x67d   : > { %v4173_v59 = vpack.c.bf16 %v4068_v33, %v4067_v9  ;;  %9635 = vpow2.f32 %v3537_v44  ;;  %v3545_v4 = vmul.f32 1.442695, %v3336_v17  ;;  %v3351_v44 = vsub.f32 %v12663_v42, %v13104_v45 }
 0x67e   : > { %9637 = vpow2.f32 %v3509_v60  ;;  %v3541_v35 = vmul.f32 1.442695, %v3334_v40 }
 0x67f   : > { %v13275_v25 = vpop.xlane.xlu1 %3741  ;;  %8666 = vmatprep.mubr.bf16.mxu1 %v4173_v59  ;;  %v3575_v58 = vmul.f32 1.442695, %v3351_v44 }
 0x680   : > { %8667 = vmatmul.mubr.bf16.gmra.mrb[76].mxu1 %v4174_v62  ;;  %9639 = vpow2.f32 %v3541_v35  ;;  %v16106_v62 = vld [vmem:[#allocation63_spill] sm:$0xff] }
 0x681   : > { %9641 = vrcp.f32 %v13214_v11  ;;  %v3337_v60 = vsub.f32 %v16106_v62, %v13003_v23  ;;  %v3579_v23 = vmul.f32 1.442695, %v3353_v53 }
 0x682   : > { %9643 = vpow2.f32 %v3545_v4 }
 0x683   : > { %v13279_v26 = vpop.xlane.xlu1 %3743  ;;  %v3547_v45 = vmul.f32 1.442695, %v3337_v60 }
 0x686   : > { %v9634_v63 = vpop.eup %9633 }
 0x687   : > { %v13285_v1 = vpop.xlane.xlu1 %3749  ;;  %v4071_v38 = vmul.f32 %v9634_v63, %v12994_v30  ;;  %v13290_v9 = vpop.f32.mrb[104].mxu0 }
 0x688   : > { %3759 = vadd.xlane.f32.xlu1 %v13281_v0  ;;  %16102 = vst [vmem:[#allocation37_spill] sm:$0xff] %v13290_v9  ;;  %v13292_v33 = vpop.f32.mrb[105].mxu0  ;;  %v13294_v18 = vpop.eup %9635 }
 0x689   : > { %16103 = vst [vmem:[#allocation121_spill] sm:$0xff] %v13292_v33  ;;  %v4175_v10 = vpack.c.bf16 %v4072_v50, %v4071_v38  ;;  %v13296_v55 = vpop.f32.mrb[106].mxu0  ;;  %v13306_v29 = vpop.eup %9637 }
 0x68a   : > { %16104 = vst [vmem:[#allocation127_spill] sm:$0xff] %v13296_v55  ;;  %v13302_v59 = vpop.f32.mrb[107].mxu0  ;;  %v13311_v40 = vpop.eup %9639 }
 0x68b   : > { %v13298_v54 = vpop.xlane.xlu1 %3773  ;;  %16105 = vst [vmem:[#allocation19_spill] sm:$0xff] %v13302_v59  ;;  %8686 = vmatprep.mubr.bf16.mxu0 %v4175_v10  ;;  %v9642_v35 = vpop.eup %9641 }
 0x68c   : > { %3793 = vadd.xlane.f32.xlu1 %v13294_v18  ;;  %v13322_v49 = vpop.eup %9643  ;;  %v4708_v50 = vpop.permute.xlu0 %4707  ;;  %v4087_v19 = vmul.f32 %v9642_v35, %v12907_v51 }
 0x68f   : > { %v3770_v30 = vpop.xlane.xlu1 %3769 }
 0x690   : > { %9645 = vrcp.f32 %v3770_v30  ;;  %3765 = vadd.xlane.f32.xlu1 %v13306_v29 }
 0x691   : > { %9647 = vpow2.f32 %v3575_v58 }
 0x692   : > { %9649 = vpow2.f32 %v3547_v45 }
 0x693   : > { %v13313_v42 = vpop.xlane.xlu1 %3781  ;;  %9651 = vpow2.f32 %v3579_v23 }
 0x694   : > { %3797 = vadd.xlane.f32.xlu1 %v13311_v40 }
 0x697   : > { %v13318_v11 = vpop.xlane.xlu1 %3777  ;;  %v13320_v63 = vpop.f32.mrb[108].mxu0 }
 0x698   : > { %16107 = vst [vmem:[#allocation150_spill] sm:$0xff] %v13320_v63  ;;  %v13324_v17 = vpop.f32.mrb[109].mxu0 }
 0x699   : > { %16108 = vst [vmem:[#allocation133_spill] sm:$0xff] %v13324_v17  ;;  %v13326_v10 = vpop.f32.mrb[110].mxu0 }
 0x69a   : > { %v9646_v38 = vpop.eup %9645  ;;  %16109 = vst [vmem:[#allocation129_spill] sm:$0xff] %v13326_v10  ;;  %v13328_v4 = vpop.f32.mrb[111].mxu0 }
 0x69b   : > { %16110 = vst [vmem:[#allocation130_spill] sm:$0xff] %v13328_v4  ;;  %v4706_v52 = vpop.permute.xlu1 %4705  ;;  %3801 = vadd.xlane.f32.xlu0 %v13322_v49  ;;  %v4088_v44 = vmul.f32 %v9646_v38, %v13043_v24  ;;  %v13333_v62 = vpop.eup %9647  ;;  %v16111_v24 = vld [vmem:[#allocation25_spill] sm:$0xff] }
 0x69c   : > { %8708 = vmatprep.subr.bf16.mxu1 %v4706_v52  ;;  %v13338_v45 = vpop.eup %9649 }
 0x69d   : > { %8709 = vmatpush3.bf16.msra.mxu1 %v4706_v52  ;;  %v4183_v30 = vpack.c.bf16 %v4088_v44, %v4087_v19  ;;  %v13345_v53 = vpop.eup %9651  ;;  %v16115_v52 = vld [vmem:[#allocation32_spill] sm:$0xff] }
 0x69e   : > { %8710 = vmatprep.subr.bf16.mxu1 %v4708_v50  ;;  %v13335_v60 = vpop.xlane.xlu0 %3753 }
 0x69f   : > { %v4587_v58 = vpop.permute.xlu1 %4586  ;;  %3831 = vadd.xlane.f32.xlu0 %v13333_v62  ;;  %8718 = vmatprep.mubr.bf16.mxu1 %v4183_v30 }
 0x6a0   : > { %8678 = vmatprep.subr.bf16.mxu0 %v4587_v58 }
 0x6a1   : > { %8679 = vmatpush3.bf16.msra.mxu0 %v4587_v58  ;;  %8711 = vmatpush3.bf16.msra.mxu1 %v4708_v50 }
 0x6a2   : > { %v13340_v51 = vpop.xlane.xlu0 %3783 }
 0x6a3   : > { %3803 = vadd.xlane.f32.xlu0 %v13338_v45 }
 0x6a5   : > { %4713 = vrot.lane.b32.xlu1 %v16111_v24, %s10159_s24 }
 0x6a6   : > { %v13347_v35 = vpop.f32.mrb[112].mxu0  ;;  %v13349_v23 = vpop.xlane.xlu0 %3755 }
 0x6a7   : > { %16112 = vst [vmem:[#allocation72_spill] sm:$0xff] %v13347_v35  ;;  %v13351_v38 = vpop.f32.mrb[113].mxu0  ;;  %3835 = vadd.xlane.f32.xlu0 %v13345_v53 }
 0x6a8   : > { %16113 = vst [vmem:[#allocation102_spill] sm:$0xff] %v13351_v38  ;;  %v13354_v50 = vpop.f32.mrb[114].mxu0 }
 0x6a9   : > { %16114 = vst [vmem:[#allocation122_spill] sm:$0xff] %v13354_v50  ;;  %4820 = vrot.lane.b32.xlu1 %v16115_v52, %s10159_s24  ;;  %v13358_v19 = vpop.f32.mrb[115].mxu0  ;;  %v16121_v50 = vld [vmem:[#allocation157_spill] sm:$0xff]  ;;  %v16122_v52 = vld [vmem:[#allocation27_spill] sm:$0xff] }
 0x6aa   : > { %16116 = vst [vmem:[#allocation170_spill] sm:$0xff] %v13358_v19  ;;  %v13360_v44 = vpop.xlane.xlu0 %3787  ;;  %v3335_v17 = vsub.f32 %v16121_v50, %v13014_v56  ;;  %v16123_v19 = vld [vmem:[#allocation154_spill] sm:$0xff] }
 0x6ab   : > { %v3352_v4 = vsub.f32 %v16123_v19, %v12996_v61  ;;  %v16127_v61 = vld [vmem:[#allocation142_spill] sm:$0xff] }
 0x6ac   : > { %v3543_v63 = vmul.f32 1.442695, %v3335_v17  ;;  %v3340_v17 = vsub.f32 %v16127_v61, %v12930_v37 }
 0x6ad   : > { %v3577_v10 = vmul.f32 1.442695, %v3352_v4 }
 0x6ae   : > { %v4589_v30 = vpop.permute.xlu0 %4588  ;;  %9653 = vpow2.f32 %v3543_v63 }
 0x6af   : > { %8680 = vmatprep.subr.bf16.mxu0 %v4589_v30  ;;  %9655 = vpow2.f32 %v3577_v10 }
 0x6b0   : > { %8681 = vmatpush3.bf16.msra.mxu0 %v4589_v30  ;;  %v16124_v30 = vld [vmem:[#allocation22_spill] sm:$0xff] }
 0x6b6   : > { %v13362_v58 = vpop.f32.mrb[116].mxu0 }
 0x6b7   : > { %16117 = vst [vmem:[#allocation89_spill] sm:$0xff] %v13362_v58  ;;  %v13364_v24 = vpop.f32.mrb[117].mxu0  ;;  %v16125_v58 = vld [vmem:[#allocation135_spill] sm:$0xff] }
 0x6b8   : > { %16118 = vst [vmem:[#allocation164_spill] sm:$0xff] %v13364_v24  ;;  %v13366_v35 = vpop.f32.mrb[118].mxu0  ;;  %v3338_v24 = vsub.f32 %v16125_v58, %v12878_v34  ;;  %v13382_v50 = vpop.eup %9653 }
 0x6b9   : > { %16119 = vst [vmem:[#allocation138_spill] sm:$0xff] %v13366_v35  ;;  %v13368_v38 = vpop.f32.mrb[119].mxu0  ;;  %v13391_v63 = vpop.eup %9655 }
 0x6ba   : > { %16120 = vst [vmem:[#allocation120_spill] sm:$0xff] %v13368_v38  ;;  %v3549_v35 = vmul.f32 1.442695, %v3338_v24  ;;  %v16126_v38 = vld [vmem:[#allocation152_spill] sm:$0xff] }
 0x6bb   : > { %v3354_v33 = vsub.f32 %v16126_v38, %v12988_v5  ;;  %v3553_v5 = vmul.f32 1.442695, %v3340_v17  ;;  %v16132_v38 = vld [vmem:[#allocation169_spill] sm:$0xff] }
 0x6bc   : > { %9657 = vpow2.f32 %v3549_v35  ;;  %v3341_v24 = vsub.f32 %v16132_v38, %v13050_v8  ;;  %v4712_v8 = vpop.permute.xlu0 %4711 }
 0x6bd   : > { %4822 = vrot.lane.b32.xlu0 %v16122_v52, %s10159_s24  ;;  %v3581_v56 = vmul.f32 1.442695, %v3354_v33  ;;  %v3355_v33 = vsub.f32 %v12698_v41, %v13114_v20  ;;  %v16133_v41 = vld [vmem:[#allocation93_spill] sm:$0xff] }
 0x6be   : > { %v3555_v61 = vmul.f32 1.442695, %v3341_v24  ;;  %v3357_v20 = vsub.f32 %v16133_v41, %v13110_v28 }
 0x6bf   : > { %9659 = vpow2.f32 %v3581_v56  ;;  %v3583_v52 = vmul.f32 1.442695, %v3355_v33 }
 0x6c0   : > { %9661 = vpow2.f32 %v3553_v5  ;;  %v3587_v5 = vmul.f32 1.442695, %v3357_v20 }
 0x6c1   : > { %4945 = vrot.lane.b32.xlu0 %v16124_v30, %s10159_s24  ;;  %9663 = vpow2.f32 %v3583_v52 }
 0x6c2   : > { %9665 = vpow2.f32 %v3555_v61 }
 0x6c3   : > { %9667 = vpow2.f32 %v3587_v5 }
 0x6c4   : > { %9669 = vrcp.f32 %v13275_v25 }
 0x6c5   : > { %9671 = vrcp.f32 %v13279_v26  ;;  %v16140_v26 = vld [vmem:[#allocation43_spill] sm:$0xff] }
 0x6c6   : > { %v13400_v37 = vpop.eup %9657 }
 0x6c9   : > { %v13407_v30 = vpop.eup %9659 }
 0x6cd   : > { %3799 = vadd.xlane.f32.xlu1 %v13382_v50 }
 0x6ce   : > { %v13387_v19 = vpop.f32.mrb[120].mxu0 }
 0x6cf   : > { %16128 = vst [vmem:[#allocation136_spill] sm:$0xff] %v13387_v19  ;;  %v13389_v34 = vpop.f32.mrb[121].mxu0 }
 0x6d0   : > { %16129 = vst [vmem:[#allocation167_spill] sm:$0xff] %v13389_v34  ;;  %v3752_v4 = vpop.xlane.xlu1 %3751  ;;  %v13393_v58 = vpop.f32.mrb[122].mxu0 }
 0x6d1   : > { %16130 = vst [vmem:[#allocation16_spill] sm:$0xff] %v13393_v58  ;;  %v13397_v10 = vpop.f32.mrb[123].mxu0  ;;  %3833 = vadd.xlane.f32.xlu1 %v13391_v63  ;;  %v13414_v34 = vpop.eup %9661  ;;  %v16142_v58 = vld [vmem:[#allocation103_spill] sm:$0xff] }
 0x6d2   : > { %16131 = vst [vmem:[#allocation44_spill] sm:$0xff] %v13397_v10  ;;  %v13419_v24 = vpop.eup %9663 }
 0x6d3   : > { %v13432_v5 = vpop.eup %9665 }
 0x6d4   : > { %v13402_v35 = vpop.xlane.xlu1 %3785  ;;  %v13441_v25 = vpop.eup %9667 }
 0x6d5   : > { %3805 = vadd.xlane.f32.xlu1 %v13400_v37 }
 0x6d8   : > { %v3758_v56 = vpop.xlane.xlu1 %3757 }
 0x6d9   : > { %3837 = vadd.xlane.f32.xlu1 %v13407_v30 }
 0x6dc   : > { %v13412_v17 = vpop.xlane.xlu1 %3789 }
 0x6e0   : > { %v4710_v33 = vpop.permute.xlu1 %4709  ;;  %3809 = vadd.xlane.f32.xlu0 %v13414_v34 }
 0x6e1   : > { %8712 = vmatprep.subr.bf16.mxu1 %v4710_v33 }
 0x6e2   : > { %v13417_v38 = vpop.f32.mrb[124].mxu0  ;;  %8713 = vmatpush3.bf16.msra.mxu1 %v4710_v33  ;;  %v16138_v33 = vld [vmem:[#allocation82_spill] sm:$0xff] }
 0x6e3   : > { %16134 = vst [vmem:[#allocation21_spill] sm:$0xff] %v13417_v38  ;;  %v13421_v28 = vpop.f32.mrb[125].mxu0  ;;  %8714 = vmatprep.subr.bf16.mxu1 %v4712_v8  ;;  %v13423_v52 = vpop.xlane.xlu0 %3761  ;;  %9673 = vrcp.f32 %v16138_v33  ;;  %v16139_v38 = vld [vmem:[#allocation10_spill] sm:$0xff] }
 0x6e4   : > { %16135 = vst [vmem:[#allocation92_spill] sm:$0xff] %v13421_v28  ;;  %v4591_v61 = vpop.permute.xlu1 %4590  ;;  %v13425_v41 = vpop.f32.mrb[126].mxu0  ;;  %3839 = vadd.xlane.f32.xlu0 %v13419_v24  ;;  %9675 = vrcp.f32 %v13188_v13 }
 0x6e5   : > { %16136 = vst [vmem:[#allocation175_spill] sm:$0xff] %v13425_v41  ;;  %v13429_v20 = vpop.f32.mrb[127].mxu0  ;;  %8682 = vmatprep.subr.bf16.mxu0 %v4591_v61  ;;  %9677 = vrcp.f32 %v13285_v1  ;;  %v16141_v41 = vld [vmem:[#allocation111_spill] sm:$0xff] }
 0x6e6   : > { %16137 = vst [vmem:[#allocation96_spill] sm:$0xff] %v13429_v20  ;;  %8683 = vmatpush3.bf16.msra.mxu0 %v4591_v61  ;;  %8715 = vmatpush3.bf16.msra.mxu1 %v4712_v8  ;;  %9679 = vrcp.f32 %v3752_v4  ;;  %v9670_v8 = vpop.eup %9669  ;;  %v16143_v1 = vld [vmem:[#allocation99_spill] sm:$0xff] }
 0x6e7   : > { %v13435_v28 = vpop.xlane.xlu0 %3791  ;;  %9681 = vrcp.f32 %v13196_v48  ;;  %v9672_v61 = vpop.eup %9671  ;;  %v4074_v10 = vmul.f32 %v9670_v8, %v16141_v41  ;;  %v16145_v8 = vld [vmem:[#allocation147_spill] sm:$0xff] }
 0x6e8   : > { %3811 = vadd.xlane.f32.xlu0 %v13432_v5  ;;  %9683 = vrcp.f32 %v13335_v60  ;;  %v4075_v59 = vmul.f32 %v9672_v61, %v16142_v58  ;;  %v16146_v58 = vld [vmem:[#allocation159_spill] sm:$0xff] }
 0x6e9   : > { %9685 = vrcp.f32 %v3758_v56  ;;  %v16148_v56 = vld [vmem:[#allocation110_spill] sm:$0xff] }
 0x6ea   : > { %4943 = vrot.lane.b32.xlu1 %v16139_v38, %s10159_s24  ;;  %9687 = vrcp.f32 %v13349_v23 }
 0x6eb   : > { %v13443_v20 = vpop.xlane.xlu0 %3763 }
 0x6ec   : > { %3843 = vadd.xlane.f32.xlu0 %v13441_v25 }
 0x6ed   : > { %v9674_v38 = vpop.eup %9673 }
 0x6ee   : > { %4824 = vrot.lane.b32.xlu1 %v16140_v26, %s10159_s24  ;;  %v9676_v33 = vpop.eup %9675  ;;  %v4073_v4 = vmul.f32 %v9674_v38, %v16143_v1  ;;  %v16144_v26 = vld [vmem:[#allocation79_spill] sm:$0xff]  ;;  %v16147_v38 = vld [vmem:[#allocation50_spill] sm:$0xff] }
 0x6ef   : > { %v13450_v13 = vpop.xlane.xlu0 %3795  ;;  %v4076_v9 = vmul.f32 %v9676_v33, %v16144_v26  ;;  %v9678_v55 = vpop.eup %9677 }
 0x6f0   : > { %v4176_v48 = vpack.c.bf16 %v4074_v10, %v4073_v4  ;;  %v9680_v60 = vpop.eup %9679  ;;  %v4078_v27 = vmul.f32 %v9678_v55, %v16145_v8  ;;  %v16149_v10 = vld [vmem:[#allocation146_spill] sm:$0xff]  ;;  %v16150_v4 = vld [vmem:[#allocation172_spill] sm:$0xff] }
 0x6f1   : > { %v4177_v12 = vpack.c.bf16 %v4076_v9, %v4075_v59  ;;  %v9682_v47 = vpop.eup %9681  ;;  %v4079_v61 = vmul.f32 %v9680_v60, %v16146_v58  ;;  %v3339_v26 = vsub.f32 %v16150_v4, %v16149_v10  ;;  %v16152_v59 = vld [vmem:[#allocation101_spill] sm:$0xff]  ;;  %v16154_v8 = vld [vmem:[#allocation78_spill] sm:$0xff]  ;;  %v16159_v10 = vld [vmem:[#allocation155_spill] sm:$0xff] }
 0x6f2   : > { %v9684_v41 = vpop.eup %9683  ;;  %v4077_v1 = vmul.f32 %v9682_v47, %v16147_v38  ;;  %v16156_v38 = vld [vmem:[#allocation42_spill] sm:$0xff]  ;;  %v16161_v4 = vld [vmem:[#allocation144_spill] sm:$0xff] }
 0x6f3   : > { %v4593_v19 = vpop.permute.xlu0 %4592  ;;  %v9686_v33 = vpop.eup %9685  ;;  %v3551_v47 = vmul.f32 1.442695, %v3339_v26 }
 0x6f4   : > { %8684 = vmatprep.subr.bf16.mxu0 %v4593_v19  ;;  %v4178_v2 = vpack.c.bf16 %v4078_v27, %v4077_v1  ;;  %v9688_v9 = vpop.eup %9687  ;;  %v4082_v55 = vmul.f32 %v9686_v33, %v13160_v31  ;;  %v16155_v27 = vld [vmem:[#allocation20_spill] sm:$0xff]  ;;  %v16160_v33 = vld [vmem:[#allocation81_spill] sm:$0xff] }
 0x6f5   : > { %8685 = vmatpush3.bf16.msra.mxu0 %v4593_v19  ;;  %v4080_v19 = vmul.f32 %v9684_v41, %v16148_v56  ;;  %v4081_v41 = vmul.f32 %v9688_v9, %v16154_v8  ;;  %9689 = vpow2.f32 %v3551_v47  ;;  %v3344_v26 = vsub.f32 %v16161_v4, %v16160_v33  ;;  %v16164_v47 = vld [vmem:[#allocation134_spill] sm:$0xff]  ;;  %v16165_v8 = vld [vmem:[#allocation75_spill] sm:$0xff] }
 0x6f7   : > { %v4179_v23 = vpack.c.bf16 %v4080_v19, %v4079_v61  ;;  %v4180_v58 = vpack.c.bf16 %v4082_v55, %v4081_v41  ;;  %v16157_v61 = vld [vmem:[#allocation140_spill] sm:$0xff]  ;;  %v16158_v19 = vld [vmem:[#allocation87_spill] sm:$0xff]  ;;  %v3359_v41 = vsub.f32 %v16165_v8, %v16164_v47 }
 0x6f8   : > { %8687 = vmatmul.mubr.bf16.vlgmr.msra.gmra.mrb[128].mxu0 %v4176_v48  ;;  %v16153_v48 = vld [vmem:[#allocation160_spill] sm:$0xff]  ;;  %v3358_v31 = vsub.f32 %v16159_v10, %v16158_v19  ;;  %v16162_v55 = vld [vmem:[#allocation119_spill] sm:$0xff] }
 0x6f9   : > { %8690 = vmatprep.mubr.bf16.mxu0 %v4177_v12  ;;  %v16151_v12 = vld [vmem:[#allocation38_spill] sm:$0xff]  ;;  %v3356_v60 = vsub.f32 %v16153_v48, %v16152_v59 }
 0x6fa   : > { %v16163_v59 = vld [vmem:[#allocation174_spill] sm:$0xff] }
 0x6fb   : > { %v3585_v1 = vmul.f32 1.442695, %v3356_v60  ;;  %v3345_v48 = vsub.f32 %v16163_v59, %v16162_v55  ;;  %v16169_v59 = vld [vmem:[#allocation149_spill] sm:$0xff] }
 0x6fd   : > { %9691 = vpow2.f32 %v3585_v1 }
 0x6ff   : > { %v13478_v9 = vpop.eup %9689 }
 0x700   : > { %8691 = vmatmul.mubr.bf16.gmra.mrb[132].mxu0 %v4178_v2  ;;  %v3342_v2 = vsub.f32 %v16157_v61, %v16156_v38  ;;  %v3591_v61 = vmul.f32 1.442695, %v3359_v41 }
 0x701   : > { %8694 = vmatprep.mubr.bf16.mxu0 %v4179_v23  ;;  %v3589_v23 = vmul.f32 1.442695, %v3358_v31 }
 0x702   : > { %4826 = vrot.lane.b32.xlu0 %v16151_v12, %s10159_s24  ;;  %v3557_v56 = vmul.f32 1.442695, %v3342_v2  ;;  %v3561_v12 = vmul.f32 1.442695, %v3344_v26 }
 0x704   : > { %9693 = vpow2.f32 %v3557_v56  ;;  %v16166_v56 = vld [vmem:[#allocation116_spill] sm:$0xff] }
 0x705   : > { %9695 = vpow2.f32 %v3589_v23 }
 0x706   : > { %4949 = vrot.lane.b32.xlu0 %v16155_v27, %s10159_s24  ;;  %9697 = vrcp.f32 %v13423_v52 }
 0x707   : > { %v13484_v60 = vpop.eup %9691  ;;  %9699 = vpow2.f32 %v3561_v12 }
 0x708   : > { %8695 = vmatmul.mubr.bf16.gmra.mrb[136].mxu0 %v4180_v58  ;;  %v3563_v58 = vmul.f32 1.442695, %v3345_v48 }
 0x70e   : > { %v13491_v38 = vpop.eup %9693 }
 0x70f   : > { %v13497_v2 = vpop.eup %9695 }
 0x712   : > { %3807 = vadd.xlane.f32.xlu1 %v13478_v9 }
 0x715   : > { %v3760_v27 = vpop.xlane.xlu1 %3759 }
 0x716   : > { %9701 = vrcp.f32 %v3760_v27  ;;  %3841 = vadd.xlane.f32.xlu1 %v13484_v60  ;;  %v16173_v27 = vld [vmem:[#allocation18_spill] sm:$0xff] }
 0x717   : > { %9703 = vrcp.f32 %v13298_v54  ;;  %v9698_v54 = vpop.eup %9697 }
 0x718   : > { %9705 = vrcp.f32 %v13318_v11  ;;  %v16167_v11 = vld [vmem:[#allocation73_spill] sm:$0xff]  ;;  %v4084_v33 = vmul.f32 %v9698_v54, %v13193_v57  ;;  %v16172_v57 = vld [vmem:[#allocation76_spill] sm:$0xff] }
 0x719   : > { %9707 = vrcp.f32 %v13205_v15  ;;  %v3794_v52 = vpop.xlane.xlu1 %3793  ;;  %v3361_v19 = vsub.f32 %v16167_v11, %v16166_v56  ;;  %v13502_v15 = vpop.eup %9699  ;;  %v16175_v11 = vld [vmem:[#allocation131_spill] sm:$0xff] }
 0x71a   : > { %9709 = vrcp.f32 %v13238_v46  ;;  %3813 = vadd.xlane.f32.xlu1 %v13491_v38 }
 0x71b   : > { %9711 = vpow2.f32 %v3563_v58  ;;  %v3595_v26 = vmul.f32 1.442695, %v3361_v19 }
 0x71c   : > { %9713 = vrcp.f32 %v13443_v20 }
 0x71d   : > { %9715 = vpow2.f32 %v3591_v61  ;;  %v3766_v1 = vpop.xlane.xlu1 %3765 }
 0x71e   : > { %9717 = vrcp.f32 %v3766_v1  ;;  %3845 = vadd.xlane.f32.xlu1 %v13497_v2 }
 0x71f   : > { %9719 = vrcp.f32 %v13313_v42 }
 0x720   : > { %v9702_v46 = vpop.eup %9701  ;;  %9721 = vrcp.f32 %v13402_v35  ;;  %v4942_v35 = vpop.permute.xlu0 %4941 }
 0x721   : > { %v9704_v10 = vpop.eup %9703  ;;  %9723 = vrcp.f32 %v13229_v6  ;;  %v3798_v20 = vpop.xlane.xlu1 %3797  ;;  %v4083_v31 = vmul.f32 %v9702_v46, %v13281_v0 }
 0x722   : > { %v9706_v4 = vpop.eup %9705  ;;  %9725 = vrcp.f32 %v13340_v51  ;;  %v4090_v48 = vmul.f32 %v9704_v10, %v16169_v59 }
 0x723   : > { %v9708_v23 = vpop.eup %9707  ;;  %v13510_v12 = vpop.f32.mrb[64].mxu1  ;;  %v4181_v55 = vpack.c.bf16 %v4084_v33, %v4083_v31  ;;  %v4092_v51 = vmul.f32 %v9706_v4, %v16172_v57  ;;  %9727 = vpow2.f32 %v3595_v26  ;;  %v16178_v57 = vld [vmem:[#allocation126_spill] sm:$0xff] }
 0x724   : > { %16168 = vst [vmem:[#allocation39_spill] sm:$0xff] %v13510_v12  ;;  %v9710_v42 = vpop.eup %9709  ;;  %v13513_v47 = vpop.f32.mrb[65].mxu1  ;;  %v4089_v58 = vmul.f32 %v9708_v23, %v16173_v27  ;;  %9729 = vrcp.f32 %v13412_v17 }
 0x725   : > { %16170 = vst [vmem:[#allocation137_spill] sm:$0xff] %v13513_v47  ;;  %v13515_v6 = vpop.eup %9711  ;;  %v4714_v8 = vpop.permute.xlu1 %4713  ;;  %3817 = vadd.xlane.f32.xlu0 %v13502_v15  ;;  %8698 = vmatprep.mubr.bf16.mxu0 %v4181_v55  ;;  %v4091_v19 = vmul.f32 %v9710_v42, %v16175_v11  ;;  %9731 = vrcp.f32 %v3794_v52  ;;  %v16247_v47 = vld [vmem:[#allocation124_spill] sm:$0xff] }
 0x726   : > { %v13517_v0 = vpop.f32.mrb[66].mxu1  ;;  %v9714_v41 = vpop.eup %9713  ;;  %8716 = vmatprep.subr.bf16.mxu1 %v4714_v8  ;;  %v4184_v31 = vpack.c.bf16 %v4090_v48, %v4089_v58  ;;  %9733 = vrcp.f32 %v13360_v44  ;;  %v16176_v48 = vld [vmem:[#allocation74_spill] sm:$0xff] }
 0x727   : > { %16171 = vst [vmem:[#allocation29_spill] sm:$0xff] %v13517_v0  ;;  %v13524_v1 = vpop.f32.mrb[67].mxu1  ;;  %v13526_v54 = vpop.eup %9715  ;;  %8717 = vmatpush3.bf16.msra.mxu1 %v4714_v8  ;;  %v4185_v26 = vpack.c.bf16 %v4092_v51, %v4091_v19  ;;  %v4085_v17 = vmul.f32 %v9714_v41, %v13212_v14  ;;  %9735 = vrcp.f32 %v13435_v28  ;;  %v16177_v14 = vld [vmem:[#allocation128_spill] sm:$0xff]  ;;  %v16179_v28 = vld [vmem:[#allocation17_spill] sm:$0xff] }
 0x728   : > { %16174 = vst [vmem:[#allocation90_spill] sm:$0xff] %v13524_v1  ;;  %v9718_v46 = vpop.eup %9717  ;;  %8766 = vmatprep.subr.bf16.mxu1 %v4942_v35  ;;  %v13532_v10 = vpop.xlane.xlu0 %3801  ;;  %9737 = vrcp.f32 %v3798_v20  ;;  %v16180_v41 = vld [vmem:[#allocation153_spill] sm:$0xff]  ;;  %v16181_v20 = vld [vmem:[#allocation46_spill] sm:$0xff]  ;;  %v3372_v1 = vsub.f32 %v16247_v47, %v13202_v7 }
 0x729   : > { %v9720_v33 = vpop.eup %9719  ;;  %v4821_v4 = vpop.permute.xlu1 %4820  ;;  %3847 = vadd.xlane.f32.xlu0 %v13526_v54  ;;  %v4086_v23 = vmul.f32 %v9718_v46, %v13306_v29  ;;  %9739 = vrcp.f32 %v13450_v13 }
 0x72a   : > { %v9722_v55 = vpop.eup %9721  ;;  %8719 = vmatmul.mubr.bf16.vlgmr.msra.gmra.mrb[80].mxu1 %v4184_v31  ;;  %8734 = vmatprep.subr.bf16.mxu0 %v4821_v4  ;;  %v4094_v8 = vmul.f32 %v9720_v33, %v16176_v48  ;;  %v16186_v48 = vld [vmem:[#allocation132_spill] sm:$0xff] }
 0x72b   : > { %v9724_v52 = vpop.eup %9723  ;;  %8722 = vmatprep.mubr.bf16.mxu1 %v4185_v26  ;;  %8735 = vmatpush3.bf16.msra.mxu0 %v4821_v4  ;;  %v4182_v42 = vpack.c.bf16 %v4086_v23, %v4085_v17  ;;  %v4096_v29 = vmul.f32 %v9722_v55, %v16177_v14  ;;  %v16212_v14 = vld [vmem:[#allocation168_spill] sm:$0xff] }
 0x72c   : > { %v9726_v59 = vpop.eup %9725  ;;  %8767 = vmatpush3.bf16.msra.mxu1 %v4942_v35  ;;  %v13539_v44 = vpop.xlane.xlu0 %3831  ;;  %v4093_v51 = vmul.f32 %v9724_v52, %v16178_v57 }
 0x72d   : > { %3819 = vadd.xlane.f32.xlu0 %v13515_v6  ;;  %8699 = vmatmul.mubr.bf16.gmra.mrb[140].mxu0 %v4182_v42  ;;  %v4095_v27 = vmul.f32 %v9726_v59, %v16180_v41  ;;  %v13548_v58 = vpop.eup %9727 }
 0x72e   : > { %v4186_v11 = vpack.c.bf16 %v4094_v8, %v4093_v51  ;;  %v9730_v19 = vpop.eup %9729 }
 0x72f   : > { %4947 = vrot.lane.b32.xlu1 %v16179_v28, %s10159_s24  ;;  %v4187_v46 = vpack.c.bf16 %v4096_v29, %v4095_v27  ;;  %v9732_v31 = vpop.eup %9731  ;;  %v4098_v55 = vmul.f32 %v9730_v19, %v13180_v22 }
 0x730   : > { %v13550_v35 = vpop.xlane.xlu0 %3803  ;;  %v9734_v33 = vpop.eup %9733  ;;  %v4100_v52 = vmul.f32 %v9732_v31, %v13294_v18  ;;  %v16189_v31 = vld [vmem:[#allocation176_spill] sm:$0xff] }
 0x731   : > { %3851 = vadd.xlane.f32.xlu0 %v13548_v58  ;;  %v9736_v26 = vpop.eup %9735  ;;  %v4097_v8 = vmul.f32 %v9734_v33, %v16186_v48  ;;  %v16195_v48 = vld [vmem:[#allocation165_spill] sm:$0xff] }
 0x732   : > { %8723 = vmatmul.mubr.bf16.gmra.mrb[84].mxu1 %v4186_v11  ;;  %v4099_v29 = vmul.f32 %v9736_v26, %v13198_v16  ;;  %v9738_v28 = vpop.eup %9737 }
 0x733   : > { %4828 = vrot.lane.b32.xlu1 %v16181_v20, %s10159_s24  ;;  %v13556_v4 = vpop.f32.mrb[68].mxu1  ;;  %8726 = vmatprep.mubr.bf16.mxu1 %v4187_v46  ;;  %v4188_v51 = vpack.c.bf16 %v4098_v55, %v4097_v8  ;;  %v9740_v18 = vpop.eup %9739  ;;  %v4102_v41 = vmul.f32 %v9738_v28, %v13311_v40  ;;  %v16188_v46 = vld [vmem:[#allocation123_spill] sm:$0xff] }
 0x734   : > { %16182 = vst [vmem:[#allocation113_spill] sm:$0xff] %v13556_v4  ;;  %v13558_v17 = vpop.f32.mrb[69].mxu1  ;;  %v13560_v23 = vpop.xlane.xlu0 %3835  ;;  %v4189_v22 = vpack.c.bf16 %v4100_v52, %v4099_v29  ;;  %v4101_v27 = vmul.f32 %v9740_v18, %v13225_v39  ;;  %v3343_v16 = vsub.f32 %v16189_v31, %v16188_v46  ;;  %v16193_v39 = vld [vmem:[#allocation41_spill] sm:$0xff]  ;;  %v16194_v52 = vld [vmem:[#allocation104_spill] sm:$0xff]  ;;  %v16198_v28 = vld [vmem:[#allocation143_spill] sm:$0xff] }
 0x735   : > { %16183 = vst [vmem:[#allocation64_spill] sm:$0xff] %v13558_v17  ;;  %v13563_v13 = vpop.f32.mrb[70].mxu1  ;;  %v3360_v8 = vsub.f32 %v16195_v48, %v16194_v52  ;;  %v16204_v48 = vld [vmem:[#allocation151_spill] sm:$0xff]  ;;  %v16229_v17 = vld [vmem:[#allocation177_spill] sm:$0xff]  ;;  %v16243_v4 = vld [vmem:[#allocation70_spill] sm:$0xff] }
 0x736   : > { %16184 = vst [vmem:[#allocation105_spill] sm:$0xff] %v13563_v13  ;;  %v13568_v59 = vpop.f32.mrb[71].mxu1  ;;  %v4190_v11 = vpack.c.bf16 %v4102_v41, %v4101_v27  ;;  %v3559_v29 = vmul.f32 1.442695, %v3343_v16  ;;  %v16199_v27 = vld [vmem:[#allocation85_spill] sm:$0xff] }
 0x737   : > { %16185 = vst [vmem:[#allocation31_spill] sm:$0xff] %v13568_v59  ;;  %v3593_v18 = vmul.f32 1.442695, %v3360_v8 }
 0x738   : > { %v4823_v57 = vpop.permute.xlu0 %4822  ;;  %9741 = vpow2.f32 %v3559_v29 }
 0x739   : > { %8736 = vmatprep.subr.bf16.mxu0 %v4823_v57  ;;  %9743 = vpow2.f32 %v3593_v18 }
 0x73a   : > { %8727 = vmatmul.mubr.bf16.gmra.mrb[88].mxu1 %v4188_v51  ;;  %8737 = vmatpush3.bf16.msra.mxu0 %v4823_v57  ;;  %v16196_v57 = vld [vmem:[#allocation30_spill] sm:$0xff]  ;;  %v16197_v51 = vld [vmem:[#allocation55_spill] sm:$0xff] }
 0x73b   : > { %8730 = vmatprep.mubr.bf16.mxu1 %v4189_v22  ;;  %v3346_v22 = vsub.f32 %v16198_v28, %v16197_v51  ;;  %v16209_v28 = vld [vmem:[#allocation84_spill] sm:$0xff] }
 0x73d   : > { %v3565_v41 = vmul.f32 1.442695, %v3346_v22 }
 0x73f   : > { %9745 = vpow2.f32 %v3565_v41 }
 0x742   : > { %8731 = vmatmul.mubr.bf16.gmra.mrb[92].mxu1 %v4190_v11  ;;  %v16200_v11 = vld [vmem:[#allocation9_spill] sm:$0xff]  ;;  %v13606_v52 = vpop.eup %9741 }
 0x743   : > { %v13576_v19 = vpop.f32.mrb[72].mxu1  ;;  %v3362_v46 = vsub.f32 %v16200_v11, %v16199_v27  ;;  %v13618_v22 = vpop.eup %9743  ;;  %v16207_v27 = vld [vmem:[#allocation106_spill] sm:$0xff]  ;;  %v16208_v11 = vld [vmem:[#allocation171_spill] sm:$0xff] }
 0x744   : > { %16187 = vst [vmem:[#allocation173_spill] sm:$0xff] %v13576_v19  ;;  %v13580_v33 = vpop.f32.mrb[73].mxu1 }
 0x745   : > { %16190 = vst [vmem:[#allocation62_spill] sm:$0xff] %v13580_v33  ;;  %v13582_v20 = vpop.f32.mrb[74].mxu1  ;;  %v16224_v33 = vld [vmem:[#allocation158_spill] sm:$0xff] }
 0x746   : > { %16191 = vst [vmem:[#allocation60_spill] sm:$0xff] %v13582_v20  ;;  %v13586_v55 = vpop.f32.mrb[75].mxu1  ;;  %v16227_v20 = vld [vmem:[#allocation179_spill] sm:$0xff] }
 0x747   : > { %16192 = vst [vmem:[#allocation58_spill] sm:$0xff] %v13586_v55  ;;  %4830 = vrot.lane.b32.xlu0 %v16193_v39, %s10159_s24  ;;  %v3597_v39 = vmul.f32 1.442695, %v3362_v46  ;;  %v3363_v46 = vsub.f32 %v16208_v11, %v16207_v27  ;;  %v16211_v11 = vld [vmem:[#allocation95_spill] sm:$0xff]  ;;  %v16225_v55 = vld [vmem:[#allocation33_spill] sm:$0xff] }
 0x748   : > { %v3366_v19 = vsub.f32 %v16225_v55, %v16224_v33  ;;  %v16230_v55 = vld [vmem:[#allocation83_spill] sm:$0xff] }
 0x749   : > { %9747 = vpow2.f32 %v3597_v39  ;;  %v16210_v39 = vld [vmem:[#allocation145_spill] sm:$0xff] }
 0x74a   : > { %9749 = vrcp.f32 %v13532_v10  ;;  %v3349_v8 = vsub.f32 %v16210_v39, %v16209_v28  ;;  %v3599_v10 = vmul.f32 1.442695, %v3363_v46 }
 0x74b   : > { %4953 = vrot.lane.b32.xlu0 %v16196_v57, %s10159_s24  ;;  %v16205_v57 = vld [vmem:[#allocation91_spill] sm:$0xff] }
 0x74c   : > { %v3348_v51 = vsub.f32 %v16205_v57, %v16204_v48  ;;  %v13624_v48 = vpop.eup %9745  ;;  %v3571_v27 = vmul.f32 1.442695, %v3349_v8 }
 0x74e   : > { %v3569_v18 = vmul.f32 1.442695, %v3348_v51 }
 0x753   : > { %v13600_v31 = vpop.f32.mrb[76].mxu1  ;;  %v13629_v51 = vpop.eup %9747 }
 0x754   : > { %16201 = vst [vmem:[#allocation61_spill] sm:$0xff] %v13600_v31  ;;  %v13602_v40 = vpop.f32.mrb[77].mxu1 }
 0x755   : > { %16202 = vst [vmem:[#allocation14_spill] sm:$0xff] %v13602_v40  ;;  %v13604_v16 = vpop.f32.mrb[78].mxu1  ;;  %v4946_v40 = vpop.permute.xlu0 %4945 }
 0x756   : > { %16203 = vst [vmem:[#allocation56_spill] sm:$0xff] %v13604_v16  ;;  %v13612_v29 = vpop.f32.mrb[79].mxu1 }
 0x757   : > { %16206 = vst [vmem:[#allocation107_spill] sm:$0xff] %v13612_v29  ;;  %3815 = vadd.xlane.f32.xlu1 %v13606_v52 }
 0x75a   : > { %v3800_v41 = vpop.xlane.xlu1 %3799 }
 0x75b   : > { %9751 = vrcp.f32 %v3800_v41  ;;  %3849 = vadd.xlane.f32.xlu1 %v13618_v22  ;;  %v9750_v41 = vpop.eup %9749 }
 0x75c   : > { %9753 = vrcp.f32 %v13539_v44  ;;  %v3365_v44 = vsub.f32 %v16212_v14, %v16211_v11  ;;  %v4104_v46 = vmul.f32 %v9750_v41, %v13322_v49 }
 0x75d   : > { %9755 = vpow2.f32 %v3569_v18 }
 0x75e   : > { %v3834_v57 = vpop.xlane.xlu1 %3833  ;;  %v3603_v39 = vmul.f32 1.442695, %v3365_v44  ;;  %v16216_v44 = vld [vmem:[#allocation57_spill] sm:$0xff] }
 0x75f   : > { %9757 = vrcp.f32 %v3834_v57  ;;  %3821 = vadd.xlane.f32.xlu1 %v13624_v48 }
 0x760   : > { %9759 = vpow2.f32 %v3599_v10 }
 0x761   : > { %9761 = vpow2.f32 %v3571_v27 }
 0x762   : > { %v13631_v26 = vpop.xlane.xlu1 %3805  ;;  %9763 = vpow2.f32 %v3603_v39  ;;  %v16219_v39 = vld [vmem:[#allocation53_spill] sm:$0xff] }
 0x763   : > { %3853 = vadd.xlane.f32.xlu1 %v13629_v51 }
 0x765   : > { %v9752_v18 = vpop.eup %9751 }
 0x766   : > { %v13636_v42 = vpop.xlane.xlu1 %3837  ;;  %v4103_v28 = vmul.f32 %v9752_v18, %v13382_v50  ;;  %v9754_v57 = vpop.eup %9753 }
 0x767   : > { %v13640_v61 = vpop.eup %9755  ;;  %v4119_v14 = vmul.f32 %v9754_v57, %v13333_v62 }
 0x768   : > { %v4191_v56 = vpack.c.bf16 %v4104_v46, %v4103_v28  ;;  %v16217_v28 = vld [vmem:[#allocation24_spill] sm:$0xff] }
 0x769   : > { %v9758_v8 = vpop.eup %9757  ;;  %v16218_v46 = vld [vmem:[#allocation148_spill] sm:$0xff] }
 0x76a   : > { %v4944_v29 = vpop.permute.xlu1 %4943  ;;  %3825 = vadd.xlane.f32.xlu0 %v13640_v61  ;;  %8750 = vmatprep.mubr.bf16.mxu0 %v4191_v56  ;;  %v4120_v10 = vmul.f32 %v9758_v8, %v13391_v63  ;;  %v13645_v50 = vpop.eup %9759  ;;  %v16214_v63 = vld [vmem:[#allocation15_spill] sm:$0xff]  ;;  %v3347_v57 = vsub.f32 %v16218_v46, %v16217_v28  ;;  %v3605_v46 = vmul.f32 1.442695, %v3366_v19 }
 0x76b   : > { %8768 = vmatprep.subr.bf16.mxu1 %v4944_v29  ;;  %16213 = vst [vmem:[#allocation51_spill] sm:$0xff] %v13645_v50  ;;  %v13650_v56 = vpop.eup %9761 }
 0x76c   : > { %8769 = vmatpush3.bf16.msra.mxu1 %v4944_v29  ;;  %v4199_v49 = vpack.c.bf16 %v4120_v10, %v4119_v14  ;;  %v13657_v29 = vpop.eup %9763  ;;  %v3567_v8 = vmul.f32 1.442695, %v3347_v57  ;;  %v16220_v14 = vld [vmem:[#allocation161_spill] sm:$0xff]  ;;  %v16221_v10 = vld [vmem:[#allocation36_spill] sm:$0xff] }
 0x76d   : > { %8770 = vmatprep.subr.bf16.mxu1 %v4946_v40  ;;  %v13647_v41 = vpop.xlane.xlu0 %3809  ;;  %16215 = vst [vmem:[#allocation98_spill] sm:$0xff] %v13657_v29  ;;  %v16228_v57 = vld [vmem:[#allocation112_spill] sm:$0xff] }
 0x76e   : > { %v4825_v27 = vpop.permute.xlu1 %4824  ;;  %3855 = vadd.xlane.f32.xlu0 %v13645_v50  ;;  %8782 = vmatprep.mubr.bf16.mxu1 %v4199_v49  ;;  %v3364_v49 = vsub.f32 %v16221_v10, %v16220_v14  ;;  %9765 = vpow2.f32 %v3567_v8  ;;  %v3369_v14 = vsub.f32 %v16229_v17, %v16228_v57 }
 0x76f   : > { %8738 = vmatprep.subr.bf16.mxu0 %v4825_v27 }
 0x770   : > { %8739 = vmatpush3.bf16.msra.mxu0 %v4825_v27  ;;  %8771 = vmatpush3.bf16.msra.mxu1 %v4946_v40  ;;  %v16222_v27 = vld [vmem:[#allocation108_spill] sm:$0xff]  ;;  %v3611_v33 = vmul.f32 1.442695, %v3369_v14 }
 0x771   : > { %v13652_v62 = vpop.xlane.xlu0 %3839 }
 0x772   : > { %3827 = vadd.xlane.f32.xlu0 %v13650_v56 }
 0x774   : > { %4951 = vrot.lane.b32.xlu1 %v16214_v63, %s10159_s24  ;;  %v16223_v63 = vld [vmem:[#allocation178_spill] sm:$0xff] }
 0x775   : > { %v13659_v11 = vpop.xlane.xlu0 %3811  ;;  %v3350_v31 = vsub.f32 %v16223_v63, %v16222_v27 }
 0x776   : > { %3859 = vadd.xlane.f32.xlu0 %v13657_v29 }
 0x777   : > { %v3573_v16 = vmul.f32 1.442695, %v3350_v31 }
 0x778   : > { %4832 = vrot.lane.b32.xlu1 %v16216_v44, %s10159_s24  ;;  %v3601_v44 = vmul.f32 1.442695, %v3364_v49  ;;  %v16231_v49 = vld [vmem:[#allocation100_spill] sm:$0xff] }
 0x779   : > { %v13664_v18 = vpop.xlane.xlu0 %3843 }
 0x77a   : > { %9767 = vpow2.f32 %v3601_v44 }
 0x77b   : > { %9769 = vpow2.f32 %v3573_v16 }
 0x77c   : > { %9771 = vpow2.f32 %v3605_v46 }
 0x77d   : > { %v4827_v40 = vpop.permute.xlu0 %4826 }
 0x77e   : > { %8740 = vmatprep.subr.bf16.mxu0 %v4827_v40 }
 0x77f   : > { %8741 = vmatpush3.bf16.msra.mxu0 %v4827_v40  ;;  %v16226_v40 = vld [vmem:[#allocation114_spill] sm:$0xff] }
 0x780   : > { %v3367_v28 = vsub.f32 %v16227_v20, %v16226_v40  ;;  %v3370_v20 = vsub.f32 %v16231_v49, %v16230_v55  ;;  %v16236_v49 = vld [vmem:[#allocation26_spill] sm:$0xff] }
 0x781   : > { %v4950_v46 = vpop.permute.xlu0 %4949 }
 0x782   : > { %v3607_v8 = vmul.f32 1.442695, %v3367_v28  ;;  %v3613_v17 = vmul.f32 1.442695, %v3370_v20 }
 0x784   : > { %9773 = vpow2.f32 %v3607_v8 }
 0x785   : > { %9775 = vpow2.f32 %v3611_v33 }
 0x786   : > { %9777 = vpow2.f32 %v3613_v17  ;;  %v16237_v17 = vld [vmem:[#allocation34_spill] sm:$0xff] }
 0x78c   : > { %4834 = vrot.lane.b32.xlu0 %v16219_v39, %s10159_s24  ;;  %v13678_v39 = vpop.eup %9765 }
 0x78d   : > { %v13683_v10 = vpop.eup %9767 }
 0x78e   : > { %v13690_v19 = vpop.eup %9769 }
 0x78f   : > { %v13695_v27 = vpop.eup %9771 }
 0x790   : > { %16232 = vst [vmem:[#allocation13_spill] sm:$0xff] %v13695_v27  ;;  %v13700_v44 = vpop.eup %9773 }
 0x791   : > { %16233 = vst [vmem:[#allocation109_spill] sm:$0xff] %v13700_v44  ;;  %v13705_v28 = vpop.eup %9775 }
 0x792   : > { %16234 = vst [vmem:[#allocation97_spill] sm:$0xff] %v13705_v28  ;;  %v13708_v14 = vpop.eup %9777 }
 0x793   : > { %16235 = vst [vmem:[#allocation162_spill] sm:$0xff] %v13708_v14 }
 0x79c   : > { %3823 = vadd.xlane.f32.xlu1 %v13678_v39 }
 0x79f   : > { %v13685_v31 = vpop.xlane.xlu1 %3807 }
 0x7a0   : > { %3857 = vadd.xlane.f32.xlu1 %v13683_v10 }
 0x7a3   : > { %v13692_v16 = vpop.xlane.xlu1 %3841 }
 0x7a4   : > { %3829 = vadd.xlane.f32.xlu1 %v13690_v19 }
 0x7a7   : > { %v13697_v63 = vpop.xlane.xlu1 %3813 }
 0x7a8   : > { %3861 = vadd.xlane.f32.xlu1 %v13695_v27 }
 0x7ab   : > { %v13702_v40 = vpop.xlane.xlu1 %3845  ;;  %3863 = vadd.xlane.f32.xlu0 %v13700_v44 }
 0x7af   : > { %v4948_v57 = vpop.permute.xlu1 %4947  ;;  %3867 = vadd.xlane.f32.xlu0 %v13705_v28 }
 0x7b0   : > { %8772 = vmatprep.subr.bf16.mxu1 %v4948_v57 }
 0x7b1   : > { %8773 = vmatpush3.bf16.msra.mxu1 %v4948_v57 }
 0x7b2   : > { %8774 = vmatprep.subr.bf16.mxu1 %v4950_v46  ;;  %v13710_v8 = vpop.xlane.xlu0 %3817 }
 0x7b3   : > { %v4829_v33 = vpop.permute.xlu1 %4828  ;;  %3869 = vadd.xlane.f32.xlu0 %v13708_v14  ;;  %v16238_v14 = vld [vmem:[#allocation45_spill] sm:$0xff] }
 0x7b4   : > { %8742 = vmatprep.subr.bf16.mxu0 %v4829_v33 }
 0x7b5   : > { %8743 = vmatpush3.bf16.msra.mxu0 %v4829_v33  ;;  %8775 = vmatpush3.bf16.msra.mxu1 %v4950_v46 }
 0x7b6   : > { %v13713_v55 = vpop.xlane.xlu0 %3847 }
 0x7b9   : > { %4955 = vrot.lane.b32.xlu1 %v16236_v49, %s10159_s24  ;;  %v16242_v49 = vld [vmem:[#allocation156_spill] sm:$0xff] }
 0x7ba   : > { %v13717_v20 = vpop.xlane.xlu0 %3819  ;;  %v3368_v13 = vsub.f32 %v16243_v4, %v16242_v49 }
 0x7bc   : > { %v3609_v0 = vmul.f32 1.442695, %v3368_v13  ;;  %v16250_v13 = vld [vmem:[#allocation94_spill] sm:$0xff] }
 0x7bd   : > { %5062 = vrot.lane.b32.xlu1 %v16237_v17, %s10159_s24  ;;  %v16258_v17 = vld [vmem:[#allocation28_spill] sm:$0xff] }
 0x7be   : > { %v13721_v57 = vpop.xlane.xlu0 %3851  ;;  %9779 = vpow2.f32 %v3609_v0 }
 0x7c2   : > { %v4831_v28 = vpop.permute.xlu0 %4830 }
 0x7c3   : > { %8744 = vmatprep.subr.bf16.mxu0 %v4831_v28 }
 0x7c4   : > { %8745 = vmatpush3.bf16.msra.mxu0 %v4831_v28  ;;  %v3374_v28 = vsub.f32 %v16250_v13, %v13191_v21 }
 0x7c6   : > { %v3621_v7 = vmul.f32 1.442695, %v3374_v28 }
 0x7c9   : > { %5066 = vrot.lane.b32.xlu0 %v16238_v14, %s10159_s24 }
 0x7cb   : > { %v13725_v33 = vpop.f32.mrb[128].mxu0 }
 0x7cc   : > { %16239 = vst [vmem:[#allocation63_spill] sm:$0xff] %v13725_v33  ;;  %v13727_v46 = vpop.f32.mrb[129].mxu0 }
 0x7cd   : > { %16240 = vst [vmem:[#allocation25_spill] sm:$0xff] %v13727_v46  ;;  %v13729_v59 = vpop.f32.mrb[130].mxu0  ;;  %v3617_v46 = vmul.f32 1.442695, %v3372_v1 }
 0x7ce   : > { %16241 = vst [vmem:[#allocation32_spill] sm:$0xff] %v13729_v59  ;;  %v13735_v12 = vpop.f32.mrb[131].mxu0 }
 0x7cf   : > { %16244 = vst [vmem:[#allocation157_spill] sm:$0xff] %v13735_v12  ;;  %9781 = vpow2.f32 %v3617_v46 }
 0x7d0   : > { %9783 = vpow2.f32 %v3621_v7  ;;  %v4954_v7 = vpop.permute.xlu0 %4953 }
 0x7d1   : > { %9785 = vrcp.f32 %v13631_v26 }
 0x7d2   : > { %9787 = vrcp.f32 %v13685_v31 }
 0x7d3   : > { %v13739_v44 = vpop.f32.mrb[132].mxu0  ;;  %9789 = vrcp.f32 %v13550_v35 }
 0x7d4   : > { %16245 = vst [vmem:[#allocation27_spill] sm:$0xff] %v13739_v44  ;;  %v13741_v14 = vpop.f32.mrb[133].mxu0  ;;  %9791 = vrcp.f32 %v13647_v41 }
 0x7d5   : > { %16246 = vst [vmem:[#allocation154_spill] sm:$0xff] %v13741_v14  ;;  %v13745_v29 = vpop.f32.mrb[134].mxu0  ;;  %v13767_v14 = vpop.eup %9779  ;;  %9793 = vrcp.f32 %v13697_v63  ;;  %v16269_v63 = vld [vmem:[#allocation118_spill] sm:$0xff] }
 0x7d6   : > { %16248 = vst [vmem:[#allocation22_spill] sm:$0xff] %v13745_v29  ;;  %v13749_v49 = vpop.f32.mrb[135].mxu0  ;;  %16255 = vst [vmem:[#allocation82_spill] sm:$0xff] %v13767_v14  ;;  %v16266_v29 = vld [vmem:[#allocation88_spill] sm:$0xff] }
 0x7d7   : > { %16249 = vst [vmem:[#allocation135_spill] sm:$0xff] %v13749_v49 }
 0x7d9   : > { %v13770_v1 = vpop.eup %9781 }
 0x7da   : > { %16256 = vst [vmem:[#allocation10_spill] sm:$0xff] %v13770_v1  ;;  %v13775_v46 = vpop.eup %9783 }
 0x7db   : > { %v13755_v12 = vpop.f32.mrb[136].mxu0  ;;  %16257 = vst [vmem:[#allocation43_spill] sm:$0xff] %v13775_v46  ;;  %v9786_v26 = vpop.eup %9785 }
 0x7dc   : > { %16251 = vst [vmem:[#allocation152_spill] sm:$0xff] %v13755_v12  ;;  %v13757_v33 = vpop.f32.mrb[137].mxu0 }
 0x7dd   : > { %16252 = vst [vmem:[#allocation142_spill] sm:$0xff] %v13757_v33  ;;  %v13759_v47 = vpop.f32.mrb[138].mxu0 }
 0x7de   : > { %16253 = vst [vmem:[#allocation169_spill] sm:$0xff] %v13759_v47  ;;  %v13763_v4 = vpop.f32.mrb[139].mxu0 }
 0x7df   : > { %16254 = vst [vmem:[#allocation93_spill] sm:$0xff] %v13763_v4 }
 0x7e1   : > { %3865 = vadd.xlane.f32.xlu1 %v13767_v14 }
 0x7e4   : > { %v3816_v21 = vpop.xlane.xlu1 %3815 }
 0x7e5   : > { %9795 = vrcp.f32 %v3816_v21 }
 0x7e6   : > { %9797 = vrcp.f32 %v13659_v11  ;;  %v4106_v11 = vmul.f32 %v9786_v26, %v13400_v37 }
 0x7e7   : > { %9799 = vrcp.f32 %v13710_v8 }
 0x7e8   : > { %v13772_v28 = vpop.xlane.xlu1 %3849  ;;  %3873 = vadd.xlane.f32.xlu0 %v13770_v1 }
 0x7ec   : > { %v3822_v13 = vpop.xlane.xlu1 %3821  ;;  %3877 = vadd.xlane.f32.xlu0 %v13775_v46  ;;  %v16267_v46 = vld [vmem:[#allocation48_spill] sm:$0xff] }
 0x7ed   : > { %9801 = vrcp.f32 %v3822_v13 }
 0x7f0   : > { %v13778_v0 = vpop.xlane.xlu1 %3853 }
 0x7f2   : > { %5064 = vrot.lane.b32.xlu1 %v16258_v17, %s10159_s24 }
 0x7f4   : > { %v4952_v33 = vpop.permute.xlu1 %4951 }
 0x7f5   : > { %8776 = vmatprep.subr.bf16.mxu1 %v4952_v33 }
 0x7f6   : > { %8777 = vmatpush3.bf16.msra.mxu1 %v4952_v33 }
 0x7f7   : > { %8778 = vmatprep.subr.bf16.mxu1 %v4954_v7  ;;  %v13782_v4 = vpop.xlane.xlu0 %3825 }
 0x7f8   : > { %v4833_v12 = vpop.permute.xlu1 %4832 }
 0x7f9   : > { %8746 = vmatprep.subr.bf16.mxu0 %v4833_v12 }
 0x7fa   : > { %8747 = vmatpush3.bf16.msra.mxu0 %v4833_v12  ;;  %8779 = vmatpush3.bf16.msra.mxu1 %v4954_v7  ;;  %v16265_v7 = vld [vmem:[#allocation80_spill] sm:$0xff] }
 0x7fb   : > { %v13787_v47 = vpop.xlane.xlu0 %3855  ;;  %v3371_v59 = vsub.f32 %v16266_v29, %v16265_v7  ;;  %v16271_v29 = vld [vmem:[#allocation23_spill] sm:$0xff] }
 0x7fc   : > { %v3376_v37 = vsub.f32 %v16271_v29, %v13240_v3  ;;  %v16272_v29 = vld [vmem:[#allocation54_spill] sm:$0xff] }
 0x7fd   : > { %v13790_v17 = vpop.f32.mrb[80].mxu1 }
 0x7fe   : > { %16259 = vst [vmem:[#allocation111_spill] sm:$0xff] %v13790_v17  ;;  %v13792_v33 = vpop.f32.mrb[81].mxu1 }
 0x7ff   : > { %16260 = vst [vmem:[#allocation103_spill] sm:$0xff] %v13792_v33  ;;  %v13794_v49 = vpop.f32.mrb[82].mxu1  ;;  %v13796_v44 = vpop.xlane.xlu0 %3827 }
 0x800   : > { %16261 = vst [vmem:[#allocation99_spill] sm:$0xff] %v13794_v49  ;;  %v13800_v31 = vpop.f32.mrb[140].mxu0  ;;  %v13802_v12 = vpop.f32.mrb[83].mxu1 }
 0x801   : > { %16262 = vst [vmem:[#allocation79_spill] sm:$0xff] %v13800_v31  ;;  %16263 = vst [vmem:[#allocation147_spill] sm:$0xff] %v13802_v12  ;;  %v13807_v41 = vpop.f32.mrb[141].mxu0  ;;  %v9788_v33 = vpop.eup %9787  ;;  %v3615_v12 = vmul.f32 1.442695, %v3371_v59  ;;  %v16270_v31 = vld [vmem:[#allocation68_spill] sm:$0xff] }
 0x802   : > { %16264 = vst [vmem:[#allocation159_spill] sm:$0xff] %v13807_v41  ;;  %5070 = vrot.lane.b32.xlu0 %v16267_v46, %s10159_s24  ;;  %v13813_v1 = vpop.f32.mrb[142].mxu0  ;;  %v9790_v21 = vpop.eup %9789  ;;  %v4107_v8 = vmul.f32 %v9788_v33, %v13478_v9 }
 0x803   : > { %16268 = vst [vmem:[#allocation50_spill] sm:$0xff] %v13813_v1  ;;  %v13818_v14 = vpop.f32.mrb[143].mxu0  ;;  %v13820_v35 = vpop.xlane.xlu0 %3859  ;;  %v3373_v1 = vsub.f32 %v16270_v31, %v16269_v63  ;;  %v4105_v50 = vmul.f32 %v9790_v21, %v13338_v45  ;;  %9803 = vpow2.f32 %v3615_v12 }
 0x804   : > { %v9792_v7 = vpop.eup %9791  ;;  %9805 = vrcp.f32 %v13717_v20 }
 0x805   : > { %v13825_v46 = vpop.f32.mrb[84].mxu1  ;;  %v4108_v59 = vmul.f32 %v9792_v7, %v13414_v34  ;;  %v4192_v26 = vpack.c.bf16 %v4106_v11, %v4105_v50  ;;  %v9794_v31 = vpop.eup %9793  ;;  %v3619_v63 = vmul.f32 1.442695, %v3373_v1  ;;  %v16311_v1 = vld [vmem:[#allocation97_spill] sm:$0xff] }
 0x806   : > { %v13828_v17 = vpop.f32.mrb[85].mxu1  ;;  %v9796_v9 = vpop.eup %9795  ;;  %v4110_v34 = vmul.f32 %v9794_v31, %v13491_v38  ;;  %v3378_v38 = vsub.f32 %v16272_v29, %v13234_v32  ;;  %v16273_v29 = vld [vmem:[#allocation40_spill] sm:$0xff] }
 0x807   : > { %v13832_v49 = vpop.f32.mrb[86].mxu1  ;;  %v4835_v27 = vpop.permute.xlu0 %4834  ;;  %v4193_v45 = vpack.c.bf16 %v4108_v59, %v4107_v8  ;;  %9807 = vpow2.f32 %v3619_v63  ;;  %v4111_v20 = vmul.f32 %v9796_v9, %v13606_v52  ;;  %v3625_v8 = vmul.f32 1.442695, %v3376_v37 }
 0x808   : > { %v13838_v41 = vpop.f32.mrb[87].mxu1  ;;  %8748 = vmatprep.subr.bf16.mxu0 %v4835_v27  ;;  %v9798_v33 = vpop.eup %9797 }
 0x809   : > { %8749 = vmatpush3.bf16.msra.mxu0 %v4835_v27  ;;  %v9800_v13 = vpop.eup %9799  ;;  %v4109_v7 = vmul.f32 %v9798_v33, %v13432_v5  ;;  %v3629_v5 = vmul.f32 1.442695, %v3378_v38  ;;  %9809 = vpow2.f32 %v3625_v8 }
 0x80a   : > { %v4112_v3 = vmul.f32 %v9800_v13, %v13502_v15 }
 0x80b   : > { %v4194_v59 = vpack.c.bf16 %v4110_v34, %v4109_v7  ;;  %9811 = vpow2.f32 %v3629_v5 }
 0x80c   : > { %8751 = vmatmul.mubr.bf16.vlgmr.msra.gmra.mrb[144].mxu0 %v4192_v26  ;;  %v9802_v26 = vpop.eup %9801  ;;  %v4195_v31 = vpack.c.bf16 %v4112_v3, %v4111_v20  ;;  %9813 = vrcp.f32 %v13782_v4 }
 0x80d   : > { %v13844_v21 = vpop.f32.mrb[88].mxu1  ;;  %8754 = vmatprep.mubr.bf16.mxu0 %v4193_v45  ;;  %v13864_v52 = vpop.eup %9803  ;;  %v4114_v15 = vmul.f32 %v9802_v26, %v13624_v48 }
 0x80e   : > { %v13848_v27 = vpop.f32.mrb[89].mxu1  ;;  %v9806_v63 = vpop.eup %9805 }
 0x80f   : > { %v13851_v50 = vpop.f32.mrb[90].mxu1  ;;  %v4113_v13 = vmul.f32 %v9806_v63, %v13515_v6 }
 0x810   : > { %v13856_v12 = vpop.f32.mrb[91].mxu1 }
 0x811   : > { %v13879_v34 = vpop.eup %9807  ;;  %v4196_v7 = vpack.c.bf16 %v4114_v15, %v4113_v13  ;;  %v16275_v13 = vld [vmem:[#allocation66_spill] sm:$0xff] }
 0x813   : > { %v13884_v48 = vpop.eup %9809 }
 0x814   : > { %8755 = vmatmul.mubr.bf16.gmra.mrb[148].mxu0 %v4194_v59 }
 0x815   : > { %v13866_v45 = vpop.f32.mrb[92].mxu1  ;;  %8758 = vmatprep.mubr.bf16.mxu0 %v4195_v31  ;;  %v13887_v3 = vpop.eup %9811 }
 0x816   : > { %3871 = vadd.xlane.f32.xlu1 %v13864_v52  ;;  %v13869_v9 = vpop.f32.mrb[93].mxu1  ;;  %v9814_v59 = vpop.eup %9813 }
 0x817   : > { %v13872_v32 = vpop.f32.mrb[94].mxu1 }
 0x818   : > { %v13876_v33 = vpop.f32.mrb[95].mxu1 }
 0x81a   : > { %3875 = vadd.xlane.f32.xlu1 %v13879_v34 }
 0x81c   : > { %8759 = vmatmul.mubr.bf16.gmra.mrb[152].mxu0 %v4196_v7  ;;  %v16276_v7 = vld [vmem:[#allocation47_spill] sm:$0xff] }
 0x821   : > { %3881 = vadd.xlane.f32.xlu0 %v13884_v48 }
 0x825   : > { %3885 = vadd.xlane.f32.xlu0 %v13887_v3 }
 0x829   : > { %v3824_v6 = vpop.xlane.xlu1 %3823 }
 0x82a   : > { %9815 = vrcp.f32 %v3824_v6 }
 0x82b   : > { %9817 = vrcp.f32 %v13636_v42  ;;  %5068 = vrot.lane.b32.xlu1 %v16273_v29, %s10159_s24 }
 0x82c   : > { %9819 = vrcp.f32 %v13692_v16 }
 0x82d   : > { %9821 = vrcp.f32 %v13560_v23  ;;  %v3858_v38 = vpop.xlane.xlu1 %3857  ;;  %v4116_v23 = vmul.f32 %v9814_v59, %v13640_v61  ;;  %v16274_v61 = vld [vmem:[#allocation59_spill] sm:$0xff] }
 0x82e   : > { %9823 = vrcp.f32 %v13652_v62 }
 0x82f   : > { %9825 = vrcp.f32 %v13796_v44 }
 0x831   : > { %v3830_v8 = vpop.xlane.xlu1 %3829 }
 0x832   : > { %9827 = vrcp.f32 %v3830_v8 }
 0x833   : > { %9829 = vrcp.f32 %v13702_v40 }
 0x834   : > { %v9816_v4 = vpop.eup %9815  ;;  %9831 = vrcp.f32 %v13772_v28 }
 0x835   : > { %v9818_v42 = vpop.eup %9817  ;;  %9833 = vrcp.f32 %v13664_v18  ;;  %v3862_v26 = vpop.xlane.xlu1 %3861  ;;  %v4115_v16 = vmul.f32 %v9816_v4, %v13678_v39 }
 0x836   : > { %v9820_v31 = vpop.eup %9819  ;;  %9835 = vrcp.f32 %v13713_v55  ;;  %v4122_v5 = vmul.f32 %v9818_v42, %v13407_v30  ;;  %v3375_v30 = vsub.f32 %v16276_v7, %v16275_v13  ;;  %v16277_v42 = vld [vmem:[#allocation69_spill] sm:$0xff] }
 0x837   : > { %v9822_v62 = vpop.eup %9821  ;;  %v4197_v44 = vpack.c.bf16 %v4116_v23, %v4115_v16  ;;  %v4124_v28 = vmul.f32 %v9820_v31, %v13484_v60  ;;  %9837 = vrcp.f32 %v13778_v0  ;;  %v16278_v16 = vld [vmem:[#allocation35_spill] sm:$0xff] }
 0x838   : > { %v9824_v63 = vpop.eup %9823  ;;  %v4121_v18 = vmul.f32 %v9822_v62, %v13345_v53  ;;  %9839 = vrcp.f32 %v3858_v38  ;;  %v3377_v23 = vsub.f32 %v16278_v16, %v16277_v42 }
 0x839   : > { %v4956_v40 = vpop.permute.xlu1 %4955  ;;  %8762 = vmatprep.mubr.bf16.mxu0 %v4197_v44  ;;  %v9826_v15 = vpop.eup %9825  ;;  %v4123_v39 = vmul.f32 %v9824_v63, %v13419_v24  ;;  %9841 = vrcp.f32 %v13721_v57  ;;  %v3623_v57 = vmul.f32 1.442695, %v3375_v30 }
 0x83a   : > { %8780 = vmatprep.subr.bf16.mxu1 %v4956_v40  ;;  %v4200_v6 = vpack.c.bf16 %v4122_v5, %v4121_v18  ;;  %v4117_v8 = vmul.f32 %v9826_v15, %v13650_v56  ;;  %9843 = vrcp.f32 %v13787_v47  ;;  %v3627_v62 = vmul.f32 1.442695, %v3377_v23  ;;  %v16280_v18 = vld [vmem:[#allocation65_spill] sm:$0xff] }
 0x83b   : > { %5074 = vrot.lane.b32.xlu0 %v16274_v61, %s10159_s24  ;;  %8781 = vmatpush3.bf16.msra.mxu1 %v4956_v40  ;;  %v4201_v53 = vpack.c.bf16 %v4124_v28, %v4123_v39  ;;  %9845 = vrcp.f32 %v3862_v26  ;;  %v3382_v61 = vsub.f32 %v16280_v18, %v13256_v43  ;;  %v16281_v39 = vld [vmem:[#allocation51_spill] sm:$0xff]  ;;  %v16283_v43 = vld [vmem:[#allocation98_spill] sm:$0xff] }
 0x83c   : > { %v9828_v55 = vpop.eup %9827  ;;  %9847 = vpow2.f32 %v3623_v57  ;;  %v16285_v57 = vld [vmem:[#allocation90_spill] sm:$0xff] }
 0x83d   : > { %v9830_v29 = vpop.eup %9829  ;;  %v5063_v60 = vpop.permute.xlu1 %5062  ;;  %v4118_v0 = vmul.f32 %v9828_v55, %v13690_v19  ;;  %9849 = vrcp.f32 %v13820_v35  ;;  %v16296_v18 = vld [vmem:[#allocation82_spill] sm:$0xff] }
 0x83e   : > { %v9832_v59 = vpop.eup %9831  ;;  %8783 = vmatmul.mubr.bf16.vlgmr.msra.gmra.mrb[96].mxu1 %v4200_v6  ;;  %8798 = vmatprep.subr.bf16.mxu0 %v5063_v60  ;;  %v4126_v31 = vmul.f32 %v9830_v29, %v13497_v2  ;;  %v16279_v2 = vld [vmem:[#allocation115_spill] sm:$0xff]  ;;  %9851 = vpow2.f32 %v3627_v62  ;;  %v3637_v29 = vmul.f32 1.442695, %v3382_v61 }
 0x83f   : > { %v9834_v24 = vpop.eup %9833  ;;  %8786 = vmatprep.mubr.bf16.mxu1 %v4201_v53  ;;  %8799 = vmatpush3.bf16.msra.mxu0 %v5063_v60  ;;  %v4198_v4 = vpack.c.bf16 %v4118_v0, %v4117_v8  ;;  %v4128_v56 = vmul.f32 %v9832_v59, %v13618_v22  ;;  %v3380_v15 = vsub.f32 %v16279_v2, %v13260_v36  ;;  %v3864_v59 = vpop.xlane.xlu0 %3863  ;;  %v16293_v2 = vld [vmem:[#allocation71_spill] sm:$0xff] }
 0x840   : > { %v9836_v38 = vpop.eup %9835  ;;  %v4125_v19 = vmul.f32 %v9834_v24, %v13441_v25  ;;  %v16284_v24 = vld [vmem:[#allocation49_spill] sm:$0xff] }
 0x841   : > { %8763 = vmatmul.mubr.bf16.gmra.mrb[156].mxu0 %v4198_v4  ;;  %v4127_v47 = vmul.f32 %v9836_v38, %v13526_v54  ;;  %v9838_v63 = vpop.eup %9837  ;;  %v3633_v35 = vmul.f32 1.442695, %v3380_v15  ;;  %v16294_v15 = vld [vmem:[#allocation11_spill] sm:$0xff] }
 0x842   : > { %v4202_v44 = vpack.c.bf16 %v4126_v31, %v4125_v19  ;;  %v9840_v40 = vpop.eup %9839  ;;  %v4130_v25 = vmul.f32 %v9838_v63, %v13629_v51  ;;  %v16282_v51 = vld [vmem:[#allocation13_spill] sm:$0xff]  ;;  %v16288_v19 = vld [vmem:[#allocation139_spill] sm:$0xff] }
 0x843   : > { %v4203_v5 = vpack.c.bf16 %v4128_v56, %v4127_v47  ;;  %v9842_v28 = vpop.eup %9841  ;;  %v4132_v54 = vmul.f32 %v9840_v40, %v13683_v10  ;;  %9853 = vpow2.f32 %v3633_v35  ;;  %v13948_v4 = vpop.xlane.xlu0 %3867  ;;  %v16286_v31 = vld [vmem:[#allocation137_spill] sm:$0xff]  ;;  %v16290_v63 = vld [vmem:[#allocation99_spill] sm:$0xff] }
 0x844   : > { %v9844_v22 = vpop.eup %9843  ;;  %v4129_v26 = vmul.f32 %v9842_v28, %v13548_v58  ;;  %9855 = vpow2.f32 %v3637_v29  ;;  %v16287_v56 = vpack.i.bf16 %v16285_v57, %v16286_v31  ;;  %v16289_v47 = vld [vmem:[#allocation77_spill] sm:$0xff]  ;;  %v16299_v29 = vld [vmem:[#allocation39_spill] sm:$0xff] }
 0x845   : > { %v4131_v55 = vmul.f32 %v9844_v22, %v16281_v39  ;;  %v9846_v7 = vpop.eup %9845  ;;  %9857 = vrcp.f32 %v3864_v59  ;;  %v3379_v62 = vsub.f32 %v16289_v47, %v16288_v19  ;;  %v3381_v22 = vsub.f32 %v16294_v15, %v16293_v2 }
 0x846   : > { %8787 = vmatmul.mubr.bf16.gmra.mrb[100].mxu1 %v4202_v44  ;;  %v4204_v13 = vpack.c.bf16 %v4130_v25, %v4129_v26  ;;  %v13932_v6 = vpop.eup %9847  ;;  %v4134_v58 = vmul.f32 %v9846_v7, %v16282_v51  ;;  %v16297_v7 = vld [vmem:[#allocation52_spill] sm:$0xff] }
 0x847   : > { %8790 = vmatprep.mubr.bf16.mxu1 %v4203_v5  ;;  %v4205_v30 = vpack.c.bf16 %v4132_v54, %v4131_v55  ;;  %v9850_v36 = vpop.eup %9849  ;;  %v13950_v38 = vpop.xlane.xlu0 %3869  ;;  %v16291_v5 = vld [vmem:[#allocation111_spill] sm:$0xff]  ;;  %v3631_v25 = vmul.f32 1.442695, %v3379_v62  ;;  %v16295_v54 = vld [vmem:[#allocation109_spill] sm:$0xff]  ;;  %v3635_v39 = vmul.f32 1.442695, %v3381_v22 }
 0x848   : > { %v13936_v10 = vpop.eup %9851  ;;  %v4133_v60 = vmul.f32 %v9850_v36, %v16283_v43  ;;  %v16292_v40 = vpack.i.bf16 %v16290_v63, %v16291_v5  ;;  %v16298_v36 = vld [vmem:[#allocation29_spill] sm:$0xff]  ;;  %v16301_v43 = vld [vmem:[#allocation147_spill] sm:$0xff] }
 0x849   : > { %v16300_v51 = vpack.i.bf16 %v16298_v36, %v16299_v29  ;;  %v16307_v29 = vld [vmem:[#allocation31_spill] sm:$0xff] }
 0x84a   : > { %v4206_v53 = vpack.c.bf16 %v4134_v58, %v4133_v60  ;;  %v16302_v60 = vld [vmem:[#allocation103_spill] sm:$0xff] }
 0x84b   : > { %v5067_v23 = vpop.permute.xlu0 %5066 }
 0x84d   : > { %v13940_v8 = vpop.eup %9853 }
 0x84e   : > { %8791 = vmatmul.mubr.bf16.gmra.mrb[104].mxu1 %v4204_v13  ;;  %v13943_v0 = vpop.eup %9855 }
 0x84f   : > { %3879 = vadd.xlane.f32.xlu1 %v13932_v6  ;;  %8794 = vmatprep.mubr.bf16.mxu1 %v4205_v30  ;;  %v9858_v44 = vpop.eup %9857 }
 0x850   : > { %v4135_v26 = vmul.f32 %v9858_v44, %v16295_v54 }
 0x853   : > { %3883 = vadd.xlane.f32.xlu1 %v13936_v10 }
 0x856   : > { %8795 = vmatmul.mubr.bf16.gmra.mrb[108].mxu1 %v4206_v53  ;;  %v16303_v53 = vpack.i.bf16 %v16301_v43, %v16302_v60 }
 0x85a   : > { %3889 = vadd.xlane.f32.xlu0 %v13940_v8 }
 0x85e   : > { %3893 = vadd.xlane.f32.xlu0 %v13943_v0 }
 0x864   : > { %5072 = vrot.lane.b32.xlu1 %v16284_v24, %s10159_s24 }
 0x86e   : > { %v3866_v42 = vpop.xlane.xlu1 %3865 }
 0x86f   : > { %9859 = vrcp.f32 %v3866_v42 }
 0x870   : > { %9861 = vpow2.f32 %v3631_v25 }
 0x871   : > { %9863 = vpow2.f32 %v3635_v39 }
 0x872   : > { %v5065_v16 = vpop.permute.xlu1 %5064  ;;  %9865 = vrcp.f32 %v13950_v38 }
 0x873   : > { %8800 = vmatprep.subr.bf16.mxu0 %v5065_v16 }
 0x874   : > { %9064 = vrot.lane.b32.xlu0 %v16287_v56, %s10163_s29  ;;  %8801 = vmatpush3.bf16.msra.mxu0 %v5065_v16 }
 0x875   : > { %8802 = vmatprep.subr.bf16.mxu0 %v5067_v23  ;;  %v3874_v30 = vpop.xlane.xlu0 %3873 }
 0x878   : > { %9079 = vrot.lane.b32.xlu0 %v16292_v40, %s10164_s30  ;;  %8803 = vmatpush3.bf16.msra.mxu0 %v5067_v23  ;;  %v9305_v23 = vld [vmem:[%s10298_s20] sm:$0xff]   ;;  %v16310_v40 = vld [vmem:[#allocation162_spill] sm:$0xff] }
 0x879   : > { %v9860_v28 = vpop.eup %9859  ;;  %v13982_v59 = vpop.xlane.xlu0 %3877  ;;  %8830 = vmatprep.subr.bf16.mxu1 %v9305_v23 }
 0x87a   : > { %v4136_v61 = vmul.f32 %v9860_v28, %v16296_v18  ;;  %v13966_v55 = vpop.eup %9861  ;;  %8831 = vmatpush3.bf16.msra.mxu1 %v9305_v23 }
 0x87b   : > { %v13969_v13 = vpop.eup %9863 }
 0x87c   : > { %v4207_v35 = vpack.c.bf16 %v4136_v61, %v4135_v26 }
 0x87d   : > { %v5071_v16 = vpop.permute.xlu0 %5070 }
 0x87e   : > { %8814 = vmatprep.mubr.bf16.mxu0 %v4207_v35 }
 0x888   : > { %3887 = vadd.xlane.f32.xlu1 %v13966_v55 }
 0x88c   : > { %3891 = vadd.xlane.f32.xlu1 %v13969_v13 }
 0x89d   : > { %5076 = vrot.lane.b32.xlu1 %v16297_v7, %s10159_s24 }
 0x8a1   : > { %9069 = vrot.lane.b32.xlu1 %v16300_v51, %s10163_s29  ;;  %v9306_v51 = vld [vmem:[%s10298_s20 + $0x8] sm:$0xff]   ;;  %s10165_s20 = smov 24  }
 0x8a2   : > { %8832 = vmatprep.subr.bf16.mxu1 %v9306_v51 }
 0x8a3   : > { %v3872_v58 = vpop.xlane.xlu1 %3871  ;;  %8833 = vmatpush3.bf16.msra.mxu1 %v9306_v51  ;;  %v9866_v51 = vpop.eup %9865 }
 0x8a4   : > { %9867 = vrcp.f32 %v3872_v58 }
 0x8a5   : > { %9074 = vrot.lane.b32.xlu1 %v16303_v53, %s10164_s30  ;;  %9869 = vrcp.f32 %v13948_v4 }
 0x8a6   : > { %9871 = vrcp.f32 %v3874_v30 }
 0x8a7   : > { %v3876_v24 = vpop.xlane.xlu1 %3875 }
 0x8a8   : > { %9873 = vrcp.f32 %v3876_v24  ;;  %v16304_v24 = vld [vmem:[#allocation105_spill] sm:$0xff] }
 0x8ab   : > { %v5069_v42 = vpop.permute.xlu1 %5068 }
 0x8ac   : > { %8804 = vmatprep.subr.bf16.mxu0 %v5069_v42 }
 0x8ad   : > { %8805 = vmatpush3.bf16.msra.mxu0 %v5069_v42 }
 0x8ae   : > { %8806 = vmatprep.subr.bf16.mxu0 %v5071_v16  ;;  %v3882_v57 = vpop.xlane.xlu0 %3881 }
 0x8b1   : > { %8807 = vmatpush3.bf16.msra.mxu0 %v5071_v16 }
 0x8b2   : > { %v13985_v56 = vpop.xlane.xlu0 %3885 }
 0x8b6   : > { %v5075_v2 = vpop.permute.xlu0 %5074 }
 0x8dc   : > { %v3880_v31 = vpop.xlane.xlu1 %3879 }
 0x8dd   : > { %9875 = vrcp.f32 %v3880_v31  ;;  %v16308_v31 = vld [vmem:[#allocation64_spill] sm:$0xff] }
 0x8de   : > { %9877 = vrcp.f32 %v13982_v59  ;;  %v16309_v18 = vpack.i.bf16 %v16307_v29, %v16308_v31  ;;  %v4138_v59 = vmul.f32 %v9866_v51, %v16310_v40  ;;  %v16313_v40 = vpack.i.bf16 %v13838_v41, %v13828_v17 }
 0x8df   : > { %v13987_v19 = vpop.f32.mrb[144].mxu0  ;;  %9879 = vrcp.f32 %v3882_v57 }
 0x8e0   : > { %v13989_v47 = vpop.xlane.xlu1 %3883  ;;  %v13991_v62 = vpop.f32.mrb[145].mxu0 }
 0x8e1   : > { %v13993_v44 = vpop.f32.mrb[146].mxu0  ;;  %9881 = vrcp.f32 %v13989_v47 }
 0x8e2   : > { %v13997_v5 = vpop.f32.mrb[147].mxu0 }
 0x8e4   : > { %v5073_v28 = vpop.permute.xlu1 %5072 }
 0x8e5   : > { %8808 = vmatprep.subr.bf16.mxu0 %v5073_v28 }
 0x8e6   : > { %8809 = vmatpush3.bf16.msra.mxu0 %v5073_v28 }
 0x8e7   : > { %v14001_v15 = vpop.f32.mrb[148].mxu0  ;;  %8810 = vmatprep.subr.bf16.mxu0 %v5075_v2 }
 0x8e8   : > { %v14003_v22 = vpop.f32.mrb[149].mxu0 }
 0x8e9   : > { %v14005_v25 = vpop.f32.mrb[150].mxu0 }
 0x8ea   : > { %v14009_v26 = vpop.f32.mrb[151].mxu0  ;;  %8811 = vmatpush3.bf16.msra.mxu0 %v5075_v2 }
 0x8ef   : > { %v14013_v61 = vpop.f32.mrb[152].mxu0 }
 0x8f0   : > { %v14015_v35 = vpop.f32.mrb[153].mxu0 }
 0x8f1   : > { %v14017_v39 = vpop.f32.mrb[154].mxu0 }
 0x8f2   : > { %v14021_v36 = vpop.f32.mrb[155].mxu0 }
 0x911   : > { %v8784_v43 = vpop.f32.mrb[96].mxu1 }
 0x912   : > { %v4999_v60 = vpop.f32.mrb[97].mxu1 }
 0x913   : > { %v8785_v53 = vpop.f32.mrb[98].mxu1 }
 0x914   : > { %v9088_v42 = vpack.i.bf16 %v8785_v53, %v8784_v43  ;;  %v14028_v16 = vpop.f32.mrb[156].mxu0  ;;  %v5002_v23 = vpop.f32.mrb[99].mxu1 }
 0x915   : > { %v9083_v28 = vpack.i.bf16 %v5002_v23, %v4999_v60  ;;  %v3888_v2 = vpop.xlane.xlu1 %3887  ;;  %v14030_v7 = vpop.f32.mrb[157].mxu0 }
 0x916   : > { %9089 = vrot.lane.b32.xlu0 %v9088_v42, %s10165_s20  ;;  %v14033_v38 = vpop.f32.mrb[158].mxu0  ;;  %v9868_v53 = vpop.eup %9867  ;;  %v16305_v42 = vld [vmem:[#allocation113_spill] sm:$0xff]  ;;  %9883 = vrcp.f32 %v3888_v2 }
 0x917   : > { %9084 = vrot.lane.b32.xlu1 %v9083_v28, %s10165_s20  ;;  %v14038_v30 = vpop.f32.mrb[159].mxu0  ;;  %v16306_v23 = vpack.i.bf16 %v16304_v24, %v16305_v42  ;;  %v9870_v28 = vpop.eup %9869  ;;  %v4139_v11 = vmul.f32 %v9868_v53, %v13864_v52  ;;  %v16312_v42 = vpack.i.bf16 %v13832_v49, %v13825_v46  ;;  %9885 = vrcp.f32 %v13985_v56  ;;  %v16315_v53 = vld [vmem:[#allocation60_spill] sm:$0xff] }
 0x918   : > { %v9872_v54 = vpop.eup %9871  ;;  %v4137_v24 = vmul.f32 %v9870_v28, %v16311_v1  ;;  %v16318_v28 = vld [vmem:[#allocation43_spill] sm:$0xff] }
 0x919   : > { %v3892_v43 = vpop.xlane.xlu1 %3891  ;;  %v8788_v60 = vpop.f32.mrb[100].mxu1 }
 0x91a   : > { %9099 = vrot.lane.b32.xlu0 %v16306_v23, %s10163_s29  ;;  %v5015_v4 = vpop.f32.mrb[101].mxu1  ;;  %v4208_v52 = vpack.c.bf16 %v4138_v59, %v4137_v24  ;;  %v9874_v1 = vpop.eup %9873  ;;  %v16316_v23 = vld [vmem:[#allocation173_spill] sm:$0xff]  ;;  %v16320_v59 = vld [vmem:[#allocation62_spill] sm:$0xff] }
 0x91b   : > { %9094 = vrot.lane.b32.xlu1 %v16309_v18, %s10163_s29  ;;  %v8789_v58 = vpop.f32.mrb[102].mxu1  ;;  %v3890_v18 = vpop.xlane.xlu0 %3889  ;;  %v4141_v51 = vmul.f32 %v9874_v1, %v13879_v34 }
 0x91c   : > { %v9118_v63 = vpack.i.bf16 %v8789_v58, %v8788_v60  ;;  %v5018_v20 = vpop.f32.mrb[103].mxu1  ;;  %v9876_v46 = vpop.eup %9875  ;;  %9887 = vrcp.f32 %v3890_v18 }
 0x91d   : > { %v9113_v37 = vpack.i.bf16 %v5018_v20, %v5015_v4  ;;  %v5077_v57 = vpop.permute.xlu1 %5076  ;;  %v16314_v20 = vld [vmem:[#allocation10_spill] sm:$0xff]  ;;  %v9878_v58 = vpop.eup %9877  ;;  %v4143_v56 = vmul.f32 %v9876_v46, %v13932_v6  ;;  %9889 = vrcp.f32 %v3892_v43 }
 0x91e   : > { %9109 = vrot.lane.b32.xlu0 %v16312_v42, %s10164_s30  ;;  %8812 = vmatprep.subr.bf16.mxu0 %v5077_v57  ;;  %v4140_v29 = vmul.f32 %v9872_v54, %v16314_v20  ;;  %v9880_v41 = vpop.eup %9879  ;;  %v4142_v31 = vmul.f32 %v9878_v58, %v16318_v28  ;;  %v16322_v20 = vpack.i.bf16 %v13851_v50, %v13844_v21 }
 0x91f   : > { %9104 = vrot.lane.b32.xlu1 %v16313_v40, %s10164_s30  ;;  %8813 = vmatpush3.bf16.msra.mxu0 %v5077_v57  ;;  %v4144_v24 = vmul.f32 %v9880_v41, %v13884_v48  ;;  %v9882_v42 = vpop.eup %9881  ;;  %v16324_v41 = vld [vmem:[#allocation56_spill] sm:$0xff] }
 0x920   : > { %v4209_v49 = vpack.c.bf16 %v4140_v29, %v4139_v11  ;;  %v3894_v11 = vpop.xlane.xlu0 %3893  ;;  %v4210_v34 = vpack.c.bf16 %v4142_v31, %v4141_v51  ;;  %v9884_v40 = vpop.eup %9883  ;;  %v4145_v46 = vmul.f32 %v9882_v42, %v13936_v10 }
 0x921   : > { %v8792_v4 = vpop.f32.mrb[104].mxu1  ;;  %9891 = vrcp.f32 %v3894_v11  ;;  %v4211_v18 = vpack.c.bf16 %v4144_v24, %v4143_v56  ;;  %v9886_v43 = vpop.eup %9885  ;;  %v4147_v58 = vmul.f32 %v9884_v40, %v13966_v55  ;;  %v16327_v55 = vld [vmem:[#allocation107_spill] sm:$0xff]  ;;  %v16328_v56 = vld [vmem:[#allocation14_spill] sm:$0xff]  ;;  %v16331_v11 = vpack.i.bf16 %v13876_v33, %v13869_v9  ;;  %v16341_v40 = vld [vmem:[#allocation125_spill] sm:$0xff] }
 0x922   : > { %9119 = vrot.lane.b32.xlu0 %v9118_v63, %s10165_s20  ;;  %v5031_v47 = vpop.f32.mrb[105].mxu1  ;;  %8815 = vmatmul.mubr.bf16.vlgmr.msra.gmra.mrb[160].mxu0 %v4208_v52  ;;  %v16317_v63 = vpack.i.bf16 %v16315_v53, %v16316_v23  ;;  %v16323_v52 = vpack.i.bf16 %v13856_v12, %v13848_v27  ;;  %v4146_v21 = vmul.f32 %v9886_v43, %v13887_v3  ;;  %v16333_v23 = vld [vmem:[#allocation63_spill] sm:$0xff]  ;;  %v9070_v31 = vpop.permute.xlu1 %9069  ;;  %v16342_v43 = vld [vmem:[#allocation12_spill] sm:$0xff] }
 0x923   : > { %9114 = vrot.lane.b32.xlu1 %v9113_v37, %s10165_s20  ;;  %v8793_v17 = vpop.f32.mrb[106].mxu1  ;;  %8818 = vmatprep.mubr.bf16.mxu0 %v4209_v49  ;;  %v16319_v37 = vld [vmem:[#allocation58_spill] sm:$0xff]  ;;  %v16338_v9 = vpack.i.bf16 %v13993_v44, %v13987_v19  ;;  %v16339_v33 = vpack.i.bf16 %v13997_v5, %v13991_v62 }
 0x924   : > { %v9148_v54 = vpack.i.bf16 %v8793_v17, %v8792_v4  ;;  %v5034_v2 = vpop.f32.mrb[107].mxu1  ;;  %v16321_v57 = vpack.i.bf16 %v16319_v37, %v16320_v59  ;;  %v4212_v27 = vpack.c.bf16 %v4146_v21, %v4145_v46  ;;  %v9065_v28 = vpop.permute.xlu0 %9064  ;;  %v9072_v37 = vunpack.i.h.bf16 %v9070_v31 }
 0x925   : > { %v9143_v60 = vpack.i.bf16 %v5034_v2, %v5031_v47  ;;  %v16325_v2 = vld [vmem:[#allocation61_spill] sm:$0xff]  ;;  %v9071_v59 = vunpack.i.l.bf16 %v9070_v31  ;;  %v9066_v42 = vunpack.i.l.bf16 %v9065_v28 }
 0x926   : > { %9129 = vrot.lane.b32.xlu0 %v16317_v63, %s10163_s29  ;;  %v9888_v1 = vpop.eup %9887  ;;  %v16326_v51 = vpack.i.bf16 %v16324_v41, %v16325_v2  ;;  %v9075_v24 = vpop.permute.xlu1 %9074 }
 0x927   : > { %9124 = vrot.lane.b32.xlu1 %v16321_v57, %s10163_s29  ;;  %v4148_v50 = vmul.f32 %v9888_v1, %v13940_v8  ;;  %v9890_v12 = vpop.eup %9889  ;;  %v16330_v8 = vpack.i.bf16 %v13872_v32, %v13866_v45  ;;  %v16335_v45 = vld [vmem:[#allocation157_spill] sm:$0xff]  ;;  %v5569_v19 = vsel %vm1726_vm2, %v16341_v40, %v9071_v59  ;;  %v9077_v44 = vunpack.i.h.bf16 %v9075_v24 }
 0x928   : > { %v4149_v3 = vmul.f32 %v9890_v12, %v13969_v13  ;;  %v16332_v13 = vld [vmem:[#allocation32_spill] sm:$0xff]  ;;  %v16336_v32 = vld [vmem:[#allocation25_spill] sm:$0xff]  ;;  %v9080_v57 = vpop.permute.xlu0 %9079 }
 0x929   : > { %v8796_v6 = vpop.f32.mrb[108].mxu1  ;;  %v4213_v17 = vpack.c.bf16 %v4148_v50, %v4147_v58  ;;  %v16334_v63 = vpack.i.bf16 %v16332_v13, %v16333_v23  ;;  %v9081_v62 = vunpack.i.l.bf16 %v9080_v57 }
 0x92a   : > { %9139 = vrot.lane.b32.xlu0 %v16322_v20, %s10164_s30  ;;  %v5047_v29 = vpop.f32.mrb[109].mxu1  ;;  %8819 = vmatmul.mubr.bf16.gmra.mrb[164].mxu0 %v4210_v34  ;;  %v9067_v34 = vunpack.i.h.bf16 %v9065_v28  ;;  %v9076_v20 = vunpack.i.l.bf16 %v9075_v24 }
 0x92b   : > { %9134 = vrot.lane.b32.xlu1 %v16323_v52, %s10164_s30  ;;  %v8797_v48 = vpop.f32.mrb[110].mxu1  ;;  %8822 = vmatprep.mubr.bf16.mxu0 %v4211_v18  ;;  %v9892_v10 = vpop.eup %9891 }
 0x92c   : > { %v9178_v4 = vpack.i.bf16 %v8797_v48, %v8796_v6  ;;  %v5050_v49 = vpop.f32.mrb[111].mxu1  ;;  %v16340_v6 = vld [vmem:[#allocation67_spill] sm:$0xff]  ;;  %v5568_v52 = vsel %vm1726_vm2, %v16342_v43, %v9067_v34  ;;  %v16343_v48 = vld [vmem:[#allocation141_spill] sm:$0xff] }
 0x92d   : > { %v9173_v47 = vpack.i.bf16 %v5050_v49, %v5047_v29  ;;  %v5570_v18 = vsel %vm1726_vm2, %v16340_v6, %v9072_v37  ;;  %v9082_v29 = vunpack.i.h.bf16 %v9080_v57  ;;  %v5567_v1 = vsel %vm1726_vm2, %v16343_v48, %v9066_v42  ;;  %v16346_v37 = vld [vmem:[#allocation117_spill] sm:$0xff]  ;;  %v16347_v57 = vld [vmem:[#allocation86_spill] sm:$0xff] }
 0x92e   : > { %9149 = vrot.lane.b32.xlu0 %v9148_v54, %s10165_s20  ;;  %v16329_v54 = vpack.i.bf16 %v16327_v55, %v16328_v56  ;;  %v5601_v12 = vsel %vm5599_vm5, %v5568_v52, %v9077_v44 }
 0x92f   : > { %9144 = vrot.lane.b32.xlu1 %v9143_v60, %s10165_s20  ;;  %v4150_v60 = vmul.f32 %v9892_v10, %v13943_v0  ;;  %v16337_v0 = vpack.i.bf16 %v16335_v45, %v16336_v32  ;;  %v5603_v58 = vsel %vm5599_vm5, %v5570_v18, %v9082_v29 }
 0x931   : > { %v4214_v53 = vpack.c.bf16 %v4150_v60, %v4149_v3 }
 0x932   : > { %9159 = vrot.lane.b32.xlu0 %v16326_v51, %s10163_s29  ;;  %8823 = vmatmul.mubr.bf16.gmra.mrb[168].mxu0 %v4212_v27  ;;  %v5600_v27 = vsel %vm5599_vm5, %v5567_v1, %v9076_v20 }
 0x933   : > { %9154 = vrot.lane.b32.xlu1 %v16329_v54, %s10163_s29  ;;  %8826 = vmatprep.mubr.bf16.mxu0 %v4213_v17 }
 0x936   : > { %9169 = vrot.lane.b32.xlu0 %v16330_v8, %s10164_s30 }
 0x937   : > { %9164 = vrot.lane.b32.xlu1 %v16331_v11, %s10164_s30 }
 0x93a   : > { %9179 = vrot.lane.b32.xlu0 %v9178_v4, %s10165_s20  ;;  %8827 = vmatmul.mubr.bf16.gmra.mrb[172].mxu0 %v4214_v53 }
 0x93b   : > { %9174 = vrot.lane.b32.xlu1 %v9173_v47, %s10165_s20  ;;  %v5602_v47 = vsel %vm5599_vm5, %v5569_v19, %v9081_v62 }
 0x93e   : > { %9189 = vrot.lane.b32.xlu0 %v16334_v63, %s10163_s29 }
 0x93f   : > { %9184 = vrot.lane.b32.xlu1 %v16337_v0, %s10163_s29  ;;  %v16344_v0 = vld [vmem:[#allocation166_spill] sm:$0xff] }
 0x942   : > { %9199 = vrot.lane.b32.xlu0 %v16338_v9, %s10164_s30 }
 0x943   : > { %9194 = vrot.lane.b32.xlu1 %v16339_v33, %s10164_s30  ;;  %v16345_v33 = vld [vmem:[#allocation163_spill] sm:$0xff] }
 0x988   : > { %v9090_v5 = vpop.permute.xlu0 %9089 }
 0x989   : > { %v9092_v4 = vunpack.i.h.bf16 %v9090_v5  ;;  %v9091_v49 = vunpack.i.l.bf16 %v9090_v5  ;;  %v9085_v46 = vpop.permute.xlu1 %9084 }
 0x98a   : > { %v9087_v21 = vunpack.i.h.bf16 %v9085_v46  ;;  %v9086_v50 = vunpack.i.l.bf16 %v9085_v46 }
 0x98b   : > { %v5635_v17 = vsel %vm5632_vm6, %v5602_v47, %v9091_v49  ;;  %v5636_v41 = vsel %vm5632_vm6, %v5603_v58, %v9092_v4 }
 0x98c   : > { %v5666_v2 = vpack.c.bf16 %v5636_v41, %v5635_v17  ;;  %v5633_v51 = vsel %vm5632_vm6, %v5600_v27, %v9086_v50  ;;  %v5634_v10 = vsel %vm5632_vm6, %v5601_v12, %v9087_v21  ;;  %v9100_v55 = vpop.permute.xlu0 %9099 }
 0x98d   : > { %v9095_v56 = vpop.permute.xlu1 %9094  ;;  %v5665_v54 = vpack.c.bf16 %v5634_v10, %v5633_v51  ;;  %v9102_v3 = vunpack.i.h.bf16 %v9100_v55  ;;  %v9101_v8 = vunpack.i.l.bf16 %v9100_v55  ;;  %v16348_v51 = vld [vmem:[#allocation127_spill] sm:$0xff]  ;;  %v16349_v55 = vld [vmem:[#allocation37_spill] sm:$0xff] }
 0x98e   : > { %v9097_v11 = vunpack.i.h.bf16 %v9095_v56  ;;  %v9096_v53 = vunpack.i.l.bf16 %v9095_v56 }
 0x98f   : > { %8834 = vmatprep.mubr.msk.bf16.mxu1 %vm840_vm1, %v5665_v54  ;;  %v5574_v9 = vsel %vm1726_vm2, %v16344_v0, %v9102_v3  ;;  %v5573_v28 = vsel %vm1726_vm2, %v16345_v33, %v9101_v8  ;;  %v16350_v3 = vld [vmem:[#allocation19_spill] sm:$0xff] }
 0x990   : > { %v9110_v60 = vpop.permute.xlu0 %9109  ;;  %8835 = vmatmul.mubr.msk.bf16.vlgmr.msra.gmra.mrb[112].mxu1 %vm840_vm1, %v5666_v2  ;;  %v5572_v59 = vsel %vm1726_vm2, %v16346_v37, %v9097_v11  ;;  %v5571_v24 = vsel %vm1726_vm2, %v16347_v57, %v9096_v53 }
 0x991   : > { %v9105_v13 = vpop.permute.xlu1 %9104  ;;  %v9112_v23 = vunpack.i.h.bf16 %v9110_v60  ;;  %v9111_v63 = vunpack.i.l.bf16 %v9110_v60  ;;  %v16351_v60 = vld [vmem:[#allocation121_spill] sm:$0xff] }
 0x992   : > { %v9107_v45 = vunpack.i.h.bf16 %v9105_v13  ;;  %v9106_v32 = vunpack.i.l.bf16 %v9105_v13 }
 0x993   : > { %v5606_v18 = vsel %vm5599_vm5, %v5573_v28, %v9111_v63  ;;  %v5607_v40 = vsel %vm5599_vm5, %v5574_v9, %v9112_v23 }
 0x994   : > { %v9120_v31 = vpop.permute.xlu0 %9119  ;;  %v5604_v20 = vsel %vm5599_vm5, %v5571_v24, %v9106_v32  ;;  %v5605_v29 = vsel %vm5599_vm5, %v5572_v59, %v9107_v45 }
 0x995   : > { %v9122_v34 = vunpack.i.h.bf16 %v9120_v31  ;;  %v9121_v42 = vunpack.i.l.bf16 %v9120_v31  ;;  %v9115_v6 = vpop.permute.xlu1 %9114 }
 0x996   : > { %v9117_v19 = vunpack.i.h.bf16 %v9115_v6  ;;  %v9116_v44 = vunpack.i.l.bf16 %v9115_v6 }
 0x997   : > { %v5639_v62 = vsel %vm5632_vm6, %v5606_v18, %v9121_v42  ;;  %v5640_v5 = vsel %vm5632_vm6, %v5607_v40, %v9122_v34 }
 0x998   : > { %v5638_v43 = vsel %vm5632_vm6, %v5605_v29, %v9117_v19  ;;  %v5637_v52 = vsel %vm5632_vm6, %v5604_v20, %v9116_v44  ;;  %v9130_v48 = vpop.permute.xlu0 %9129  ;;  %v5668_v1 = vpack.c.bf16 %v5640_v5, %v5639_v62 }
 0x999   : > { %v9125_v4 = vpop.permute.xlu1 %9124  ;;  %v5667_v49 = vpack.c.bf16 %v5638_v43, %v5637_v52  ;;  %v9132_v46 = vunpack.i.h.bf16 %v9130_v48  ;;  %v9131_v47 = vunpack.i.l.bf16 %v9130_v48  ;;  %v16352_v52 = vld [vmem:[#allocation129_spill] sm:$0xff] }
 0x99a   : > { %v9127_v21 = vunpack.i.h.bf16 %v9125_v4  ;;  %v9126_v50 = vunpack.i.l.bf16 %v9125_v4 }
 0x99b   : > { %8838 = vmatprep.mubr.msk.bf16.mxu1 %vm840_vm1, %v5667_v49  ;;  %v5578_v10 = vsel %vm1726_vm2, %v16348_v51, %v9132_v46  ;;  %v5577_v56 = vsel %vm1726_vm2, %v16349_v55, %v9131_v47  ;;  %v16354_v46 = vld [vmem:[#allocation130_spill] sm:$0xff] }
 0x99c   : > { %v9140_v58 = vpop.permute.xlu0 %9139  ;;  %8839 = vmatmul.mubr.msk.bf16.gmra.mrb[116].mxu1 %vm840_vm1, %v5668_v1  ;;  %v5576_v8 = vsel %vm1726_vm2, %v16350_v3, %v9127_v21  ;;  %v5575_v11 = vsel %vm1726_vm2, %v16351_v60, %v9126_v50  ;;  %v16353_v1 = vld [vmem:[#allocation150_spill] sm:$0xff] }
 0x99d   : > { %v9135_v27 = vpop.permute.xlu1 %9134  ;;  %v9142_v12 = vunpack.i.h.bf16 %v9140_v58  ;;  %v9141_v17 = vunpack.i.l.bf16 %v9140_v58  ;;  %v16355_v58 = vld [vmem:[#allocation133_spill] sm:$0xff] }
 0x99e   : > { %v9137_v41 = vunpack.i.h.bf16 %v9135_v27  ;;  %v9136_v2 = vunpack.i.l.bf16 %v9135_v27 }
 0x99f   : > { %v5610_v63 = vsel %vm5599_vm5, %v5577_v56, %v9141_v17  ;;  %v5611_v45 = vsel %vm5599_vm5, %v5578_v10, %v9142_v12 }
 0x9a0   : > { %v9150_v54 = vpop.permute.xlu0 %9149  ;;  %v5608_v9 = vsel %vm5599_vm5, %v5575_v11, %v9136_v2  ;;  %v5609_v33 = vsel %vm5599_vm5, %v5576_v8, %v9137_v41 }
 0x9a1   : > { %v9152_v53 = vunpack.i.h.bf16 %v9150_v54  ;;  %v9151_v13 = vunpack.i.l.bf16 %v9150_v54  ;;  %v9145_v23 = vpop.permute.xlu1 %9144 }
 0x9a2   : > { %v9147_v32 = vunpack.i.h.bf16 %v9145_v23  ;;  %v9146_v0 = vunpack.i.l.bf16 %v9145_v23 }
 0x9a3   : > { %v5643_v28 = vsel %vm5632_vm6, %v5610_v63, %v9151_v13  ;;  %v5644_v31 = vsel %vm5632_vm6, %v5611_v45, %v9152_v53 }
 0x9a4   : > { %v5670_v37 = vpack.c.bf16 %v5644_v31, %v5643_v28  ;;  %v5642_v59 = vsel %vm5632_vm6, %v5609_v33, %v9147_v32  ;;  %v5641_v57 = vsel %vm5632_vm6, %v5608_v9, %v9146_v0  ;;  %v9160_v24 = vpop.permute.xlu0 %9159  ;;  %v16356_v9 = vld [vmem:[#allocation22_spill] sm:$0xff]  ;;  %v16357_v33 = vld [vmem:[#allocation27_spill] sm:$0xff] }
 0x9a5   : > { %v5669_v34 = vpack.c.bf16 %v5642_v59, %v5641_v57  ;;  %v9155_v42 = vpop.permute.xlu1 %9154  ;;  %v9162_v6 = vunpack.i.h.bf16 %v9160_v24  ;;  %v9161_v18 = vunpack.i.l.bf16 %v9160_v24  ;;  %v16358_v28 = vpack.i.bf16 %v16356_v9, %v16357_v33  ;;  %v16360_v59 = vld [vmem:[#allocation154_spill] sm:$0xff] }
 0x9a6   : > { %v9157_v19 = vunpack.i.h.bf16 %v9155_v42  ;;  %v9156_v44 = vunpack.i.l.bf16 %v9155_v42 }
 0x9a7   : > { %8842 = vmatprep.mubr.msk.bf16.mxu1 %vm840_vm1, %v5669_v34  ;;  %v5582_v48 = vsel %vm1726_vm2, %v16352_v52, %v9162_v6  ;;  %v5581_v4 = vsel %vm1726_vm2, %v16353_v1, %v9161_v18  ;;  %v16362_v18 = vpack.i.bf16 %v14005_v25, %v14001_v15  ;;  %v16365_v52 = vld [vmem:[#allocation152_spill] sm:$0xff]  ;;  %v16367_v25 = vld [vmem:[#allocation93_spill] sm:$0xff]  ;;  %v16370_v1 = vpack.i.bf16 %v14017_v39, %v14013_v61  ;;  %v16375_v39 = vld [vmem:[#allocation159_spill] sm:$0xff] }
 0x9a8   : > { %v9170_v40 = vpop.permute.xlu0 %9169  ;;  %8843 = vmatmul.mubr.msk.bf16.gmra.mrb[120].mxu1 %vm840_vm1, %v5670_v37  ;;  %v5580_v47 = vsel %vm1726_vm2, %v16354_v46, %v9157_v19  ;;  %v5579_v21 = vsel %vm1726_vm2, %v16355_v58, %v9156_v44  ;;  %v16359_v37 = vld [vmem:[#allocation135_spill] sm:$0xff] }
 0x9a9   : > { %v9165_v20 = vpop.permute.xlu1 %9164  ;;  %v9172_v29 = vunpack.i.h.bf16 %v9170_v40  ;;  %v9171_v62 = vunpack.i.l.bf16 %v9170_v40  ;;  %v16361_v57 = vpack.i.bf16 %v16359_v37, %v16360_v59  ;;  %v16363_v40 = vpack.i.bf16 %v14009_v26, %v14003_v22  ;;  %v10088_v37 = vld [vmem:[#allocation2 + $0x10] sm:$0xff] }
 0x9aa   : > { %v9167_v5 = vunpack.i.h.bf16 %v9165_v20  ;;  %v9166_v43 = vunpack.i.l.bf16 %v9165_v20 }
 0x9ab   : > { %v5614_v17 = vsel %vm5599_vm5, %v5581_v4, %v9171_v62  ;;  %v5615_v41 = vsel %vm5599_vm5, %v5582_v48, %v9172_v29  ;;  %v16368_v48 = vld [vmem:[#allocation142_spill] sm:$0xff] }
 0x9ac   : > { %v9180_v49 = vpop.permute.xlu0 %9179  ;;  %v5612_v10 = vsel %vm5599_vm5, %v5579_v21, %v9166_v43  ;;  %v5613_v55 = vsel %vm5599_vm5, %v5580_v47, %v9167_v5  ;;  %v16364_v43 = vld [vmem:[#allocation169_spill] sm:$0xff]  ;;  %v16369_v22 = vpack.i.bf16 %v16367_v25, %v16368_v48 }
 0x9ad   : > { %v9182_v50 = vunpack.i.h.bf16 %v9180_v49  ;;  %v9181_v27 = vunpack.i.l.bf16 %v9180_v49  ;;  %v9175_v12 = vpop.permute.xlu1 %9174  ;;  %v16366_v15 = vpack.i.bf16 %v16364_v43, %v16365_v52  ;;  %v16371_v49 = vpack.i.bf16 %v14021_v36, %v14015_v35 }
 0x9ae   : > { %v9177_v2 = vunpack.i.h.bf16 %v9175_v12  ;;  %v9176_v51 = vunpack.i.l.bf16 %v9175_v12  ;;  %v16376_v12 = vpack.i.bf16 %v13818_v14, %v16375_v39  ;;  %v16377_v35 = vpack.i.bf16 %v14033_v38, %v14028_v16  ;;  %v14262_v14 = vld [vmem:[%s16379_s1] ss:$0 sm:$0xff] }
 0x9af   : > { %v5647_v56 = vsel %vm5632_vm6, %v5614_v17, %v9181_v27  ;;  %v5648_v54 = vsel %vm5632_vm6, %v5615_v41, %v9182_v50  ;;  %v16372_v50 = vld [vmem:[#allocation50_spill] sm:$0xff]  ;;  %v16373_v27 = vld [vmem:[#allocation79_spill] sm:$0xff]  ;;  %v16378_v36 = vpack.i.bf16 %v14038_v30, %v14030_v7 }
 0x9b0   : > { %v5672_v3 = vpack.c.bf16 %v5648_v54, %v5647_v56  ;;  %v5646_v8 = vsel %vm5632_vm6, %v5613_v55, %v9177_v2  ;;  %v5645_v60 = vsel %vm5632_vm6, %v5612_v10, %v9176_v51  ;;  %v16374_v61 = vpack.i.bf16 %v16372_v50, %v16373_v27  ;;  %v9190_v17 = vpop.permute.xlu0 %9189  ;;  %v10085_v54 = vld [vmem:[#allocation2] sm:$0xff] }
 0x9b1   : > { %v5671_v11 = vpack.c.bf16 %v5646_v8, %v5645_v60  ;;  %v9185_v41 = vpop.permute.xlu1 %9184  ;;  %v9192_v60 = vunpack.i.h.bf16 %v9190_v17 }
 0x9b3   : > { %8846 = vmatprep.mubr.msk.bf16.mxu1 %vm840_vm1, %v5671_v11  ;;  %v9191_v11 = vunpack.i.l.bf16 %v9190_v17 }
 0x9b4   : > { %8847 = vmatmul.mubr.msk.bf16.gmra.mrb[124].mxu1 %vm840_vm1, %v5672_v3  ;;  %v9200_v10 = vpop.permute.xlu0 %9199 }
 0x9b5   : > { %v9195_v55 = vpop.permute.xlu1 %9194  ;;  %v9202_v33 = vunpack.i.h.bf16 %v9200_v10 }
 0x9f5   : > { %v8816_v53 = vpop.f32.mrb[160].mxu0 }
 0x9f6   : > { %v5120_v13 = vpop.f32.mrb[161].mxu0 }
 0x9f7   : > { %v8817_v23 = vpop.f32.mrb[162].mxu0 }
 0x9f8   : > { %v9208_v63 = vpack.i.bf16 %v8817_v23, %v8816_v53  ;;  %v5123_v45 = vpop.f32.mrb[163].mxu0  ;;  %v9187_v53 = vunpack.i.h.bf16 %v9185_v41  ;;  %v9201_v23 = vunpack.i.l.bf16 %v9200_v10 }
 0x9f9   : > { %v9203_v32 = vpack.i.bf16 %v5123_v45, %v5120_v13  ;;  %v9186_v13 = vunpack.i.l.bf16 %v9185_v41 }
 0x9fa   : > { %9209 = vrot.lane.b32.xlu0 %v9208_v63, %s10165_s20  ;;  %v10086_v63 = vld [vmem:[#allocation2 + $0x18] sm:$0xff] }
 0x9fb   : > { %9204 = vrot.lane.b32.xlu1 %v9203_v32, %s10165_s20  ;;  %v10087_v32 = vld [vmem:[#allocation2 + $0x8] sm:$0xff] }
 0x9fd   : > { %v8820_v0 = vpop.f32.mrb[164].mxu0 }
 0x9fe   : > { %9219 = vrot.lane.b32.xlu0 %v16358_v28, %s10163_s29  ;;  %v5136_v31 = vpop.f32.mrb[165].mxu0  ;;  %v9197_v28 = vunpack.i.h.bf16 %v9195_v55 }
 0x9ff   : > { %9214 = vrot.lane.b32.xlu1 %v16361_v57, %s10163_s29  ;;  %v8821_v24 = vpop.f32.mrb[166].mxu0 }
 0xa00   : > { %v9238_v34 = vpack.i.bf16 %v8821_v24, %v8820_v0  ;;  %v5139_v42 = vpop.f32.mrb[167].mxu0  ;;  %v16380_v24 = vld [vmem:[#allocation122_spill] sm:$0xff] }
 0xa01   : > { %v9233_v6 = vpack.i.bf16 %v5139_v42, %v5136_v31  ;;  %v9196_v31 = vunpack.i.l.bf16 %v9195_v55  ;;  %v16381_v42 = vld [vmem:[#allocation72_spill] sm:$0xff] }
 0xa02   : > { %9229 = vrot.lane.b32.xlu0 %v16362_v18, %s10164_s30  ;;  %v16382_v18 = vld [vmem:[#allocation170_spill] sm:$0xff] }
 0xa03   : > { %9224 = vrot.lane.b32.xlu1 %v16363_v40, %s10164_s30  ;;  %v5584_v40 = vsel %vm1726_vm2, %v16382_v18, %v9187_v53 }
 0xa04   : > { %v5617_v25 = vsel %vm5599_vm5, %v5584_v40, %v9197_v28 }
 0xa05   : > { %v8824_v19 = vpop.f32.mrb[168].mxu0 }
 0xa06   : > { %9239 = vrot.lane.b32.xlu0 %v9238_v34, %s10165_s20  ;;  %v5152_v44 = vpop.f32.mrb[169].mxu0  ;;  %v5586_v34 = vsel %vm1726_vm2, %v16380_v24, %v9192_v60 }
 0xa07   : > { %9234 = vrot.lane.b32.xlu1 %v9233_v6, %s10165_s20  ;;  %v8825_v20 = vpop.f32.mrb[170].mxu0  ;;  %v5585_v6 = vsel %vm1726_vm2, %v16381_v42, %v9191_v11  ;;  %v10092_v11 = vld [vmem:[#allocation2 + $0x28] sm:$0xff] }
 0xa08   : > { %v9268_v29 = vpack.i.bf16 %v8825_v20, %v8824_v19  ;;  %v5155_v62 = vpop.f32.mrb[171].mxu0  ;;  %v16383_v19 = vld [vmem:[#allocation102_spill] sm:$0xff] }
 0xa09   : > { %v9263_v5 = vpack.i.bf16 %v5155_v62, %v5152_v44  ;;  %v5583_v44 = vsel %vm1726_vm2, %v16383_v19, %v9186_v13 }
 0xa0a   : > { %9249 = vrot.lane.b32.xlu0 %v16366_v15, %s10163_s29  ;;  %v5619_v15 = vsel %vm5599_vm5, %v5586_v34, %v9202_v33  ;;  %v16386_v34 = vld [vmem:[#allocation120_spill] sm:$0xff] }
 0xa0b   : > { %9244 = vrot.lane.b32.xlu1 %v16369_v22, %s10163_s29 }
 0xa0d   : > { %v8828_v26 = vpop.f32.mrb[172].mxu0 }
 0xa0e   : > { %9259 = vrot.lane.b32.xlu0 %v16370_v1, %s10164_s30  ;;  %v5168_v4 = vpop.f32.mrb[173].mxu0 }
 0xa0f   : > { %9254 = vrot.lane.b32.xlu1 %v16371_v49, %s10164_s30  ;;  %v8829_v46 = vpop.f32.mrb[174].mxu0 }
 0xa10   : > { %v9298_v47 = vpack.i.bf16 %v8829_v46, %v8828_v26  ;;  %v5171_v58 = vpop.f32.mrb[175].mxu0  ;;  %v5616_v26 = vsel %vm5599_vm5, %v5583_v44, %v9196_v31  ;;  %v16384_v31 = vld [vmem:[#allocation138_spill] sm:$0xff] }
 0xa11   : > { %v9293_v21 = vpack.i.bf16 %v5171_v58, %v5168_v4 }
 0xa12   : > { %9269 = vrot.lane.b32.xlu0 %v9268_v29, %s10165_s20  ;;  %v5618_v29 = vsel %vm5599_vm5, %v5585_v6, %v9201_v23  ;;  %v16387_v6 = vld [vmem:[#allocation164_spill] sm:$0xff] }
 0xa13   : > { %9264 = vrot.lane.b32.xlu1 %v9263_v5, %s10165_s20 }
 0xa16   : > { %9279 = vrot.lane.b32.xlu0 %v16374_v61, %s10163_s29 }
 0xa17   : > { %9274 = vrot.lane.b32.xlu1 %v16376_v12, %s10163_s29 }
 0xa1a   : > { %9289 = vrot.lane.b32.xlu0 %v16377_v35, %s10164_s30 }
 0xa1b   : > { %9284 = vrot.lane.b32.xlu1 %v16378_v36, %s10164_s30 }
 0xa1e   : > { %9299 = vrot.lane.b32.xlu0 %v9298_v47, %s10165_s20 }
 0xa1f   : > { %9294 = vrot.lane.b32.xlu1 %v9293_v21, %s10165_s20 }
 0xa63   : > { %v8836_v2 = vpop.f32.mrb[112].mxu1 }
 0xa64   : > { %v5786_v16 = vpop.f32.mrb[113].mxu1  ;;  %v5795_v56 = vadd.f32 %v8836_v2, %v14262_v14  ;;  %v10089_v2 = vld [vmem:[#allocation2 + $0x20] sm:$0xff] }
 0xa65   : > { %v5787_v38 = vadd.f32 %v14262_v14, %v5786_v16  ;;  %v8837_v51 = vpop.f32.mrb[114].mxu1 }
 0xa66   : > { %v5798_v7 = vadd.f32 %v8837_v51, %v14262_v14  ;;  %v5789_v30 = vpop.f32.mrb[115].mxu1  ;;  %v14276_v59 = vadd.f32 %v10088_v37, %v5795_v56  ;;  %v10090_v56 = vld [vmem:[#allocation2 + $0x30] sm:$0xff] }
 0xa67   : > { %v14267_v3 = vadd.f32 %v10085_v54, %v5787_v38  ;;  %v5790_v8 = vadd.f32 %v14262_v14, %v5789_v30 }
 0xa68   : > { %v14270_v45 = vadd.f32 %v10086_v63, %v5798_v7  ;;  %v5953_v46 = vsel %vm840_vm1, %v14276_v59, 0.0 }
 0xa69   : > { %v14272_v0 = vadd.f32 %v10087_v32, %v5790_v8  ;;  %v5947_v9 = vsel %vm840_vm1, %v14267_v3, 0.0  ;;  %v10091_v8 = vld [vmem:[#allocation2 + $0x38] sm:$0xff] }
 0xa6a   : > { %5948 = vadd.xlane.f32.xlu1 %v5947_v9  ;;  %v5956_v52 = vsel %vm840_vm1, %v14270_v45, 0.0 }
 0xa6b   : > { %v5950_v57 = vsel %vm840_vm1, %v14272_v0, 0.0 }
 0xa6c   : > { %v9210_v20 = vpop.permute.xlu0 %9209  ;;  %5951 = vadd.xlane.f32.xlu0 %v5950_v57  ;;  %v16385_v57 = vld [vmem:[#allocation89_spill] sm:$0xff] }
 0xa6d   : > { %v9212_v62 = vunpack.i.h.bf16 %v9210_v20  ;;  %v9211_v5 = vunpack.i.l.bf16 %v9210_v20  ;;  %v9205_v43 = vpop.permute.xlu1 %9204 }
 0xa6e   : > { %v9207_v48 = vunpack.i.h.bf16 %v9205_v43  ;;  %v9206_v22 = vunpack.i.l.bf16 %v9205_v43  ;;  %5957 = vadd.xlane.f32.xlu1 %v5956_v52 }
 0xa6f   : > { %v5651_v1 = vsel %vm5632_vm6, %v5618_v29, %v9211_v5  ;;  %v5652_v4 = vsel %vm5632_vm6, %v5619_v15, %v9212_v62  ;;  %v8840_v49 = vpop.f32.mrb[116].mxu1 }
 0xa70   : > { %v5674_v47 = vpack.c.bf16 %v5652_v4, %v5651_v1  ;;  %v5650_v58 = vsel %vm5632_vm6, %v5617_v25, %v9207_v48  ;;  %v5649_v21 = vsel %vm5632_vm6, %v5616_v26, %v9206_v22  ;;  %v9220_v50 = vpop.permute.xlu0 %9219  ;;  %v5802_v27 = vpop.f32.mrb[117].mxu1  ;;  %5954 = vadd.xlane.f32.xlu0 %v5953_v46  ;;  %v5811_v39 = vadd.f32 %v8840_v49, %v14262_v14 }
 0xa71   : > { %v5673_v61 = vpack.c.bf16 %v5650_v58, %v5649_v21  ;;  %v5803_v12 = vadd.f32 %v14262_v14, %v5802_v27  ;;  %v9215_v35 = vpop.permute.xlu1 %9214  ;;  %v8841_v36 = vpop.f32.mrb[118].mxu1  ;;  %v9222_v51 = vunpack.i.h.bf16 %v9220_v50  ;;  %v9221_v10 = vunpack.i.l.bf16 %v9220_v50 }
 0xa72   : > { %v5814_v17 = vadd.f32 %v8841_v36, %v14262_v14  ;;  %v5805_v41 = vpop.f32.mrb[119].mxu1  ;;  %v9217_v7 = vunpack.i.h.bf16 %v9215_v35  ;;  %v9216_v30 = vunpack.i.l.bf16 %v9215_v35  ;;  %v14308_v54 = vadd.f32 %v10090_v56, %v5811_v39  ;;  %v10093_v36 = vld [vmem:[#allocation2 + $0x40] sm:$0xff]  ;;  %v10095_v56 = vld [vmem:[#allocation2 + $0x58] sm:$0xff] }
 0xa73   : > { %v14303_v16 = vadd.f32 %v10089_v2, %v5803_v12  ;;  %v5806_v38 = vadd.f32 %v14262_v14, %v5805_v41  ;;  %8850 = vmatprep.mubr.msk.bf16.mxu1 %vm840_vm1, %v5673_v61  ;;  %v5590_v37 = vsel %vm1726_vm2, %v16384_v31, %v9222_v51  ;;  %v5589_v24 = vsel %vm1726_vm2, %v16385_v57, %v9221_v10 }
 0xa74   : > { %v9230_v55 = vpop.permute.xlu0 %9229  ;;  %8851 = vmatmul.mubr.msk.bf16.gmra.mrb[128].mxu1 %vm840_vm1, %v5674_v47  ;;  %v14310_v60 = vadd.f32 %v10091_v8, %v5814_v17  ;;  %v5588_v42 = vsel %vm1726_vm2, %v16386_v34, %v9217_v7  ;;  %v5587_v18 = vsel %vm1726_vm2, %v16387_v6, %v9216_v30  ;;  %v5965_v29 = vsel %vm840_vm1, %v14308_v54, 0.0  ;;  %v10094_v30 = vld [vmem:[#allocation2 + $0x50] sm:$0xff] }
 0xa75   : > { %v14312_v53 = vadd.f32 %v10092_v11, %v5806_v38  ;;  %v9225_v13 = vpop.permute.xlu1 %9224  ;;  %v5959_v23 = vsel %vm840_vm1, %v14303_v16, 0.0  ;;  %v9232_v63 = vunpack.i.h.bf16 %v9230_v55  ;;  %v9231_v32 = vunpack.i.l.bf16 %v9230_v55  ;;  %v10096_v11 = vld [vmem:[#allocation2 + $0x48] sm:$0xff] }
 0xa76   : > { %5960 = vadd.xlane.f32.xlu0 %v5959_v23  ;;  %v9227_v9 = vunpack.i.h.bf16 %v9225_v13  ;;  %v9226_v33 = vunpack.i.l.bf16 %v9225_v13  ;;  %v5968_v62 = vsel %vm840_vm1, %v14310_v60, 0.0 }
 0xa77   : > { %v5962_v28 = vsel %vm840_vm1, %v14312_v53, 0.0  ;;  %v5622_v5 = vsel %vm5599_vm5, %v5589_v24, %v9231_v32  ;;  %v5623_v43 = vsel %vm5599_vm5, %v5590_v37, %v9232_v63  ;;  %v16388_v37 = vld [vmem:[#allocation16_spill] sm:$0xff] }
 0xa78   : > { %v9240_v40 = vpop.permute.xlu0 %9239  ;;  %5963 = vadd.xlane.f32.xlu1 %v5962_v28  ;;  %v5620_v25 = vsel %vm5599_vm5, %v5587_v18, %v9226_v33  ;;  %v5621_v48 = vsel %vm5599_vm5, %v5588_v42, %v9227_v9  ;;  %v16389_v24 = vld [vmem:[#allocation136_spill] sm:$0xff]  ;;  %v16391_v18 = vld [vmem:[#allocation167_spill] sm:$0xff] }
 0xa79   : > { %v9242_v19 = vunpack.i.h.bf16 %v9240_v40  ;;  %v9241_v44 = vunpack.i.l.bf16 %v9240_v40  ;;  %v9235_v20 = vpop.permute.xlu1 %9234  ;;  %v16390_v42 = vld [vmem:[#allocation44_spill] sm:$0xff] }
 0xa7a   : > { %v9237_v52 = vunpack.i.h.bf16 %v9235_v20  ;;  %v9236_v15 = vunpack.i.l.bf16 %v9235_v20  ;;  %5966 = vadd.xlane.f32.xlu0 %v5965_v29 }
 0xa7b   : > { %v5655_v22 = vsel %vm5632_vm6, %v5622_v5, %v9241_v44  ;;  %v5656_v26 = vsel %vm5632_vm6, %v5623_v43, %v9242_v19  ;;  %v8844_v1 = vpop.f32.mrb[120].mxu1 }
 0xa7c   : > { %v5676_v4 = vpack.c.bf16 %v5656_v26, %v5655_v22  ;;  %v5654_v49 = vsel %vm5632_vm6, %v5621_v48, %v9237_v52  ;;  %v5653_v46 = vsel %vm5632_vm6, %v5620_v25, %v9236_v15  ;;  %v9250_v47 = vpop.permute.xlu0 %9249  ;;  %v5818_v58 = vpop.f32.mrb[121].mxu1  ;;  %5969 = vadd.xlane.f32.xlu1 %v5968_v62  ;;  %v5827_v50 = vadd.f32 %v8844_v1, %v14262_v14 }
 0xa7d   : > { %v5675_v21 = vpack.c.bf16 %v5654_v49, %v5653_v46  ;;  %v5819_v27 = vadd.f32 %v14262_v14, %v5818_v58  ;;  %v9245_v61 = vpop.permute.xlu1 %9244  ;;  %v8845_v39 = vpop.f32.mrb[122].mxu1  ;;  %v9252_v2 = vunpack.i.h.bf16 %v9250_v47  ;;  %v9251_v38 = vunpack.i.l.bf16 %v9250_v47 }
 0xa7e   : > { %v5830_v12 = vadd.f32 %v8845_v39, %v14262_v14  ;;  %v5821_v35 = vpop.f32.mrb[123].mxu1  ;;  %v9247_v51 = vunpack.i.h.bf16 %v9245_v61  ;;  %v9246_v10 = vunpack.i.l.bf16 %v9245_v61  ;;  %v14346_v55 = vadd.f32 %v10094_v30, %v5827_v50 }
 0xa7f   : > { %v14341_v17 = vadd.f32 %v10093_v36, %v5819_v27  ;;  %v5822_v41 = vadd.f32 %v14262_v14, %v5821_v35  ;;  %8854 = vmatprep.mubr.msk.bf16.mxu1 %vm840_vm1, %v5675_v21  ;;  %v5594_v57 = vsel %vm1726_vm2, %v16388_v37, %v9252_v2  ;;  %v5593_v34 = vsel %vm1726_vm2, %v16389_v24, %v9251_v38 }
 0xa80   : > { %v9260_v7 = vpop.permute.xlu0 %9259  ;;  %8855 = vmatmul.mubr.msk.bf16.gmra.mrb[132].mxu1 %vm840_vm1, %v5676_v4  ;;  %v14348_v8 = vadd.f32 %v10095_v56, %v5830_v12  ;;  %v5592_v6 = vsel %vm1726_vm2, %v16390_v42, %v9247_v51  ;;  %v5591_v40 = vsel %vm1726_vm2, %v16391_v18, %v9246_v10  ;;  %v5977_v62 = vsel %vm840_vm1, %v14346_v55, 0.0 }
 0xa81   : > { %v14350_v13 = vadd.f32 %v10096_v11, %v5822_v41  ;;  %v9255_v23 = vpop.permute.xlu1 %9254  ;;  %v5971_v63 = vsel %vm840_vm1, %v14341_v17, 0.0  ;;  %v9262_v32 = vunpack.i.h.bf16 %v9260_v7  ;;  %v9261_v9 = vunpack.i.l.bf16 %v9260_v7  ;;  %v10097_v41 = vld [vmem:[#allocation2 + $0x60] sm:$0xff]  ;;  %v10098_v11 = vld [vmem:[#allocation2 + $0x70] sm:$0xff] }
 0xa82   : > { %5972 = vadd.xlane.f32.xlu0 %v5971_v63  ;;  %v9257_v33 = vunpack.i.h.bf16 %v9255_v23  ;;  %v9256_v28 = vunpack.i.l.bf16 %v9255_v23  ;;  %v5980_v5 = vsel %vm840_vm1, %v14348_v8, 0.0  ;;  %v10099_v63 = vld [vmem:[#allocation2 + $0x78] sm:$0xff] }
 0xa83   : > { %v5974_v31 = vsel %vm840_vm1, %v14350_v13, 0.0  ;;  %v5626_v43 = vsel %vm5599_vm5, %v5593_v34, %v9261_v9  ;;  %v5627_v52 = vsel %vm5599_vm5, %v5594_v57, %v9262_v32  ;;  %v10100_v9 = vld [vmem:[#allocation2 + $0x68] sm:$0xff] }
 0xa84   : > { %v9270_v19 = vpop.permute.xlu0 %9269  ;;  %5975 = vadd.xlane.f32.xlu1 %v5974_v31  ;;  %v5624_v48 = vsel %vm5599_vm5, %v5591_v40, %v9256_v28  ;;  %v5625_v22 = vsel %vm5599_vm5, %v5592_v6, %v9257_v33  ;;  %v16395_v6 = vld [vmem:[#allocation175_spill] sm:$0xff]  ;;  %v16396_v40 = vld [vmem:[#allocation21_spill] sm:$0xff] }
 0xa85   : > { %v9272_v44 = vunpack.i.h.bf16 %v9270_v19  ;;  %v9271_v20 = vunpack.i.l.bf16 %v9270_v19  ;;  %v9265_v29 = vpop.permute.xlu1 %9264 }
 0xa86   : > { %v9267_v15 = vunpack.i.h.bf16 %v9265_v29  ;;  %v9266_v25 = vunpack.i.l.bf16 %v9265_v29  ;;  %5978 = vadd.xlane.f32.xlu0 %v5977_v62  ;;  %v16398_v29 = vld [vmem:[#allocation92_spill] sm:$0xff] }
 0xa87   : > { %v5659_v26 = vsel %vm5632_vm6, %v5626_v43, %v9271_v20  ;;  %v5660_v1 = vsel %vm5632_vm6, %v5627_v52, %v9272_v44  ;;  %v8848_v4 = vpop.f32.mrb[124].mxu1  ;;  %v16397_v44 = vld [vmem:[#allocation96_spill] sm:$0xff] }
 0xa88   : > { %v5678_v49 = vpack.c.bf16 %v5660_v1, %v5659_v26  ;;  %v5658_v46 = vsel %vm5632_vm6, %v5625_v22, %v9267_v15  ;;  %v5657_v47 = vsel %vm5632_vm6, %v5624_v48, %v9266_v25  ;;  %v9280_v58 = vpop.permute.xlu0 %9279  ;;  %v5834_v21 = vpop.f32.mrb[125].mxu1  ;;  %5981 = vadd.xlane.f32.xlu1 %v5980_v5  ;;  %v5843_v27 = vadd.f32 %v8848_v4, %v14262_v14 }
 0xa89   : > { %v5677_v50 = vpack.c.bf16 %v5658_v46, %v5657_v47  ;;  %v5835_v61 = vadd.f32 %v14262_v14, %v5834_v21  ;;  %v9275_v39 = vpop.permute.xlu1 %9274  ;;  %v8849_v12 = vpop.f32.mrb[126].mxu1  ;;  %v9282_v51 = vunpack.i.h.bf16 %v9280_v58  ;;  %v9281_v10 = vunpack.i.l.bf16 %v9280_v58 }
 0xa8a   : > { %v5846_v35 = vadd.f32 %v8849_v12, %v14262_v14  ;;  %v5837_v36 = vpop.f32.mrb[127].mxu1  ;;  %v9277_v7 = vunpack.i.h.bf16 %v9275_v39  ;;  %v9276_v30 = vunpack.i.l.bf16 %v9275_v39  ;;  %v14384_v23 = vadd.f32 %v10098_v11, %v5843_v27 }
 0xa8b   : > { %v14379_v2 = vadd.f32 %v10097_v41, %v5835_v61  ;;  %v5838_v38 = vadd.f32 %v14262_v14, %v5837_v36  ;;  %8858 = vmatprep.mubr.msk.bf16.mxu1 %vm840_vm1, %v5677_v50  ;;  %v5598_v18 = vsel %vm1726_vm2, %v16395_v6, %v9282_v51  ;;  %v5597_v19 = vsel %vm1726_vm2, %v16396_v40, %v9281_v10  ;;  %v10101_v51 = vld [vmem:[#allocation2 + $0x80] sm:$0xff] }
 0xa8c   : > { %v9290_v56 = vpop.permute.xlu0 %9289  ;;  %8859 = vmatmul.mubr.msk.bf16.gmra.mrb[136].mxu1 %vm840_vm1, %v5678_v49  ;;  %v14386_v32 = vadd.f32 %v10099_v63, %v5846_v35  ;;  %v5596_v20 = vsel %vm1726_vm2, %v16397_v44, %v9277_v7  ;;  %v5595_v62 = vsel %vm1726_vm2, %v16398_v29, %v9276_v30  ;;  %v5989_v25 = vsel %vm840_vm1, %v14384_v23, 0.0  ;;  %v10103_v63 = vld [vmem:[#allocation2 + $0x88] sm:$0xff] }
 0xa8d   : > { %16392 = vst [vmem:[#allocation110_spill] sm:$0xff] %v14379_v2  ;;  %v14388_v33 = vadd.f32 %v10100_v9, %v5838_v38  ;;  %v9285_v28 = vpop.permute.xlu1 %9284  ;;  %v5983_v31 = vsel %vm840_vm1, %v14379_v2, 0.0  ;;  %v9292_v37 = vunpack.i.h.bf16 %v9290_v56  ;;  %v9291_v57 = vunpack.i.l.bf16 %v9290_v56  ;;  %v10102_v56 = vld [vmem:[#allocation2 + $0x90] sm:$0xff] }
 0xa8e   : > { %16393 = vst [vmem:[#allocation146_spill] sm:$0xff] %v14386_v32  ;;  %5984 = vadd.xlane.f32.xlu0 %v5983_v31  ;;  %v9287_v24 = vunpack.i.h.bf16 %v9285_v28  ;;  %v9286_v34 = vunpack.i.l.bf16 %v9285_v28  ;;  %v5992_v48 = vsel %vm840_vm1, %v14386_v32, 0.0  ;;  %v10104_v31 = vld [vmem:[#allocation2 + $0x98] sm:$0xff] }
 0xa8f   : > { %16394 = vst [vmem:[#allocation172_spill] sm:$0xff] %v14388_v33  ;;  %v5986_v42 = vsel %vm840_vm1, %v14388_v33, 0.0  ;;  %v5630_v22 = vsel %vm5599_vm5, %v5597_v19, %v9291_v57  ;;  %v5631_v26 = vsel %vm5599_vm5, %v5598_v18, %v9292_v37 }
 0xa90   : > { %v9300_v5 = vpop.permute.xlu0 %9299  ;;  %5987 = vadd.xlane.f32.xlu1 %v5986_v42  ;;  %v5628_v49 = vsel %vm5599_vm5, %v5595_v62, %v9286_v34  ;;  %v5629_v46 = vsel %vm5599_vm5, %v5596_v20, %v9287_v24  ;;  %v10105_v20 = vld [vmem:[#allocation2 + $0xa0] sm:$0xff] }
 0xa91   : > { %v9302_v43 = vunpack.i.h.bf16 %v9300_v5  ;;  %v9301_v52 = vunpack.i.l.bf16 %v9300_v5  ;;  %v9295_v15 = vpop.permute.xlu1 %9294 }
 0xa92   : > { %v9297_v1 = vunpack.i.h.bf16 %v9295_v15  ;;  %v9296_v4 = vunpack.i.l.bf16 %v9295_v15  ;;  %5990 = vadd.xlane.f32.xlu0 %v5989_v25  ;;  %v10107_v15 = vld [vmem:[#allocation2 + $0xa8] sm:$0xff] }
 0xa93   : > { %v5663_v47 = vsel %vm5632_vm6, %v5630_v22, %v9301_v52  ;;  %v5664_v58 = vsel %vm5632_vm6, %v5631_v26, %v9302_v43  ;;  %v10106_v43 = vld [vmem:[#allocation2 + $0xb0] sm:$0xff]  ;;  %v10108_v22 = vld [vmem:[#allocation2 + $0xb8] sm:$0xff] }
 0xa94   : > { %v5680_v21 = vpack.c.bf16 %v5664_v58, %v5663_v47  ;;  %v5662_v50 = vsel %vm5632_vm6, %v5629_v46, %v9297_v1  ;;  %v5661_v27 = vsel %vm5632_vm6, %v5628_v49, %v9296_v4  ;;  %5993 = vadd.xlane.f32.xlu1 %v5992_v48 }
 0xa95   : > { %v5679_v61 = vpack.c.bf16 %v5662_v50, %v5661_v27 }
 0xa97   : > { %8862 = vmatprep.mubr.msk.bf16.mxu1 %vm840_vm1, %v5679_v61 }
 0xa98   : > { %8863 = vmatmul.mubr.msk.bf16.gmra.mrb[140].mxu1 %vm840_vm1, %v5680_v21 }
 0xaf9   : > { %v5952_v27 = vpop.xlane.xlu0 %5951 }
 0xb47   : > { %v8852_v39 = vpop.f32.mrb[128].mxu1 }
 0xb48   : > { %v5850_v12 = vpop.f32.mrb[129].mxu1  ;;  %v5859_v35 = vadd.f32 %v8852_v39, %v14262_v14  ;;  %v10109_v39 = vld [vmem:[#allocation2 + $0xc0] sm:$0xff] }
 0xb49   : > { %v5851_v36 = vadd.f32 %v14262_v14, %v5850_v12  ;;  %v8853_v41 = vpop.f32.mrb[130].mxu1 }
 0xb4a   : > { %v5853_v38 = vpop.f32.mrb[131].mxu1  ;;  %v5862_v7 = vadd.f32 %v8853_v41, %v14262_v14  ;;  %v14422_v11 = vadd.f32 %v10102_v56, %v5859_v35  ;;  %v5949_v41 = vpop.xlane.xlu1 %5948 }
 0xb4b   : > { %v14418_v10 = vadd.f32 %v10101_v51, %v5851_v36  ;;  %v5854_v30 = vadd.f32 %v14262_v14, %v5853_v38  ;;  %v10110_v38 = vld [vmem:[#allocation2 + $0xd0] sm:$0xff] }
 0xb4c   : > { %16400 = vst [vmem:[#allocation101_spill] sm:$0xff] %v14422_v11  ;;  %v14428_v37 = vadd.f32 %v10104_v31, %v5862_v7  ;;  %v6001_v24 = vsel %vm840_vm1, %v14422_v11, 0.0  ;;  %v10111_v7 = vld [vmem:[#allocation2 + $0xc8] sm:$0xff] }
 0xb4d   : > { %16399 = vst [vmem:[#allocation38_spill] sm:$0xff] %v14418_v10  ;;  %v14424_v9 = vadd.f32 %v10103_v63, %v5854_v30  ;;  %v5995_v28 = vsel %vm840_vm1, %v14418_v10, 0.0  ;;  %v10112_v63 = vld [vmem:[#allocation2 + $0xd8] sm:$0xff] }
 0xb4e   : > { %5996 = vadd.xlane.f32.xlu0 %v5995_v28  ;;  %16402 = vst [vmem:[#allocation78_spill] sm:$0xff] %v14428_v37  ;;  %v6004_v42 = vsel %vm840_vm1, %v14428_v37, 0.0 }
 0xb4f   : > { %16401 = vst [vmem:[#allocation160_spill] sm:$0xff] %v14424_v9  ;;  %v5998_v57 = vsel %vm840_vm1, %v14424_v9, 0.0 }
 0xb50   : > { %5999 = vadd.xlane.f32.xlu1 %v5998_v57  ;;  %v5955_v57 = vpop.xlane.xlu0 %5954 }
 0xb52   : > { %6002 = vadd.xlane.f32.xlu0 %v6001_v24 }
 0xb53   : > { %v8856_v34 = vpop.f32.mrb[132].mxu1 }
 0xb54   : > { %v5866_v6 = vpop.f32.mrb[133].mxu1  ;;  %6005 = vadd.xlane.f32.xlu1 %v6004_v42  ;;  %v5875_v18 = vadd.f32 %v8856_v34, %v14262_v14  ;;  %v5958_v34 = vpop.xlane.xlu1 %5957 }
 0xb55   : > { %v5867_v40 = vadd.f32 %v14262_v14, %v5866_v6  ;;  %v8857_v19 = vpop.f32.mrb[134].mxu1 }
 0xb56   : > { %v5869_v44 = vpop.f32.mrb[135].mxu1  ;;  %v5878_v62 = vadd.f32 %v8857_v19, %v14262_v14  ;;  %v14442_v52 = vadd.f32 %v10106_v43, %v5875_v18  ;;  %v6043_v18 = vmul.f32 0.03125, %v5949_v41 }
 0xb57   : > { %v14438_v29 = vadd.f32 %v10105_v20, %v5867_v40  ;;  %v5870_v5 = vadd.f32 %v14262_v14, %v5869_v44  ;;  %v5961_v40 = vpop.xlane.xlu0 %5960 }
 0xb58   : > { %16404 = vst [vmem:[#allocation42_spill] sm:$0xff] %v14442_v52  ;;  %v14448_v26 = vadd.f32 %v10108_v22, %v5878_v62  ;;  %v6013_v4 = vsel %vm840_vm1, %v14442_v52, 0.0 }
 0xb59   : > { %16403 = vst [vmem:[#allocation20_spill] sm:$0xff] %v14438_v29  ;;  %v14444_v25 = vadd.f32 %v10107_v15, %v5870_v5  ;;  %v6007_v48 = vsel %vm840_vm1, %v14438_v29, 0.0  ;;  %v5964_v5 = vpop.xlane.xlu1 %5963  ;;  %v6044_v15 = vmul.f32 0.03125, %v5952_v27 }
 0xb5a   : > { %6008 = vadd.xlane.f32.xlu0 %v6007_v48  ;;  %16406 = vst [vmem:[#allocation87_spill] sm:$0xff] %v14448_v26  ;;  %v6016_v46 = vsel %vm840_vm1, %v14448_v26, 0.0  ;;  %v10113_v48 = vld [vmem:[#allocation2 + $0xe0] sm:$0xff] }
 0xb5b   : > { %16405 = vst [vmem:[#allocation140_spill] sm:$0xff] %v14444_v25  ;;  %v6010_v1 = vsel %vm840_vm1, %v14444_v25, 0.0 }
 0xb5c   : > { %6011 = vadd.xlane.f32.xlu1 %v6010_v1 }
 0xb5e   : > { %6014 = vadd.xlane.f32.xlu0 %v6013_v4 }
 0xb5f   : > { %v8860_v49 = vpop.f32.mrb[136].mxu1 }
 0xb60   : > { %v5882_v47 = vpop.f32.mrb[137].mxu1  ;;  %6017 = vadd.xlane.f32.xlu1 %v6016_v46  ;;  %v5891_v58 = vadd.f32 %v8860_v49, %v14262_v14  ;;  %v14483_v49 = vsub.f32 %v14267_v3, %v6043_v18  ;;  %v6045_v46 = vmul.f32 0.03125, %v5955_v57 }
 0xb61   : > { %v5883_v21 = vadd.f32 %v14262_v14, %v5882_v47  ;;  %v8861_v50 = vpop.f32.mrb[138].mxu1  ;;  %v10114_v47 = vld [vmem:[#allocation2 + $0xf0] sm:$0xff] }
 0xb62   : > { %v5885_v61 = vpop.f32.mrb[139].mxu1  ;;  %v5894_v35 = vadd.f32 %v8861_v50, %v14262_v14  ;;  %v14462_v51 = vadd.f32 %v10110_v38, %v5891_v58  ;;  %v5970_v38 = vpop.xlane.xlu1 %5969 }
 0xb63   : > { %v14458_v12 = vadd.f32 %v10109_v39, %v5883_v21  ;;  %v5886_v36 = vadd.f32 %v14262_v14, %v5885_v61  ;;  %v10115_v21 = vld [vmem:[#allocation2 + $0xe8] sm:$0xff]  ;;  %v5967_v61 = vpop.xlane.xlu0 %5966  ;;  %v14492_v39 = vsub.f32 %v14272_v0, %v6044_v15 }
 0xb64   : > { %16408 = vst [vmem:[#allocation81_spill] sm:$0xff] %v14462_v51  ;;  %v14468_v28 = vadd.f32 %v10112_v63, %v5894_v35  ;;  %v6025_v24 = vsel %vm840_vm1, %v14462_v51, 0.0  ;;  %v6046_v35 = vmul.f32 0.03125, %v5958_v34  ;;  %v6048_v34 = vmul.f32 0.03125, %v5964_v5 }
 0xb65   : > { %16407 = vst [vmem:[#allocation155_spill] sm:$0xff] %v14458_v12  ;;  %v14464_v30 = vadd.f32 %v10111_v7, %v5886_v36  ;;  %v6019_v56 = vsel %vm840_vm1, %v14458_v12, 0.0  ;;  %v14499_v7 = vsub.f32 %v14276_v59, %v6045_v46  ;;  %v6050_v5 = vmul.f32 0.03125, %v5970_v38 }
 0xb66   : > { %6020 = vadd.xlane.f32.xlu0 %v6019_v56  ;;  %16410 = vst [vmem:[#allocation119_spill] sm:$0xff] %v14468_v28  ;;  %v6028_v6 = vsel %vm840_vm1, %v14468_v28, 0.0  ;;  %v6047_v56 = vmul.f32 0.03125, %v5961_v40  ;;  %v5976_v18 = vpop.xlane.xlu1 %5975 }
 0xb67   : > { %16409 = vst [vmem:[#allocation144_spill] sm:$0xff] %v14464_v30  ;;  %v6022_v31 = vsel %vm840_vm1, %v14464_v30, 0.0  ;;  %v5973_v57 = vpop.xlane.xlu0 %5972 }
 0xb68   : > { %6023 = vadd.xlane.f32.xlu1 %v6022_v31  ;;  %v6107_v31 = vmul.f32 %v14483_v49, %v14483_v49  ;;  %v14513_v40 = vsub.f32 %v14303_v16, %v6047_v56 }
 0xb6a   : > { %6026 = vadd.xlane.f32.xlu0 %v6025_v24  ;;  %v14506_v24 = vsub.f32 %v14270_v45, %v6046_v35 }
 0xb6b   : > { %v8864_v42 = vpop.f32.mrb[140].mxu1 }
 0xb6c   : > { %v5898_v19 = vpop.f32.mrb[141].mxu1  ;;  %6029 = vadd.xlane.f32.xlu1 %v6028_v6  ;;  %v5907_v44 = vadd.f32 %v8864_v42, %v14262_v14  ;;  %v6108_v6 = vmul.f32 %v14492_v39, %v14492_v39  ;;  %v6110_v15 = vmul.f32 %v14506_v24, %v14506_v24 }
 0xb6d   : > { %v5899_v20 = vadd.f32 %v14262_v14, %v5898_v19  ;;  %v8865_v62 = vpop.f32.mrb[142].mxu1  ;;  %v6049_v19 = vmul.f32 0.03125, %v5967_v61  ;;  %v6052_v61 = vmul.f32 0.03125, %v5976_v18 }
 0xb6e   : > { %v5901_v43 = vpop.f32.mrb[143].mxu1  ;;  %v5910_v1 = vadd.f32 %v8865_v62, %v14262_v14  ;;  %v14485_v58 = vadd.f32 %v10114_v47, %v5907_v44  ;;  %v6139_v44 = vsel %vm840_vm1, %v6107_v31, 0.0  ;;  %v14519_v62 = vsub.f32 %v14312_v53, %v6048_v34 }
 0xb6f   : > { %v14478_v22 = vadd.f32 %v10113_v48, %v5899_v20  ;;  %v5902_v4 = vadd.f32 %v14262_v14, %v5901_v43  ;;  %v10116_v14 = vld [vmem:[#allocation2 + $0xf8] sm:$0xff]  ;;  %v6109_v20 = vmul.f32 %v14499_v7, %v14499_v7  ;;  %v6142_v43 = vsel %vm840_vm1, %v6108_v6, 0.0  ;;  %v5979_v48 = vpop.xlane.xlu0 %5978 }
 0xb70   : > { %16412 = vst [vmem:[#allocation134_spill] sm:$0xff] %v14485_v58  ;;  %v14494_v36 = vadd.f32 %v10116_v14, %v5910_v1  ;;  %v6037_v63 = vsel %vm840_vm1, %v14485_v58, 0.0  ;;  %v14525_v1 = vsub.f32 %v14308_v54, %v6049_v19  ;;  %v6111_v47 = vmul.f32 %v14513_v40, %v14513_v40 }
 0xb71   : > { %16411 = vst [vmem:[#allocation174_spill] sm:$0xff] %v14478_v22  ;;  %v14487_v50 = vadd.f32 %v10115_v21, %v5902_v4  ;;  %v6031_v27 = vsel %vm840_vm1, %v14478_v22, 0.0  ;;  %v6051_v4 = vmul.f32 0.03125, %v5973_v57  ;;  %v6145_v46 = vsel %vm840_vm1, %v6109_v20, 0.0  ;;  %v5982_v21 = vpop.xlane.xlu1 %5981 }
 0xb72   : > { %6032 = vadd.xlane.f32.xlu0 %v6031_v27  ;;  %16414 = vst [vmem:[#allocation116_spill] sm:$0xff] %v14494_v36  ;;  %v6040_v42 = vsel %vm840_vm1, %v14494_v36, 0.0  ;;  %v14531_v27 = vsub.f32 %v14310_v60, %v6050_v5  ;;  %v6148_v35 = vsel %vm840_vm1, %v6110_v15, 0.0  ;;  %v6112_v14 = vmul.f32 %v14519_v62, %v14519_v62 }
 0xb73   : > { %16413 = vst [vmem:[#allocation75_spill] sm:$0xff] %v14487_v50  ;;  %v6034_v41 = vsel %vm840_vm1, %v14487_v50, 0.0  ;;  %v14537_v38 = vsub.f32 %v14341_v17, %v6051_v4  ;;  %v6053_v56 = vmul.f32 0.03125, %v5979_v48  ;;  %v6113_v31 = vmul.f32 %v14525_v1, %v14525_v1 }
 0xb74   : > { %6035 = vadd.xlane.f32.xlu1 %v6034_v41  ;;  %v5985_v41 = vpop.xlane.xlu0 %5984  ;;  %v14543_v34 = vsub.f32 %v14350_v13, %v6052_v61  ;;  %v6154_v6 = vsel %vm840_vm1, %v6112_v14, 0.0  ;;  %v6114_v18 = vmul.f32 %v14531_v27, %v14531_v27 }
 0xb75   : > { %v5988_v57 = vpop.xlane.xlu1 %5987  ;;  %v14549_v19 = vsub.f32 %v14346_v55, %v6053_v56  ;;  %v6157_v20 = vsel %vm840_vm1, %v6113_v31, 0.0  ;;  %v6115_v5 = vmul.f32 %v14537_v38, %v14537_v38 }
 0xb76   : > { %6038 = vadd.xlane.f32.xlu0 %v6037_v63  ;;  %v6151_v63 = vsel %vm840_vm1, %v6111_v47, 0.0  ;;  %v6056_v48 = vmul.f32 0.03125, %v5988_v57  ;;  %v6160_v4 = vsel %vm840_vm1, %v6114_v18, 0.0 }
 0xb77   : > { %v6117_v14 = vmul.f32 %v14549_v19, %v14549_v19 }
 0xb78   : > { %6041 = vadd.xlane.f32.xlu1 %v6040_v42  ;;  %v6054_v42 = vmul.f32 0.03125, %v5982_v21 }
 0xb79   : > { %v5994_v47 = vpop.xlane.xlu1 %5993 }
 0xb7a   : > { %6140 = vadd.xlane.f32.xlu0 %v6139_v44  ;;  %v6055_v44 = vmul.f32 0.03125, %v5985_v41  ;;  %v14555_v15 = vsub.f32 %v14348_v8, %v6054_v42  ;;  %v14567_v41 = vsub.f32 %v14388_v33, %v6056_v48  ;;  %v6058_v56 = vmul.f32 0.03125, %v5994_v47 }
 0xb7b   : > { %v6169_v42 = vsel %vm840_vm1, %v6117_v14, 0.0 }
 0xb7c   : > { %6143 = vadd.xlane.f32.xlu1 %v6142_v43  ;;  %v5991_v43 = vpop.xlane.xlu0 %5990  ;;  %v14561_v21 = vsub.f32 %v14379_v2, %v6055_v44  ;;  %v6118_v31 = vmul.f32 %v14555_v15, %v14555_v15  ;;  %v14579_v18 = vsub.f32 %v14386_v32, %v6058_v56 }
 0xb7d   : > { %v6057_v61 = vmul.f32 0.03125, %v5991_v43 }
 0xb7e   : > { %6146 = vadd.xlane.f32.xlu0 %v6145_v46  ;;  %v6116_v46 = vmul.f32 %v14543_v34, %v14543_v34  ;;  %v6172_v44 = vsel %vm840_vm1, %v6118_v31, 0.0 }
 0xb7f   : > { %v14573_v57 = vsub.f32 %v14384_v23, %v6057_v61  ;;  %v9307_v61 = vld [vmem:[%s10315_s17] sm:$0xff]  }
 0xb80   : > { %6149 = vadd.xlane.f32.xlu1 %v6148_v35  ;;  %v6163_v35 = vsel %vm840_vm1, %v6115_v5, 0.0  ;;  %8866 = vmatprep.subr.bf16.mxu0 %v9307_v61 }
 0xb81   : > { %v6121_v43 = vmul.f32 %v14573_v57, %v14573_v57  ;;  %8867 = vmatpush3.bf16.msra.mxu0 %v9307_v61 }
 0xb82   : > { %6152 = vadd.xlane.f32.xlu0 %v6151_v63  ;;  %v6166_v63 = vsel %vm840_vm1, %v6116_v46, 0.0 }
 0xb83   : > { %v6181_v46 = vsel %vm840_vm1, %v6121_v43, 0.0 }
 0xb84   : > { %6155 = vadd.xlane.f32.xlu1 %v6154_v6  ;;  %v6119_v6 = vmul.f32 %v14561_v21, %v14561_v21 }
 0xb86   : > { %6158 = vadd.xlane.f32.xlu0 %v6157_v20  ;;  %v6120_v20 = vmul.f32 %v14567_v41, %v14567_v41  ;;  %v6175_v5 = vsel %vm840_vm1, %v6119_v6, 0.0 }
 0xb88   : > { %6161 = vadd.xlane.f32.xlu1 %v6160_v4  ;;  %v6178_v48 = vsel %vm840_vm1, %v6120_v20, 0.0  ;;  %v6122_v4 = vmul.f32 %v14579_v18, %v14579_v18 }
 0xb8a   : > { %6164 = vadd.xlane.f32.xlu0 %v6163_v35  ;;  %v6184_v47 = vsel %vm840_vm1, %v6122_v4, 0.0  ;;  %v9308_v35 = vld [vmem:[%s10315_s17 + $0x8] sm:$0xff]  }
 0xb8b   : > { %8868 = vmatprep.subr.bf16.mxu0 %v9308_v35 }
 0xb8c   : > { %6167 = vadd.xlane.f32.xlu1 %v6166_v63  ;;  %8869 = vmatpush3.bf16.msra.mxu0 %v9308_v35 }
 0xb8e   : > { %6170 = vadd.xlane.f32.xlu0 %v6169_v42 }
 0xb90   : > { %6173 = vadd.xlane.f32.xlu1 %v6172_v44 }
 0xb92   : > { %6176 = vadd.xlane.f32.xlu0 %v6175_v5 }
 0xb94   : > { %6179 = vadd.xlane.f32.xlu1 %v6178_v48 }
 0xb96   : > { %6182 = vadd.xlane.f32.xlu0 %v6181_v46 }
 0xb98   : > { %6185 = vadd.xlane.f32.xlu1 %v6184_v47 }
 0xbdb   : > { %v5997_v14 = vpop.xlane.xlu0 %5996 }
 0xbdc   : > { %v6059_v56 = vmul.f32 0.03125, %v5997_v14 }
 0xbdd   : > { %v6000_v63 = vpop.xlane.xlu1 %5999 }
 0xbde   : > { %v14595_v31 = vsub.f32 %v14418_v10, %v6059_v56  ;;  %v6060_v42 = vmul.f32 0.03125, %v6000_v63 }
 0xbdf   : > { %v6003_v6 = vpop.xlane.xlu0 %6002 }
 0xbe0   : > { %v14598_v44 = vsub.f32 %v14424_v9, %v6060_v42  ;;  %v6061_v20 = vmul.f32 0.03125, %v6003_v6  ;;  %v6123_v5 = vmul.f32 %v14595_v31, %v14595_v31 }
 0xbe1   : > { %v6006_v43 = vpop.xlane.xlu1 %6005 }
 0xbe2   : > { %v14603_v48 = vsub.f32 %v14422_v11, %v6061_v20  ;;  %v6062_v4 = vmul.f32 0.03125, %v6006_v43  ;;  %v6187_v46 = vsel %vm840_vm1, %v6123_v5, 0.0  ;;  %v6124_v47 = vmul.f32 %v14598_v44, %v14598_v44 }
 0xbe3   : > { %6188 = vadd.xlane.f32.xlu0 %v6187_v46 }
 0xbe4   : > { %v14609_v61 = vsub.f32 %v14428_v37, %v6062_v4  ;;  %v6190_v35 = vsel %vm840_vm1, %v6124_v47, 0.0  ;;  %v6125_v14 = vmul.f32 %v14603_v48, %v14603_v48 }
 0xbe5   : > { %6191 = vadd.xlane.f32.xlu1 %v6190_v35 }
 0xbe6   : > { %v6193_v56 = vsel %vm840_vm1, %v6125_v14, 0.0  ;;  %v6126_v63 = vmul.f32 %v14609_v61, %v14609_v61 }
 0xbe7   : > { %v6009_v42 = vpop.xlane.xlu0 %6008  ;;  %6194 = vadd.xlane.f32.xlu0 %v6193_v56 }
 0xbe8   : > { %v6063_v6 = vmul.f32 0.03125, %v6009_v42  ;;  %v6196_v20 = vsel %vm840_vm1, %v6126_v63, 0.0 }
 0xbe9   : > { %6197 = vadd.xlane.f32.xlu1 %v6196_v20  ;;  %v6012_v5 = vpop.xlane.xlu1 %6011 }
 0xbea   : > { %v14619_v43 = vsub.f32 %v14438_v29, %v6063_v6  ;;  %v6064_v4 = vmul.f32 0.03125, %v6012_v5 }
 0xbeb   : > { %v6015_v46 = vpop.xlane.xlu0 %6014 }
 0xbec   : > { %v14622_v47 = vsub.f32 %v14444_v25, %v6064_v4  ;;  %v6065_v35 = vmul.f32 0.03125, %v6015_v46  ;;  %v6127_v14 = vmul.f32 %v14619_v43, %v14619_v43 }
 0xbed   : > { %v6018_v9 = vpop.xlane.xlu1 %6017 }
 0xbee   : > { %v14627_v56 = vsub.f32 %v14442_v52, %v6065_v35  ;;  %v6066_v42 = vmul.f32 0.03125, %v6018_v9  ;;  %v6199_v63 = vsel %vm840_vm1, %v6127_v14, 0.0  ;;  %v6128_v6 = vmul.f32 %v14622_v47, %v14622_v47 }
 0xbef   : > { %6200 = vadd.xlane.f32.xlu0 %v6199_v63 }
 0xbf0   : > { %v14633_v20 = vsub.f32 %v14448_v26, %v6066_v42  ;;  %v6202_v5 = vsel %vm840_vm1, %v6128_v6, 0.0  ;;  %v6129_v4 = vmul.f32 %v14627_v56, %v14627_v56 }
 0xbf1   : > { %6203 = vadd.xlane.f32.xlu1 %v6202_v5 }
 0xbf2   : > { %v6205_v46 = vsel %vm840_vm1, %v6129_v4, 0.0  ;;  %v6130_v9 = vmul.f32 %v14633_v20, %v14633_v20 }
 0xbf3   : > { %v6021_v35 = vpop.xlane.xlu0 %6020  ;;  %6206 = vadd.xlane.f32.xlu0 %v6205_v46 }
 0xbf4   : > { %v6067_v14 = vmul.f32 0.03125, %v6021_v35  ;;  %v6208_v25 = vsel %vm840_vm1, %v6130_v9, 0.0 }
 0xbf5   : > { %6209 = vadd.xlane.f32.xlu1 %v6208_v25  ;;  %v6024_v63 = vpop.xlane.xlu1 %6023 }
 0xbf6   : > { %v14643_v42 = vsub.f32 %v14458_v12, %v6067_v14  ;;  %v6068_v6 = vmul.f32 0.03125, %v6024_v63 }
 0xbf7   : > { %v6027_v26 = vpop.xlane.xlu0 %6026 }
 0xbf8   : > { %v14646_v29 = vsub.f32 %v14464_v30, %v6068_v6  ;;  %v6069_v5 = vmul.f32 0.03125, %v6027_v26  ;;  %v6131_v4 = vmul.f32 %v14643_v42, %v14643_v42 }
 0xbf9   : > { %v6030_v52 = vpop.xlane.xlu1 %6029 }
 0xbfa   : > { %v14651_v46 = vsub.f32 %v14462_v51, %v6069_v5  ;;  %v6070_v35 = vmul.f32 0.03125, %v6030_v52  ;;  %v6211_v25 = vsel %vm840_vm1, %v6131_v4, 0.0  ;;  %v6132_v9 = vmul.f32 %v14646_v29, %v14646_v29 }
 0xbfb   : > { %6212 = vadd.xlane.f32.xlu0 %v6211_v25 }
 0xbfc   : > { %v14657_v14 = vsub.f32 %v14468_v28, %v6070_v35  ;;  %v6214_v63 = vsel %vm840_vm1, %v6132_v9, 0.0  ;;  %v6133_v26 = vmul.f32 %v14651_v46, %v14651_v46 }
 0xbfd   : > { %6215 = vadd.xlane.f32.xlu1 %v6214_v63 }
 0xbfe   : > { %v6217_v6 = vsel %vm840_vm1, %v6133_v26, 0.0  ;;  %v6134_v52 = vmul.f32 %v14657_v14, %v14657_v14 }
 0xbff   : > { %v6033_v5 = vpop.xlane.xlu0 %6032  ;;  %6218 = vadd.xlane.f32.xlu0 %v6217_v6 }
 0xc00   : > { %v6071_v4 = vmul.f32 0.03125, %v6033_v5  ;;  %v6220_v30 = vsel %vm840_vm1, %v6134_v52, 0.0 }
 0xc01   : > { %6221 = vadd.xlane.f32.xlu1 %v6220_v30  ;;  %v6036_v25 = vpop.xlane.xlu1 %6035 }
 0xc02   : > { %v14667_v35 = vsub.f32 %v14478_v22, %v6071_v4  ;;  %v6072_v9 = vmul.f32 0.03125, %v6036_v25 }
 0xc03   : > { %v6039_v28 = vpop.xlane.xlu0 %6038 }
 0xc04   : > { %v14670_v12 = vsub.f32 %v14487_v50, %v6072_v9  ;;  %v6073_v63 = vmul.f32 0.03125, %v6039_v28  ;;  %v6135_v26 = vmul.f32 %v14667_v35, %v14667_v35 }
 0xc05   : > { %v6042_v51 = vpop.xlane.xlu1 %6041 }
 0xc06   : > { %v14675_v6 = vsub.f32 %v14485_v58, %v6073_v63  ;;  %v6074_v5 = vmul.f32 0.03125, %v6042_v51  ;;  %v6223_v30 = vsel %vm840_vm1, %v6135_v26, 0.0  ;;  %v6136_v52 = vmul.f32 %v14670_v12, %v14670_v12 }
 0xc07   : > { %6224 = vadd.xlane.f32.xlu0 %v6223_v30  ;;  %v6141_v4 = vpop.xlane.xlu0 %6140 }
 0xc08   : > { %v14681_v25 = vsub.f32 %v14494_v36, %v6074_v5  ;;  %v6235_v9 = vmul.f32 0.03125, %v6141_v4  ;;  %v6226_v28 = vsel %vm840_vm1, %v6136_v52, 0.0  ;;  %v6137_v50 = vmul.f32 %v14675_v6, %v14675_v6 }
 0xc09   : > { %6227 = vadd.xlane.f32.xlu1 %v6226_v28  ;;  %v6144_v63 = vpop.xlane.xlu1 %6143 }
 0xc0a   : > { %v6267_v22 = vadd.f32 1e-05, %v6235_v9  ;;  %v6236_v51 = vmul.f32 0.03125, %v6144_v63  ;;  %v6229_v26 = vsel %vm840_vm1, %v6137_v50, 0.0  ;;  %v6138_v58 = vmul.f32 %v14681_v25, %v14681_v25 }
 0xc0b   : > { %6230 = vadd.xlane.f32.xlu0 %v6229_v26  ;;  %v6147_v30 = vpop.xlane.xlu0 %6146 }
 0xc0c   : > { %9893 = vrsqrt.f32 %v6267_v22  ;;  %v6268_v5 = vadd.f32 1e-05, %v6236_v51  ;;  %v6237_v36 = vmul.f32 0.03125, %v6147_v30  ;;  %v6232_v4 = vsel %vm840_vm1, %v6138_v58, 0.0 }
 0xc0d   : > { %6233 = vadd.xlane.f32.xlu1 %v6232_v4  ;;  %v6150_v52 = vpop.xlane.xlu1 %6149 }
 0xc0e   : > { %9895 = vrsqrt.f32 %v6268_v5  ;;  %v6269_v37 = vadd.f32 1e-05, %v6237_v36  ;;  %v6238_v28 = vmul.f32 0.03125, %v6150_v52  ;;  %v14695_v36 = vld [vmem:[%s626_s0] ss:$0 sm:$0xff]  ;;  %s16415_s0 = scalar_lea.vmem %s15342_s8, %s10270_s16  ;;  %s16435_s16 = sld [smem:[#allocation3_spill]] }
 0xc0f   : > { %v6153_v9 = vpop.xlane.xlu0 %6152 }
 0xc10   : > { %9897 = vrsqrt.f32 %v6269_v37  ;;  %v6270_v63 = vadd.f32 1e-05, %v6238_v28  ;;  %v6239_v50 = vmul.f32 0.03125, %v6153_v9 }
 0xc11   : > { %v6156_v10 = vpop.xlane.xlu1 %6155 }
 0xc12   : > { %9899 = vrsqrt.f32 %v6270_v63  ;;  %v6271_v11 = vadd.f32 1e-05, %v6239_v50  ;;  %v6240_v26 = vmul.f32 0.03125, %v6156_v10 }
 0xc13   : > { %v6159_v33 = vpop.xlane.xlu0 %6158 }
 0xc14   : > { %9901 = vrsqrt.f32 %v6271_v11  ;;  %v6272_v22 = vadd.f32 1e-05, %v6240_v26  ;;  %v6241_v51 = vmul.f32 0.03125, %v6159_v33  ;;  %v14705_v26 = vld [vmem:[%s16415_s0] ss:$0 sm:$0xff]  ;;  %p7796_p8 = scmp.ne.s32.totalorder %s16435_s16, 1 }
 0xc15   : > { %v6162_v30 = vpop.xlane.xlu1 %6161  ;;  %vm7387_vm2 = vcmask (!%p7796_p8), 257024  }
 0xc16   : > { %v9894_v58 = vpop.eup %9893  ;;  %9903 = vrsqrt.f32 %v6272_v22  ;;  %v6273_v37 = vadd.f32 1e-05, %v6241_v51  ;;  %v6242_v5 = vmul.f32 0.03125, %v6162_v30 }
 0xc17   : > { %v6331_v4 = vmul.f32 %v9894_v58, %v14483_v49  ;;  %v6165_v52 = vpop.xlane.xlu0 %6164 }
 0xc18   : > { %v9896_v10 = vpop.eup %9895  ;;  %9905 = vrsqrt.f32 %v6273_v37  ;;  %v6274_v11 = vadd.f32 1e-05, %v6242_v5  ;;  %v6243_v28 = vmul.f32 0.03125, %v6165_v52 }
 0xc19   : > { %v6332_v33 = vmul.f32 %v9896_v10, %v14492_v39  ;;  %v6168_v9 = vpop.xlane.xlu1 %6167  ;;  %v6369_v63 = vmul.f32 %v14695_v36, %v6331_v4 }
 0xc1a   : > { %v9898_v50 = vpop.eup %9897  ;;  %9907 = vrsqrt.f32 %v6274_v11  ;;  %v6275_v22 = vadd.f32 1e-05, %v6243_v28  ;;  %v6244_v49 = vmul.f32 0.03125, %v6168_v9 }
 0xc1b   : > { %v6333_v51 = vmul.f32 %v9898_v50, %v14499_v7  ;;  %v6171_v30 = vpop.xlane.xlu0 %6170  ;;  %v6370_v58 = vmul.f32 %v14695_v36, %v6332_v33  ;;  %v6407_v32 = vadd.f32 %v14705_v26, %v6369_v63 }
 0xc1c   : > { %v9900_v37 = vpop.eup %9899  ;;  %9909 = vrsqrt.f32 %v6275_v22  ;;  %v6276_v39 = vadd.f32 1e-05, %v6244_v49  ;;  %v6245_v5 = vmul.f32 0.03125, %v6171_v30 }
 0xc1d   : > { %v6371_v4 = vmul.f32 %v14695_v36, %v6333_v51  ;;  %v6334_v52 = vmul.f32 %v9900_v37, %v14506_v24  ;;  %v6174_v10 = vpop.xlane.xlu1 %6173  ;;  %v6408_v11 = vadd.f32 %v14705_v26, %v6370_v58 }
 0xc1e   : > { %v9902_v28 = vpop.eup %9901  ;;  %9911 = vrsqrt.f32 %v6276_v39  ;;  %v6277_v9 = vadd.f32 1e-05, %v6245_v5  ;;  %v6246_v7 = vmul.f32 0.03125, %v6174_v10 }
 0xc1f   : > { %v6372_v50 = vmul.f32 %v14695_v36, %v6334_v52  ;;  %v6335_v33 = vmul.f32 %v9902_v28, %v14513_v40  ;;  %v6177_v22 = vpop.xlane.xlu0 %6176  ;;  %v6439_v49 = vpack.c.bf16 %v6408_v11, %v6407_v32  ;;  %v6409_v24 = vadd.f32 %v14705_v26, %v6371_v4 }
 0xc20   : > { %v9904_v30 = vpop.eup %9903  ;;  %9913 = vrsqrt.f32 %v6277_v9  ;;  %v6278_v51 = vadd.f32 1e-05, %v6246_v7  ;;  %v6247_v2 = vmul.f32 0.03125, %v6177_v22 }
 0xc21   : > { %v6410_v63 = vadd.f32 %v14705_v26, %v6372_v50  ;;  %v6336_v58 = vmul.f32 %v9904_v30, %v14519_v62  ;;  %8870 = vmatprep.mubr.msk.bf16.mxu0 %vm840_vm1, %v6439_v49  ;;  %v6180_v37 = vpop.xlane.xlu1 %6179  ;;  %v6373_v39 = vmul.f32 %v14695_v36, %v6335_v33 }
 0xc22   : > { %v9906_v5 = vpop.eup %9905  ;;  %9915 = vrsqrt.f32 %v6278_v51  ;;  %v6279_v40 = vadd.f32 1e-05, %v6247_v2  ;;  %v6248_v52 = vmul.f32 0.03125, %v6180_v37 }
 0xc23   : > { %v6337_v32 = vmul.f32 %v9906_v5, %v14525_v1  ;;  %v6183_v10 = vpop.xlane.xlu0 %6182  ;;  %v6440_v11 = vpack.c.bf16 %v6410_v63, %v6409_v24  ;;  %v6374_v28 = vmul.f32 %v14695_v36, %v6336_v58  ;;  %v6411_v33 = vadd.f32 %v14705_v26, %v6373_v39 }
 0xc24   : > { %v9908_v4 = vpop.eup %9907  ;;  %9917 = vrsqrt.f32 %v6279_v40  ;;  %v6280_v9 = vadd.f32 1e-05, %v6248_v52  ;;  %v6249_v7 = vmul.f32 0.03125, %v6183_v10 }
 0xc25   : > { %v6338_v62 = vmul.f32 %v9908_v4, %v14531_v27  ;;  %8871 = vmatmul.mubr.msk.bf16.vlgmr.msra.gmra.mrb[176].mxu0 %vm840_vm1, %v6440_v11  ;;  %v6186_v50 = vpop.xlane.xlu1 %6185  ;;  %v6412_v2 = vadd.f32 %v14705_v26, %v6374_v28  ;;  %v6375_v22 = vmul.f32 %v14695_v36, %v6337_v32 }
 0xc26   : > { %v9910_v1 = vpop.eup %9909  ;;  %9919 = vrsqrt.f32 %v6280_v9  ;;  %v6281_v49 = vadd.f32 1e-05, %v6249_v7  ;;  %v6250_v30 = vmul.f32 0.03125, %v6186_v50 }
 0xc27   : > { %v6339_v51 = vmul.f32 %v9910_v1, %v14537_v38  ;;  %v6441_v24 = vpack.c.bf16 %v6412_v2, %v6411_v33  ;;  %v6376_v63 = vmul.f32 %v14695_v36, %v6338_v62  ;;  %v6413_v39 = vadd.f32 %v14705_v26, %v6375_v22 }
 0xc28   : > { %v9912_v58 = vpop.eup %9911  ;;  %9921 = vrsqrt.f32 %v6281_v49  ;;  %v6282_v27 = vadd.f32 1e-05, %v6250_v30 }
 0xc29   : > { %v6340_v37 = vmul.f32 %v9912_v58, %v14543_v34  ;;  %8874 = vmatprep.mubr.msk.bf16.mxu0 %vm840_vm1, %v6441_v24  ;;  %v6414_v5 = vadd.f32 %v14705_v26, %v6376_v63  ;;  %v6377_v40 = vmul.f32 %v14695_v36, %v6339_v51 }
 0xc2a   : > { %v9914_v52 = vpop.eup %9913  ;;  %9923 = vrsqrt.f32 %v6282_v27 }
 0xc2b   : > { %v6341_v38 = vmul.f32 %v9914_v52, %v14549_v19  ;;  %v6442_v32 = vpack.c.bf16 %v6414_v5, %v6413_v39  ;;  %v6378_v10 = vmul.f32 %v14695_v36, %v6340_v37  ;;  %v6415_v34 = vadd.f32 %v14705_v26, %v6377_v40 }
 0xc2c   : > { %v9916_v11 = vpop.eup %9915 }
 0xc2d   : > { %v6342_v28 = vmul.f32 %v9916_v11, %v14555_v15  ;;  %8875 = vmatmul.mubr.msk.bf16.gmra.mrb[180].mxu0 %vm840_vm1, %v6442_v32  ;;  %v6416_v4 = vadd.f32 %v14705_v26, %v6378_v10  ;;  %v6379_v9 = vmul.f32 %v14695_v36, %v6341_v38 }
 0xc2e   : > { %v9918_v7 = vpop.eup %9917 }
 0xc2f   : > { %v6343_v62 = vmul.f32 %v9918_v7, %v14561_v21  ;;  %v6443_v50 = vpack.c.bf16 %v6416_v4, %v6415_v34  ;;  %v6380_v19 = vmul.f32 %v14695_v36, %v6342_v28  ;;  %v6417_v15 = vadd.f32 %v14705_v26, %v6379_v9 }
 0xc30   : > { %v9920_v33 = vpop.eup %9919 }
 0xc31   : > { %v6344_v2 = vmul.f32 %v9920_v33, %v14567_v41  ;;  %8878 = vmatprep.mubr.msk.bf16.mxu0 %vm840_vm1, %v6443_v50  ;;  %v6418_v22 = vadd.f32 %v14705_v26, %v6380_v19  ;;  %v6381_v1 = vmul.f32 %v14695_v36, %v6343_v62 }
 0xc32   : > { %v9922_v49 = vpop.eup %9921 }
 0xc33   : > { %v6345_v30 = vmul.f32 %v9922_v49, %v14573_v57  ;;  %v6444_v51 = vpack.c.bf16 %v6418_v22, %v6417_v15  ;;  %v6382_v21 = vmul.f32 %v14695_v36, %v6344_v2  ;;  %v6419_v41 = vadd.f32 %v14705_v26, %v6381_v1  ;;  %v9309_v1 = vld [vmem:[%s10325_s14] sm:$0xff]  }
 0xc34   : > { %v9924_v24 = vpop.eup %9923  ;;  %8902 = vmatprep.subr.bf16.mxu1 %v9309_v1 }
 0xc35   : > { %v6346_v63 = vmul.f32 %v9924_v24, %v14579_v18  ;;  %8879 = vmatmul.mubr.msk.bf16.gmra.mrb[184].mxu0 %vm840_vm1, %v6444_v51  ;;  %v6420_v58 = vadd.f32 %v14705_v26, %v6382_v21  ;;  %v6383_v27 = vmul.f32 %v14695_v36, %v6345_v30  ;;  %8903 = vmatpush3.bf16.msra.mxu1 %v9309_v1 }
 0xc37   : > { %v6445_v37 = vpack.c.bf16 %v6420_v58, %v6419_v41  ;;  %v6384_v39 = vmul.f32 %v14695_v36, %v6346_v63  ;;  %v6421_v57 = vadd.f32 %v14705_v26, %v6383_v27 }
 0xc39   : > { %8882 = vmatprep.mubr.msk.bf16.mxu0 %vm840_vm1, %v6445_v37  ;;  %v6422_v5 = vadd.f32 %v14705_v26, %v6384_v39 }
 0xc3b   : > { %v6446_v40 = vpack.c.bf16 %v6422_v5, %v6421_v57  ;;  %v9310_v57 = vld [vmem:[%s10325_s14 + $0x8] sm:$0xff]  }
 0xc3c   : > { %8904 = vmatprep.subr.bf16.mxu1 %v9310_v57 }
 0xc3d   : > { %8883 = vmatmul.mubr.msk.bf16.gmra.mrb[188].mxu0 %vm840_vm1, %v6446_v40  ;;  %8905 = vmatpush3.bf16.msra.mxu1 %v9310_v57 }
 0xc70   : > { %v6189_v18 = vpop.xlane.xlu0 %6188 }
 0xc71   : > { %v6251_v52 = vmul.f32 0.03125, %v6189_v18 }
 0xc72   : > { %v6192_v38 = vpop.xlane.xlu1 %6191 }
 0xc73   : > { %v6283_v32 = vadd.f32 1e-05, %v6251_v52  ;;  %v6252_v10 = vmul.f32 0.03125, %v6192_v38 }
 0xc74   : > { %v6195_v11 = vpop.xlane.xlu0 %6194 }
 0xc75   : > { %9925 = vrsqrt.f32 %v6283_v32  ;;  %v6284_v28 = vadd.f32 1e-05, %v6252_v10  ;;  %v6253_v34 = vmul.f32 0.03125, %v6195_v11  ;;  %v9311_v10 = vld [vmem:[%s10325_s14 + $0x10] sm:$0xff]  }
 0xc76   : > { %v6198_v4 = vpop.xlane.xlu1 %6197  ;;  %8906 = vmatprep.subr.bf16.mxu1 %v9311_v10 }
 0xc77   : > { %9927 = vrsqrt.f32 %v6284_v28  ;;  %v6285_v9 = vadd.f32 1e-05, %v6253_v34  ;;  %v6254_v7 = vmul.f32 0.03125, %v6198_v4  ;;  %8907 = vmatpush3.bf16.msra.mxu1 %v9311_v10 }
 0xc79   : > { %9929 = vrsqrt.f32 %v6285_v9  ;;  %v6286_v62 = vadd.f32 1e-05, %v6254_v7 }
 0xc7b   : > { %9931 = vrsqrt.f32 %v6286_v62 }
 0xc7c   : > { %v6201_v50 = vpop.xlane.xlu0 %6200 }
 0xc7d   : > { %v6255_v19 = vmul.f32 0.03125, %v6201_v50 }
 0xc7e   : > { %v6204_v33 = vpop.xlane.xlu1 %6203 }
 0xc7f   : > { %v9926_v2 = vpop.eup %9925  ;;  %v6287_v15 = vadd.f32 1e-05, %v6255_v19  ;;  %v6256_v22 = vmul.f32 0.03125, %v6204_v33  ;;  %v9312_v19 = vld [vmem:[%s10325_s14 + $0x18] sm:$0xff]  }
 0xc80   : > { %v6347_v49 = vmul.f32 %v9926_v2, %v14595_v31  ;;  %v6207_v30 = vpop.xlane.xlu0 %6206  ;;  %8908 = vmatprep.subr.bf16.mxu1 %v9312_v19 }
 0xc81   : > { %v9928_v51 = vpop.eup %9927  ;;  %9933 = vrsqrt.f32 %v6287_v15  ;;  %v6288_v21 = vadd.f32 1e-05, %v6256_v22  ;;  %v6257_v24 = vmul.f32 0.03125, %v6207_v30  ;;  %8909 = vmatpush3.bf16.msra.mxu1 %v9312_v19 }
 0xc82   : > { %v6348_v63 = vmul.f32 %v9928_v51, %v14598_v44  ;;  %v6210_v41 = vpop.xlane.xlu1 %6209  ;;  %v6385_v58 = vmul.f32 %v14695_v36, %v6347_v49 }
 0xc83   : > { %v9930_v27 = vpop.eup %9929  ;;  %9935 = vrsqrt.f32 %v6288_v21  ;;  %v6289_v37 = vadd.f32 1e-05, %v6257_v24  ;;  %v6258_v39 = vmul.f32 0.03125, %v6210_v41  ;;  %v9313_v41 = vld [vmem:[%s10325_s14 + $0x20] sm:$0xff]  }
 0xc84   : > { %v6349_v31 = vmul.f32 %v9930_v27, %v14603_v48  ;;  %v6386_v5 = vmul.f32 %v14695_v36, %v6348_v63  ;;  %v6423_v52 = vadd.f32 %v14705_v26, %v6385_v58  ;;  %8910 = vmatprep.subr.bf16.mxu1 %v9313_v41 }
 0xc85   : > { %v9932_v40 = vpop.eup %9931  ;;  %9937 = vrsqrt.f32 %v6289_v37  ;;  %v6290_v18 = vadd.f32 1e-05, %v6258_v39  ;;  %8911 = vmatpush3.bf16.msra.mxu1 %v9313_v41 }
 0xc86   : > { %v6350_v44 = vmul.f32 %v9932_v40, %v14609_v61  ;;  %v6424_v38 = vadd.f32 %v14705_v26, %v6386_v5  ;;  %v6387_v32 = vmul.f32 %v14695_v36, %v6349_v31  ;;  %v9314_v40 = vld [vmem:[%s10325_s14 + $0x28] sm:$0xff]  }
 0xc87   : > { %9939 = vrsqrt.f32 %v6290_v18  ;;  %8912 = vmatprep.subr.bf16.mxu1 %v9314_v40 }
 0xc88   : > { %v6213_v11 = vpop.xlane.xlu0 %6212  ;;  %v6447_v48 = vpack.c.bf16 %v6424_v38, %v6423_v52  ;;  %v6388_v28 = vmul.f32 %v14695_v36, %v6350_v44  ;;  %v6425_v61 = vadd.f32 %v14705_v26, %v6387_v32 }
 0xc89   : > { %v6259_v34 = vmul.f32 0.03125, %v6213_v11  ;;  %8913 = vmatpush3.bf16.msra.mxu1 %v9314_v40 }
 0xc8a   : > { %8886 = vmatprep.mubr.msk.bf16.mxu0 %vm840_vm1, %v6447_v48  ;;  %v6216_v4 = vpop.xlane.xlu1 %6215  ;;  %v6426_v9 = vadd.f32 %v14705_v26, %v6388_v28  ;;  %v9315_v28 = vld [vmem:[%s10325_s14 + $0x30] sm:$0xff]  }
 0xc8b   : > { %v9934_v7 = vpop.eup %9933  ;;  %v6291_v62 = vadd.f32 1e-05, %v6259_v34  ;;  %v6260_v50 = vmul.f32 0.03125, %v6216_v4  ;;  %8914 = vmatprep.subr.bf16.mxu1 %v9315_v28 }
 0xc8c   : > { %v6351_v33 = vmul.f32 %v9934_v7, %v14619_v43  ;;  %v6219_v2 = vpop.xlane.xlu0 %6218  ;;  %v6448_v15 = vpack.c.bf16 %v6426_v9, %v6425_v61 }
 0xc8d   : > { %v9936_v22 = vpop.eup %9935  ;;  %9941 = vrsqrt.f32 %v6291_v62  ;;  %v6292_v1 = vadd.f32 1e-05, %v6260_v50  ;;  %v6261_v49 = vmul.f32 0.03125, %v6219_v2  ;;  %8915 = vmatpush3.bf16.msra.mxu1 %v9315_v28 }
 0xc8e   : > { %v6352_v30 = vmul.f32 %v9936_v22, %v14622_v47  ;;  %8887 = vmatmul.mubr.msk.bf16.gmra.mrb[192].mxu0 %vm840_vm1, %v6448_v15  ;;  %v6222_v51 = vpop.xlane.xlu1 %6221  ;;  %v6389_v21 = vmul.f32 %v14695_v36, %v6351_v33  ;;  %v9316_v22 = vld [vmem:[%s10325_s14 + $0x38] sm:$0xff]  }
 0xc8f   : > { %v9938_v24 = vpop.eup %9937  ;;  %9943 = vrsqrt.f32 %v6292_v1  ;;  %v6293_v43 = vadd.f32 1e-05, %v6261_v49  ;;  %v6262_v63 = vmul.f32 0.03125, %v6222_v51  ;;  %8916 = vmatprep.subr.bf16.mxu1 %v9316_v22 }
 0xc90   : > { %v6353_v58 = vmul.f32 %v9938_v24, %v14627_v56  ;;  %v6390_v27 = vmul.f32 %v14695_v36, %v6352_v30  ;;  %v6427_v57 = vadd.f32 %v14705_v26, %v6389_v21 }
 0xc91   : > { %v9940_v37 = vpop.eup %9939  ;;  %9945 = vrsqrt.f32 %v6293_v43  ;;  %v6294_v39 = vadd.f32 1e-05, %v6262_v63  ;;  %8917 = vmatpush3.bf16.msra.mxu1 %v9316_v22 }
 0xc92   : > { %v6354_v47 = vmul.f32 %v9940_v37, %v14633_v20  ;;  %v6428_v31 = vadd.f32 %v14705_v26, %v6390_v27  ;;  %v6391_v5 = vmul.f32 %v14695_v36, %v6353_v58 }
 0xc93   : > { %9947 = vrsqrt.f32 %v6294_v39 }
 0xc94   : > { %v6225_v18 = vpop.xlane.xlu0 %6224  ;;  %v6449_v56 = vpack.c.bf16 %v6428_v31, %v6427_v57  ;;  %v6392_v44 = vmul.f32 %v14695_v36, %v6354_v47  ;;  %v6429_v20 = vadd.f32 %v14705_v26, %v6391_v5 }
 0xc95   : > { %v6263_v52 = vmul.f32 0.03125, %v6225_v18 }
 0xc96   : > { %8890 = vmatprep.mubr.msk.bf16.mxu0 %vm840_vm1, %v6449_v56  ;;  %v6228_v38 = vpop.xlane.xlu1 %6227  ;;  %v6430_v32 = vadd.f32 %v14705_v26, %v6392_v44 }
 0xc97   : > { %v9942_v10 = vpop.eup %9941  ;;  %v6295_v11 = vadd.f32 1e-05, %v6263_v52  ;;  %v6264_v48 = vmul.f32 0.03125, %v6228_v38 }
 0xc98   : > { %v6355_v34 = vmul.f32 %v9942_v10, %v14643_v42  ;;  %v6231_v4 = vpop.xlane.xlu0 %6230  ;;  %v6450_v61 = vpack.c.bf16 %v6430_v32, %v6429_v20 }
 0xc99   : > { %v9944_v9 = vpop.eup %9943  ;;  %9949 = vrsqrt.f32 %v6295_v11  ;;  %v6296_v7 = vadd.f32 1e-05, %v6264_v48  ;;  %v6265_v62 = vmul.f32 0.03125, %v6231_v4 }
 0xc9a   : > { %v6356_v50 = vmul.f32 %v9944_v9, %v14646_v29  ;;  %8891 = vmatmul.mubr.msk.bf16.gmra.mrb[196].mxu0 %vm840_vm1, %v6450_v61  ;;  %v6234_v19 = vpop.xlane.xlu1 %6233  ;;  %v6393_v33 = vmul.f32 %v14695_v36, %v6355_v34 }
 0xc9b   : > { %v9946_v2 = vpop.eup %9945  ;;  %9951 = vrsqrt.f32 %v6296_v7  ;;  %v6297_v15 = vadd.f32 1e-05, %v6265_v62  ;;  %v6266_v42 = vmul.f32 0.03125, %v6234_v19 }
 0xc9c   : > { %v6357_v1 = vmul.f32 %v9946_v2, %v14651_v46  ;;  %v6394_v49 = vmul.f32 %v14695_v36, %v6356_v50  ;;  %v6431_v21 = vadd.f32 %v14705_v26, %v6393_v33 }
 0xc9d   : > { %v9948_v30 = vpop.eup %9947  ;;  %9953 = vrsqrt.f32 %v6297_v15  ;;  %v6298_v51 = vadd.f32 1e-05, %v6266_v42 }
 0xc9e   : > { %v6358_v29 = vmul.f32 %v9948_v30, %v14657_v14  ;;  %v6432_v24 = vadd.f32 %v14705_v26, %v6394_v49  ;;  %v6395_v43 = vmul.f32 %v14695_v36, %v6357_v1 }
 0xc9f   : > { %9955 = vrsqrt.f32 %v6298_v51 }
 0xca0   : > { %v6451_v63 = vpack.c.bf16 %v6432_v24, %v6431_v21  ;;  %v6396_v41 = vmul.f32 %v14695_v36, %v6358_v29  ;;  %v6433_v46 = vadd.f32 %v14705_v26, %v6395_v43 }
 0xca2   : > { %8894 = vmatprep.mubr.msk.bf16.mxu0 %vm840_vm1, %v6451_v63  ;;  %v6434_v58 = vadd.f32 %v14705_v26, %v6396_v41 }
 0xca3   : > { %v9950_v27 = vpop.eup %9949 }
 0xca4   : > { %v6359_v14 = vmul.f32 %v9950_v27, %v14667_v35  ;;  %v6452_v37 = vpack.c.bf16 %v6434_v58, %v6433_v46 }
 0xca5   : > { %v9952_v39 = vpop.eup %9951 }
 0xca6   : > { %v6360_v47 = vmul.f32 %v9952_v39, %v14670_v12  ;;  %8895 = vmatmul.mubr.msk.bf16.gmra.mrb[200].mxu0 %vm840_vm1, %v6452_v37  ;;  %v6397_v57 = vmul.f32 %v14695_v36, %v6359_v14 }
 0xca7   : > { %v9954_v31 = vpop.eup %9953 }
 0xca8   : > { %v6361_v5 = vmul.f32 %v9954_v31, %v14675_v6  ;;  %v6398_v40 = vmul.f32 %v14695_v36, %v6360_v47  ;;  %v6435_v44 = vadd.f32 %v14705_v26, %v6397_v57 }
 0xca9   : > { %v9956_v18 = vpop.eup %9955 }
 0xcaa   : > { %v6362_v56 = vmul.f32 %v9956_v18, %v14681_v25  ;;  %v6436_v35 = vadd.f32 %v14705_v26, %v6398_v40  ;;  %v6399_v52 = vmul.f32 %v14695_v36, %v6361_v5  ;;  %v14829_v25 = vld [vmem:[%s637_s18] ss:$0 sm:$0xff] }
 0xcac   : > { %v6453_v12 = vpack.c.bf16 %v6436_v35, %v6435_v44  ;;  %v6400_v38 = vmul.f32 %v14695_v36, %v6362_v56  ;;  %v6437_v20 = vadd.f32 %v14705_v26, %v6399_v52 }
 0xcae   : > { %8898 = vmatprep.mubr.msk.bf16.mxu0 %vm840_vm1, %v6453_v12  ;;  %v6438_v6 = vadd.f32 %v14705_v26, %v6400_v38 }
 0xcb0   : > { %v6454_v32 = vpack.c.bf16 %v6438_v6, %v6437_v20 }
 0xcb2   : > { %8899 = vmatmul.mubr.msk.bf16.gmra.mrb[204].mxu0 %vm840_vm1, %v6454_v32 }
 0xcf8   : > { %v8872_v10 = vpop.f32.mrb[176].mxu0 }
 0xcf9   : > { %v14832_v11 = vadd.f32 %v8872_v10, %v14829_v25  ;;  %v6560_v36 = vpop.f32.mrb[177].mxu0 }
 0xcfa   : > { %v14835_v48 = vadd.f32 %v14829_v25, %v6560_v36  ;;  %v8873_v28 = vpop.f32.mrb[178].mxu0 }
 0xcfb   : > { %v7757_v26 = vmul.f32 -1.702, %v14832_v11  ;;  %v14839_v34 = vadd.f32 %v8873_v28, %v14829_v25  ;;  %v6563_v4 = vpop.f32.mrb[179].mxu0 }
 0xcfc   : > { %v7755_v61 = vmul.f32 -1.702, %v14835_v48  ;;  %v14843_v9 = vadd.f32 %v14829_v25, %v6563_v4 }
 0xcfd   : > { %v6755_v7 = vmul.f32 1.442695, %v7757_v26  ;;  %v7758_v62 = vmul.f32 -1.702, %v14839_v34 }
 0xcfe   : > { %v6751_v50 = vmul.f32 1.442695, %v7755_v61  ;;  %v7756_v19 = vmul.f32 -1.702, %v14843_v9 }
 0xcff   : > { %9957 = vpow2.f32 %v6755_v7  ;;  %v6757_v33 = vmul.f32 1.442695, %v7758_v62 }
 0xd00   : > { %9959 = vpow2.f32 %v6751_v50  ;;  %v6753_v2 = vmul.f32 1.442695, %v7756_v19  ;;  %v8876_v15 = vpop.f32.mrb[180].mxu0 }
 0xd01   : > { %9961 = vpow2.f32 %v6757_v33  ;;  %v14848_v42 = vadd.f32 %v8876_v15, %v14829_v25  ;;  %v6576_v22 = vpop.f32.mrb[181].mxu0 }
 0xd02   : > { %9963 = vpow2.f32 %v6753_v2  ;;  %v14851_v1 = vadd.f32 %v14829_v25, %v6576_v22  ;;  %v8877_v49 = vpop.f32.mrb[182].mxu0 }
 0xd03   : > { %v7761_v30 = vmul.f32 -1.702, %v14848_v42  ;;  %v14855_v51 = vadd.f32 %v8877_v49, %v14829_v25  ;;  %v6579_v29 = vpop.f32.mrb[183].mxu0 }
 0xd04   : > { %v7759_v21 = vmul.f32 -1.702, %v14851_v1  ;;  %v14859_v24 = vadd.f32 %v14829_v25, %v6579_v29 }
 0xd05   : > { %v6763_v43 = vmul.f32 1.442695, %v7761_v30  ;;  %v7762_v63 = vmul.f32 -1.702, %v14855_v51 }
 0xd06   : > { %v6759_v41 = vmul.f32 1.442695, %v7759_v21  ;;  %v7760_v46 = vmul.f32 -1.702, %v14859_v24 }
 0xd07   : > { %9965 = vpow2.f32 %v6763_v43  ;;  %v6765_v58 = vmul.f32 1.442695, %v7762_v63 }
 0xd08   : > { %9967 = vpow2.f32 %v6759_v41  ;;  %v6761_v27 = vmul.f32 1.442695, %v7760_v46  ;;  %v8880_v14 = vpop.f32.mrb[184].mxu0 }
 0xd09   : > { %v9958_v37 = vpop.eup %9957  ;;  %9969 = vpow2.f32 %v6765_v58  ;;  %v14864_v39 = vadd.f32 %v8880_v14, %v14829_v25  ;;  %v6592_v47 = vpop.f32.mrb[185].mxu0 }
 0xd0a   : > { %v9960_v57 = vpop.eup %9959  ;;  %v6817_v31 = vadd.f32 1.0, %v9958_v37  ;;  %9971 = vpow2.f32 %v6761_v27  ;;  %v14867_v5 = vadd.f32 %v14829_v25, %v6592_v47  ;;  %v8881_v40 = vpop.f32.mrb[186].mxu0 }
 0xd0b   : > { %v9962_v18 = vpop.eup %9961  ;;  %v6815_v56 = vadd.f32 1.0, %v9960_v57  ;;  %v7765_v44 = vmul.f32 -1.702, %v14864_v39  ;;  %v14871_v35 = vadd.f32 %v8881_v40, %v14829_v25  ;;  %v6595_v52 = vpop.f32.mrb[187].mxu0 }
 0xd0c   : > { %v9964_v12 = vpop.eup %9963  ;;  %9973 = vrcp.f32 %v6817_v31  ;;  %v6818_v38 = vadd.f32 1.0, %v9962_v18  ;;  %v7763_v20 = vmul.f32 -1.702, %v14867_v5  ;;  %v14875_v6 = vadd.f32 %v14829_v25, %v6595_v52 }
 0xd0d   : > { %9975 = vrcp.f32 %v6815_v56  ;;  %v6816_v32 = vadd.f32 1.0, %v9964_v12  ;;  %v6771_v10 = vmul.f32 1.442695, %v7765_v44  ;;  %v7766_v36 = vmul.f32 -1.702, %v14871_v35 }
 0xd0e   : > { %9977 = vrcp.f32 %v6818_v38  ;;  %v6767_v28 = vmul.f32 1.442695, %v7763_v20  ;;  %v7764_v26 = vmul.f32 -1.702, %v14875_v6 }
 0xd0f   : > { %9979 = vrcp.f32 %v6816_v32  ;;  %v6773_v4 = vmul.f32 1.442695, %v7766_v36 }
 0xd10   : > { %9981 = vpow2.f32 %v6771_v10  ;;  %v6769_v61 = vmul.f32 1.442695, %v7764_v26  ;;  %v8884_v7 = vpop.f32.mrb[188].mxu0 }
 0xd11   : > { %v9966_v62 = vpop.eup %9965  ;;  %9983 = vpow2.f32 %v6767_v28  ;;  %v14880_v50 = vadd.f32 %v8884_v7, %v14829_v25  ;;  %v6608_v19 = vpop.f32.mrb[189].mxu0 }
 0xd12   : > { %v9968_v33 = vpop.eup %9967  ;;  %v6821_v2 = vadd.f32 1.0, %v9966_v62  ;;  %9985 = vpow2.f32 %v6773_v4  ;;  %v14883_v15 = vadd.f32 %v14829_v25, %v6608_v19  ;;  %v8885_v22 = vpop.f32.mrb[190].mxu0 }
 0xd13   : > { %v9970_v49 = vpop.eup %9969  ;;  %v6819_v30 = vadd.f32 1.0, %v9968_v33  ;;  %9987 = vpow2.f32 %v6769_v61  ;;  %v7769_v29 = vmul.f32 -1.702, %v14880_v50  ;;  %v14887_v21 = vadd.f32 %v8885_v22, %v14829_v25  ;;  %v6611_v43 = vpop.f32.mrb[191].mxu0 }
 0xd14   : > { %v9972_v63 = vpop.eup %9971  ;;  %9989 = vrcp.f32 %v6821_v2  ;;  %v6822_v41 = vadd.f32 1.0, %v9970_v49  ;;  %v7767_v46 = vmul.f32 -1.702, %v14883_v15  ;;  %v14891_v58 = vadd.f32 %v14829_v25, %v6611_v43 }
 0xd15   : > { %9991 = vrcp.f32 %v6819_v30  ;;  %v6820_v27 = vadd.f32 1.0, %v9972_v63  ;;  %v6779_v14 = vmul.f32 1.442695, %v7769_v29  ;;  %v7770_v37 = vmul.f32 -1.702, %v14887_v21 }
 0xd16   : > { %v9974_v47 = vpop.eup %9973  ;;  %9993 = vrcp.f32 %v6822_v41  ;;  %v6775_v57 = vmul.f32 1.442695, %v7767_v46  ;;  %v7768_v31 = vmul.f32 -1.702, %v14891_v58 }
 0xd17   : > { %v9976_v40 = vpop.eup %9975  ;;  %9995 = vrcp.f32 %v6820_v27  ;;  %v6781_v18 = vmul.f32 1.442695, %v7770_v37  ;;  %v6913_v12 = vmul.f32 %v9974_v47, %v14832_v11 }
 0xd18   : > { %v9978_v56 = vpop.eup %9977  ;;  %9997 = vpow2.f32 %v6779_v14  ;;  %v6777_v44 = vmul.f32 1.442695, %v7768_v31  ;;  %v6911_v32 = vmul.f32 %v9976_v40, %v14835_v48 }
 0xd19   : > { %v9980_v52 = vpop.eup %9979  ;;  %v6914_v38 = vmul.f32 %v9978_v56, %v14839_v34  ;;  %9999 = vpow2.f32 %v6775_v57 }
 0xd1a   : > { %v9982_v20 = vpop.eup %9981  ;;  %v6912_v10 = vmul.f32 %v9980_v52, %v14843_v9  ;;  %10001 = vpow2.f32 %v6781_v18 }
 0xd1b   : > { %v9984_v36 = vpop.eup %9983  ;;  %v6944_v28 = vpack.c.bf16 %v6914_v38, %v6913_v12  ;;  %v6825_v26 = vadd.f32 1.0, %v9982_v20  ;;  %10003 = vpow2.f32 %v6777_v44 }
 0xd1c   : > { %v9986_v4 = vpop.eup %9985  ;;  %v6823_v61 = vadd.f32 1.0, %v9984_v36  ;;  %v6943_v7 = vpack.c.bf16 %v6912_v10, %v6911_v32 }
 0xd1d   : > { %v9988_v62 = vpop.eup %9987  ;;  %10005 = vrcp.f32 %v6825_v26  ;;  %v6826_v19 = vadd.f32 1.0, %v9986_v4 }
 0xd1e   : > { %v9990_v11 = vpop.eup %9989  ;;  %10007 = vrcp.f32 %v6823_v61  ;;  %v6824_v34 = vadd.f32 1.0, %v9988_v62  ;;  %8918 = vmatprep.mubr.bf16.mxu1 %v6943_v7 }
 0xd1f   : > { %v9992_v33 = vpop.eup %9991  ;;  %10009 = vrcp.f32 %v6826_v19  ;;  %8919 = vmatmul.mubr.bf16.vlgmr.msra.gmra.mrb[144].mxu1 %v6944_v28  ;;  %v6917_v2 = vmul.f32 %v9990_v11, %v14848_v42 }
 0xd20   : > { %v9994_v48 = vpop.eup %9993  ;;  %10011 = vrcp.f32 %v6824_v34  ;;  %v6915_v30 = vmul.f32 %v9992_v33, %v14851_v1 }
 0xd21   : > { %v9996_v9 = vpop.eup %9995  ;;  %v6918_v22 = vmul.f32 %v9994_v48, %v14855_v51 }
 0xd22   : > { %v9998_v49 = vpop.eup %9997  ;;  %v6916_v29 = vmul.f32 %v9996_v9, %v14859_v24 }
 0xd23   : > { %v10000_v43 = vpop.eup %9999  ;;  %v6829_v63 = vadd.f32 1.0, %v9998_v49  ;;  %v6946_v41 = vpack.c.bf16 %v6918_v22, %v6917_v2 }
 0xd24   : > { %v10002_v46 = vpop.eup %10001  ;;  %v6827_v27 = vadd.f32 1.0, %v10000_v43  ;;  %v6945_v14 = vpack.c.bf16 %v6916_v29, %v6915_v30 }
 0xd25   : > { %v10004_v37 = vpop.eup %10003  ;;  %10013 = vrcp.f32 %v6829_v63  ;;  %v6830_v47 = vadd.f32 1.0, %v10002_v46 }
 0xd26   : > { %10015 = vrcp.f32 %v6827_v27  ;;  %v6828_v57 = vadd.f32 1.0, %v10004_v37  ;;  %8922 = vmatprep.mubr.bf16.mxu1 %v6945_v14 }
 0xd27   : > { %v10006_v42 = vpop.eup %10005  ;;  %10017 = vrcp.f32 %v6830_v47  ;;  %8923 = vmatmul.mubr.bf16.gmra.mrb[148].mxu1 %v6946_v41 }
 0xd28   : > { %v10008_v51 = vpop.eup %10007  ;;  %10019 = vrcp.f32 %v6828_v57  ;;  %v6921_v24 = vmul.f32 %v10006_v42, %v14864_v39 }
 0xd29   : > { %v10010_v1 = vpop.eup %10009  ;;  %v6919_v18 = vmul.f32 %v10008_v51, %v14867_v5 }
 0xd2a   : > { %v10012_v31 = vpop.eup %10011  ;;  %v6922_v40 = vmul.f32 %v10010_v1, %v14871_v35 }
 0xd2b   : > { %v6920_v56 = vmul.f32 %v10012_v31, %v14875_v6 }
 0xd2c   : > { %v6948_v44 = vpack.c.bf16 %v6922_v40, %v6921_v24 }
 0xd2d   : > { %v6947_v52 = vpack.c.bf16 %v6920_v56, %v6919_v18 }
 0xd2f   : > { %v10014_v12 = vpop.eup %10013  ;;  %8926 = vmatprep.mubr.bf16.mxu1 %v6947_v52 }
 0xd30   : > { %v10016_v38 = vpop.eup %10015  ;;  %8927 = vmatmul.mubr.bf16.gmra.mrb[152].mxu1 %v6948_v44  ;;  %v6925_v10 = vmul.f32 %v10014_v12, %v14880_v50 }
 0xd31   : > { %v10018_v20 = vpop.eup %10017  ;;  %v6923_v39 = vmul.f32 %v10016_v38, %v14883_v15 }
 0xd32   : > { %v10020_v32 = vpop.eup %10019  ;;  %v6926_v36 = vmul.f32 %v10018_v20, %v14887_v21 }
 0xd33   : > { %v6924_v35 = vmul.f32 %v10020_v32, %v14891_v58 }
 0xd34   : > { %v6950_v28 = vpack.c.bf16 %v6926_v36, %v6925_v10 }
 0xd35   : > { %v6949_v5 = vpack.c.bf16 %v6924_v35, %v6923_v39 }
 0xd37   : > { %8930 = vmatprep.mubr.bf16.mxu1 %v6949_v5 }
 0xd38   : > { %8931 = vmatmul.mubr.bf16.gmra.mrb[156].mxu1 %v6950_v28 }
 0xd61   : > { %v8888_v6 = vpop.f32.mrb[192].mxu0 }
 0xd62   : > { %v14912_v26 = vadd.f32 %v8888_v6, %v14829_v25  ;;  %v6624_v4 = vpop.f32.mrb[193].mxu0 }
 0xd63   : > { %v14915_v61 = vadd.f32 %v14829_v25, %v6624_v4  ;;  %v8889_v7 = vpop.f32.mrb[194].mxu0 }
 0xd64   : > { %v7773_v50 = vmul.f32 -1.702, %v14912_v26  ;;  %v14919_v21 = vadd.f32 %v8889_v7, %v14829_v25  ;;  %v6627_v15 = vpop.f32.mrb[195].mxu0 }
 0xd65   : > { %v7771_v58 = vmul.f32 -1.702, %v14915_v61  ;;  %v14923_v62 = vadd.f32 %v14829_v25, %v6627_v15 }
 0xd66   : > { %v6787_v19 = vmul.f32 1.442695, %v7773_v50  ;;  %v7774_v11 = vmul.f32 -1.702, %v14919_v21 }
 0xd67   : > { %v6783_v34 = vmul.f32 1.442695, %v7771_v58  ;;  %v7772_v33 = vmul.f32 -1.702, %v14923_v62 }
 0xd68   : > { %10021 = vpow2.f32 %v6787_v19  ;;  %v6789_v48 = vmul.f32 1.442695, %v7774_v11 }
 0xd69   : > { %10023 = vpow2.f32 %v6783_v34  ;;  %v6785_v9 = vmul.f32 1.442695, %v7772_v33 }
 0xd6a   : > { %10025 = vpow2.f32 %v6789_v48 }
 0xd6b   : > { %10027 = vpow2.f32 %v6785_v9 }
 0xd6d   : > { %v8892_v2 = vpop.f32.mrb[196].mxu0 }
 0xd6e   : > { %v14928_v22 = vadd.f32 %v8892_v2, %v14829_v25  ;;  %v6640_v49 = vpop.f32.mrb[197].mxu0 }
 0xd6f   : > { %v14931_v30 = vadd.f32 %v14829_v25, %v6640_v49  ;;  %v8893_v29 = vpop.f32.mrb[198].mxu0 }
 0xd70   : > { %v7777_v43 = vmul.f32 -1.702, %v14928_v22  ;;  %v14935_v63 = vadd.f32 %v8893_v29, %v14829_v25  ;;  %v6643_v41 = vpop.f32.mrb[199].mxu0 }
 0xd71   : > { %v7775_v46 = vmul.f32 -1.702, %v14931_v30  ;;  %v14939_v27 = vadd.f32 %v14829_v25, %v6643_v41 }
 0xd72   : > { %v10022_v14 = vpop.eup %10021  ;;  %v6795_v37 = vmul.f32 1.442695, %v7777_v43  ;;  %v7778_v47 = vmul.f32 -1.702, %v14935_v63 }
 0xd73   : > { %v10024_v57 = vpop.eup %10023  ;;  %v6833_v42 = vadd.f32 1.0, %v10022_v14  ;;  %v7776_v51 = vmul.f32 -1.702, %v14939_v27  ;;  %v6791_v18 = vmul.f32 1.442695, %v7775_v46 }
 0xd74   : > { %v10026_v1 = vpop.eup %10025  ;;  %v6831_v31 = vadd.f32 1.0, %v10024_v57  ;;  %10029 = vpow2.f32 %v6795_v37  ;;  %v6797_v44 = vmul.f32 1.442695, %v7778_v47 }
 0xd75   : > { %v10028_v24 = vpop.eup %10027  ;;  %10031 = vrcp.f32 %v6833_v42  ;;  %v6834_v40 = vadd.f32 1.0, %v10026_v1  ;;  %v6793_v52 = vmul.f32 1.442695, %v7776_v51 }
 0xd76   : > { %10033 = vrcp.f32 %v6831_v31  ;;  %v6832_v56 = vadd.f32 1.0, %v10028_v24 }
 0xd77   : > { %10035 = vrcp.f32 %v6834_v40 }
 0xd78   : > { %10037 = vrcp.f32 %v6832_v56 }
 0xd79   : > { %10039 = vpow2.f32 %v6791_v18  ;;  %v8896_v12 = vpop.f32.mrb[200].mxu0 }
 0xd7a   : > { %10041 = vpow2.f32 %v6797_v44  ;;  %v14944_v38 = vadd.f32 %v8896_v12, %v14829_v25  ;;  %v6656_v20 = vpop.f32.mrb[201].mxu0 }
 0xd7b   : > { %10043 = vpow2.f32 %v6793_v52  ;;  %v14947_v32 = vadd.f32 %v14829_v25, %v6656_v20  ;;  %v8897_v10 = vpop.f32.mrb[202].mxu0 }
 0xd7c   : > { %v7781_v36 = vmul.f32 -1.702, %v14944_v38  ;;  %v14951_v39 = vadd.f32 %v8897_v10, %v14829_v25  ;;  %v6659_v35 = vpop.f32.mrb[203].mxu0 }
 0xd7d   : > { %v7779_v28 = vmul.f32 -1.702, %v14947_v32  ;;  %v14955_v5 = vadd.f32 %v14829_v25, %v6659_v35 }
 0xd7e   : > { %v10030_v6 = vpop.eup %10029  ;;  %v6803_v4 = vmul.f32 1.442695, %v7781_v36  ;;  %v7782_v7 = vmul.f32 -1.702, %v14951_v39 }
 0xd7f   : > { %v10032_v50 = vpop.eup %10031  ;;  %v6799_v15 = vmul.f32 1.442695, %v7779_v28  ;;  %v7780_v58 = vmul.f32 -1.702, %v14955_v5  ;;  %v6837_v33 = vadd.f32 1.0, %v10030_v6 }
 0xd80   : > { %v10034_v19 = vpop.eup %10033  ;;  %10045 = vpow2.f32 %v6803_v4  ;;  %v6805_v11 = vmul.f32 1.442695, %v7782_v7  ;;  %v6929_v2 = vmul.f32 %v10032_v50, %v14912_v26 }
 0xd81   : > { %v10036_v34 = vpop.eup %10035  ;;  %v6801_v48 = vmul.f32 1.442695, %v7780_v58  ;;  %10047 = vpow2.f32 %v6799_v15  ;;  %v6927_v43 = vmul.f32 %v10034_v19, %v14915_v61 }
 0xd82   : > { %v10038_v9 = vpop.eup %10037  ;;  %v6930_v49 = vmul.f32 %v10036_v34, %v14919_v21  ;;  %10049 = vpow2.f32 %v6805_v11 }
 0xd83   : > { %v10040_v29 = vpop.eup %10039  ;;  %v6928_v41 = vmul.f32 %v10038_v9, %v14923_v62  ;;  %10051 = vpow2.f32 %v6801_v48 }
 0xd84   : > { %v10042_v46 = vpop.eup %10041  ;;  %v6835_v14 = vadd.f32 1.0, %v10040_v29  ;;  %v6952_v37 = vpack.c.bf16 %v6930_v49, %v6929_v2  ;;  %10053 = vrcp.f32 %v6837_v33 }
 0xd85   : > { %v10044_v47 = vpop.eup %10043  ;;  %v6838_v57 = vadd.f32 1.0, %v10042_v46  ;;  %v8900_v42 = vpop.f32.mrb[204].mxu0  ;;  %v6951_v51 = vpack.c.bf16 %v6928_v41, %v6927_v43 }
 0xd86   : > { %10055 = vrcp.f32 %v6835_v14  ;;  %v6836_v26 = vadd.f32 1.0, %v10044_v47  ;;  %v14964_v21 = vadd.f32 %v8900_v42, %v14829_v25  ;;  %v6672_v1 = vpop.f32.mrb[205].mxu0 }
 0xd87   : > { %10057 = vrcp.f32 %v6838_v57  ;;  %v14967_v61 = vadd.f32 %v14829_v25, %v6672_v1  ;;  %v8901_v62 = vpop.f32.mrb[206].mxu0  ;;  %8934 = vmatprep.mubr.bf16.mxu1 %v6951_v51 }
 0xd88   : > { %10059 = vrcp.f32 %v6836_v26  ;;  %v7785_v31 = vmul.f32 -1.702, %v14964_v21  ;;  %v14971_v24 = vadd.f32 %v8901_v62, %v14829_v25  ;;  %v6675_v40 = vpop.f32.mrb[207].mxu0  ;;  %8935 = vmatmul.mubr.bf16.gmra.mrb[160].mxu1 %v6952_v37 }
 0xd89   : > { %v7783_v18 = vmul.f32 -1.702, %v14967_v61  ;;  %v14975_v56 = vadd.f32 %v14829_v25, %v6675_v40 }
 0xd8a   : > { %v10046_v44 = vpop.eup %10045  ;;  %v6811_v52 = vmul.f32 1.442695, %v7785_v31  ;;  %v7786_v12 = vmul.f32 -1.702, %v14971_v24 }
 0xd8b   : > { %v6841_v20 = vadd.f32 1.0, %v10046_v44  ;;  %v6807_v10 = vmul.f32 1.442695, %v7783_v18  ;;  %v7784_v36 = vmul.f32 -1.702, %v14975_v56  ;;  %v10048_v35 = vpop.eup %10047 }
 0xd8c   : > { %10061 = vpow2.f32 %v6811_v52  ;;  %v10050_v28 = vpop.eup %10049  ;;  %v6839_v6 = vadd.f32 1.0, %v10048_v35  ;;  %v6813_v50 = vmul.f32 1.442695, %v7786_v12 }
 0xd8d   : > { %10063 = vrcp.f32 %v6841_v20  ;;  %v10052_v4 = vpop.eup %10051  ;;  %v6842_v7 = vadd.f32 1.0, %v10050_v28  ;;  %v6809_v58 = vmul.f32 1.442695, %v7784_v36  ;;  %v14996_v36 = vld [vmem:[%s645_s27] ss:$0 sm:$0xff] }
 0xd8e   : > { %10065 = vpow2.f32 %v6807_v10  ;;  %v10054_v15 = vpop.eup %10053  ;;  %v6840_v25 = vadd.f32 1.0, %v10052_v4 }
 0xd8f   : > { %10067 = vrcp.f32 %v6839_v6  ;;  %v6933_v33 = vmul.f32 %v10054_v15, %v14928_v22 }
 0xd90   : > { %v10056_v19 = vpop.eup %10055  ;;  %10069 = vrcp.f32 %v6842_v7 }
 0xd91   : > { %v10058_v11 = vpop.eup %10057  ;;  %10071 = vrcp.f32 %v6840_v25  ;;  %v6931_v9 = vmul.f32 %v10056_v19, %v14931_v30 }
 0xd92   : > { %v10060_v34 = vpop.eup %10059  ;;  %v6934_v48 = vmul.f32 %v10058_v11, %v14935_v63  ;;  %10073 = vpow2.f32 %v6813_v50 }
 0xd93   : > { %v6932_v2 = vmul.f32 %v10060_v34, %v14939_v27  ;;  %10075 = vpow2.f32 %v6809_v58 }
 0xd94   : > { %v6954_v49 = vpack.c.bf16 %v6934_v48, %v6933_v33 }
 0xd95   : > { %v6953_v29 = vpack.c.bf16 %v6932_v2, %v6931_v9 }
 0xd96   : > { %v10062_v43 = vpop.eup %10061 }
 0xd97   : > { %v10064_v41 = vpop.eup %10063  ;;  %8938 = vmatprep.mubr.bf16.mxu1 %v6953_v29  ;;  %v6845_v37 = vadd.f32 1.0, %v10062_v43 }
 0xd98   : > { %v10066_v46 = vpop.eup %10065  ;;  %8939 = vmatmul.mubr.bf16.gmra.mrb[164].mxu1 %v6954_v49  ;;  %v6937_v63 = vmul.f32 %v10064_v41, %v14944_v38 }
 0xd99   : > { %v10068_v14 = vpop.eup %10067  ;;  %v6843_v57 = vadd.f32 1.0, %v10066_v46  ;;  %10077 = vrcp.f32 %v6845_v37 }
 0xd9a   : > { %v10070_v47 = vpop.eup %10069  ;;  %v6935_v27 = vmul.f32 %v10068_v14, %v14947_v32 }
 0xd9b   : > { %v10072_v22 = vpop.eup %10071  ;;  %v6938_v42 = vmul.f32 %v10070_v47, %v14951_v39  ;;  %10079 = vrcp.f32 %v6843_v57 }
 0xd9c   : > { %v10074_v30 = vpop.eup %10073  ;;  %v6936_v51 = vmul.f32 %v10072_v22, %v14955_v5 }
 0xd9d   : > { %v10076_v26 = vpop.eup %10075  ;;  %v6846_v1 = vadd.f32 1.0, %v10074_v30  ;;  %v6956_v62 = vpack.c.bf16 %v6938_v42, %v6937_v63  ;;  %v16416_v30 = vld [vmem:[#allocation110_spill] sm:$0xff] }
 0xd9e   : > { %v6844_v31 = vadd.f32 1.0, %v10076_v26  ;;  %v6955_v40 = vpack.c.bf16 %v6936_v51, %v6935_v27  ;;  %v16417_v26 = vld [vmem:[#allocation146_spill] sm:$0xff] }
 0xd9f   : > { %10081 = vrcp.f32 %v6846_v1 }
 0xda0   : > { %10083 = vrcp.f32 %v6844_v31  ;;  %8942 = vmatprep.mubr.bf16.mxu1 %v6955_v40 }
 0xda1   : > { %8943 = vmatmul.mubr.bf16.gmra.mrb[168].mxu1 %v6956_v62  ;;  %v16418_v62 = vld [vmem:[#allocation172_spill] sm:$0xff] }
 0xda3   : > { %v10078_v38 = vpop.eup %10077 }
 0xda4   : > { %v6941_v32 = vmul.f32 %v10078_v38, %v14964_v21 }
 0xda5   : > { %v10080_v18 = vpop.eup %10079 }
 0xda6   : > { %v6939_v52 = vmul.f32 %v10080_v18, %v14967_v61 }
 0xda9   : > { %v10082_v39 = vpop.eup %10081 }
 0xdaa   : > { %v10084_v44 = vpop.eup %10083  ;;  %v6942_v5 = vmul.f32 %v10082_v39, %v14971_v24 }
 0xdab   : > { %v6940_v12 = vmul.f32 %v10084_v44, %v14975_v56  ;;  %v16419_v44 = vld [vmem:[#allocation101_spill] sm:$0xff] }
 0xdac   : > { %v6958_v20 = vpack.c.bf16 %v6942_v5, %v6941_v32 }
 0xdad   : > { %v6957_v10 = vpack.c.bf16 %v6940_v12, %v6939_v52  ;;  %v16420_v12 = vld [vmem:[#allocation38_spill] sm:$0xff] }
 0xdaf   : > { %8946 = vmatprep.mubr.bf16.mxu1 %v6957_v10 }
 0xdb0   : > { %8947 = vmatmul.mubr.bf16.gmra.mrb[172].mxu1 %v6958_v20 }
 0xdf2   : > { %v8920_v35 = vpop.f32.mrb[144].mxu1 }
 0xdf3   : > { %v7073_v28 = vadd.f32 %v8920_v35, %v14996_v36  ;;  %v7064_v21 = vpop.f32.mrb[145].mxu1  ;;  %v16421_v35 = vld [vmem:[#allocation78_spill] sm:$0xff] }
 0xdf4   : > { %v7065_v24 = vadd.f32 %v14996_v36, %v7064_v21  ;;  %v8921_v6 = vpop.f32.mrb[146].mxu1  ;;  %v16422_v21 = vld [vmem:[#allocation160_spill] sm:$0xff] }
 0xdf5   : > { %v15001_v61 = vadd.f32 %v7073_v28, %v14276_v59  ;;  %v7076_v56 = vadd.f32 %v8921_v6, %v14996_v36  ;;  %v7067_v4 = vpop.f32.mrb[147].mxu1 }
 0xdf6   : > { %v15005_v7 = vadd.f32 %v7065_v24, %v14267_v3  ;;  %v7068_v50 = vadd.f32 %v14996_v36, %v7067_v4 }
 0xdf7   : > { %7225 = vst.msk [vmem:[#allocation2 + $0x10] sm:$0xff] %vm840_vm1, %v15001_v61  ;;  %v15011_v15 = vadd.f32 %v7076_v56, %v14270_v45 }
 0xdf8   : > { %7223 = vst.msk [vmem:[#allocation2] sm:$0xff] %vm840_vm1, %v15005_v7  ;;  %v15016_v59 = vadd.f32 %v7068_v50, %v14272_v0 }
 0xdf9   : > { %7226 = vst.msk [vmem:[#allocation2 + $0x18] sm:$0xff] %vm840_vm1, %v15011_v15 }
 0xdfa   : > { %7224 = vst.msk [vmem:[#allocation2 + $0x8] sm:$0xff] %vm840_vm1, %v15016_v59  ;;  %v8924_v3 = vpop.f32.mrb[148].mxu1 }
 0xdfb   : > { %v7089_v25 = vadd.f32 %v8924_v3, %v14996_v36  ;;  %v7080_v58 = vpop.f32.mrb[149].mxu1 }
 0xdfc   : > { %v7081_v19 = vadd.f32 %v14996_v36, %v7080_v58  ;;  %v8925_v45 = vpop.f32.mrb[150].mxu1 }
 0xdfd   : > { %v15025_v11 = vadd.f32 %v7089_v25, %v14308_v54  ;;  %v7092_v34 = vadd.f32 %v8925_v45, %v14996_v36  ;;  %v7083_v0 = vpop.f32.mrb[151].mxu1  ;;  %v16423_v25 = vld [vmem:[#allocation42_spill] sm:$0xff] }
 0xdfe   : > { %v15029_v33 = vadd.f32 %v7081_v19, %v14303_v16  ;;  %v7084_v48 = vadd.f32 %v14996_v36, %v7083_v0 }
 0xdff   : > { %7229 = vst.msk [vmem:[#allocation2 + $0x30] sm:$0xff] %vm840_vm1, %v15025_v11  ;;  %v15035_v9 = vadd.f32 %v7092_v34, %v14310_v60  ;;  %v16424_v34 = vld [vmem:[#allocation20_spill] sm:$0xff] }
 0xe00   : > { %7227 = vst.msk [vmem:[#allocation2 + $0x20] sm:$0xff] %vm840_vm1, %v15029_v33  ;;  %v15040_v54 = vadd.f32 %v7084_v48, %v14312_v53 }
 0xe01   : > { %7230 = vst.msk [vmem:[#allocation2 + $0x38] sm:$0xff] %vm840_vm1, %v15035_v9 }
 0xe02   : > { %7228 = vst.msk [vmem:[#allocation2 + $0x28] sm:$0xff] %vm840_vm1, %v15040_v54 }
 0xe03   : > { %v8928_v16 = vpop.f32.mrb[152].mxu1 }
 0xe04   : > { %v7105_v2 = vadd.f32 %v8928_v16, %v14996_v36  ;;  %v7096_v49 = vpop.f32.mrb[153].mxu1  ;;  %v16425_v16 = vld [vmem:[#allocation87_spill] sm:$0xff] }
 0xe05   : > { %v7097_v29 = vadd.f32 %v14996_v36, %v7096_v49  ;;  %v8929_v60 = vpop.f32.mrb[154].mxu1  ;;  %v16426_v49 = vld [vmem:[#allocation140_spill] sm:$0xff] }
 0xe06   : > { %v15049_v43 = vadd.f32 %v7105_v2, %v14346_v55  ;;  %v7108_v41 = vadd.f32 %v8929_v60, %v14996_v36  ;;  %v7099_v53 = vpop.f32.mrb[155].mxu1 }
 0xe07   : > { %v15053_v46 = vadd.f32 %v7097_v29, %v14341_v17  ;;  %v7100_v14 = vadd.f32 %v14996_v36, %v7099_v53 }
 0xe08   : > { %7233 = vst.msk [vmem:[#allocation2 + $0x50] sm:$0xff] %vm840_vm1, %v15049_v43  ;;  %v15059_v37 = vadd.f32 %v7108_v41, %v14348_v8 }
 0xe09   : > { %7231 = vst.msk [vmem:[#allocation2 + $0x40] sm:$0xff] %vm840_vm1, %v15053_v46  ;;  %v15064_v55 = vadd.f32 %v7100_v14, %v14350_v13 }
 0xe0a   : > { %7234 = vst.msk [vmem:[#allocation2 + $0x58] sm:$0xff] %vm840_vm1, %v15059_v37 }
 0xe0b   : > { %7232 = vst.msk [vmem:[#allocation2 + $0x48] sm:$0xff] %vm840_vm1, %v15064_v55  ;;  %v8932_v17 = vpop.f32.mrb[156].mxu1 }
 0xe0c   : > { %v7121_v47 = vadd.f32 %v8932_v17, %v14996_v36  ;;  %v7112_v57 = vpop.f32.mrb[157].mxu1 }
 0xe0d   : > { %v7113_v22 = vadd.f32 %v14996_v36, %v7112_v57  ;;  %v8933_v8 = vpop.f32.mrb[158].mxu1 }
 0xe0e   : > { %v15073_v63 = vadd.f32 %v7121_v47, %v14384_v23  ;;  %v7124_v42 = vadd.f32 %v8933_v8, %v14996_v36  ;;  %v7115_v13 = vpop.f32.mrb[159].mxu1  ;;  %v16427_v47 = vld [vmem:[#allocation81_spill] sm:$0xff] }
 0xe0f   : > { %v15077_v27 = vadd.f32 %v7113_v22, %v16416_v30  ;;  %v7116_v51 = vadd.f32 %v14996_v36, %v7115_v13 }
 0xe10   : > { %7237 = vst.msk [vmem:[#allocation2 + $0x70] sm:$0xff] %vm840_vm1, %v15073_v63  ;;  %v15083_v1 = vadd.f32 %v7124_v42, %v16417_v26  ;;  %v16428_v42 = vld [vmem:[#allocation155_spill] sm:$0xff] }
 0xe11   : > { %7235 = vst.msk [vmem:[#allocation2 + $0x60] sm:$0xff] %vm840_vm1, %v15077_v27  ;;  %v15088_v23 = vadd.f32 %v7116_v51, %v16418_v62  ;;  %v16429_v51 = vld [vmem:[#allocation119_spill] sm:$0xff]  ;;  %v16430_v62 = vld [vmem:[#allocation144_spill] sm:$0xff] }
 0xe12   : > { %7238 = vst.msk [vmem:[#allocation2 + $0x78] sm:$0xff] %vm840_vm1, %v15083_v1 }
 0xe13   : > { %7236 = vst.msk [vmem:[#allocation2 + $0x68] sm:$0xff] %vm840_vm1, %v15088_v23 }
 0xe5b   : > { %v8936_v31 = vpop.f32.mrb[160].mxu1 }
 0xe5c   : > { %v7137_v40 = vadd.f32 %v8936_v31, %v14996_v36  ;;  %v7128_v38 = vpop.f32.mrb[161].mxu1 }
 0xe5d   : > { %v7129_v18 = vadd.f32 %v14996_v36, %v7128_v38  ;;  %v8937_v39 = vpop.f32.mrb[162].mxu1 }
 0xe5e   : > { %v15097_v32 = vadd.f32 %v7137_v40, %v16419_v44  ;;  %v7140_v5 = vadd.f32 %v8937_v39, %v14996_v36  ;;  %v7131_v52 = vpop.f32.mrb[163].mxu1 }
 0xe5f   : > { %v15101_v20 = vadd.f32 %v7129_v18, %v16420_v12  ;;  %v7132_v10 = vadd.f32 %v14996_v36, %v7131_v52 }
 0xe60   : > { %7241 = vst.msk [vmem:[#allocation2 + $0x90] sm:$0xff] %vm840_vm1, %v15097_v32  ;;  %v15107_v28 = vadd.f32 %v7140_v5, %v16421_v35  ;;  %v16431_v5 = vld [vmem:[#allocation134_spill] sm:$0xff] }
 0xe61   : > { %7239 = vst.msk [vmem:[#allocation2 + $0x80] sm:$0xff] %vm840_vm1, %v15101_v20  ;;  %v15112_v24 = vadd.f32 %v7132_v10, %v16422_v21  ;;  %v16432_v35 = vld [vmem:[#allocation174_spill] sm:$0xff] }
 0xe62   : > { %7242 = vst.msk [vmem:[#allocation2 + $0x98] sm:$0xff] %vm840_vm1, %v15107_v28 }
 0xe63   : > { %7240 = vst.msk [vmem:[#allocation2 + $0x88] sm:$0xff] %vm840_vm1, %v15112_v24 }
 0xe6b   : > { %v8940_v6 = vpop.f32.mrb[164].mxu1 }
 0xe6c   : > { %v7153_v56 = vadd.f32 %v8940_v6, %v14996_v36  ;;  %v7144_v4 = vpop.f32.mrb[165].mxu1 }
 0xe6d   : > { %v7145_v50 = vadd.f32 %v14996_v36, %v7144_v4  ;;  %v8941_v3 = vpop.f32.mrb[166].mxu1 }
 0xe6e   : > { %v15121_v58 = vadd.f32 %v7153_v56, %v16423_v25  ;;  %v7156_v19 = vadd.f32 %v8941_v3, %v14996_v36  ;;  %v7147_v45 = vpop.f32.mrb[167].mxu1  ;;  %v16433_v56 = vld [vmem:[#allocation116_spill] sm:$0xff]  ;;  %v7838_v25 = vpack.c.bf16 (!%p7796_p8), %v15016_v59, %v15016_v59  ;;  %v7846_v59 = vpack.c.bf16 (!%p7796_p8), %v15064_v55, %v15064_v55 }
 0xe6f   : > { %v15125_v0 = vadd.f32 %v7145_v50, %v16424_v34  ;;  %v7148_v48 = vadd.f32 %v14996_v36, %v7147_v45  ;;  %v16434_v50 = vld [vmem:[#allocation75_spill] sm:$0xff]  ;;  %v7840_v45 = vpack.c.bf16 (!%p7796_p8), %v15011_v15, %v15011_v15  ;;  %v7841_v34 = vpack.c.bf16 (!%p7796_p8), %v15029_v33, %v15029_v33 }
 0xe70   : > { %7245 = vst.msk [vmem:[#allocation2 + $0xb0] sm:$0xff] %vm840_vm1, %v15121_v58  ;;  %v15131_v2 = vadd.f32 %v7156_v19, %v16425_v16  ;;  %v7839_v19 = vpack.c.bf16 (!%p7796_p8), %v15001_v61, %v15001_v61  ;;  %v7844_v61 = vpack.c.bf16 (!%p7796_p8), %v15035_v9, %v15035_v9  ;;  %v7845_v15 = vpack.c.bf16 (!%p7796_p8), %v15053_v46, %v15053_v46 }
 0xe71   : > { %7243 = vst.msk [vmem:[#allocation2 + $0xa0] sm:$0xff] %vm840_vm1, %v15125_v0  ;;  %v15136_v29 = vadd.f32 %v7148_v48, %v16426_v49  ;;  %v7842_v48 = vpack.c.bf16 (!%p7796_p8), %v15040_v54, %v15040_v54  ;;  %v7848_v33 = vpack.c.bf16 (!%p7796_p8), %v15059_v37, %v15059_v37  ;;  %v7849_v9 = vpack.c.bf16 (!%p7796_p8), %v15077_v27, %v15077_v27 }
 0xe72   : > { %7246 = vst.msk [vmem:[#allocation2 + $0xb8] sm:$0xff] %vm840_vm1, %v15131_v2  ;;  %v7850_v54 = vpack.c.bf16 (!%p7796_p8), %v15088_v23, %v15088_v23  ;;  %v7852_v46 = vpack.c.bf16 (!%p7796_p8), %v15083_v1, %v15083_v1  ;;  %v7853_v37 = vpack.c.bf16 (!%p7796_p8), %v15101_v20, %v15101_v20  ;;  %v7854_v55 = vpack.c.bf16 (!%p7796_p8), %v15112_v24, %v15112_v24 }
 0xe73   : > { %7244 = vst.msk [vmem:[#allocation2 + $0xa8] sm:$0xff] %vm840_vm1, %v15136_v29  ;;  %v7856_v27 = vpack.c.bf16 (!%p7796_p8), %v15107_v28, %v15107_v28  ;;  %v7857_v1 = vpack.c.bf16 (!%p7796_p8), %v15125_v0, %v15125_v0  ;;  %v7858_v23 = vpack.c.bf16 (!%p7796_p8), %v15136_v29, %v15136_v29  ;;  %v7860_v20 = vpack.c.bf16 (!%p7796_p8), %v15131_v2, %v15131_v2 }
 0xe74   : > { %v8944_v60 = vpop.f32.mrb[168].mxu1  ;;  %7389 = vst.msk [vmem:[%s10334_s2 + $0x4] sm:$0xf] (!%p7796_p8), %vm7387_vm2, %v7838_v25  ;;  %7390 = vst.msk [vmem:[%s10334_s2 + $0x8] sm:$0xf] (!%p7796_p8), %vm7387_vm2, %v7839_v19 }
 0xe75   : > { %v7169_v41 = vadd.f32 %v8944_v60, %v14996_v36  ;;  %v7160_v53 = vpop.f32.mrb[169].mxu1  ;;  %7391 = vst.msk [vmem:[%s10334_s2 + $0xc] sm:$0xf] (!%p7796_p8), %vm7387_vm2, %v7840_v45  ;;  %7392 = vst.msk [vmem:[%s10334_s2 + $0x10] sm:$0xf] (!%p7796_p8), %vm7387_vm2, %v7841_v34 }
 0xe76   : > { %v7161_v14 = vadd.f32 %v14996_v36, %v7160_v53  ;;  %v8945_v17 = vpop.f32.mrb[170].mxu1  ;;  %7393 = vst.msk [vmem:[%s10334_s2 + $0x14] sm:$0xf] (!%p7796_p8), %vm7387_vm2, %v7842_v48  ;;  %7395 = vst.msk [vmem:[%s10334_s2 + $0x1c] sm:$0xf] (!%p7796_p8), %vm7387_vm2, %v7844_v61 }
 0xe77   : > { %v15145_v57 = vadd.f32 %v7169_v41, %v16427_v47  ;;  %v7172_v22 = vadd.f32 %v8945_v17, %v14996_v36  ;;  %v7163_v8 = vpop.f32.mrb[171].mxu1  ;;  %7396 = vst.msk [vmem:[%s10334_s2 + $0x20] sm:$0xf] (!%p7796_p8), %vm7387_vm2, %v7845_v15  ;;  %7397 = vst.msk [vmem:[%s10334_s2 + $0x24] sm:$0xf] (!%p7796_p8), %vm7387_vm2, %v7846_v59 }
 0xe78   : > { %v15149_v13 = vadd.f32 %v7161_v14, %v16428_v42  ;;  %v7164_v30 = vadd.f32 %v14996_v36, %v7163_v8  ;;  %7399 = vst.msk [vmem:[%s10334_s2 + $0x2c] sm:$0xf] (!%p7796_p8), %vm7387_vm2, %v7848_v33  ;;  %7400 = vst.msk [vmem:[%s10334_s2 + $0x30] sm:$0xf] (!%p7796_p8), %vm7387_vm2, %v7849_v9 }
 0xe79   : > { %7249 = vst.msk [vmem:[#allocation2 + $0xd0] sm:$0xff] %vm840_vm1, %v15145_v57  ;;  %v15155_v26 = vadd.f32 %v7172_v22, %v16429_v51 }
 0xe7a   : > { %7247 = vst.msk [vmem:[#allocation2 + $0xc0] sm:$0xff] %vm840_vm1, %v15149_v13  ;;  %v15160_v31 = vadd.f32 %v7164_v30, %v16430_v62  ;;  %v7861_v28 = vpack.c.bf16 (!%p7796_p8), %v15149_v13, %v15149_v13 }
 0xe7b   : > { %7250 = vst.msk [vmem:[#allocation2 + $0xd8] sm:$0xff] %vm840_vm1, %v15155_v26  ;;  %v7864_v0 = vpack.c.bf16 (!%p7796_p8), %v15155_v26, %v15155_v26 }
 0xe7c   : > { %7248 = vst.msk [vmem:[#allocation2 + $0xc8] sm:$0xff] %vm840_vm1, %v15160_v31  ;;  %v7862_v24 = vpack.c.bf16 (!%p7796_p8), %v15160_v31, %v15160_v31 }
 0xe7d   : > { %7401 = vst.msk [vmem:[%s10334_s2 + $0x34] sm:$0xf] (!%p7796_p8), %vm7387_vm2, %v7850_v54  ;;  %7403 = vst.msk [vmem:[%s10334_s2 + $0x3c] sm:$0xf] (!%p7796_p8), %vm7387_vm2, %v7852_v46 }
 0xe7e   : > { %7404 = vst.msk [vmem:[%s10334_s2 + $0x40] sm:$0xf] (!%p7796_p8), %vm7387_vm2, %v7853_v37  ;;  %7405 = vst.msk [vmem:[%s10334_s2 + $0x44] sm:$0xf] (!%p7796_p8), %vm7387_vm2, %v7854_v55 }
 0xe7f   : > { %7407 = vst.msk [vmem:[%s10334_s2 + $0x4c] sm:$0xf] (!%p7796_p8), %vm7387_vm2, %v7856_v27  ;;  %7408 = vst.msk [vmem:[%s10334_s2 + $0x50] sm:$0xf] (!%p7796_p8), %vm7387_vm2, %v7857_v1 }
 0xe80   : > { %7409 = vst.msk [vmem:[%s10334_s2 + $0x54] sm:$0xf] (!%p7796_p8), %vm7387_vm2, %v7858_v23  ;;  %7411 = vst.msk [vmem:[%s10334_s2 + $0x5c] sm:$0xf] (!%p7796_p8), %vm7387_vm2, %v7860_v20 }
 0xe81   : > { %7412 = vst.msk [vmem:[%s10334_s2 + $0x60] sm:$0xf] (!%p7796_p8), %vm7387_vm2, %v7861_v28  ;;  %7413 = vst.msk [vmem:[%s10334_s2 + $0x64] sm:$0xf] (!%p7796_p8), %vm7387_vm2, %v7862_v24 }
 0xe82   : > { %7415 = vst.msk [vmem:[%s10334_s2 + $0x6c] sm:$0xf] (!%p7796_p8), %vm7387_vm2, %v7864_v0 }
 0xe83   : > { %v8948_v40 = vpop.f32.mrb[172].mxu1 }
 0xe84   : > { %v7185_v38 = vadd.f32 %v8948_v40, %v14996_v36  ;;  %v7176_v18 = vpop.f32.mrb[173].mxu1 }
 0xe85   : > { %v7177_v39 = vadd.f32 %v14996_v36, %v7176_v18  ;;  %v8949_v44 = vpop.f32.mrb[174].mxu1  ;;  %7258 = sbr.rel (%p7796_p8) target bundleno = 3730 (0xe92), region = 80 }
 0xe86   : > { %v15169_v52 = vadd.f32 %v7185_v38, %v16431_v5  ;;  %v7188_v12 = vadd.f32 %v8949_v44, %v14996_v36  ;;  %v7179_v10 = vpop.f32.mrb[175].mxu1 }
 0xe87   : > { %v15173_v21 = vadd.f32 %v7177_v39, %v16432_v35  ;;  %v7180_v6 = vadd.f32 %v14996_v36, %v7179_v10  ;;  %v7837_v36 = vpack.c.bf16 (!%p7796_p8), %v15005_v7, %v15005_v7  ;;  %v7843_v7 = vpack.c.bf16 (!%p7796_p8), %v15025_v11, %v15025_v11 }
 0xe88   : > { %7253 = vst.msk [vmem:[#allocation2 + $0xf0] sm:$0xff] %vm840_vm1, %v15169_v52  ;;  %v15179_v4 = vadd.f32 %v7188_v12, %v16433_v56  ;;  %v7847_v11 = vpack.c.bf16 (!%p7796_p8), %v15049_v43, %v15049_v43  ;;  %v7851_v43 = vpack.c.bf16 (!%p7796_p8), %v15073_v63, %v15073_v63  ;;  %v7855_v63 = vpack.c.bf16 (!%p7796_p8), %v15097_v32, %v15097_v32 }
 0xe89   : > { %7251 = vst.msk [vmem:[#allocation2 + $0xe0] sm:$0xff] %vm840_vm1, %v15173_v21  ;;  %v15184_v3 = vadd.f32 %v7180_v6, %v16434_v50  ;;  %v7859_v32 = vpack.c.bf16 (!%p7796_p8), %v15121_v58, %v15121_v58  ;;  %v7863_v58 = vpack.c.bf16 (!%p7796_p8), %v15145_v57, %v15145_v57  ;;  %v7865_v16 = vpack.c.bf16 (!%p7796_p8), %v15173_v21, %v15173_v21 }
 0xe8a   : > { %7254 = vst.msk [vmem:[#allocation2 + $0xf8] sm:$0xff] %vm840_vm1, %v15179_v4  ;;  %v7867_v49 = vpack.c.bf16 (!%p7796_p8), %v15169_v52, %v15169_v52  ;;  %v7868_v29 = vpack.c.bf16 (!%p7796_p8), %v15179_v4, %v15179_v4 }
 0xe8b   : > { %7252 = vst.msk [vmem:[#allocation2 + $0xe8] sm:$0xff] %vm840_vm1, %v15184_v3  ;;  %v7866_v2 = vpack.c.bf16 (!%p7796_p8), %v15184_v3, %v15184_v3 }
 0xe8c   : > { %7388 = vst.msk [vmem:[%s10334_s2] sm:$0xf] %vm7387_vm2, %v7837_v36  ;;  %7394 = vst.msk [vmem:[%s10334_s2 + $0x18] sm:$0xf] %vm7387_vm2, %v7843_v7 }
 0xe8d   : > { %7398 = vst.msk [vmem:[%s10334_s2 + $0x28] sm:$0xf] %vm7387_vm2, %v7847_v11  ;;  %7402 = vst.msk [vmem:[%s10334_s2 + $0x38] sm:$0xf] %vm7387_vm2, %v7851_v43 }
 0xe8e   : > { %7406 = vst.msk [vmem:[%s10334_s2 + $0x48] sm:$0xf] %vm7387_vm2, %v7855_v63  ;;  %7410 = vst.msk [vmem:[%s10334_s2 + $0x58] sm:$0xf] %vm7387_vm2, %v7859_v32 }
 0xe8f   : > { %7414 = vst.msk [vmem:[%s10334_s2 + $0x68] sm:$0xf] %vm7387_vm2, %v7863_v58  ;;  %7416 = vst.msk [vmem:[%s10334_s2 + $0x70] sm:$0xf] %vm7387_vm2, %v7865_v16 }
 0xe90   : > { %7417 = vst.msk [vmem:[%s10334_s2 + $0x74] sm:$0xf] %vm7387_vm2, %v7866_v2  ;;  %7418 = vst.msk [vmem:[%s10334_s2 + $0x78] sm:$0xf] %vm7387_vm2, %v7867_v49 }
 0xe91   : > { %7419 = vst.msk [vmem:[%s10334_s2 + $0x7c] sm:$0xf] %vm7387_vm2, %v7868_v29 }
 0xe92 PF: > { %s16436_s27 = sld [smem:[#allocation6_spill]]  ;;  %s16437_s25 = sld [smem:[#allocation4_spill]] }
 0xe93   : > { %s16438_s26 = sld [smem:[#allocation5_spill]]  ;;  %s16440_s28 = sld [smem:[#allocation8_spill]] }
 0xe98   : > { %s23_s29 = sadd.s32 1, %s16436_s27   ;;  %s16439_s27 = sld [smem:[#allocation7_spill]] }
 0xe99   : > { %p20_p9 = scmp.ge.s32.totalorder %s23_s29, 6  }
 0xe9b   :  { %22 = sbr.rel (!%p20_p9) target bundleno = 6 (0x6), region = 146 }

</bundles_post_ra>
